<compile_context>
chip_gen: v7x
topology: tpu7x:2x2x1
jax: 0.10.0
libtpu: 0.0.40
codegen_flags: <defaults>
</compile_context>

<pallas_src>
import math
from functools import partial

import numpy as np
import jax
import jax.numpy as jnp
from jax.experimental import pallas as pl
from jax.experimental.pallas import tpu as pltpu


# ----- "settings" module from the reference code (small, deterministic) -----
class settings:
    channel = 4
    scale_num = 4      # full 4-scale path of Inner_scale_connection_block
    conv_num = 2
    Num_encoder = 2


# =============================== Pallas kernel ===============================
def _encoder_kernel(x_ref,
                    w3_ref, b3_ref, wf2c_ref, wf4c_ref, bfus_ref,
                    wout0_ref, wout1_ref, bout_ref,
                    m_r1_ref, m_r2_ref, m_r4_ref, m_r8_ref,
                    p_r1_ref, p_r2_ref, p_r4_ref,
                    u_r8_ref, u_r4_ref, u_r2_ref,
                    out_ref, feat0_ref, feat1_ref,
                    *, W):
    """Whole Encoder forward, fully VMEM-resident.

    Activations are (C, B*h*w) values; n = b*h*w + i*w + j (row-major spatial).
    """
    CONV_NUM = settings.conv_num

    def shifted(v, s):
        # y[:, n] = v[:, (n + s) % N]  (static s; wrap positions are masked later)
        n = v.shape[1]
        s = s % n
        if s == 0:
            return v
        return jnp.concatenate([v[:, s:], v[:, :s]], axis=1)

    def lrelu(v):
        return jnp.where(v >= 0, v, 0.2 * v)

    def mm(a, b):
        return jnp.dot(a, b, preferred_element_type=jnp.float32)

    def conv3x3(v, w2, b, mask, row_w):
        # Conv(3, 1, 1) + LeakyReLU(0.2) on the flattened layout:
        # 9 masked lane-rolls -> (9C, N) patch stack -> one MXU matmul.
        pieces = []
        k = 0
        for dy in (-1, 0, 1):
            for dx in (-1, 0, 1):
                pieces.append(shifted(v, dy * row_w + dx) * mask[k:k + 1, :])
                k += 1
        patches = jnp.concatenate(pieces, axis=0)            # (9*C, N)
        return lrelu(mm(w2, patches) + b)

    def conv1x1(v, w, b):
        return lrelu(mm(w, v) + b)

    def winmax2(v, row_w):
        # 2x2 windowed max; valid at even (i, j) positions (compacted by a 0/1 matmul).
        a = jnp.maximum(v, shifted(v, 1))
        return jnp.maximum(a, shifted(a, row_w))

    # static tables (boundary masks, pool selectors, upsample operators)
    m_r1 = m_r1_ref[...]; m_r2 = m_r2_ref[...]; m_r4 = m_r4_ref[...]; m_r8 = m_r8_ref[...]
    p_r1 = p_r1_ref[...]; p_r2 = p_r2_ref[...]; p_r4 = p_r4_ref[...]
    u_r8 = u_r8_ref[...]; u_r4 = u_r4_ref[...]; u_r2 = u_r2_ref[...]

    def scale_block(x, u):
        # ---- multi-scale max pooling (pool4 = pool2 o pool2, pool8 = pool2^3) ----
        f2 = mm(winmax2(x, W), p_r1)            # (C, N/4)   half resolution
        f4 = mm(winmax2(f2, W // 2), p_r2)      # (C, N/16)  quarter resolution
        f8 = mm(winmax2(f4, W // 4), p_r4)      # (C, N/64)  eighth resolution
        f1 = x

        def c3(v, branch, i, mask, row_w):
            idx = u * 4 * CONV_NUM + branch * CONV_NUM + i
            return conv3x3(v, w3_ref[idx], b3_ref[:, idx:idx + 1], mask, row_w)

        def fuse(v, pos):   # 1x1 fusion, Cin = 2C; pos: 0=fusion84, 1=fusion42, 2=fusion21
            return conv1x1(v, wf2c_ref[u * 3 + pos],
                           bfus_ref[:, u * 4 + pos:u * 4 + pos + 1])

        # scale-8 branch (eighth resolution, 8 lanes -- stays in vregs)
        for i in range(CONV_NUM):
            f8 = c3(f8, 0, i, m_r8, W // 8)
        scale8 = f8

        # scale-4 branch
        up8_to4 = mm(scale8, u_r8)
        f4 = fuse(jnp.concatenate([f4, up8_to4], axis=0), 0)
        for i in range(CONV_NUM):
            f4 = c3(f4, 1, i, m_r4, W // 4)
        scale4 = f4

        # scale-2 branch
        up4_to2 = mm(scale4, u_r4)
        f2 = fuse(jnp.concatenate([f2, up4_to2], axis=0), 1)
        for i in range(CONV_NUM):
            f2 = c3(f2, 2, i, m_r2, W // 2)
        scale2 = f2

        # scale-1 branch (full resolution)
        up2_to1 = mm(scale2, u_r2)
        f1 = fuse(jnp.concatenate([f1, up2_to1], axis=0), 2)
        for i in range(CONV_NUM):
            f1 = c3(f1, 3, i, m_r1, W)
        scale1 = f1

        # all-scale fusion + residual
        up4_to1 = mm(up4_to2, u_r2)
        up8_to1 = mm(mm(up8_to4, u_r4), u_r2)
        cat = jnp.concatenate([scale1, up2_to1, up4_to1, up8_to1], axis=0)   # (4C, N)
        fusion_all = conv1x1(cat, wf4c_ref[u], bfus_ref[:, u * 4 + 3:u * 4 + 4])
        return fusion_all + x

    # Encoder: two scale blocks + growing 1x1 compaction, all inside one kernel.
    x0 = x_ref[...]
    tmp0 = scale_block(x0, 0)
    out0 = conv1x1(jnp.concatenate([x0, tmp0], axis=0), wout0_ref[...], bout_ref[:, 0:1])
    tmp1 = scale_block(out0, 1)
    out1 = conv1x1(jnp.concatenate([x0, tmp0, tmp1], axis=0), wout1_ref[...], bout_ref[:, 1:2])

    out_ref[...] = out1
    feat0_ref[...] = tmp0
    feat1_ref[...] = tmp1


# ============================ host-side wrapper ==============================
def encoder_forward(x, packed, tables):
    """x: (B, C, H, W) NCHW.  Returns (out, [feat0, feat1]) in NCHW."""
    B, C, H, W = x.shape
    assert settings.scale_num == 4 and settings.Num_encoder == 2
    assert H % 8 == 0 and W % 8 == 0
    N = B * H * W
    # persistent in-kernel layout: channels on sublanes, flattened spatial on lanes
    x_cn = jnp.transpose(x, (1, 0, 2, 3)).reshape(C, N)

    vmem = pl.BlockSpec(memory_space=pltpu.MemorySpace.VMEM)
    operands = (
        x_cn,
        packed["w3"], packed["b3"], packed["wf2c"], packed["wf4c"], packed["bfus"],
        packed["wout0"], packed["wout1"], packed["bout"],
        tables["mask_r1"], tables["mask_r2"], tables["mask_r4"], tables["mask_r8"],
        tables["pool_r1"], tables["pool_r2"], tables["pool_r4"],
        tables["up_r8"], tables["up_r4"], tables["up_r2"],
    )
    out_cn, f0_cn, f1_cn = pl.pallas_call(
        partial(_encoder_kernel, W=W),
        out_shape=tuple(jax.ShapeDtypeStruct((C, N), jnp.float32) for _ in range(3)),
        in_specs=[vmem] * len(operands),
        out_specs=(vmem, vmem, vmem),
    )(*operands)

    def to_nchw(a):
        return jnp.transpose(a.reshape(C, B, H, W), (1, 0, 2, 3))

    return to_nchw(out_cn), [to_nchw(f0_cn), to_nchw(f1_cn)]


# ===================== parameter packing & static tables =====================
def pack_params(params):
    """Repack per-conv params into a few stacked arrays for the fused kernel."""
    O = settings.channel
    w3, b3, wf2c, wf4c, bfus = [], [], [], [], []
    for u in range(settings.Num_encoder):
        p = params["units"][u]
        for branch in ("scale8", "scale4", "scale2", "scale1"):
            for i in range(settings.conv_num):
                w, b = p[branch][i]
                # (O, C, 3, 3) -> (O, 9C); column = ((dy+1)*3 + (dx+1)) * C + c
                w3.append(jnp.transpose(w, (0, 2, 3, 1)).reshape(O, -1))
                b3.append(b)
        for name in ("fusion84", "fusion42", "fusion21"):
            w, b = p[name]
            wf2c.append(w.reshape(O, -1))
            bfus.append(b)
        w, b = p["fusion_all"]
        wf4c.append(w.reshape(O, -1))
        bfus.append(b)
    wout, bout = [], []
    for u in range(settings.Num_encoder):
        w, b = params["conv1x1"][u]
        wout.append(w.reshape(O, -1))
        bout.append(b)
    return {
        "w3": jnp.stack(w3),                 # (16, O, 9C)
        "b3": jnp.stack(b3, axis=1),         # (O, 16)
        "wf2c": jnp.stack(wf2c),             # (6, O, 2C)
        "wf4c": jnp.stack(wf4c),             # (2, O, 4C)
        "bfus": jnp.stack(bfus, axis=1),     # (O, 8)
        "wout0": wout[0],                    # (O, 2C)
        "wout1": wout[1],                    # (O, 3C)
        "bout": jnp.stack(bout, axis=1),     # (O, 2)
    }


def build_tables(B, H, W):
    """Precomputed 0/1 operators for the flattened (C, B*h*w) layout:
       3x3 zero-pad boundary masks, 2x2 max-pool window-start selectors and
       2x nearest-neighbour upsample matrices.  r1/r2/r4/r8 = /1, /2, /4, /8 res."""
    def flat(b, i, j, h, w):
        return b * h * w + i * w + j

    res = {"r1": (H, W), "r2": (H // 2, W // 2), "r4": (H // 4, W // 4), "r8": (H // 8, W // 8)}
    tables = {}

    for name, (h, w) in res.items():
        n = B * h * w
        m = np.zeros((9, n), np.float32)
        k = 0
        for dy in (-1, 0, 1):
            for dx in (-1, 0, 1):
                for b in range(B):
                    for i in range(h):
                        for j in range(w):
                            if 0 <= i + dy < h and 0 <= j + dx < w:
                                m[k, flat(b, i, j, h, w)] = 1.0
                k += 1
        tables["mask_" + name] = m

    for name in ("r1", "r2", "r4"):          # pool2 selector: res -> res/2
        h, w = res[name]
        hl, wl = h // 2, w // 2
        s = np.zeros((B * h * w, B * hl * wl), np.float32)
        for b in range(B):
            for i in range(hl):
                for j in range(wl):
                    s[flat(b, 2 * i, 2 * j, h, w), flat(b, i, j, hl, wl)] = 1.0
        tables["pool_" + name] = s

    for name in ("r8", "r4", "r2"):          # nearest 2x upsample: res -> 2*res
        h, w = res[name]
        hh, wh = 2 * h, 2 * w
        uu = np.zeros((B * h * w, B * hh * wh), np.float32)
        for b in range(B):
            for i in range(hh):
                for j in range(wh):
                    uu[flat(b, i // 2, j // 2, h, w), flat(b, i, j, hh, wh)] = 1.0
        tables["up_" + name] = uu

    return {k: jnp.asarray(v) for k, v in tables.items()}


# --------------------- parameter init (deterministic) ------------------------
def _conv_params(key, out_c, in_c, k):
    kw, kb = jax.random.split(key)
    fan_in = in_c * k * k
    bound = 1.0 / math.sqrt(fan_in)
    w = jax.random.uniform(kw, (out_c, in_c, k, k), jnp.float32, -bound, bound)
    b = jax.random.uniform(kb, (out_c,), jnp.float32, -bound, bound)
    return (w, b)


def init_scale_block_params(key):
    C = settings.channel
    keys = iter(jax.random.split(key, 4 * settings.conv_num + 4))
    p = {}
    for name in ("scale1", "scale2", "scale4", "scale8"):
        p[name] = [_conv_params(next(keys), C, C, 3) for _ in range(settings.conv_num)]
    p["fusion84"] = _conv_params(next(keys), C, 2 * C, 1)
    p["fusion42"] = _conv_params(next(keys), C, 2 * C, 1)
    p["fusion21"] = _conv_params(next(keys), C, 2 * C, 1)
    p["fusion_all"] = _conv_params(next(keys), C, 4 * C, 1)
    return p


def init_encoder_params(key):
    C = settings.channel
    params = {"units": [], "conv1x1": []}
    keys = jax.random.split(key, 2 * settings.Num_encoder)
    for i in range(settings.Num_encoder):
        params["units"].append(init_scale_block_params(keys[2 * i]))
        params["conv1x1"].append(_conv_params(keys[2 * i + 1], C, (i + 2) * C, 1))
    return params


# ---------------- plain-XLA (non-Pallas) reference for self-check -------------
def _conv_lrelu_ref(x, w, b, pad):
    y = jax.lax.conv_general_dilated(
        x, w, window_strides=(1, 1), padding=((pad, pad), (pad, pad)),
        dimension_numbers=("NCHW", "OIHW", "NCHW"))
    y = y + b.reshape(1, -1, 1, 1)
    return jnp.where(y >= 0, y, 0.2 * y)


def _maxpool_ref(x, k):
    B, C, H, W = x.shape
    return x.reshape(B, C, H // k, k, W // k, k).max(axis=(3, 5))


def _upsample_ref(x, h, w):
    return jnp.repeat(jnp.repeat(x, h // x.shape[2], axis=2), w // x.shape[3], axis=3)


def _scale_block_ref(x, p):
    h1, w1 = x.shape[2:]
    feature8 = _maxpool_ref(x, 8)
    feature4 = _maxpool_ref(x, 4)
    h4, w4 = feature4.shape[2:]
    feature2 = _maxpool_ref(x, 2)
    h2, w2 = feature2.shape[2:]
    feature1 = x
    for i in range(settings.conv_num):
        feature8 = _conv_lrelu_ref(feature8, *p["scale8"][i], pad=1)
    scale8 = feature8
    feature4 = _conv_lrelu_ref(
        jnp.concatenate([feature4, _upsample_ref(scale8, h4, w4)], axis=1), *p["fusion84"], pad=0)
    for i in range(settings.conv_num):
        feature4 = _conv_lrelu_ref(feature4, *p["scale4"][i], pad=1)
    scale4 = feature4
    feature2 = _conv_lrelu_ref(
        jnp.concatenate([feature2, _upsample_ref(scale4, h2, w2)], axis=1), *p["fusion42"], pad=0)
    for i in range(settings.conv_num):
        feature2 = _conv_lrelu_ref(feature2, *p["scale2"][i], pad=1)
    scale2 = feature2
    feature1 = _conv_lrelu_ref(
        jnp.concatenate([feature1, _upsample_ref(scale2, h1, w1)], axis=1), *p["fusion21"], pad=0)
    for i in range(settings.conv_num):
        feature1 = _conv_lrelu_ref(feature1, *p["scale1"][i], pad=1)
    scale1 = feature1
    fusion_all = _conv_lrelu_ref(
        jnp.concatenate([scale1,
                         _upsample_ref(scale2, h1, w1),
                         _upsample_ref(scale4, h1, w1),
                         _upsample_ref(scale8, h1, w1)], axis=1), *p["fusion_all"], pad=0)
    return fusion_all + x


def _encoder_ref(x, params):
    cat = [x]
    out = x
    feats = []
    for i in range(settings.Num_encoder):
        tmp = _scale_block_ref(out, params["units"][i])
        feats.append(tmp)
        cat.append(tmp)
        out = _conv_lrelu_ref(jnp.concatenate(cat, axis=1), *params["conv1x1"][i], pad=0)
    return out, feats


def _rel_err(a, b):
    return float(jnp.linalg.norm(a - b) / (jnp.linalg.norm(b) + 1e-12))


# =================================== main ====================================
if __name__ == "__main__":
    key = jax.random.PRNGKey(0)
    k_param, k_x = jax.random.split(key)

    params = init_encoder_params(k_param)
    x = jax.random.normal(k_x, (2, settings.channel, 16, 16), jnp.float32)

    packed = pack_params(params)
    tables = build_tables(x.shape[0], x.shape[2], x.shape[3])

    fwd = jax.jit(encoder_forward)
    out, feats = fwd(x, packed, tables)
    out = jax.block_until_ready(out)
    feats = [jax.block_until_ready(f) for f in feats]

    assert out.shape == (2, settings.channel, 16, 16)
    assert len(feats) == settings.Num_encoder
    for f in feats:
        assert f.shape == (2, settings.channel, 16, 16)
    assert bool(jnp.all(jnp.isfinite(out)))

    # structural correctness check against an independent plain-XLA reference
    ref_out, ref_feats = jax.jit(_encoder_ref)(x, params)
    assert _rel_err(out, ref_out) < 2e-2, _rel_err(out, ref_out)
    for f, rf in zip(feats, ref_feats):
        assert _rel_err(f, rf) < 2e-2, _rel_err(f, rf)

    print("KERNEL_OK")
</pallas_src>

<mosaic_0001>
module attributes {stable_mosaic.version = 11 : i64} {
  func.func @_encoder_kernel(%arg0: memref<4x512xf32, #tpu.memory_space<vmem>>, %arg1: memref<16x4x36xf32, #tpu.memory_space<vmem>>, %arg2: memref<4x16xf32, #tpu.memory_space<vmem>>, %arg3: memref<6x4x8xf32, #tpu.memory_space<vmem>>, %arg4: memref<2x4x16xf32, #tpu.memory_space<vmem>>, %arg5: memref<4x8xf32, #tpu.memory_space<vmem>>, %arg6: memref<4x8xf32, #tpu.memory_space<vmem>>, %arg7: memref<4x12xf32, #tpu.memory_space<vmem>>, %arg8: memref<4x2xf32, #tpu.memory_space<vmem>>, %arg9: memref<9x512xf32, #tpu.memory_space<vmem>>, %arg10: memref<9x128xf32, #tpu.memory_space<vmem>>, %arg11: memref<9x32xf32, #tpu.memory_space<vmem>>, %arg12: memref<9x8xf32, #tpu.memory_space<vmem>>, %arg13: memref<512x128xf32, #tpu.memory_space<vmem>>, %arg14: memref<128x32xf32, #tpu.memory_space<vmem>>, %arg15: memref<32x8xf32, #tpu.memory_space<vmem>>, %arg16: memref<8x32xf32, #tpu.memory_space<vmem>>, %arg17: memref<32x128xf32, #tpu.memory_space<vmem>>, %arg18: memref<128x512xf32, #tpu.memory_space<vmem>>, %arg19: memref<4x512xf32, #tpu.memory_space<vmem>>, %arg20: memref<4x512xf32, #tpu.memory_space<vmem>>, %arg21: memref<4x512xf32, #tpu.memory_space<vmem>>) attributes {dimension_semantics = [], scalar_prefetch = 0 : i64, scratch_operands = 0 : i64, tpu.core_type = #tpu.core_type<tc>} {
    %c0 = arith.constant 0 : index
    %c0_0 = arith.constant 0 : index
    %0 = vector.load %arg9[%c0, %c0_0] : memref<9x512xf32, #tpu.memory_space<vmem>>, vector<9x512xf32>
    %c0_1 = arith.constant 0 : index
    %c0_2 = arith.constant 0 : index
    %1 = vector.load %arg10[%c0_1, %c0_2] : memref<9x128xf32, #tpu.memory_space<vmem>>, vector<9x128xf32>
    %c0_3 = arith.constant 0 : index
    %c0_4 = arith.constant 0 : index
    %2 = vector.load %arg11[%c0_3, %c0_4] : memref<9x32xf32, #tpu.memory_space<vmem>>, vector<9x32xf32>
    %c0_5 = arith.constant 0 : index
    %c0_6 = arith.constant 0 : index
    %3 = vector.load %arg12[%c0_5, %c0_6] : memref<9x8xf32, #tpu.memory_space<vmem>>, vector<9x8xf32>
    %c0_7 = arith.constant 0 : index
    %c0_8 = arith.constant 0 : index
    %4 = vector.load %arg13[%c0_7, %c0_8] : memref<512x128xf32, #tpu.memory_space<vmem>>, vector<512x128xf32>
    %c0_9 = arith.constant 0 : index
    %c0_10 = arith.constant 0 : index
    %5 = vector.load %arg14[%c0_9, %c0_10] : memref<128x32xf32, #tpu.memory_space<vmem>>, vector<128x32xf32>
    %c0_11 = arith.constant 0 : index
    %c0_12 = arith.constant 0 : index
    %6 = vector.load %arg15[%c0_11, %c0_12] : memref<32x8xf32, #tpu.memory_space<vmem>>, vector<32x8xf32>
    %c0_13 = arith.constant 0 : index
    %c0_14 = arith.constant 0 : index
    %7 = vector.load %arg16[%c0_13, %c0_14] : memref<8x32xf32, #tpu.memory_space<vmem>>, vector<8x32xf32>
    %c0_15 = arith.constant 0 : index
    %c0_16 = arith.constant 0 : index
    %8 = vector.load %arg17[%c0_15, %c0_16] : memref<32x128xf32, #tpu.memory_space<vmem>>, vector<32x128xf32>
    %c0_17 = arith.constant 0 : index
    %c0_18 = arith.constant 0 : index
    %9 = vector.load %arg18[%c0_17, %c0_18] : memref<128x512xf32, #tpu.memory_space<vmem>>, vector<128x512xf32>
    %c0_19 = arith.constant 0 : index
    %c0_20 = arith.constant 0 : index
    %10 = vector.load %arg0[%c0_19, %c0_20] : memref<4x512xf32, #tpu.memory_space<vmem>>, vector<4x512xf32>
    %11 = vector.extract_strided_slice %10 {offsets = [0, 1], sizes = [4, 511], strides = [1, 1]} : vector<4x512xf32> to vector<4x511xf32>
    %12 = vector.extract_strided_slice %10 {offsets = [0, 0], sizes = [4, 1], strides = [1, 1]} : vector<4x512xf32> to vector<4x1xf32>
    %13 = tpu.concatenate %11, %12 in 1 : vector<4x511xf32>, vector<4x1xf32> -> vector<4x512xf32>
    %14 = arith.maximumf %10, %13 : vector<4x512xf32>
    %15 = vector.extract_strided_slice %14 {offsets = [0, 16], sizes = [4, 496], strides = [1, 1]} : vector<4x512xf32> to vector<4x496xf32>
    %16 = vector.extract_strided_slice %14 {offsets = [0, 0], sizes = [4, 16], strides = [1, 1]} : vector<4x512xf32> to vector<4x16xf32>
    %17 = tpu.concatenate %15, %16 in 1 : vector<4x496xf32>, vector<4x16xf32> -> vector<4x512xf32>
    %18 = arith.maximumf %14, %17 : vector<4x512xf32>
    %cst = arith.constant dense<0.000000e+00> : vector<4x128xf32>
    %19 = tpu.matmul %18, %4, %cst {dimension_numbers = #tpu.dot_dimension_numbers<[1], [0], [0], [1], [0, 0, 1, 1], [], []>} : vector<4x512xf32>, vector<512x128xf32>, vector<4x128xf32> -> vector<4x128xf32>
    %20 = vector.extract_strided_slice %19 {offsets = [0, 1], sizes = [4, 127], strides = [1, 1]} : vector<4x128xf32> to vector<4x127xf32>
    %21 = vector.extract_strided_slice %19 {offsets = [0, 0], sizes = [4, 1], strides = [1, 1]} : vector<4x128xf32> to vector<4x1xf32>
    %22 = tpu.concatenate %20, %21 in 1 : vector<4x127xf32>, vector<4x1xf32> -> vector<4x128xf32>
    %23 = arith.maximumf %19, %22 : vector<4x128xf32>
    %24 = vector.extract_strided_slice %23 {offsets = [0, 8], sizes = [4, 120], strides = [1, 1]} : vector<4x128xf32> to vector<4x120xf32>
    %25 = vector.extract_strided_slice %23 {offsets = [0, 0], sizes = [4, 8], strides = [1, 1]} : vector<4x128xf32> to vector<4x8xf32>
    %26 = tpu.concatenate %24, %25 in 1 : vector<4x120xf32>, vector<4x8xf32> -> vector<4x128xf32>
    %27 = arith.maximumf %23, %26 : vector<4x128xf32>
    %cst_21 = arith.constant dense<0.000000e+00> : vector<4x32xf32>
    %28 = tpu.matmul %27, %5, %cst_21 {dimension_numbers = #tpu.dot_dimension_numbers<[1], [0], [0], [1], [0, 0, 1, 1], [], []>} : vector<4x128xf32>, vector<128x32xf32>, vector<4x32xf32> -> vector<4x32xf32>
    %29 = vector.extract_strided_slice %28 {offsets = [0, 1], sizes = [4, 31], strides = [1, 1]} : vector<4x32xf32> to vector<4x31xf32>
    %30 = vector.extract_strided_slice %28 {offsets = [0, 0], sizes = [4, 1], strides = [1, 1]} : vector<4x32xf32> to vector<4x1xf32>
    %31 = tpu.concatenate %29, %30 in 1 : vector<4x31xf32>, vector<4x1xf32> -> vector<4x32xf32>
    %32 = arith.maximumf %28, %31 : vector<4x32xf32>
    %33 = vector.extract_strided_slice %32 {offsets = [0, 4], sizes = [4, 28], strides = [1, 1]} : vector<4x32xf32> to vector<4x28xf32>
    %34 = vector.extract_strided_slice %32 {offsets = [0, 0], sizes = [4, 4], strides = [1, 1]} : vector<4x32xf32> to vector<4x4xf32>
    %35 = tpu.concatenate %33, %34 in 1 : vector<4x28xf32>, vector<4x4xf32> -> vector<4x32xf32>
    %36 = arith.maximumf %32, %35 : vector<4x32xf32>
    %cst_22 = arith.constant dense<0.000000e+00> : vector<4x8xf32>
    %37 = tpu.matmul %36, %6, %cst_22 {dimension_numbers = #tpu.dot_dimension_numbers<[1], [0], [0], [1], [0, 0, 1, 1], [], []>} : vector<4x32xf32>, vector<32x8xf32>, vector<4x8xf32> -> vector<4x8xf32>
    %c0_23 = arith.constant 0 : index
    %c0_24 = arith.constant 0 : index
    %c0_25 = arith.constant 0 : index
    %38 = vector.load %arg1[%c0_23, %c0_24, %c0_25] : memref<16x4x36xf32, #tpu.memory_space<vmem>>, vector<1x4x36xf32>
    %39 = vector.shape_cast %38 : vector<1x4x36xf32> to vector<4x36xf32>
    %c0_26 = arith.constant 0 : index
    %c0_27 = arith.constant 0 : index
    %40 = vector.load %arg2[%c0_26, %c0_27] : memref<4x16xf32, #tpu.memory_space<vmem>>, vector<4x1xf32>
    %41 = vector.extract_strided_slice %37 {offsets = [0, 5], sizes = [4, 3], strides = [1, 1]} : vector<4x8xf32> to vector<4x3xf32>
    %42 = vector.extract_strided_slice %37 {offsets = [0, 0], sizes = [4, 5], strides = [1, 1]} : vector<4x8xf32> to vector<4x5xf32>
    %43 = tpu.concatenate %41, %42 in 1 : vector<4x3xf32>, vector<4x5xf32> -> vector<4x8xf32>
    %44 = vector.extract_strided_slice %3 {offsets = [0, 0], sizes = [1, 8], strides = [1, 1]} : vector<9x8xf32> to vector<1x8xf32>
    %45 = vector.broadcast %44 : vector<1x8xf32> to vector<4x8xf32>
    %46 = arith.mulf %43, %45 : vector<4x8xf32>
    %47 = vector.extract_strided_slice %37 {offsets = [0, 6], sizes = [4, 2], strides = [1, 1]} : vector<4x8xf32> to vector<4x2xf32>
    %48 = vector.extract_strided_slice %37 {offsets = [0, 0], sizes = [4, 6], strides = [1, 1]} : vector<4x8xf32> to vector<4x6xf32>
    %49 = tpu.concatenate %47, %48 in 1 : vector<4x2xf32>, vector<4x6xf32> -> vector<4x8xf32>
    %50 = vector.extract_strided_slice %3 {offsets = [1, 0], sizes = [1, 8], strides = [1, 1]} : vector<9x8xf32> to vector<1x8xf32>
    %51 = vector.broadcast %50 : vector<1x8xf32> to vector<4x8xf32>
    %52 = arith.mulf %49, %51 : vector<4x8xf32>
    %53 = vector.extract_strided_slice %37 {offsets = [0, 7], sizes = [4, 1], strides = [1, 1]} : vector<4x8xf32> to vector<4x1xf32>
    %54 = vector.extract_strided_slice %37 {offsets = [0, 0], sizes = [4, 7], strides = [1, 1]} : vector<4x8xf32> to vector<4x7xf32>
    %55 = tpu.concatenate %53, %54 in 1 : vector<4x1xf32>, vector<4x7xf32> -> vector<4x8xf32>
    %56 = vector.extract_strided_slice %3 {offsets = [2, 0], sizes = [1, 8], strides = [1, 1]} : vector<9x8xf32> to vector<1x8xf32>
    %57 = vector.broadcast %56 : vector<1x8xf32> to vector<4x8xf32>
    %58 = arith.mulf %55, %57 : vector<4x8xf32>
    %59 = vector.extract_strided_slice %37 {offsets = [0, 7], sizes = [4, 1], strides = [1, 1]} : vector<4x8xf32> to vector<4x1xf32>
    %60 = vector.extract_strided_slice %37 {offsets = [0, 0], sizes = [4, 7], strides = [1, 1]} : vector<4x8xf32> to vector<4x7xf32>
    %61 = tpu.concatenate %59, %60 in 1 : vector<4x1xf32>, vector<4x7xf32> -> vector<4x8xf32>
    %62 = vector.extract_strided_slice %3 {offsets = [3, 0], sizes = [1, 8], strides = [1, 1]} : vector<9x8xf32> to vector<1x8xf32>
    %63 = vector.broadcast %62 : vector<1x8xf32> to vector<4x8xf32>
    %64 = arith.mulf %61, %63 : vector<4x8xf32>
    %65 = vector.extract_strided_slice %3 {offsets = [4, 0], sizes = [1, 8], strides = [1, 1]} : vector<9x8xf32> to vector<1x8xf32>
    %66 = vector.broadcast %65 : vector<1x8xf32> to vector<4x8xf32>
    %67 = arith.mulf %37, %66 : vector<4x8xf32>
    %68 = vector.extract_strided_slice %37 {offsets = [0, 1], sizes = [4, 7], strides = [1, 1]} : vector<4x8xf32> to vector<4x7xf32>
    %69 = vector.extract_strided_slice %37 {offsets = [0, 0], sizes = [4, 1], strides = [1, 1]} : vector<4x8xf32> to vector<4x1xf32>
    %70 = tpu.concatenate %68, %69 in 1 : vector<4x7xf32>, vector<4x1xf32> -> vector<4x8xf32>
    %71 = vector.extract_strided_slice %3 {offsets = [5, 0], sizes = [1, 8], strides = [1, 1]} : vector<9x8xf32> to vector<1x8xf32>
    %72 = vector.broadcast %71 : vector<1x8xf32> to vector<4x8xf32>
    %73 = arith.mulf %70, %72 : vector<4x8xf32>
    %74 = vector.extract_strided_slice %37 {offsets = [0, 1], sizes = [4, 7], strides = [1, 1]} : vector<4x8xf32> to vector<4x7xf32>
    %75 = vector.extract_strided_slice %37 {offsets = [0, 0], sizes = [4, 1], strides = [1, 1]} : vector<4x8xf32> to vector<4x1xf32>
    %76 = tpu.concatenate %74, %75 in 1 : vector<4x7xf32>, vector<4x1xf32> -> vector<4x8xf32>
    %77 = vector.extract_strided_slice %3 {offsets = [6, 0], sizes = [1, 8], strides = [1, 1]} : vector<9x8xf32> to vector<1x8xf32>
    %78 = vector.broadcast %77 : vector<1x8xf32> to vector<4x8xf32>
    %79 = arith.mulf %76, %78 : vector<4x8xf32>
    %80 = vector.extract_strided_slice %37 {offsets = [0, 2], sizes = [4, 6], strides = [1, 1]} : vector<4x8xf32> to vector<4x6xf32>
    %81 = vector.extract_strided_slice %37 {offsets = [0, 0], sizes = [4, 2], strides = [1, 1]} : vector<4x8xf32> to vector<4x2xf32>
    %82 = tpu.concatenate %80, %81 in 1 : vector<4x6xf32>, vector<4x2xf32> -> vector<4x8xf32>
    %83 = vector.extract_strided_slice %3 {offsets = [7, 0], sizes = [1, 8], strides = [1, 1]} : vector<9x8xf32> to vector<1x8xf32>
    %84 = vector.broadcast %83 : vector<1x8xf32> to vector<4x8xf32>
    %85 = arith.mulf %82, %84 : vector<4x8xf32>
    %86 = vector.extract_strided_slice %37 {offsets = [0, 3], sizes = [4, 5], strides = [1, 1]} : vector<4x8xf32> to vector<4x5xf32>
    %87 = vector.extract_strided_slice %37 {offsets = [0, 0], sizes = [4, 3], strides = [1, 1]} : vector<4x8xf32> to vector<4x3xf32>
    %88 = tpu.concatenate %86, %87 in 1 : vector<4x5xf32>, vector<4x3xf32> -> vector<4x8xf32>
    %89 = vector.extract_strided_slice %3 {offsets = [8, 0], sizes = [1, 8], strides = [1, 1]} : vector<9x8xf32> to vector<1x8xf32>
    %90 = vector.broadcast %89 : vector<1x8xf32> to vector<4x8xf32>
    %91 = arith.mulf %88, %90 : vector<4x8xf32>
    %92 = tpu.concatenate %46, %52, %58, %64, %67, %73, %79, %85, %91 in 0 : vector<4x8xf32>, vector<4x8xf32>, vector<4x8xf32>, vector<4x8xf32>, vector<4x8xf32>, vector<4x8xf32>, vector<4x8xf32>, vector<4x8xf32>, vector<4x8xf32> -> vector<36x8xf32>
    %cst_28 = arith.constant dense<0.000000e+00> : vector<4x8xf32>
    %93 = tpu.matmul %39, %92, %cst_28 {dimension_numbers = #tpu.dot_dimension_numbers<[1], [0], [0], [1], [0, 0, 1, 1], [], []>} : vector<4x36xf32>, vector<36x8xf32>, vector<4x8xf32> -> vector<4x8xf32>
    %94 = vector.broadcast %40 : vector<4x1xf32> to vector<4x8xf32>
    %95 = arith.addf %93, %94 : vector<4x8xf32>
    %cst_29 = arith.constant 0.000000e+00 : f32
    %96 = vector.broadcast %cst_29 : f32 to vector<4x8xf32>
    %97 = arith.cmpf oge, %95, %96 : vector<4x8xf32>
    %cst_30 = arith.constant 2.000000e-01 : f32
    %98 = vector.broadcast %cst_30 : f32 to vector<4x8xf32>
    %99 = arith.mulf %98, %95 : vector<4x8xf32>
    %100 = arith.select %97, %95, %99 : vector<4x8xi1>, vector<4x8xf32>
    %c1 = arith.constant 1 : index
    %c0_31 = arith.constant 0 : index
    %c0_32 = arith.constant 0 : index
    %101 = vector.load %arg1[%c1, %c0_31, %c0_32] : memref<16x4x36xf32, #tpu.memory_space<vmem>>, vector<1x4x36xf32>
    %102 = vector.shape_cast %101 : vector<1x4x36xf32> to vector<4x36xf32>
    %c0_33 = arith.constant 0 : index
    %c1_34 = arith.constant 1 : index
    %103 = vector.load %arg2[%c0_33, %c1_34] : memref<4x16xf32, #tpu.memory_space<vmem>>, vector<4x1xf32>
    %104 = vector.extract_strided_slice %100 {offsets = [0, 5], sizes = [4, 3], strides = [1, 1]} : vector<4x8xf32> to vector<4x3xf32>
    %105 = vector.extract_strided_slice %100 {offsets = [0, 0], sizes = [4, 5], strides = [1, 1]} : vector<4x8xf32> to vector<4x5xf32>
    %106 = tpu.concatenate %104, %105 in 1 : vector<4x3xf32>, vector<4x5xf32> -> vector<4x8xf32>
    %107 = vector.extract_strided_slice %3 {offsets = [0, 0], sizes = [1, 8], strides = [1, 1]} : vector<9x8xf32> to vector<1x8xf32>
    %108 = vector.broadcast %107 : vector<1x8xf32> to vector<4x8xf32>
    %109 = arith.mulf %106, %108 : vector<4x8xf32>
    %110 = vector.extract_strided_slice %100 {offsets = [0, 6], sizes = [4, 2], strides = [1, 1]} : vector<4x8xf32> to vector<4x2xf32>
    %111 = vector.extract_strided_slice %100 {offsets = [0, 0], sizes = [4, 6], strides = [1, 1]} : vector<4x8xf32> to vector<4x6xf32>
    %112 = tpu.concatenate %110, %111 in 1 : vector<4x2xf32>, vector<4x6xf32> -> vector<4x8xf32>
    %113 = vector.extract_strided_slice %3 {offsets = [1, 0], sizes = [1, 8], strides = [1, 1]} : vector<9x8xf32> to vector<1x8xf32>
    %114 = vector.broadcast %113 : vector<1x8xf32> to vector<4x8xf32>
    %115 = arith.mulf %112, %114 : vector<4x8xf32>
    %116 = vector.extract_strided_slice %100 {offsets = [0, 7], sizes = [4, 1], strides = [1, 1]} : vector<4x8xf32> to vector<4x1xf32>
    %117 = vector.extract_strided_slice %100 {offsets = [0, 0], sizes = [4, 7], strides = [1, 1]} : vector<4x8xf32> to vector<4x7xf32>
    %118 = tpu.concatenate %116, %117 in 1 : vector<4x1xf32>, vector<4x7xf32> -> vector<4x8xf32>
    %119 = vector.extract_strided_slice %3 {offsets = [2, 0], sizes = [1, 8], strides = [1, 1]} : vector<9x8xf32> to vector<1x8xf32>
    %120 = vector.broadcast %119 : vector<1x8xf32> to vector<4x8xf32>
    %121 = arith.mulf %118, %120 : vector<4x8xf32>
    %122 = vector.extract_strided_slice %100 {offsets = [0, 7], sizes = [4, 1], strides = [1, 1]} : vector<4x8xf32> to vector<4x1xf32>
    %123 = vector.extract_strided_slice %100 {offsets = [0, 0], sizes = [4, 7], strides = [1, 1]} : vector<4x8xf32> to vector<4x7xf32>
    %124 = tpu.concatenate %122, %123 in 1 : vector<4x1xf32>, vector<4x7xf32> -> vector<4x8xf32>
    %125 = vector.extract_strided_slice %3 {offsets = [3, 0], sizes = [1, 8], strides = [1, 1]} : vector<9x8xf32> to vector<1x8xf32>
    %126 = vector.broadcast %125 : vector<1x8xf32> to vector<4x8xf32>
    %127 = arith.mulf %124, %126 : vector<4x8xf32>
    %128 = vector.extract_strided_slice %3 {offsets = [4, 0], sizes = [1, 8], strides = [1, 1]} : vector<9x8xf32> to vector<1x8xf32>
    %129 = vector.broadcast %128 : vector<1x8xf32> to vector<4x8xf32>
    %130 = arith.mulf %100, %129 : vector<4x8xf32>
    %131 = vector.extract_strided_slice %100 {offsets = [0, 1], sizes = [4, 7], strides = [1, 1]} : vector<4x8xf32> to vector<4x7xf32>
    %132 = vector.extract_strided_slice %100 {offsets = [0, 0], sizes = [4, 1], strides = [1, 1]} : vector<4x8xf32> to vector<4x1xf32>
    %133 = tpu.concatenate %131, %132 in 1 : vector<4x7xf32>, vector<4x1xf32> -> vector<4x8xf32>
    %134 = vector.extract_strided_slice %3 {offsets = [5, 0], sizes = [1, 8], strides = [1, 1]} : vector<9x8xf32> to vector<1x8xf32>
    %135 = vector.broadcast %134 : vector<1x8xf32> to vector<4x8xf32>
    %136 = arith.mulf %133, %135 : vector<4x8xf32>
    %137 = vector.extract_strided_slice %100 {offsets = [0, 1], sizes = [4, 7], strides = [1, 1]} : vector<4x8xf32> to vector<4x7xf32>
    %138 = vector.extract_strided_slice %100 {offsets = [0, 0], sizes = [4, 1], strides = [1, 1]} : vector<4x8xf32> to vector<4x1xf32>
    %139 = tpu.concatenate %137, %138 in 1 : vector<4x7xf32>, vector<4x1xf32> -> vector<4x8xf32>
    %140 = vector.extract_strided_slice %3 {offsets = [6, 0], sizes = [1, 8], strides = [1, 1]} : vector<9x8xf32> to vector<1x8xf32>
    %141 = vector.broadcast %140 : vector<1x8xf32> to vector<4x8xf32>
    %142 = arith.mulf %139, %141 : vector<4x8xf32>
    %143 = vector.extract_strided_slice %100 {offsets = [0, 2], sizes = [4, 6], strides = [1, 1]} : vector<4x8xf32> to vector<4x6xf32>
    %144 = vector.extract_strided_slice %100 {offsets = [0, 0], sizes = [4, 2], strides = [1, 1]} : vector<4x8xf32> to vector<4x2xf32>
    %145 = tpu.concatenate %143, %144 in 1 : vector<4x6xf32>, vector<4x2xf32> -> vector<4x8xf32>
    %146 = vector.extract_strided_slice %3 {offsets = [7, 0], sizes = [1, 8], strides = [1, 1]} : vector<9x8xf32> to vector<1x8xf32>
    %147 = vector.broadcast %146 : vector<1x8xf32> to vector<4x8xf32>
    %148 = arith.mulf %145, %147 : vector<4x8xf32>
    %149 = vector.extract_strided_slice %100 {offsets = [0, 3], sizes = [4, 5], strides = [1, 1]} : vector<4x8xf32> to vector<4x5xf32>
    %150 = vector.extract_strided_slice %100 {offsets = [0, 0], sizes = [4, 3], strides = [1, 1]} : vector<4x8xf32> to vector<4x3xf32>
    %151 = tpu.concatenate %149, %150 in 1 : vector<4x5xf32>, vector<4x3xf32> -> vector<4x8xf32>
    %152 = vector.extract_strided_slice %3 {offsets = [8, 0], sizes = [1, 8], strides = [1, 1]} : vector<9x8xf32> to vector<1x8xf32>
    %153 = vector.broadcast %152 : vector<1x8xf32> to vector<4x8xf32>
    %154 = arith.mulf %151, %153 : vector<4x8xf32>
    %155 = tpu.concatenate %109, %115, %121, %127, %130, %136, %142, %148, %154 in 0 : vector<4x8xf32>, vector<4x8xf32>, vector<4x8xf32>, vector<4x8xf32>, vector<4x8xf32>, vector<4x8xf32>, vector<4x8xf32>, vector<4x8xf32>, vector<4x8xf32> -> vector<36x8xf32>
    %cst_35 = arith.constant dense<0.000000e+00> : vector<4x8xf32>
    %156 = tpu.matmul %102, %155, %cst_35 {dimension_numbers = #tpu.dot_dimension_numbers<[1], [0], [0], [1], [0, 0, 1, 1], [], []>} : vector<4x36xf32>, vector<36x8xf32>, vector<4x8xf32> -> vector<4x8xf32>
    %157 = vector.broadcast %103 : vector<4x1xf32> to vector<4x8xf32>
    %158 = arith.addf %156, %157 : vector<4x8xf32>
    %cst_36 = arith.constant 0.000000e+00 : f32
    %159 = vector.broadcast %cst_36 : f32 to vector<4x8xf32>
    %160 = arith.cmpf oge, %158, %159 : vector<4x8xf32>
    %cst_37 = arith.constant 2.000000e-01 : f32
    %161 = vector.broadcast %cst_37 : f32 to vector<4x8xf32>
    %162 = arith.mulf %161, %158 : vector<4x8xf32>
    %163 = arith.select %160, %158, %162 : vector<4x8xi1>, vector<4x8xf32>
    %cst_38 = arith.constant dense<0.000000e+00> : vector<4x32xf32>
    %164 = tpu.matmul %163, %7, %cst_38 {dimension_numbers = #tpu.dot_dimension_numbers<[1], [0], [0], [1], [0, 0, 1, 1], [], []>} : vector<4x8xf32>, vector<8x32xf32>, vector<4x32xf32> -> vector<4x32xf32>
    %165 = tpu.concatenate %28, %164 in 0 : vector<4x32xf32>, vector<4x32xf32> -> vector<8x32xf32>
    %c0_39 = arith.constant 0 : index
    %c0_40 = arith.constant 0 : index
    %c0_41 = arith.constant 0 : index
    %166 = vector.load %arg3[%c0_39, %c0_40, %c0_41] : memref<6x4x8xf32, #tpu.memory_space<vmem>>, vector<1x4x8xf32>
    %167 = vector.shape_cast %166 : vector<1x4x8xf32> to vector<4x8xf32>
    %c0_42 = arith.constant 0 : index
    %c0_43 = arith.constant 0 : index
    %168 = vector.load %arg5[%c0_42, %c0_43] : memref<4x8xf32, #tpu.memory_space<vmem>>, vector<4x1xf32>
    %cst_44 = arith.constant dense<0.000000e+00> : vector<4x32xf32>
    %169 = tpu.matmul %167, %165, %cst_44 {dimension_numbers = #tpu.dot_dimension_numbers<[1], [0], [0], [1], [0, 0, 1, 1], [], []>} : vector<4x8xf32>, vector<8x32xf32>, vector<4x32xf32> -> vector<4x32xf32>
    %170 = vector.broadcast %168 : vector<4x1xf32> to vector<4x32xf32>
    %171 = arith.addf %169, %170 : vector<4x32xf32>
    %cst_45 = arith.constant 0.000000e+00 : f32
    %172 = vector.broadcast %cst_45 : f32 to vector<4x32xf32>
    %173 = arith.cmpf oge, %171, %172 : vector<4x32xf32>
    %cst_46 = arith.constant 2.000000e-01 : f32
    %174 = vector.broadcast %cst_46 : f32 to vector<4x32xf32>
    %175 = arith.mulf %174, %171 : vector<4x32xf32>
    %176 = arith.select %173, %171, %175 : vector<4x32xi1>, vector<4x32xf32>
    %c2 = arith.constant 2 : index
    %c0_47 = arith.constant 0 : index
    %c0_48 = arith.constant 0 : index
    %177 = vector.load %arg1[%c2, %c0_47, %c0_48] : memref<16x4x36xf32, #tpu.memory_space<vmem>>, vector<1x4x36xf32>
    %178 = vector.shape_cast %177 : vector<1x4x36xf32> to vector<4x36xf32>
    %c0_49 = arith.constant 0 : index
    %c2_50 = arith.constant 2 : index
    %179 = vector.load %arg2[%c0_49, %c2_50] : memref<4x16xf32, #tpu.memory_space<vmem>>, vector<4x1xf32>
    %180 = vector.extract_strided_slice %176 {offsets = [0, 27], sizes = [4, 5], strides = [1, 1]} : vector<4x32xf32> to vector<4x5xf32>
    %181 = vector.extract_strided_slice %176 {offsets = [0, 0], sizes = [4, 27], strides = [1, 1]} : vector<4x32xf32> to vector<4x27xf32>
    %182 = tpu.concatenate %180, %181 in 1 : vector<4x5xf32>, vector<4x27xf32> -> vector<4x32xf32>
    %183 = vector.extract_strided_slice %2 {offsets = [0, 0], sizes = [1, 32], strides = [1, 1]} : vector<9x32xf32> to vector<1x32xf32>
    %184 = vector.broadcast %183 : vector<1x32xf32> to vector<4x32xf32>
    %185 = arith.mulf %182, %184 : vector<4x32xf32>
    %186 = vector.extract_strided_slice %176 {offsets = [0, 28], sizes = [4, 4], strides = [1, 1]} : vector<4x32xf32> to vector<4x4xf32>
    %187 = vector.extract_strided_slice %176 {offsets = [0, 0], sizes = [4, 28], strides = [1, 1]} : vector<4x32xf32> to vector<4x28xf32>
    %188 = tpu.concatenate %186, %187 in 1 : vector<4x4xf32>, vector<4x28xf32> -> vector<4x32xf32>
    %189 = vector.extract_strided_slice %2 {offsets = [1, 0], sizes = [1, 32], strides = [1, 1]} : vector<9x32xf32> to vector<1x32xf32>
    %190 = vector.broadcast %189 : vector<1x32xf32> to vector<4x32xf32>
    %191 = arith.mulf %188, %190 : vector<4x32xf32>
    %192 = vector.extract_strided_slice %176 {offsets = [0, 29], sizes = [4, 3], strides = [1, 1]} : vector<4x32xf32> to vector<4x3xf32>
    %193 = vector.extract_strided_slice %176 {offsets = [0, 0], sizes = [4, 29], strides = [1, 1]} : vector<4x32xf32> to vector<4x29xf32>
    %194 = tpu.concatenate %192, %193 in 1 : vector<4x3xf32>, vector<4x29xf32> -> vector<4x32xf32>
    %195 = vector.extract_strided_slice %2 {offsets = [2, 0], sizes = [1, 32], strides = [1, 1]} : vector<9x32xf32> to vector<1x32xf32>
    %196 = vector.broadcast %195 : vector<1x32xf32> to vector<4x32xf32>
    %197 = arith.mulf %194, %196 : vector<4x32xf32>
    %198 = vector.extract_strided_slice %176 {offsets = [0, 31], sizes = [4, 1], strides = [1, 1]} : vector<4x32xf32> to vector<4x1xf32>
    %199 = vector.extract_strided_slice %176 {offsets = [0, 0], sizes = [4, 31], strides = [1, 1]} : vector<4x32xf32> to vector<4x31xf32>
    %200 = tpu.concatenate %198, %199 in 1 : vector<4x1xf32>, vector<4x31xf32> -> vector<4x32xf32>
    %201 = vector.extract_strided_slice %2 {offsets = [3, 0], sizes = [1, 32], strides = [1, 1]} : vector<9x32xf32> to vector<1x32xf32>
    %202 = vector.broadcast %201 : vector<1x32xf32> to vector<4x32xf32>
    %203 = arith.mulf %200, %202 : vector<4x32xf32>
    %204 = vector.extract_strided_slice %2 {offsets = [4, 0], sizes = [1, 32], strides = [1, 1]} : vector<9x32xf32> to vector<1x32xf32>
    %205 = vector.broadcast %204 : vector<1x32xf32> to vector<4x32xf32>
    %206 = arith.mulf %176, %205 : vector<4x32xf32>
    %207 = vector.extract_strided_slice %176 {offsets = [0, 1], sizes = [4, 31], strides = [1, 1]} : vector<4x32xf32> to vector<4x31xf32>
    %208 = vector.extract_strided_slice %176 {offsets = [0, 0], sizes = [4, 1], strides = [1, 1]} : vector<4x32xf32> to vector<4x1xf32>
    %209 = tpu.concatenate %207, %208 in 1 : vector<4x31xf32>, vector<4x1xf32> -> vector<4x32xf32>
    %210 = vector.extract_strided_slice %2 {offsets = [5, 0], sizes = [1, 32], strides = [1, 1]} : vector<9x32xf32> to vector<1x32xf32>
    %211 = vector.broadcast %210 : vector<1x32xf32> to vector<4x32xf32>
    %212 = arith.mulf %209, %211 : vector<4x32xf32>
    %213 = vector.extract_strided_slice %176 {offsets = [0, 3], sizes = [4, 29], strides = [1, 1]} : vector<4x32xf32> to vector<4x29xf32>
    %214 = vector.extract_strided_slice %176 {offsets = [0, 0], sizes = [4, 3], strides = [1, 1]} : vector<4x32xf32> to vector<4x3xf32>
    %215 = tpu.concatenate %213, %214 in 1 : vector<4x29xf32>, vector<4x3xf32> -> vector<4x32xf32>
    %216 = vector.extract_strided_slice %2 {offsets = [6, 0], sizes = [1, 32], strides = [1, 1]} : vector<9x32xf32> to vector<1x32xf32>
    %217 = vector.broadcast %216 : vector<1x32xf32> to vector<4x32xf32>
    %218 = arith.mulf %215, %217 : vector<4x32xf32>
    %219 = vector.extract_strided_slice %176 {offsets = [0, 4], sizes = [4, 28], strides = [1, 1]} : vector<4x32xf32> to vector<4x28xf32>
    %220 = vector.extract_strided_slice %176 {offsets = [0, 0], sizes = [4, 4], strides = [1, 1]} : vector<4x32xf32> to vector<4x4xf32>
    %221 = tpu.concatenate %219, %220 in 1 : vector<4x28xf32>, vector<4x4xf32> -> vector<4x32xf32>
    %222 = vector.extract_strided_slice %2 {offsets = [7, 0], sizes = [1, 32], strides = [1, 1]} : vector<9x32xf32> to vector<1x32xf32>
    %223 = vector.broadcast %222 : vector<1x32xf32> to vector<4x32xf32>
    %224 = arith.mulf %221, %223 : vector<4x32xf32>
    %225 = vector.extract_strided_slice %176 {offsets = [0, 5], sizes = [4, 27], strides = [1, 1]} : vector<4x32xf32> to vector<4x27xf32>
    %226 = vector.extract_strided_slice %176 {offsets = [0, 0], sizes = [4, 5], strides = [1, 1]} : vector<4x32xf32> to vector<4x5xf32>
    %227 = tpu.concatenate %225, %226 in 1 : vector<4x27xf32>, vector<4x5xf32> -> vector<4x32xf32>
    %228 = vector.extract_strided_slice %2 {offsets = [8, 0], sizes = [1, 32], strides = [1, 1]} : vector<9x32xf32> to vector<1x32xf32>
    %229 = vector.broadcast %228 : vector<1x32xf32> to vector<4x32xf32>
    %230 = arith.mulf %227, %229 : vector<4x32xf32>
    %231 = tpu.concatenate %185, %191, %197, %203, %206, %212, %218, %224, %230 in 0 : vector<4x32xf32>, vector<4x32xf32>, vector<4x32xf32>, vector<4x32xf32>, vector<4x32xf32>, vector<4x32xf32>, vector<4x32xf32>, vector<4x32xf32>, vector<4x32xf32> -> vector<36x32xf32>
    %cst_51 = arith.constant dense<0.000000e+00> : vector<4x32xf32>
    %232 = tpu.matmul %178, %231, %cst_51 {dimension_numbers = #tpu.dot_dimension_numbers<[1], [0], [0], [1], [0, 0, 1, 1], [], []>} : vector<4x36xf32>, vector<36x32xf32>, vector<4x32xf32> -> vector<4x32xf32>
    %233 = vector.broadcast %179 : vector<4x1xf32> to vector<4x32xf32>
    %234 = arith.addf %232, %233 : vector<4x32xf32>
    %cst_52 = arith.constant 0.000000e+00 : f32
    %235 = vector.broadcast %cst_52 : f32 to vector<4x32xf32>
    %236 = arith.cmpf oge, %234, %235 : vector<4x32xf32>
    %cst_53 = arith.constant 2.000000e-01 : f32
    %237 = vector.broadcast %cst_53 : f32 to vector<4x32xf32>
    %238 = arith.mulf %237, %234 : vector<4x32xf32>
    %239 = arith.select %236, %234, %238 : vector<4x32xi1>, vector<4x32xf32>
    %c3 = arith.constant 3 : index
    %c0_54 = arith.constant 0 : index
    %c0_55 = arith.constant 0 : index
    %240 = vector.load %arg1[%c3, %c0_54, %c0_55] : memref<16x4x36xf32, #tpu.memory_space<vmem>>, vector<1x4x36xf32>
    %241 = vector.shape_cast %240 : vector<1x4x36xf32> to vector<4x36xf32>
    %c0_56 = arith.constant 0 : index
    %c3_57 = arith.constant 3 : index
    %242 = vector.load %arg2[%c0_56, %c3_57] : memref<4x16xf32, #tpu.memory_space<vmem>>, vector<4x1xf32>
    %243 = vector.extract_strided_slice %239 {offsets = [0, 27], sizes = [4, 5], strides = [1, 1]} : vector<4x32xf32> to vector<4x5xf32>
    %244 = vector.extract_strided_slice %239 {offsets = [0, 0], sizes = [4, 27], strides = [1, 1]} : vector<4x32xf32> to vector<4x27xf32>
    %245 = tpu.concatenate %243, %244 in 1 : vector<4x5xf32>, vector<4x27xf32> -> vector<4x32xf32>
    %246 = vector.extract_strided_slice %2 {offsets = [0, 0], sizes = [1, 32], strides = [1, 1]} : vector<9x32xf32> to vector<1x32xf32>
    %247 = vector.broadcast %246 : vector<1x32xf32> to vector<4x32xf32>
    %248 = arith.mulf %245, %247 : vector<4x32xf32>
    %249 = vector.extract_strided_slice %239 {offsets = [0, 28], sizes = [4, 4], strides = [1, 1]} : vector<4x32xf32> to vector<4x4xf32>
    %250 = vector.extract_strided_slice %239 {offsets = [0, 0], sizes = [4, 28], strides = [1, 1]} : vector<4x32xf32> to vector<4x28xf32>
    %251 = tpu.concatenate %249, %250 in 1 : vector<4x4xf32>, vector<4x28xf32> -> vector<4x32xf32>
    %252 = vector.extract_strided_slice %2 {offsets = [1, 0], sizes = [1, 32], strides = [1, 1]} : vector<9x32xf32> to vector<1x32xf32>
    %253 = vector.broadcast %252 : vector<1x32xf32> to vector<4x32xf32>
    %254 = arith.mulf %251, %253 : vector<4x32xf32>
    %255 = vector.extract_strided_slice %239 {offsets = [0, 29], sizes = [4, 3], strides = [1, 1]} : vector<4x32xf32> to vector<4x3xf32>
    %256 = vector.extract_strided_slice %239 {offsets = [0, 0], sizes = [4, 29], strides = [1, 1]} : vector<4x32xf32> to vector<4x29xf32>
    %257 = tpu.concatenate %255, %256 in 1 : vector<4x3xf32>, vector<4x29xf32> -> vector<4x32xf32>
    %258 = vector.extract_strided_slice %2 {offsets = [2, 0], sizes = [1, 32], strides = [1, 1]} : vector<9x32xf32> to vector<1x32xf32>
    %259 = vector.broadcast %258 : vector<1x32xf32> to vector<4x32xf32>
    %260 = arith.mulf %257, %259 : vector<4x32xf32>
    %261 = vector.extract_strided_slice %239 {offsets = [0, 31], sizes = [4, 1], strides = [1, 1]} : vector<4x32xf32> to vector<4x1xf32>
    %262 = vector.extract_strided_slice %239 {offsets = [0, 0], sizes = [4, 31], strides = [1, 1]} : vector<4x32xf32> to vector<4x31xf32>
    %263 = tpu.concatenate %261, %262 in 1 : vector<4x1xf32>, vector<4x31xf32> -> vector<4x32xf32>
    %264 = vector.extract_strided_slice %2 {offsets = [3, 0], sizes = [1, 32], strides = [1, 1]} : vector<9x32xf32> to vector<1x32xf32>
    %265 = vector.broadcast %264 : vector<1x32xf32> to vector<4x32xf32>
    %266 = arith.mulf %263, %265 : vector<4x32xf32>
    %267 = vector.extract_strided_slice %2 {offsets = [4, 0], sizes = [1, 32], strides = [1, 1]} : vector<9x32xf32> to vector<1x32xf32>
    %268 = vector.broadcast %267 : vector<1x32xf32> to vector<4x32xf32>
    %269 = arith.mulf %239, %268 : vector<4x32xf32>
    %270 = vector.extract_strided_slice %239 {offsets = [0, 1], sizes = [4, 31], strides = [1, 1]} : vector<4x32xf32> to vector<4x31xf32>
    %271 = vector.extract_strided_slice %239 {offsets = [0, 0], sizes = [4, 1], strides = [1, 1]} : vector<4x32xf32> to vector<4x1xf32>
    %272 = tpu.concatenate %270, %271 in 1 : vector<4x31xf32>, vector<4x1xf32> -> vector<4x32xf32>
    %273 = vector.extract_strided_slice %2 {offsets = [5, 0], sizes = [1, 32], strides = [1, 1]} : vector<9x32xf32> to vector<1x32xf32>
    %274 = vector.broadcast %273 : vector<1x32xf32> to vector<4x32xf32>
    %275 = arith.mulf %272, %274 : vector<4x32xf32>
    %276 = vector.extract_strided_slice %239 {offsets = [0, 3], sizes = [4, 29], strides = [1, 1]} : vector<4x32xf32> to vector<4x29xf32>
    %277 = vector.extract_strided_slice %239 {offsets = [0, 0], sizes = [4, 3], strides = [1, 1]} : vector<4x32xf32> to vector<4x3xf32>
    %278 = tpu.concatenate %276, %277 in 1 : vector<4x29xf32>, vector<4x3xf32> -> vector<4x32xf32>
    %279 = vector.extract_strided_slice %2 {offsets = [6, 0], sizes = [1, 32], strides = [1, 1]} : vector<9x32xf32> to vector<1x32xf32>
    %280 = vector.broadcast %279 : vector<1x32xf32> to vector<4x32xf32>
    %281 = arith.mulf %278, %280 : vector<4x32xf32>
    %282 = vector.extract_strided_slice %239 {offsets = [0, 4], sizes = [4, 28], strides = [1, 1]} : vector<4x32xf32> to vector<4x28xf32>
    %283 = vector.extract_strided_slice %239 {offsets = [0, 0], sizes = [4, 4], strides = [1, 1]} : vector<4x32xf32> to vector<4x4xf32>
    %284 = tpu.concatenate %282, %283 in 1 : vector<4x28xf32>, vector<4x4xf32> -> vector<4x32xf32>
    %285 = vector.extract_strided_slice %2 {offsets = [7, 0], sizes = [1, 32], strides = [1, 1]} : vector<9x32xf32> to vector<1x32xf32>
    %286 = vector.broadcast %285 : vector<1x32xf32> to vector<4x32xf32>
    %287 = arith.mulf %284, %286 : vector<4x32xf32>
    %288 = vector.extract_strided_slice %239 {offsets = [0, 5], sizes = [4, 27], strides = [1, 1]} : vector<4x32xf32> to vector<4x27xf32>
    %289 = vector.extract_strided_slice %239 {offsets = [0, 0], sizes = [4, 5], strides = [1, 1]} : vector<4x32xf32> to vector<4x5xf32>
    %290 = tpu.concatenate %288, %289 in 1 : vector<4x27xf32>, vector<4x5xf32> -> vector<4x32xf32>
    %291 = vector.extract_strided_slice %2 {offsets = [8, 0], sizes = [1, 32], strides = [1, 1]} : vector<9x32xf32> to vector<1x32xf32>
    %292 = vector.broadcast %291 : vector<1x32xf32> to vector<4x32xf32>
    %293 = arith.mulf %290, %292 : vector<4x32xf32>
    %294 = tpu.concatenate %248, %254, %260, %266, %269, %275, %281, %287, %293 in 0 : vector<4x32xf32>, vector<4x32xf32>, vector<4x32xf32>, vector<4x32xf32>, vector<4x32xf32>, vector<4x32xf32>, vector<4x32xf32>, vector<4x32xf32>, vector<4x32xf32> -> vector<36x32xf32>
    %cst_58 = arith.constant dense<0.000000e+00> : vector<4x32xf32>
    %295 = tpu.matmul %241, %294, %cst_58 {dimension_numbers = #tpu.dot_dimension_numbers<[1], [0], [0], [1], [0, 0, 1, 1], [], []>} : vector<4x36xf32>, vector<36x32xf32>, vector<4x32xf32> -> vector<4x32xf32>
    %296 = vector.broadcast %242 : vector<4x1xf32> to vector<4x32xf32>
    %297 = arith.addf %295, %296 : vector<4x32xf32>
    %cst_59 = arith.constant 0.000000e+00 : f32
    %298 = vector.broadcast %cst_59 : f32 to vector<4x32xf32>
    %299 = arith.cmpf oge, %297, %298 : vector<4x32xf32>
    %cst_60 = arith.constant 2.000000e-01 : f32
    %300 = vector.broadcast %cst_60 : f32 to vector<4x32xf32>
    %301 = arith.mulf %300, %297 : vector<4x32xf32>
    %302 = arith.select %299, %297, %301 : vector<4x32xi1>, vector<4x32xf32>
    %cst_61 = arith.constant dense<0.000000e+00> : vector<4x128xf32>
    %303 = tpu.matmul %302, %8, %cst_61 {dimension_numbers = #tpu.dot_dimension_numbers<[1], [0], [0], [1], [0, 0, 1, 1], [], []>} : vector<4x32xf32>, vector<32x128xf32>, vector<4x128xf32> -> vector<4x128xf32>
    %304 = tpu.concatenate %19, %303 in 0 : vector<4x128xf32>, vector<4x128xf32> -> vector<8x128xf32>
    %c1_62 = arith.constant 1 : index
    %c0_63 = arith.constant 0 : index
    %c0_64 = arith.constant 0 : index
    %305 = vector.load %arg3[%c1_62, %c0_63, %c0_64] : memref<6x4x8xf32, #tpu.memory_space<vmem>>, vector<1x4x8xf32>
    %306 = vector.shape_cast %305 : vector<1x4x8xf32> to vector<4x8xf32>
    %c0_65 = arith.constant 0 : index
    %c1_66 = arith.constant 1 : index
    %307 = vector.load %arg5[%c0_65, %c1_66] : memref<4x8xf32, #tpu.memory_space<vmem>>, vector<4x1xf32>
    %cst_67 = arith.constant dense<0.000000e+00> : vector<4x128xf32>
    %308 = tpu.matmul %306, %304, %cst_67 {dimension_numbers = #tpu.dot_dimension_numbers<[1], [0], [0], [1], [0, 0, 1, 1], [], []>} : vector<4x8xf32>, vector<8x128xf32>, vector<4x128xf32> -> vector<4x128xf32>
    %309 = vector.broadcast %307 : vector<4x1xf32> to vector<4x128xf32>
    %310 = arith.addf %308, %309 : vector<4x128xf32>
    %cst_68 = arith.constant 0.000000e+00 : f32
    %311 = vector.broadcast %cst_68 : f32 to vector<4x128xf32>
    %312 = arith.cmpf oge, %310, %311 : vector<4x128xf32>
    %cst_69 = arith.constant 2.000000e-01 : f32
    %313 = vector.broadcast %cst_69 : f32 to vector<4x128xf32>
    %314 = arith.mulf %313, %310 : vector<4x128xf32>
    %315 = arith.select %312, %310, %314 : vector<4x128xi1>, vector<4x128xf32>
    %c4 = arith.constant 4 : index
    %c0_70 = arith.constant 0 : index
    %c0_71 = arith.constant 0 : index
    %316 = vector.load %arg1[%c4, %c0_70, %c0_71] : memref<16x4x36xf32, #tpu.memory_space<vmem>>, vector<1x4x36xf32>
    %317 = vector.shape_cast %316 : vector<1x4x36xf32> to vector<4x36xf32>
    %c0_72 = arith.constant 0 : index
    %c4_73 = arith.constant 4 : index
    %318 = vector.load %arg2[%c0_72, %c4_73] : memref<4x16xf32, #tpu.memory_space<vmem>>, vector<4x1xf32>
    %319 = vector.extract_strided_slice %315 {offsets = [0, 119], sizes = [4, 9], strides = [1, 1]} : vector<4x128xf32> to vector<4x9xf32>
    %320 = vector.extract_strided_slice %315 {offsets = [0, 0], sizes = [4, 119], strides = [1, 1]} : vector<4x128xf32> to vector<4x119xf32>
    %321 = tpu.concatenate %319, %320 in 1 : vector<4x9xf32>, vector<4x119xf32> -> vector<4x128xf32>
    %322 = vector.extract_strided_slice %1 {offsets = [0, 0], sizes = [1, 128], strides = [1, 1]} : vector<9x128xf32> to vector<1x128xf32>
    %323 = vector.broadcast %322 : vector<1x128xf32> to vector<4x128xf32>
    %324 = arith.mulf %321, %323 : vector<4x128xf32>
    %325 = vector.extract_strided_slice %315 {offsets = [0, 120], sizes = [4, 8], strides = [1, 1]} : vector<4x128xf32> to vector<4x8xf32>
    %326 = vector.extract_strided_slice %315 {offsets = [0, 0], sizes = [4, 120], strides = [1, 1]} : vector<4x128xf32> to vector<4x120xf32>
    %327 = tpu.concatenate %325, %326 in 1 : vector<4x8xf32>, vector<4x120xf32> -> vector<4x128xf32>
    %328 = vector.extract_strided_slice %1 {offsets = [1, 0], sizes = [1, 128], strides = [1, 1]} : vector<9x128xf32> to vector<1x128xf32>
    %329 = vector.broadcast %328 : vector<1x128xf32> to vector<4x128xf32>
    %330 = arith.mulf %327, %329 : vector<4x128xf32>
    %331 = vector.extract_strided_slice %315 {offsets = [0, 121], sizes = [4, 7], strides = [1, 1]} : vector<4x128xf32> to vector<4x7xf32>
    %332 = vector.extract_strided_slice %315 {offsets = [0, 0], sizes = [4, 121], strides = [1, 1]} : vector<4x128xf32> to vector<4x121xf32>
    %333 = tpu.concatenate %331, %332 in 1 : vector<4x7xf32>, vector<4x121xf32> -> vector<4x128xf32>
    %334 = vector.extract_strided_slice %1 {offsets = [2, 0], sizes = [1, 128], strides = [1, 1]} : vector<9x128xf32> to vector<1x128xf32>
    %335 = vector.broadcast %334 : vector<1x128xf32> to vector<4x128xf32>
    %336 = arith.mulf %333, %335 : vector<4x128xf32>
    %337 = vector.extract_strided_slice %315 {offsets = [0, 127], sizes = [4, 1], strides = [1, 1]} : vector<4x128xf32> to vector<4x1xf32>
    %338 = vector.extract_strided_slice %315 {offsets = [0, 0], sizes = [4, 127], strides = [1, 1]} : vector<4x128xf32> to vector<4x127xf32>
    %339 = tpu.concatenate %337, %338 in 1 : vector<4x1xf32>, vector<4x127xf32> -> vector<4x128xf32>
    %340 = vector.extract_strided_slice %1 {offsets = [3, 0], sizes = [1, 128], strides = [1, 1]} : vector<9x128xf32> to vector<1x128xf32>
    %341 = vector.broadcast %340 : vector<1x128xf32> to vector<4x128xf32>
    %342 = arith.mulf %339, %341 : vector<4x128xf32>
    %343 = vector.extract_strided_slice %1 {offsets = [4, 0], sizes = [1, 128], strides = [1, 1]} : vector<9x128xf32> to vector<1x128xf32>
    %344 = vector.broadcast %343 : vector<1x128xf32> to vector<4x128xf32>
    %345 = arith.mulf %315, %344 : vector<4x128xf32>
    %346 = vector.extract_strided_slice %315 {offsets = [0, 1], sizes = [4, 127], strides = [1, 1]} : vector<4x128xf32> to vector<4x127xf32>
    %347 = vector.extract_strided_slice %315 {offsets = [0, 0], sizes = [4, 1], strides = [1, 1]} : vector<4x128xf32> to vector<4x1xf32>
    %348 = tpu.concatenate %346, %347 in 1 : vector<4x127xf32>, vector<4x1xf32> -> vector<4x128xf32>
    %349 = vector.extract_strided_slice %1 {offsets = [5, 0], sizes = [1, 128], strides = [1, 1]} : vector<9x128xf32> to vector<1x128xf32>
    %350 = vector.broadcast %349 : vector<1x128xf32> to vector<4x128xf32>
    %351 = arith.mulf %348, %350 : vector<4x128xf32>
    %352 = vector.extract_strided_slice %315 {offsets = [0, 7], sizes = [4, 121], strides = [1, 1]} : vector<4x128xf32> to vector<4x121xf32>
    %353 = vector.extract_strided_slice %315 {offsets = [0, 0], sizes = [4, 7], strides = [1, 1]} : vector<4x128xf32> to vector<4x7xf32>
    %354 = tpu.concatenate %352, %353 in 1 : vector<4x121xf32>, vector<4x7xf32> -> vector<4x128xf32>
    %355 = vector.extract_strided_slice %1 {offsets = [6, 0], sizes = [1, 128], strides = [1, 1]} : vector<9x128xf32> to vector<1x128xf32>
    %356 = vector.broadcast %355 : vector<1x128xf32> to vector<4x128xf32>
    %357 = arith.mulf %354, %356 : vector<4x128xf32>
    %358 = vector.extract_strided_slice %315 {offsets = [0, 8], sizes = [4, 120], strides = [1, 1]} : vector<4x128xf32> to vector<4x120xf32>
    %359 = vector.extract_strided_slice %315 {offsets = [0, 0], sizes = [4, 8], strides = [1, 1]} : vector<4x128xf32> to vector<4x8xf32>
    %360 = tpu.concatenate %358, %359 in 1 : vector<4x120xf32>, vector<4x8xf32> -> vector<4x128xf32>
    %361 = vector.extract_strided_slice %1 {offsets = [7, 0], sizes = [1, 128], strides = [1, 1]} : vector<9x128xf32> to vector<1x128xf32>
    %362 = vector.broadcast %361 : vector<1x128xf32> to vector<4x128xf32>
    %363 = arith.mulf %360, %362 : vector<4x128xf32>
    %364 = vector.extract_strided_slice %315 {offsets = [0, 9], sizes = [4, 119], strides = [1, 1]} : vector<4x128xf32> to vector<4x119xf32>
    %365 = vector.extract_strided_slice %315 {offsets = [0, 0], sizes = [4, 9], strides = [1, 1]} : vector<4x128xf32> to vector<4x9xf32>
    %366 = tpu.concatenate %364, %365 in 1 : vector<4x119xf32>, vector<4x9xf32> -> vector<4x128xf32>
    %367 = vector.extract_strided_slice %1 {offsets = [8, 0], sizes = [1, 128], strides = [1, 1]} : vector<9x128xf32> to vector<1x128xf32>
    %368 = vector.broadcast %367 : vector<1x128xf32> to vector<4x128xf32>
    %369 = arith.mulf %366, %368 : vector<4x128xf32>
    %370 = tpu.concatenate %324, %330, %336, %342, %345, %351, %357, %363, %369 in 0 : vector<4x128xf32>, vector<4x128xf32>, vector<4x128xf32>, vector<4x128xf32>, vector<4x128xf32>, vector<4x128xf32>, vector<4x128xf32>, vector<4x128xf32>, vector<4x128xf32> -> vector<36x128xf32>
    %cst_74 = arith.constant dense<0.000000e+00> : vector<4x128xf32>
    %371 = tpu.matmul %317, %370, %cst_74 {dimension_numbers = #tpu.dot_dimension_numbers<[1], [0], [0], [1], [0, 0, 1, 1], [], []>} : vector<4x36xf32>, vector<36x128xf32>, vector<4x128xf32> -> vector<4x128xf32>
    %372 = vector.broadcast %318 : vector<4x1xf32> to vector<4x128xf32>
    %373 = arith.addf %371, %372 : vector<4x128xf32>
    %cst_75 = arith.constant 0.000000e+00 : f32
    %374 = vector.broadcast %cst_75 : f32 to vector<4x128xf32>
    %375 = arith.cmpf oge, %373, %374 : vector<4x128xf32>
    %cst_76 = arith.constant 2.000000e-01 : f32
    %376 = vector.broadcast %cst_76 : f32 to vector<4x128xf32>
    %377 = arith.mulf %376, %373 : vector<4x128xf32>
    %378 = arith.select %375, %373, %377 : vector<4x128xi1>, vector<4x128xf32>
    %c5 = arith.constant 5 : index
    %c0_77 = arith.constant 0 : index
    %c0_78 = arith.constant 0 : index
    %379 = vector.load %arg1[%c5, %c0_77, %c0_78] : memref<16x4x36xf32, #tpu.memory_space<vmem>>, vector<1x4x36xf32>
    %380 = vector.shape_cast %379 : vector<1x4x36xf32> to vector<4x36xf32>
    %c0_79 = arith.constant 0 : index
    %c5_80 = arith.constant 5 : index
    %381 = vector.load %arg2[%c0_79, %c5_80] : memref<4x16xf32, #tpu.memory_space<vmem>>, vector<4x1xf32>
    %382 = vector.extract_strided_slice %378 {offsets = [0, 119], sizes = [4, 9], strides = [1, 1]} : vector<4x128xf32> to vector<4x9xf32>
    %383 = vector.extract_strided_slice %378 {offsets = [0, 0], sizes = [4, 119], strides = [1, 1]} : vector<4x128xf32> to vector<4x119xf32>
    %384 = tpu.concatenate %382, %383 in 1 : vector<4x9xf32>, vector<4x119xf32> -> vector<4x128xf32>
    %385 = vector.extract_strided_slice %1 {offsets = [0, 0], sizes = [1, 128], strides = [1, 1]} : vector<9x128xf32> to vector<1x128xf32>
    %386 = vector.broadcast %385 : vector<1x128xf32> to vector<4x128xf32>
    %387 = arith.mulf %384, %386 : vector<4x128xf32>
    %388 = vector.extract_strided_slice %378 {offsets = [0, 120], sizes = [4, 8], strides = [1, 1]} : vector<4x128xf32> to vector<4x8xf32>
    %389 = vector.extract_strided_slice %378 {offsets = [0, 0], sizes = [4, 120], strides = [1, 1]} : vector<4x128xf32> to vector<4x120xf32>
    %390 = tpu.concatenate %388, %389 in 1 : vector<4x8xf32>, vector<4x120xf32> -> vector<4x128xf32>
    %391 = vector.extract_strided_slice %1 {offsets = [1, 0], sizes = [1, 128], strides = [1, 1]} : vector<9x128xf32> to vector<1x128xf32>
    %392 = vector.broadcast %391 : vector<1x128xf32> to vector<4x128xf32>
    %393 = arith.mulf %390, %392 : vector<4x128xf32>
    %394 = vector.extract_strided_slice %378 {offsets = [0, 121], sizes = [4, 7], strides = [1, 1]} : vector<4x128xf32> to vector<4x7xf32>
    %395 = vector.extract_strided_slice %378 {offsets = [0, 0], sizes = [4, 121], strides = [1, 1]} : vector<4x128xf32> to vector<4x121xf32>
    %396 = tpu.concatenate %394, %395 in 1 : vector<4x7xf32>, vector<4x121xf32> -> vector<4x128xf32>
    %397 = vector.extract_strided_slice %1 {offsets = [2, 0], sizes = [1, 128], strides = [1, 1]} : vector<9x128xf32> to vector<1x128xf32>
    %398 = vector.broadcast %397 : vector<1x128xf32> to vector<4x128xf32>
    %399 = arith.mulf %396, %398 : vector<4x128xf32>
    %400 = vector.extract_strided_slice %378 {offsets = [0, 127], sizes = [4, 1], strides = [1, 1]} : vector<4x128xf32> to vector<4x1xf32>
    %401 = vector.extract_strided_slice %378 {offsets = [0, 0], sizes = [4, 127], strides = [1, 1]} : vector<4x128xf32> to vector<4x127xf32>
    %402 = tpu.concatenate %400, %401 in 1 : vector<4x1xf32>, vector<4x127xf32> -> vector<4x128xf32>
    %403 = vector.extract_strided_slice %1 {offsets = [3, 0], sizes = [1, 128], strides = [1, 1]} : vector<9x128xf32> to vector<1x128xf32>
    %404 = vector.broadcast %403 : vector<1x128xf32> to vector<4x128xf32>
    %405 = arith.mulf %402, %404 : vector<4x128xf32>
    %406 = vector.extract_strided_slice %1 {offsets = [4, 0], sizes = [1, 128], strides = [1, 1]} : vector<9x128xf32> to vector<1x128xf32>
    %407 = vector.broadcast %406 : vector<1x128xf32> to vector<4x128xf32>
    %408 = arith.mulf %378, %407 : vector<4x128xf32>
    %409 = vector.extract_strided_slice %378 {offsets = [0, 1], sizes = [4, 127], strides = [1, 1]} : vector<4x128xf32> to vector<4x127xf32>
    %410 = vector.extract_strided_slice %378 {offsets = [0, 0], sizes = [4, 1], strides = [1, 1]} : vector<4x128xf32> to vector<4x1xf32>
    %411 = tpu.concatenate %409, %410 in 1 : vector<4x127xf32>, vector<4x1xf32> -> vector<4x128xf32>
    %412 = vector.extract_strided_slice %1 {offsets = [5, 0], sizes = [1, 128], strides = [1, 1]} : vector<9x128xf32> to vector<1x128xf32>
    %413 = vector.broadcast %412 : vector<1x128xf32> to vector<4x128xf32>
    %414 = arith.mulf %411, %413 : vector<4x128xf32>
    %415 = vector.extract_strided_slice %378 {offsets = [0, 7], sizes = [4, 121], strides = [1, 1]} : vector<4x128xf32> to vector<4x121xf32>
    %416 = vector.extract_strided_slice %378 {offsets = [0, 0], sizes = [4, 7], strides = [1, 1]} : vector<4x128xf32> to vector<4x7xf32>
    %417 = tpu.concatenate %415, %416 in 1 : vector<4x121xf32>, vector<4x7xf32> -> vector<4x128xf32>
    %418 = vector.extract_strided_slice %1 {offsets = [6, 0], sizes = [1, 128], strides = [1, 1]} : vector<9x128xf32> to vector<1x128xf32>
    %419 = vector.broadcast %418 : vector<1x128xf32> to vector<4x128xf32>
    %420 = arith.mulf %417, %419 : vector<4x128xf32>
    %421 = vector.extract_strided_slice %378 {offsets = [0, 8], sizes = [4, 120], strides = [1, 1]} : vector<4x128xf32> to vector<4x120xf32>
    %422 = vector.extract_strided_slice %378 {offsets = [0, 0], sizes = [4, 8], strides = [1, 1]} : vector<4x128xf32> to vector<4x8xf32>
    %423 = tpu.concatenate %421, %422 in 1 : vector<4x120xf32>, vector<4x8xf32> -> vector<4x128xf32>
    %424 = vector.extract_strided_slice %1 {offsets = [7, 0], sizes = [1, 128], strides = [1, 1]} : vector<9x128xf32> to vector<1x128xf32>
    %425 = vector.broadcast %424 : vector<1x128xf32> to vector<4x128xf32>
    %426 = arith.mulf %423, %425 : vector<4x128xf32>
    %427 = vector.extract_strided_slice %378 {offsets = [0, 9], sizes = [4, 119], strides = [1, 1]} : vector<4x128xf32> to vector<4x119xf32>
    %428 = vector.extract_strided_slice %378 {offsets = [0, 0], sizes = [4, 9], strides = [1, 1]} : vector<4x128xf32> to vector<4x9xf32>
    %429 = tpu.concatenate %427, %428 in 1 : vector<4x119xf32>, vector<4x9xf32> -> vector<4x128xf32>
    %430 = vector.extract_strided_slice %1 {offsets = [8, 0], sizes = [1, 128], strides = [1, 1]} : vector<9x128xf32> to vector<1x128xf32>
    %431 = vector.broadcast %430 : vector<1x128xf32> to vector<4x128xf32>
    %432 = arith.mulf %429, %431 : vector<4x128xf32>
    %433 = tpu.concatenate %387, %393, %399, %405, %408, %414, %420, %426, %432 in 0 : vector<4x128xf32>, vector<4x128xf32>, vector<4x128xf32>, vector<4x128xf32>, vector<4x128xf32>, vector<4x128xf32>, vector<4x128xf32>, vector<4x128xf32>, vector<4x128xf32> -> vector<36x128xf32>
    %cst_81 = arith.constant dense<0.000000e+00> : vector<4x128xf32>
    %434 = tpu.matmul %380, %433, %cst_81 {dimension_numbers = #tpu.dot_dimension_numbers<[1], [0], [0], [1], [0, 0, 1, 1], [], []>} : vector<4x36xf32>, vector<36x128xf32>, vector<4x128xf32> -> vector<4x128xf32>
    %435 = vector.broadcast %381 : vector<4x1xf32> to vector<4x128xf32>
    %436 = arith.addf %434, %435 : vector<4x128xf32>
    %cst_82 = arith.constant 0.000000e+00 : f32
    %437 = vector.broadcast %cst_82 : f32 to vector<4x128xf32>
    %438 = arith.cmpf oge, %436, %437 : vector<4x128xf32>
    %cst_83 = arith.constant 2.000000e-01 : f32
    %439 = vector.broadcast %cst_83 : f32 to vector<4x128xf32>
    %440 = arith.mulf %439, %436 : vector<4x128xf32>
    %441 = arith.select %438, %436, %440 : vector<4x128xi1>, vector<4x128xf32>
    %cst_84 = arith.constant dense<0.000000e+00> : vector<4x512xf32>
    %442 = tpu.matmul %441, %9, %cst_84 {dimension_numbers = #tpu.dot_dimension_numbers<[1], [0], [0], [1], [0, 0, 1, 1], [], []>} : vector<4x128xf32>, vector<128x512xf32>, vector<4x512xf32> -> vector<4x512xf32>
    %443 = tpu.concatenate %10, %442 in 0 : vector<4x512xf32>, vector<4x512xf32> -> vector<8x512xf32>
    %c2_85 = arith.constant 2 : index
    %c0_86 = arith.constant 0 : index
    %c0_87 = arith.constant 0 : index
    %444 = vector.load %arg3[%c2_85, %c0_86, %c0_87] : memref<6x4x8xf32, #tpu.memory_space<vmem>>, vector<1x4x8xf32>
    %445 = vector.shape_cast %444 : vector<1x4x8xf32> to vector<4x8xf32>
    %c0_88 = arith.constant 0 : index
    %c2_89 = arith.constant 2 : index
    %446 = vector.load %arg5[%c0_88, %c2_89] : memref<4x8xf32, #tpu.memory_space<vmem>>, vector<4x1xf32>
    %cst_90 = arith.constant dense<0.000000e+00> : vector<4x512xf32>
    %447 = tpu.matmul %445, %443, %cst_90 {dimension_numbers = #tpu.dot_dimension_numbers<[1], [0], [0], [1], [0, 0, 1, 1], [], []>} : vector<4x8xf32>, vector<8x512xf32>, vector<4x512xf32> -> vector<4x512xf32>
    %448 = vector.broadcast %446 : vector<4x1xf32> to vector<4x512xf32>
    %449 = arith.addf %447, %448 : vector<4x512xf32>
    %cst_91 = arith.constant 0.000000e+00 : f32
    %450 = vector.broadcast %cst_91 : f32 to vector<4x512xf32>
    %451 = arith.cmpf oge, %449, %450 : vector<4x512xf32>
    %cst_92 = arith.constant 2.000000e-01 : f32
    %452 = vector.broadcast %cst_92 : f32 to vector<4x512xf32>
    %453 = arith.mulf %452, %449 : vector<4x512xf32>
    %454 = arith.select %451, %449, %453 : vector<4x512xi1>, vector<4x512xf32>
    %c6 = arith.constant 6 : index
    %c0_93 = arith.constant 0 : index
    %c0_94 = arith.constant 0 : index
    %455 = vector.load %arg1[%c6, %c0_93, %c0_94] : memref<16x4x36xf32, #tpu.memory_space<vmem>>, vector<1x4x36xf32>
    %456 = vector.shape_cast %455 : vector<1x4x36xf32> to vector<4x36xf32>
    %c0_95 = arith.constant 0 : index
    %c6_96 = arith.constant 6 : index
    %457 = vector.load %arg2[%c0_95, %c6_96] : memref<4x16xf32, #tpu.memory_space<vmem>>, vector<4x1xf32>
    %458 = vector.extract_strided_slice %454 {offsets = [0, 495], sizes = [4, 17], strides = [1, 1]} : vector<4x512xf32> to vector<4x17xf32>
    %459 = vector.extract_strided_slice %454 {offsets = [0, 0], sizes = [4, 495], strides = [1, 1]} : vector<4x512xf32> to vector<4x495xf32>
    %460 = tpu.concatenate %458, %459 in 1 : vector<4x17xf32>, vector<4x495xf32> -> vector<4x512xf32>
    %461 = vector.extract_strided_slice %0 {offsets = [0, 0], sizes = [1, 512], strides = [1, 1]} : vector<9x512xf32> to vector<1x512xf32>
    %462 = vector.broadcast %461 : vector<1x512xf32> to vector<4x512xf32>
    %463 = arith.mulf %460, %462 : vector<4x512xf32>
    %464 = vector.extract_strided_slice %454 {offsets = [0, 496], sizes = [4, 16], strides = [1, 1]} : vector<4x512xf32> to vector<4x16xf32>
    %465 = vector.extract_strided_slice %454 {offsets = [0, 0], sizes = [4, 496], strides = [1, 1]} : vector<4x512xf32> to vector<4x496xf32>
    %466 = tpu.concatenate %464, %465 in 1 : vector<4x16xf32>, vector<4x496xf32> -> vector<4x512xf32>
    %467 = vector.extract_strided_slice %0 {offsets = [1, 0], sizes = [1, 512], strides = [1, 1]} : vector<9x512xf32> to vector<1x512xf32>
    %468 = vector.broadcast %467 : vector<1x512xf32> to vector<4x512xf32>
    %469 = arith.mulf %466, %468 : vector<4x512xf32>
    %470 = vector.extract_strided_slice %454 {offsets = [0, 497], sizes = [4, 15], strides = [1, 1]} : vector<4x512xf32> to vector<4x15xf32>
    %471 = vector.extract_strided_slice %454 {offsets = [0, 0], sizes = [4, 497], strides = [1, 1]} : vector<4x512xf32> to vector<4x497xf32>
    %472 = tpu.concatenate %470, %471 in 1 : vector<4x15xf32>, vector<4x497xf32> -> vector<4x512xf32>
    %473 = vector.extract_strided_slice %0 {offsets = [2, 0], sizes = [1, 512], strides = [1, 1]} : vector<9x512xf32> to vector<1x512xf32>
    %474 = vector.broadcast %473 : vector<1x512xf32> to vector<4x512xf32>
    %475 = arith.mulf %472, %474 : vector<4x512xf32>
    %476 = vector.extract_strided_slice %454 {offsets = [0, 511], sizes = [4, 1], strides = [1, 1]} : vector<4x512xf32> to vector<4x1xf32>
    %477 = vector.extract_strided_slice %454 {offsets = [0, 0], sizes = [4, 511], strides = [1, 1]} : vector<4x512xf32> to vector<4x511xf32>
    %478 = tpu.concatenate %476, %477 in 1 : vector<4x1xf32>, vector<4x511xf32> -> vector<4x512xf32>
    %479 = vector.extract_strided_slice %0 {offsets = [3, 0], sizes = [1, 512], strides = [1, 1]} : vector<9x512xf32> to vector<1x512xf32>
    %480 = vector.broadcast %479 : vector<1x512xf32> to vector<4x512xf32>
    %481 = arith.mulf %478, %480 : vector<4x512xf32>
    %482 = vector.extract_strided_slice %0 {offsets = [4, 0], sizes = [1, 512], strides = [1, 1]} : vector<9x512xf32> to vector<1x512xf32>
    %483 = vector.broadcast %482 : vector<1x512xf32> to vector<4x512xf32>
    %484 = arith.mulf %454, %483 : vector<4x512xf32>
    %485 = vector.extract_strided_slice %454 {offsets = [0, 1], sizes = [4, 511], strides = [1, 1]} : vector<4x512xf32> to vector<4x511xf32>
    %486 = vector.extract_strided_slice %454 {offsets = [0, 0], sizes = [4, 1], strides = [1, 1]} : vector<4x512xf32> to vector<4x1xf32>
    %487 = tpu.concatenate %485, %486 in 1 : vector<4x511xf32>, vector<4x1xf32> -> vector<4x512xf32>
    %488 = vector.extract_strided_slice %0 {offsets = [5, 0], sizes = [1, 512], strides = [1, 1]} : vector<9x512xf32> to vector<1x512xf32>
    %489 = vector.broadcast %488 : vector<1x512xf32> to vector<4x512xf32>
    %490 = arith.mulf %487, %489 : vector<4x512xf32>
    %491 = vector.extract_strided_slice %454 {offsets = [0, 15], sizes = [4, 497], strides = [1, 1]} : vector<4x512xf32> to vector<4x497xf32>
    %492 = vector.extract_strided_slice %454 {offsets = [0, 0], sizes = [4, 15], strides = [1, 1]} : vector<4x512xf32> to vector<4x15xf32>
    %493 = tpu.concatenate %491, %492 in 1 : vector<4x497xf32>, vector<4x15xf32> -> vector<4x512xf32>
    %494 = vector.extract_strided_slice %0 {offsets = [6, 0], sizes = [1, 512], strides = [1, 1]} : vector<9x512xf32> to vector<1x512xf32>
    %495 = vector.broadcast %494 : vector<1x512xf32> to vector<4x512xf32>
    %496 = arith.mulf %493, %495 : vector<4x512xf32>
    %497 = vector.extract_strided_slice %454 {offsets = [0, 16], sizes = [4, 496], strides = [1, 1]} : vector<4x512xf32> to vector<4x496xf32>
    %498 = vector.extract_strided_slice %454 {offsets = [0, 0], sizes = [4, 16], strides = [1, 1]} : vector<4x512xf32> to vector<4x16xf32>
    %499 = tpu.concatenate %497, %498 in 1 : vector<4x496xf32>, vector<4x16xf32> -> vector<4x512xf32>
    %500 = vector.extract_strided_slice %0 {offsets = [7, 0], sizes = [1, 512], strides = [1, 1]} : vector<9x512xf32> to vector<1x512xf32>
    %501 = vector.broadcast %500 : vector<1x512xf32> to vector<4x512xf32>
    %502 = arith.mulf %499, %501 : vector<4x512xf32>
    %503 = vector.extract_strided_slice %454 {offsets = [0, 17], sizes = [4, 495], strides = [1, 1]} : vector<4x512xf32> to vector<4x495xf32>
    %504 = vector.extract_strided_slice %454 {offsets = [0, 0], sizes = [4, 17], strides = [1, 1]} : vector<4x512xf32> to vector<4x17xf32>
    %505 = tpu.concatenate %503, %504 in 1 : vector<4x495xf32>, vector<4x17xf32> -> vector<4x512xf32>
    %506 = vector.extract_strided_slice %0 {offsets = [8, 0], sizes = [1, 512], strides = [1, 1]} : vector<9x512xf32> to vector<1x512xf32>
    %507 = vector.broadcast %506 : vector<1x512xf32> to vector<4x512xf32>
    %508 = arith.mulf %505, %507 : vector<4x512xf32>
    %509 = tpu.concatenate %463, %469, %475, %481, %484, %490, %496, %502, %508 in 0 : vector<4x512xf32>, vector<4x512xf32>, vector<4x512xf32>, vector<4x512xf32>, vector<4x512xf32>, vector<4x512xf32>, vector<4x512xf32>, vector<4x512xf32>, vector<4x512xf32> -> vector<36x512xf32>
    %cst_97 = arith.constant dense<0.000000e+00> : vector<4x512xf32>
    %510 = tpu.matmul %456, %509, %cst_97 {dimension_numbers = #tpu.dot_dimension_numbers<[1], [0], [0], [1], [0, 0, 1, 1], [], []>} : vector<4x36xf32>, vector<36x512xf32>, vector<4x512xf32> -> vector<4x512xf32>
    %511 = vector.broadcast %457 : vector<4x1xf32> to vector<4x512xf32>
    %512 = arith.addf %510, %511 : vector<4x512xf32>
    %cst_98 = arith.constant 0.000000e+00 : f32
    %513 = vector.broadcast %cst_98 : f32 to vector<4x512xf32>
    %514 = arith.cmpf oge, %512, %513 : vector<4x512xf32>
    %cst_99 = arith.constant 2.000000e-01 : f32
    %515 = vector.broadcast %cst_99 : f32 to vector<4x512xf32>
    %516 = arith.mulf %515, %512 : vector<4x512xf32>
    %517 = arith.select %514, %512, %516 : vector<4x512xi1>, vector<4x512xf32>
    %c7 = arith.constant 7 : index
    %c0_100 = arith.constant 0 : index
    %c0_101 = arith.constant 0 : index
    %518 = vector.load %arg1[%c7, %c0_100, %c0_101] : memref<16x4x36xf32, #tpu.memory_space<vmem>>, vector<1x4x36xf32>
    %519 = vector.shape_cast %518 : vector<1x4x36xf32> to vector<4x36xf32>
    %c0_102 = arith.constant 0 : index
    %c7_103 = arith.constant 7 : index
    %520 = vector.load %arg2[%c0_102, %c7_103] : memref<4x16xf32, #tpu.memory_space<vmem>>, vector<4x1xf32>
    %521 = vector.extract_strided_slice %517 {offsets = [0, 495], sizes = [4, 17], strides = [1, 1]} : vector<4x512xf32> to vector<4x17xf32>
    %522 = vector.extract_strided_slice %517 {offsets = [0, 0], sizes = [4, 495], strides = [1, 1]} : vector<4x512xf32> to vector<4x495xf32>
    %523 = tpu.concatenate %521, %522 in 1 : vector<4x17xf32>, vector<4x495xf32> -> vector<4x512xf32>
    %524 = vector.extract_strided_slice %0 {offsets = [0, 0], sizes = [1, 512], strides = [1, 1]} : vector<9x512xf32> to vector<1x512xf32>
    %525 = vector.broadcast %524 : vector<1x512xf32> to vector<4x512xf32>
    %526 = arith.mulf %523, %525 : vector<4x512xf32>
    %527 = vector.extract_strided_slice %517 {offsets = [0, 496], sizes = [4, 16], strides = [1, 1]} : vector<4x512xf32> to vector<4x16xf32>
    %528 = vector.extract_strided_slice %517 {offsets = [0, 0], sizes = [4, 496], strides = [1, 1]} : vector<4x512xf32> to vector<4x496xf32>
    %529 = tpu.concatenate %527, %528 in 1 : vector<4x16xf32>, vector<4x496xf32> -> vector<4x512xf32>
    %530 = vector.extract_strided_slice %0 {offsets = [1, 0], sizes = [1, 512], strides = [1, 1]} : vector<9x512xf32> to vector<1x512xf32>
    %531 = vector.broadcast %530 : vector<1x512xf32> to vector<4x512xf32>
    %532 = arith.mulf %529, %531 : vector<4x512xf32>
    %533 = vector.extract_strided_slice %517 {offsets = [0, 497], sizes = [4, 15], strides = [1, 1]} : vector<4x512xf32> to vector<4x15xf32>
    %534 = vector.extract_strided_slice %517 {offsets = [0, 0], sizes = [4, 497], strides = [1, 1]} : vector<4x512xf32> to vector<4x497xf32>
    %535 = tpu.concatenate %533, %534 in 1 : vector<4x15xf32>, vector<4x497xf32> -> vector<4x512xf32>
    %536 = vector.extract_strided_slice %0 {offsets = [2, 0], sizes = [1, 512], strides = [1, 1]} : vector<9x512xf32> to vector<1x512xf32>
    %537 = vector.broadcast %536 : vector<1x512xf32> to vector<4x512xf32>
    %538 = arith.mulf %535, %537 : vector<4x512xf32>
    %539 = vector.extract_strided_slice %517 {offsets = [0, 511], sizes = [4, 1], strides = [1, 1]} : vector<4x512xf32> to vector<4x1xf32>
    %540 = vector.extract_strided_slice %517 {offsets = [0, 0], sizes = [4, 511], strides = [1, 1]} : vector<4x512xf32> to vector<4x511xf32>
    %541 = tpu.concatenate %539, %540 in 1 : vector<4x1xf32>, vector<4x511xf32> -> vector<4x512xf32>
    %542 = vector.extract_strided_slice %0 {offsets = [3, 0], sizes = [1, 512], strides = [1, 1]} : vector<9x512xf32> to vector<1x512xf32>
    %543 = vector.broadcast %542 : vector<1x512xf32> to vector<4x512xf32>
    %544 = arith.mulf %541, %543 : vector<4x512xf32>
    %545 = vector.extract_strided_slice %0 {offsets = [4, 0], sizes = [1, 512], strides = [1, 1]} : vector<9x512xf32> to vector<1x512xf32>
    %546 = vector.broadcast %545 : vector<1x512xf32> to vector<4x512xf32>
    %547 = arith.mulf %517, %546 : vector<4x512xf32>
    %548 = vector.extract_strided_slice %517 {offsets = [0, 1], sizes = [4, 511], strides = [1, 1]} : vector<4x512xf32> to vector<4x511xf32>
    %549 = vector.extract_strided_slice %517 {offsets = [0, 0], sizes = [4, 1], strides = [1, 1]} : vector<4x512xf32> to vector<4x1xf32>
    %550 = tpu.concatenate %548, %549 in 1 : vector<4x511xf32>, vector<4x1xf32> -> vector<4x512xf32>
    %551 = vector.extract_strided_slice %0 {offsets = [5, 0], sizes = [1, 512], strides = [1, 1]} : vector<9x512xf32> to vector<1x512xf32>
    %552 = vector.broadcast %551 : vector<1x512xf32> to vector<4x512xf32>
    %553 = arith.mulf %550, %552 : vector<4x512xf32>
    %554 = vector.extract_strided_slice %517 {offsets = [0, 15], sizes = [4, 497], strides = [1, 1]} : vector<4x512xf32> to vector<4x497xf32>
    %555 = vector.extract_strided_slice %517 {offsets = [0, 0], sizes = [4, 15], strides = [1, 1]} : vector<4x512xf32> to vector<4x15xf32>
    %556 = tpu.concatenate %554, %555 in 1 : vector<4x497xf32>, vector<4x15xf32> -> vector<4x512xf32>
    %557 = vector.extract_strided_slice %0 {offsets = [6, 0], sizes = [1, 512], strides = [1, 1]} : vector<9x512xf32> to vector<1x512xf32>
    %558 = vector.broadcast %557 : vector<1x512xf32> to vector<4x512xf32>
    %559 = arith.mulf %556, %558 : vector<4x512xf32>
    %560 = vector.extract_strided_slice %517 {offsets = [0, 16], sizes = [4, 496], strides = [1, 1]} : vector<4x512xf32> to vector<4x496xf32>
    %561 = vector.extract_strided_slice %517 {offsets = [0, 0], sizes = [4, 16], strides = [1, 1]} : vector<4x512xf32> to vector<4x16xf32>
    %562 = tpu.concatenate %560, %561 in 1 : vector<4x496xf32>, vector<4x16xf32> -> vector<4x512xf32>
    %563 = vector.extract_strided_slice %0 {offsets = [7, 0], sizes = [1, 512], strides = [1, 1]} : vector<9x512xf32> to vector<1x512xf32>
    %564 = vector.broadcast %563 : vector<1x512xf32> to vector<4x512xf32>
    %565 = arith.mulf %562, %564 : vector<4x512xf32>
    %566 = vector.extract_strided_slice %517 {offsets = [0, 17], sizes = [4, 495], strides = [1, 1]} : vector<4x512xf32> to vector<4x495xf32>
    %567 = vector.extract_strided_slice %517 {offsets = [0, 0], sizes = [4, 17], strides = [1, 1]} : vector<4x512xf32> to vector<4x17xf32>
    %568 = tpu.concatenate %566, %567 in 1 : vector<4x495xf32>, vector<4x17xf32> -> vector<4x512xf32>
    %569 = vector.extract_strided_slice %0 {offsets = [8, 0], sizes = [1, 512], strides = [1, 1]} : vector<9x512xf32> to vector<1x512xf32>
    %570 = vector.broadcast %569 : vector<1x512xf32> to vector<4x512xf32>
    %571 = arith.mulf %568, %570 : vector<4x512xf32>
    %572 = tpu.concatenate %526, %532, %538, %544, %547, %553, %559, %565, %571 in 0 : vector<4x512xf32>, vector<4x512xf32>, vector<4x512xf32>, vector<4x512xf32>, vector<4x512xf32>, vector<4x512xf32>, vector<4x512xf32>, vector<4x512xf32>, vector<4x512xf32> -> vector<36x512xf32>
    %cst_104 = arith.constant dense<0.000000e+00> : vector<4x512xf32>
    %573 = tpu.matmul %519, %572, %cst_104 {dimension_numbers = #tpu.dot_dimension_numbers<[1], [0], [0], [1], [0, 0, 1, 1], [], []>} : vector<4x36xf32>, vector<36x512xf32>, vector<4x512xf32> -> vector<4x512xf32>
    %574 = vector.broadcast %520 : vector<4x1xf32> to vector<4x512xf32>
    %575 = arith.addf %573, %574 : vector<4x512xf32>
    %cst_105 = arith.constant 0.000000e+00 : f32
    %576 = vector.broadcast %cst_105 : f32 to vector<4x512xf32>
    %577 = arith.cmpf oge, %575, %576 : vector<4x512xf32>
    %cst_106 = arith.constant 2.000000e-01 : f32
    %578 = vector.broadcast %cst_106 : f32 to vector<4x512xf32>
    %579 = arith.mulf %578, %575 : vector<4x512xf32>
    %580 = arith.select %577, %575, %579 : vector<4x512xi1>, vector<4x512xf32>
    %cst_107 = arith.constant dense<0.000000e+00> : vector<4x512xf32>
    %581 = tpu.matmul %303, %9, %cst_107 {dimension_numbers = #tpu.dot_dimension_numbers<[1], [0], [0], [1], [0, 0, 1, 1], [], []>} : vector<4x128xf32>, vector<128x512xf32>, vector<4x512xf32> -> vector<4x512xf32>
    %cst_108 = arith.constant dense<0.000000e+00> : vector<4x128xf32>
    %582 = tpu.matmul %164, %8, %cst_108 {dimension_numbers = #tpu.dot_dimension_numbers<[1], [0], [0], [1], [0, 0, 1, 1], [], []>} : vector<4x32xf32>, vector<32x128xf32>, vector<4x128xf32> -> vector<4x128xf32>
    %cst_109 = arith.constant dense<0.000000e+00> : vector<4x512xf32>
    %583 = tpu.matmul %582, %9, %cst_109 {dimension_numbers = #tpu.dot_dimension_numbers<[1], [0], [0], [1], [0, 0, 1, 1], [], []>} : vector<4x128xf32>, vector<128x512xf32>, vector<4x512xf32> -> vector<4x512xf32>
    %584 = tpu.concatenate %580, %442, %581, %583 in 0 : vector<4x512xf32>, vector<4x512xf32>, vector<4x512xf32>, vector<4x512xf32> -> vector<16x512xf32>
    %c0_110 = arith.constant 0 : index
    %c0_111 = arith.constant 0 : index
    %c0_112 = arith.constant 0 : index
    %585 = vector.load %arg4[%c0_110, %c0_111, %c0_112] : memref<2x4x16xf32, #tpu.memory_space<vmem>>, vector<1x4x16xf32>
    %586 = vector.shape_cast %585 : vector<1x4x16xf32> to vector<4x16xf32>
    %c0_113 = arith.constant 0 : index
    %c3_114 = arith.constant 3 : index
    %587 = vector.load %arg5[%c0_113, %c3_114] : memref<4x8xf32, #tpu.memory_space<vmem>>, vector<4x1xf32>
    %cst_115 = arith.constant dense<0.000000e+00> : vector<4x512xf32>
    %588 = tpu.matmul %586, %584, %cst_115 {dimension_numbers = #tpu.dot_dimension_numbers<[1], [0], [0], [1], [0, 0, 1, 1], [], []>} : vector<4x16xf32>, vector<16x512xf32>, vector<4x512xf32> -> vector<4x512xf32>
    %589 = vector.broadcast %587 : vector<4x1xf32> to vector<4x512xf32>
    %590 = arith.addf %588, %589 : vector<4x512xf32>
    %cst_116 = arith.constant 0.000000e+00 : f32
    %591 = vector.broadcast %cst_116 : f32 to vector<4x512xf32>
    %592 = arith.cmpf oge, %590, %591 : vector<4x512xf32>
    %cst_117 = arith.constant 2.000000e-01 : f32
    %593 = vector.broadcast %cst_117 : f32 to vector<4x512xf32>
    %594 = arith.mulf %593, %590 : vector<4x512xf32>
    %595 = arith.select %592, %590, %594 : vector<4x512xi1>, vector<4x512xf32>
    %596 = arith.addf %595, %10 : vector<4x512xf32>
    %597 = tpu.concatenate %10, %596 in 0 : vector<4x512xf32>, vector<4x512xf32> -> vector<8x512xf32>
    %c0_118 = arith.constant 0 : index
    %c0_119 = arith.constant 0 : index
    %598 = vector.load %arg6[%c0_118, %c0_119] : memref<4x8xf32, #tpu.memory_space<vmem>>, vector<4x8xf32>
    %c0_120 = arith.constant 0 : index
    %c0_121 = arith.constant 0 : index
    %599 = vector.load %arg8[%c0_120, %c0_121] : memref<4x2xf32, #tpu.memory_space<vmem>>, vector<4x1xf32>
    %cst_122 = arith.constant dense<0.000000e+00> : vector<4x512xf32>
    %600 = tpu.matmul %598, %597, %cst_122 {dimension_numbers = #tpu.dot_dimension_numbers<[1], [0], [0], [1], [0, 0, 1, 1], [], []>} : vector<4x8xf32>, vector<8x512xf32>, vector<4x512xf32> -> vector<4x512xf32>
    %601 = vector.broadcast %599 : vector<4x1xf32> to vector<4x512xf32>
    %602 = arith.addf %600, %601 : vector<4x512xf32>
    %cst_123 = arith.constant 0.000000e+00 : f32
    %603 = vector.broadcast %cst_123 : f32 to vector<4x512xf32>
    %604 = arith.cmpf oge, %602, %603 : vector<4x512xf32>
    %cst_124 = arith.constant 2.000000e-01 : f32
    %605 = vector.broadcast %cst_124 : f32 to vector<4x512xf32>
    %606 = arith.mulf %605, %602 : vector<4x512xf32>
    %607 = arith.select %604, %602, %606 : vector<4x512xi1>, vector<4x512xf32>
    %608 = vector.extract_strided_slice %607 {offsets = [0, 1], sizes = [4, 511], strides = [1, 1]} : vector<4x512xf32> to vector<4x511xf32>
    %609 = vector.extract_strided_slice %607 {offsets = [0, 0], sizes = [4, 1], strides = [1, 1]} : vector<4x512xf32> to vector<4x1xf32>
    %610 = tpu.concatenate %608, %609 in 1 : vector<4x511xf32>, vector<4x1xf32> -> vector<4x512xf32>
    %611 = arith.maximumf %607, %610 : vector<4x512xf32>
    %612 = vector.extract_strided_slice %611 {offsets = [0, 16], sizes = [4, 496], strides = [1, 1]} : vector<4x512xf32> to vector<4x496xf32>
    %613 = vector.extract_strided_slice %611 {offsets = [0, 0], sizes = [4, 16], strides = [1, 1]} : vector<4x512xf32> to vector<4x16xf32>
    %614 = tpu.concatenate %612, %613 in 1 : vector<4x496xf32>, vector<4x16xf32> -> vector<4x512xf32>
    %615 = arith.maximumf %611, %614 : vector<4x512xf32>
    %cst_125 = arith.constant dense<0.000000e+00> : vector<4x128xf32>
    %616 = tpu.matmul %615, %4, %cst_125 {dimension_numbers = #tpu.dot_dimension_numbers<[1], [0], [0], [1], [0, 0, 1, 1], [], []>} : vector<4x512xf32>, vector<512x128xf32>, vector<4x128xf32> -> vector<4x128xf32>
    %617 = vector.extract_strided_slice %616 {offsets = [0, 1], sizes = [4, 127], strides = [1, 1]} : vector<4x128xf32> to vector<4x127xf32>
    %618 = vector.extract_strided_slice %616 {offsets = [0, 0], sizes = [4, 1], strides = [1, 1]} : vector<4x128xf32> to vector<4x1xf32>
    %619 = tpu.concatenate %617, %618 in 1 : vector<4x127xf32>, vector<4x1xf32> -> vector<4x128xf32>
    %620 = arith.maximumf %616, %619 : vector<4x128xf32>
    %621 = vector.extract_strided_slice %620 {offsets = [0, 8], sizes = [4, 120], strides = [1, 1]} : vector<4x128xf32> to vector<4x120xf32>
    %622 = vector.extract_strided_slice %620 {offsets = [0, 0], sizes = [4, 8], strides = [1, 1]} : vector<4x128xf32> to vector<4x8xf32>
    %623 = tpu.concatenate %621, %622 in 1 : vector<4x120xf32>, vector<4x8xf32> -> vector<4x128xf32>
    %624 = arith.maximumf %620, %623 : vector<4x128xf32>
    %cst_126 = arith.constant dense<0.000000e+00> : vector<4x32xf32>
    %625 = tpu.matmul %624, %5, %cst_126 {dimension_numbers = #tpu.dot_dimension_numbers<[1], [0], [0], [1], [0, 0, 1, 1], [], []>} : vector<4x128xf32>, vector<128x32xf32>, vector<4x32xf32> -> vector<4x32xf32>
    %626 = vector.extract_strided_slice %625 {offsets = [0, 1], sizes = [4, 31], strides = [1, 1]} : vector<4x32xf32> to vector<4x31xf32>
    %627 = vector.extract_strided_slice %625 {offsets = [0, 0], sizes = [4, 1], strides = [1, 1]} : vector<4x32xf32> to vector<4x1xf32>
    %628 = tpu.concatenate %626, %627 in 1 : vector<4x31xf32>, vector<4x1xf32> -> vector<4x32xf32>
    %629 = arith.maximumf %625, %628 : vector<4x32xf32>
    %630 = vector.extract_strided_slice %629 {offsets = [0, 4], sizes = [4, 28], strides = [1, 1]} : vector<4x32xf32> to vector<4x28xf32>
    %631 = vector.extract_strided_slice %629 {offsets = [0, 0], sizes = [4, 4], strides = [1, 1]} : vector<4x32xf32> to vector<4x4xf32>
    %632 = tpu.concatenate %630, %631 in 1 : vector<4x28xf32>, vector<4x4xf32> -> vector<4x32xf32>
    %633 = arith.maximumf %629, %632 : vector<4x32xf32>
    %cst_127 = arith.constant dense<0.000000e+00> : vector<4x8xf32>
    %634 = tpu.matmul %633, %6, %cst_127 {dimension_numbers = #tpu.dot_dimension_numbers<[1], [0], [0], [1], [0, 0, 1, 1], [], []>} : vector<4x32xf32>, vector<32x8xf32>, vector<4x8xf32> -> vector<4x8xf32>
    %c8 = arith.constant 8 : index
    %c0_128 = arith.constant 0 : index
    %c0_129 = arith.constant 0 : index
    %635 = vector.load %arg1[%c8, %c0_128, %c0_129] : memref<16x4x36xf32, #tpu.memory_space<vmem>>, vector<1x4x36xf32>
    %636 = vector.shape_cast %635 : vector<1x4x36xf32> to vector<4x36xf32>
    %c0_130 = arith.constant 0 : index
    %c8_131 = arith.constant 8 : index
    %637 = vector.load %arg2[%c0_130, %c8_131] : memref<4x16xf32, #tpu.memory_space<vmem>>, vector<4x1xf32>
    %638 = vector.extract_strided_slice %634 {offsets = [0, 5], sizes = [4, 3], strides = [1, 1]} : vector<4x8xf32> to vector<4x3xf32>
    %639 = vector.extract_strided_slice %634 {offsets = [0, 0], sizes = [4, 5], strides = [1, 1]} : vector<4x8xf32> to vector<4x5xf32>
    %640 = tpu.concatenate %638, %639 in 1 : vector<4x3xf32>, vector<4x5xf32> -> vector<4x8xf32>
    %641 = vector.extract_strided_slice %3 {offsets = [0, 0], sizes = [1, 8], strides = [1, 1]} : vector<9x8xf32> to vector<1x8xf32>
    %642 = vector.broadcast %641 : vector<1x8xf32> to vector<4x8xf32>
    %643 = arith.mulf %640, %642 : vector<4x8xf32>
    %644 = vector.extract_strided_slice %634 {offsets = [0, 6], sizes = [4, 2], strides = [1, 1]} : vector<4x8xf32> to vector<4x2xf32>
    %645 = vector.extract_strided_slice %634 {offsets = [0, 0], sizes = [4, 6], strides = [1, 1]} : vector<4x8xf32> to vector<4x6xf32>
    %646 = tpu.concatenate %644, %645 in 1 : vector<4x2xf32>, vector<4x6xf32> -> vector<4x8xf32>
    %647 = vector.extract_strided_slice %3 {offsets = [1, 0], sizes = [1, 8], strides = [1, 1]} : vector<9x8xf32> to vector<1x8xf32>
    %648 = vector.broadcast %647 : vector<1x8xf32> to vector<4x8xf32>
    %649 = arith.mulf %646, %648 : vector<4x8xf32>
    %650 = vector.extract_strided_slice %634 {offsets = [0, 7], sizes = [4, 1], strides = [1, 1]} : vector<4x8xf32> to vector<4x1xf32>
    %651 = vector.extract_strided_slice %634 {offsets = [0, 0], sizes = [4, 7], strides = [1, 1]} : vector<4x8xf32> to vector<4x7xf32>
    %652 = tpu.concatenate %650, %651 in 1 : vector<4x1xf32>, vector<4x7xf32> -> vector<4x8xf32>
    %653 = vector.extract_strided_slice %3 {offsets = [2, 0], sizes = [1, 8], strides = [1, 1]} : vector<9x8xf32> to vector<1x8xf32>
    %654 = vector.broadcast %653 : vector<1x8xf32> to vector<4x8xf32>
    %655 = arith.mulf %652, %654 : vector<4x8xf32>
    %656 = vector.extract_strided_slice %634 {offsets = [0, 7], sizes = [4, 1], strides = [1, 1]} : vector<4x8xf32> to vector<4x1xf32>
    %657 = vector.extract_strided_slice %634 {offsets = [0, 0], sizes = [4, 7], strides = [1, 1]} : vector<4x8xf32> to vector<4x7xf32>
    %658 = tpu.concatenate %656, %657 in 1 : vector<4x1xf32>, vector<4x7xf32> -> vector<4x8xf32>
    %659 = vector.extract_strided_slice %3 {offsets = [3, 0], sizes = [1, 8], strides = [1, 1]} : vector<9x8xf32> to vector<1x8xf32>
    %660 = vector.broadcast %659 : vector<1x8xf32> to vector<4x8xf32>
    %661 = arith.mulf %658, %660 : vector<4x8xf32>
    %662 = vector.extract_strided_slice %3 {offsets = [4, 0], sizes = [1, 8], strides = [1, 1]} : vector<9x8xf32> to vector<1x8xf32>
    %663 = vector.broadcast %662 : vector<1x8xf32> to vector<4x8xf32>
    %664 = arith.mulf %634, %663 : vector<4x8xf32>
    %665 = vector.extract_strided_slice %634 {offsets = [0, 1], sizes = [4, 7], strides = [1, 1]} : vector<4x8xf32> to vector<4x7xf32>
    %666 = vector.extract_strided_slice %634 {offsets = [0, 0], sizes = [4, 1], strides = [1, 1]} : vector<4x8xf32> to vector<4x1xf32>
    %667 = tpu.concatenate %665, %666 in 1 : vector<4x7xf32>, vector<4x1xf32> -> vector<4x8xf32>
    %668 = vector.extract_strided_slice %3 {offsets = [5, 0], sizes = [1, 8], strides = [1, 1]} : vector<9x8xf32> to vector<1x8xf32>
    %669 = vector.broadcast %668 : vector<1x8xf32> to vector<4x8xf32>
    %670 = arith.mulf %667, %669 : vector<4x8xf32>
    %671 = vector.extract_strided_slice %634 {offsets = [0, 1], sizes = [4, 7], strides = [1, 1]} : vector<4x8xf32> to vector<4x7xf32>
    %672 = vector.extract_strided_slice %634 {offsets = [0, 0], sizes = [4, 1], strides = [1, 1]} : vector<4x8xf32> to vector<4x1xf32>
    %673 = tpu.concatenate %671, %672 in 1 : vector<4x7xf32>, vector<4x1xf32> -> vector<4x8xf32>
    %674 = vector.extract_strided_slice %3 {offsets = [6, 0], sizes = [1, 8], strides = [1, 1]} : vector<9x8xf32> to vector<1x8xf32>
    %675 = vector.broadcast %674 : vector<1x8xf32> to vector<4x8xf32>
    %676 = arith.mulf %673, %675 : vector<4x8xf32>
    %677 = vector.extract_strided_slice %634 {offsets = [0, 2], sizes = [4, 6], strides = [1, 1]} : vector<4x8xf32> to vector<4x6xf32>
    %678 = vector.extract_strided_slice %634 {offsets = [0, 0], sizes = [4, 2], strides = [1, 1]} : vector<4x8xf32> to vector<4x2xf32>
    %679 = tpu.concatenate %677, %678 in 1 : vector<4x6xf32>, vector<4x2xf32> -> vector<4x8xf32>
    %680 = vector.extract_strided_slice %3 {offsets = [7, 0], sizes = [1, 8], strides = [1, 1]} : vector<9x8xf32> to vector<1x8xf32>
    %681 = vector.broadcast %680 : vector<1x8xf32> to vector<4x8xf32>
    %682 = arith.mulf %679, %681 : vector<4x8xf32>
    %683 = vector.extract_strided_slice %634 {offsets = [0, 3], sizes = [4, 5], strides = [1, 1]} : vector<4x8xf32> to vector<4x5xf32>
    %684 = vector.extract_strided_slice %634 {offsets = [0, 0], sizes = [4, 3], strides = [1, 1]} : vector<4x8xf32> to vector<4x3xf32>
    %685 = tpu.concatenate %683, %684 in 1 : vector<4x5xf32>, vector<4x3xf32> -> vector<4x8xf32>
    %686 = vector.extract_strided_slice %3 {offsets = [8, 0], sizes = [1, 8], strides = [1, 1]} : vector<9x8xf32> to vector<1x8xf32>
    %687 = vector.broadcast %686 : vector<1x8xf32> to vector<4x8xf32>
    %688 = arith.mulf %685, %687 : vector<4x8xf32>
    %689 = tpu.concatenate %643, %649, %655, %661, %664, %670, %676, %682, %688 in 0 : vector<4x8xf32>, vector<4x8xf32>, vector<4x8xf32>, vector<4x8xf32>, vector<4x8xf32>, vector<4x8xf32>, vector<4x8xf32>, vector<4x8xf32>, vector<4x8xf32> -> vector<36x8xf32>
    %cst_132 = arith.constant dense<0.000000e+00> : vector<4x8xf32>
    %690 = tpu.matmul %636, %689, %cst_132 {dimension_numbers = #tpu.dot_dimension_numbers<[1], [0], [0], [1], [0, 0, 1, 1], [], []>} : vector<4x36xf32>, vector<36x8xf32>, vector<4x8xf32> -> vector<4x8xf32>
    %691 = vector.broadcast %637 : vector<4x1xf32> to vector<4x8xf32>
    %692 = arith.addf %690, %691 : vector<4x8xf32>
    %cst_133 = arith.constant 0.000000e+00 : f32
    %693 = vector.broadcast %cst_133 : f32 to vector<4x8xf32>
    %694 = arith.cmpf oge, %692, %693 : vector<4x8xf32>
    %cst_134 = arith.constant 2.000000e-01 : f32
    %695 = vector.broadcast %cst_134 : f32 to vector<4x8xf32>
    %696 = arith.mulf %695, %692 : vector<4x8xf32>
    %697 = arith.select %694, %692, %696 : vector<4x8xi1>, vector<4x8xf32>
    %c9 = arith.constant 9 : index
    %c0_135 = arith.constant 0 : index
    %c0_136 = arith.constant 0 : index
    %698 = vector.load %arg1[%c9, %c0_135, %c0_136] : memref<16x4x36xf32, #tpu.memory_space<vmem>>, vector<1x4x36xf32>
    %699 = vector.shape_cast %698 : vector<1x4x36xf32> to vector<4x36xf32>
    %c0_137 = arith.constant 0 : index
    %c9_138 = arith.constant 9 : index
    %700 = vector.load %arg2[%c0_137, %c9_138] : memref<4x16xf32, #tpu.memory_space<vmem>>, vector<4x1xf32>
    %701 = vector.extract_strided_slice %697 {offsets = [0, 5], sizes = [4, 3], strides = [1, 1]} : vector<4x8xf32> to vector<4x3xf32>
    %702 = vector.extract_strided_slice %697 {offsets = [0, 0], sizes = [4, 5], strides = [1, 1]} : vector<4x8xf32> to vector<4x5xf32>
    %703 = tpu.concatenate %701, %702 in 1 : vector<4x3xf32>, vector<4x5xf32> -> vector<4x8xf32>
    %704 = vector.extract_strided_slice %3 {offsets = [0, 0], sizes = [1, 8], strides = [1, 1]} : vector<9x8xf32> to vector<1x8xf32>
    %705 = vector.broadcast %704 : vector<1x8xf32> to vector<4x8xf32>
    %706 = arith.mulf %703, %705 : vector<4x8xf32>
    %707 = vector.extract_strided_slice %697 {offsets = [0, 6], sizes = [4, 2], strides = [1, 1]} : vector<4x8xf32> to vector<4x2xf32>
    %708 = vector.extract_strided_slice %697 {offsets = [0, 0], sizes = [4, 6], strides = [1, 1]} : vector<4x8xf32> to vector<4x6xf32>
    %709 = tpu.concatenate %707, %708 in 1 : vector<4x2xf32>, vector<4x6xf32> -> vector<4x8xf32>
    %710 = vector.extract_strided_slice %3 {offsets = [1, 0], sizes = [1, 8], strides = [1, 1]} : vector<9x8xf32> to vector<1x8xf32>
    %711 = vector.broadcast %710 : vector<1x8xf32> to vector<4x8xf32>
    %712 = arith.mulf %709, %711 : vector<4x8xf32>
    %713 = vector.extract_strided_slice %697 {offsets = [0, 7], sizes = [4, 1], strides = [1, 1]} : vector<4x8xf32> to vector<4x1xf32>
    %714 = vector.extract_strided_slice %697 {offsets = [0, 0], sizes = [4, 7], strides = [1, 1]} : vector<4x8xf32> to vector<4x7xf32>
    %715 = tpu.concatenate %713, %714 in 1 : vector<4x1xf32>, vector<4x7xf32> -> vector<4x8xf32>
    %716 = vector.extract_strided_slice %3 {offsets = [2, 0], sizes = [1, 8], strides = [1, 1]} : vector<9x8xf32> to vector<1x8xf32>
    %717 = vector.broadcast %716 : vector<1x8xf32> to vector<4x8xf32>
    %718 = arith.mulf %715, %717 : vector<4x8xf32>
    %719 = vector.extract_strided_slice %697 {offsets = [0, 7], sizes = [4, 1], strides = [1, 1]} : vector<4x8xf32> to vector<4x1xf32>
    %720 = vector.extract_strided_slice %697 {offsets = [0, 0], sizes = [4, 7], strides = [1, 1]} : vector<4x8xf32> to vector<4x7xf32>
    %721 = tpu.concatenate %719, %720 in 1 : vector<4x1xf32>, vector<4x7xf32> -> vector<4x8xf32>
    %722 = vector.extract_strided_slice %3 {offsets = [3, 0], sizes = [1, 8], strides = [1, 1]} : vector<9x8xf32> to vector<1x8xf32>
    %723 = vector.broadcast %722 : vector<1x8xf32> to vector<4x8xf32>
    %724 = arith.mulf %721, %723 : vector<4x8xf32>
    %725 = vector.extract_strided_slice %3 {offsets = [4, 0], sizes = [1, 8], strides = [1, 1]} : vector<9x8xf32> to vector<1x8xf32>
    %726 = vector.broadcast %725 : vector<1x8xf32> to vector<4x8xf32>
    %727 = arith.mulf %697, %726 : vector<4x8xf32>
    %728 = vector.extract_strided_slice %697 {offsets = [0, 1], sizes = [4, 7], strides = [1, 1]} : vector<4x8xf32> to vector<4x7xf32>
    %729 = vector.extract_strided_slice %697 {offsets = [0, 0], sizes = [4, 1], strides = [1, 1]} : vector<4x8xf32> to vector<4x1xf32>
    %730 = tpu.concatenate %728, %729 in 1 : vector<4x7xf32>, vector<4x1xf32> -> vector<4x8xf32>
    %731 = vector.extract_strided_slice %3 {offsets = [5, 0], sizes = [1, 8], strides = [1, 1]} : vector<9x8xf32> to vector<1x8xf32>
    %732 = vector.broadcast %731 : vector<1x8xf32> to vector<4x8xf32>
    %733 = arith.mulf %730, %732 : vector<4x8xf32>
    %734 = vector.extract_strided_slice %697 {offsets = [0, 1], sizes = [4, 7], strides = [1, 1]} : vector<4x8xf32> to vector<4x7xf32>
    %735 = vector.extract_strided_slice %697 {offsets = [0, 0], sizes = [4, 1], strides = [1, 1]} : vector<4x8xf32> to vector<4x1xf32>
    %736 = tpu.concatenate %734, %735 in 1 : vector<4x7xf32>, vector<4x1xf32> -> vector<4x8xf32>
    %737 = vector.extract_strided_slice %3 {offsets = [6, 0], sizes = [1, 8], strides = [1, 1]} : vector<9x8xf32> to vector<1x8xf32>
    %738 = vector.broadcast %737 : vector<1x8xf32> to vector<4x8xf32>
    %739 = arith.mulf %736, %738 : vector<4x8xf32>
    %740 = vector.extract_strided_slice %697 {offsets = [0, 2], sizes = [4, 6], strides = [1, 1]} : vector<4x8xf32> to vector<4x6xf32>
    %741 = vector.extract_strided_slice %697 {offsets = [0, 0], sizes = [4, 2], strides = [1, 1]} : vector<4x8xf32> to vector<4x2xf32>
    %742 = tpu.concatenate %740, %741 in 1 : vector<4x6xf32>, vector<4x2xf32> -> vector<4x8xf32>
    %743 = vector.extract_strided_slice %3 {offsets = [7, 0], sizes = [1, 8], strides = [1, 1]} : vector<9x8xf32> to vector<1x8xf32>
    %744 = vector.broadcast %743 : vector<1x8xf32> to vector<4x8xf32>
    %745 = arith.mulf %742, %744 : vector<4x8xf32>
    %746 = vector.extract_strided_slice %697 {offsets = [0, 3], sizes = [4, 5], strides = [1, 1]} : vector<4x8xf32> to vector<4x5xf32>
    %747 = vector.extract_strided_slice %697 {offsets = [0, 0], sizes = [4, 3], strides = [1, 1]} : vector<4x8xf32> to vector<4x3xf32>
    %748 = tpu.concatenate %746, %747 in 1 : vector<4x5xf32>, vector<4x3xf32> -> vector<4x8xf32>
    %749 = vector.extract_strided_slice %3 {offsets = [8, 0], sizes = [1, 8], strides = [1, 1]} : vector<9x8xf32> to vector<1x8xf32>
    %750 = vector.broadcast %749 : vector<1x8xf32> to vector<4x8xf32>
    %751 = arith.mulf %748, %750 : vector<4x8xf32>
    %752 = tpu.concatenate %706, %712, %718, %724, %727, %733, %739, %745, %751 in 0 : vector<4x8xf32>, vector<4x8xf32>, vector<4x8xf32>, vector<4x8xf32>, vector<4x8xf32>, vector<4x8xf32>, vector<4x8xf32>, vector<4x8xf32>, vector<4x8xf32> -> vector<36x8xf32>
    %cst_139 = arith.constant dense<0.000000e+00> : vector<4x8xf32>
    %753 = tpu.matmul %699, %752, %cst_139 {dimension_numbers = #tpu.dot_dimension_numbers<[1], [0], [0], [1], [0, 0, 1, 1], [], []>} : vector<4x36xf32>, vector<36x8xf32>, vector<4x8xf32> -> vector<4x8xf32>
    %754 = vector.broadcast %700 : vector<4x1xf32> to vector<4x8xf32>
    %755 = arith.addf %753, %754 : vector<4x8xf32>
    %cst_140 = arith.constant 0.000000e+00 : f32
    %756 = vector.broadcast %cst_140 : f32 to vector<4x8xf32>
    %757 = arith.cmpf oge, %755, %756 : vector<4x8xf32>
    %cst_141 = arith.constant 2.000000e-01 : f32
    %758 = vector.broadcast %cst_141 : f32 to vector<4x8xf32>
    %759 = arith.mulf %758, %755 : vector<4x8xf32>
    %760 = arith.select %757, %755, %759 : vector<4x8xi1>, vector<4x8xf32>
    %cst_142 = arith.constant dense<0.000000e+00> : vector<4x32xf32>
    %761 = tpu.matmul %760, %7, %cst_142 {dimension_numbers = #tpu.dot_dimension_numbers<[1], [0], [0], [1], [0, 0, 1, 1], [], []>} : vector<4x8xf32>, vector<8x32xf32>, vector<4x32xf32> -> vector<4x32xf32>
    %762 = tpu.concatenate %625, %761 in 0 : vector<4x32xf32>, vector<4x32xf32> -> vector<8x32xf32>
    %c3_143 = arith.constant 3 : index
    %c0_144 = arith.constant 0 : index
    %c0_145 = arith.constant 0 : index
    %763 = vector.load %arg3[%c3_143, %c0_144, %c0_145] : memref<6x4x8xf32, #tpu.memory_space<vmem>>, vector<1x4x8xf32>
    %764 = vector.shape_cast %763 : vector<1x4x8xf32> to vector<4x8xf32>
    %c0_146 = arith.constant 0 : index
    %c4_147 = arith.constant 4 : index
    %765 = vector.load %arg5[%c0_146, %c4_147] : memref<4x8xf32, #tpu.memory_space<vmem>>, vector<4x1xf32>
    %cst_148 = arith.constant dense<0.000000e+00> : vector<4x32xf32>
    %766 = tpu.matmul %764, %762, %cst_148 {dimension_numbers = #tpu.dot_dimension_numbers<[1], [0], [0], [1], [0, 0, 1, 1], [], []>} : vector<4x8xf32>, vector<8x32xf32>, vector<4x32xf32> -> vector<4x32xf32>
    %767 = vector.broadcast %765 : vector<4x1xf32> to vector<4x32xf32>
    %768 = arith.addf %766, %767 : vector<4x32xf32>
    %cst_149 = arith.constant 0.000000e+00 : f32
    %769 = vector.broadcast %cst_149 : f32 to vector<4x32xf32>
    %770 = arith.cmpf oge, %768, %769 : vector<4x32xf32>
    %cst_150 = arith.constant 2.000000e-01 : f32
    %771 = vector.broadcast %cst_150 : f32 to vector<4x32xf32>
    %772 = arith.mulf %771, %768 : vector<4x32xf32>
    %773 = arith.select %770, %768, %772 : vector<4x32xi1>, vector<4x32xf32>
    %c10 = arith.constant 10 : index
    %c0_151 = arith.constant 0 : index
    %c0_152 = arith.constant 0 : index
    %774 = vector.load %arg1[%c10, %c0_151, %c0_152] : memref<16x4x36xf32, #tpu.memory_space<vmem>>, vector<1x4x36xf32>
    %775 = vector.shape_cast %774 : vector<1x4x36xf32> to vector<4x36xf32>
    %c0_153 = arith.constant 0 : index
    %c10_154 = arith.constant 10 : index
    %776 = vector.load %arg2[%c0_153, %c10_154] : memref<4x16xf32, #tpu.memory_space<vmem>>, vector<4x1xf32>
    %777 = vector.extract_strided_slice %773 {offsets = [0, 27], sizes = [4, 5], strides = [1, 1]} : vector<4x32xf32> to vector<4x5xf32>
    %778 = vector.extract_strided_slice %773 {offsets = [0, 0], sizes = [4, 27], strides = [1, 1]} : vector<4x32xf32> to vector<4x27xf32>
    %779 = tpu.concatenate %777, %778 in 1 : vector<4x5xf32>, vector<4x27xf32> -> vector<4x32xf32>
    %780 = vector.extract_strided_slice %2 {offsets = [0, 0], sizes = [1, 32], strides = [1, 1]} : vector<9x32xf32> to vector<1x32xf32>
    %781 = vector.broadcast %780 : vector<1x32xf32> to vector<4x32xf32>
    %782 = arith.mulf %779, %781 : vector<4x32xf32>
    %783 = vector.extract_strided_slice %773 {offsets = [0, 28], sizes = [4, 4], strides = [1, 1]} : vector<4x32xf32> to vector<4x4xf32>
    %784 = vector.extract_strided_slice %773 {offsets = [0, 0], sizes = [4, 28], strides = [1, 1]} : vector<4x32xf32> to vector<4x28xf32>
    %785 = tpu.concatenate %783, %784 in 1 : vector<4x4xf32>, vector<4x28xf32> -> vector<4x32xf32>
    %786 = vector.extract_strided_slice %2 {offsets = [1, 0], sizes = [1, 32], strides = [1, 1]} : vector<9x32xf32> to vector<1x32xf32>
    %787 = vector.broadcast %786 : vector<1x32xf32> to vector<4x32xf32>
    %788 = arith.mulf %785, %787 : vector<4x32xf32>
    %789 = vector.extract_strided_slice %773 {offsets = [0, 29], sizes = [4, 3], strides = [1, 1]} : vector<4x32xf32> to vector<4x3xf32>
    %790 = vector.extract_strided_slice %773 {offsets = [0, 0], sizes = [4, 29], strides = [1, 1]} : vector<4x32xf32> to vector<4x29xf32>
    %791 = tpu.concatenate %789, %790 in 1 : vector<4x3xf32>, vector<4x29xf32> -> vector<4x32xf32>
    %792 = vector.extract_strided_slice %2 {offsets = [2, 0], sizes = [1, 32], strides = [1, 1]} : vector<9x32xf32> to vector<1x32xf32>
    %793 = vector.broadcast %792 : vector<1x32xf32> to vector<4x32xf32>
    %794 = arith.mulf %791, %793 : vector<4x32xf32>
    %795 = vector.extract_strided_slice %773 {offsets = [0, 31], sizes = [4, 1], strides = [1, 1]} : vector<4x32xf32> to vector<4x1xf32>
    %796 = vector.extract_strided_slice %773 {offsets = [0, 0], sizes = [4, 31], strides = [1, 1]} : vector<4x32xf32> to vector<4x31xf32>
    %797 = tpu.concatenate %795, %796 in 1 : vector<4x1xf32>, vector<4x31xf32> -> vector<4x32xf32>
    %798 = vector.extract_strided_slice %2 {offsets = [3, 0], sizes = [1, 32], strides = [1, 1]} : vector<9x32xf32> to vector<1x32xf32>
    %799 = vector.broadcast %798 : vector<1x32xf32> to vector<4x32xf32>
    %800 = arith.mulf %797, %799 : vector<4x32xf32>
    %801 = vector.extract_strided_slice %2 {offsets = [4, 0], sizes = [1, 32], strides = [1, 1]} : vector<9x32xf32> to vector<1x32xf32>
    %802 = vector.broadcast %801 : vector<1x32xf32> to vector<4x32xf32>
    %803 = arith.mulf %773, %802 : vector<4x32xf32>
    %804 = vector.extract_strided_slice %773 {offsets = [0, 1], sizes = [4, 31], strides = [1, 1]} : vector<4x32xf32> to vector<4x31xf32>
    %805 = vector.extract_strided_slice %773 {offsets = [0, 0], sizes = [4, 1], strides = [1, 1]} : vector<4x32xf32> to vector<4x1xf32>
    %806 = tpu.concatenate %804, %805 in 1 : vector<4x31xf32>, vector<4x1xf32> -> vector<4x32xf32>
    %807 = vector.extract_strided_slice %2 {offsets = [5, 0], sizes = [1, 32], strides = [1, 1]} : vector<9x32xf32> to vector<1x32xf32>
    %808 = vector.broadcast %807 : vector<1x32xf32> to vector<4x32xf32>
    %809 = arith.mulf %806, %808 : vector<4x32xf32>
    %810 = vector.extract_strided_slice %773 {offsets = [0, 3], sizes = [4, 29], strides = [1, 1]} : vector<4x32xf32> to vector<4x29xf32>
    %811 = vector.extract_strided_slice %773 {offsets = [0, 0], sizes = [4, 3], strides = [1, 1]} : vector<4x32xf32> to vector<4x3xf32>
    %812 = tpu.concatenate %810, %811 in 1 : vector<4x29xf32>, vector<4x3xf32> -> vector<4x32xf32>
    %813 = vector.extract_strided_slice %2 {offsets = [6, 0], sizes = [1, 32], strides = [1, 1]} : vector<9x32xf32> to vector<1x32xf32>
    %814 = vector.broadcast %813 : vector<1x32xf32> to vector<4x32xf32>
    %815 = arith.mulf %812, %814 : vector<4x32xf32>
    %816 = vector.extract_strided_slice %773 {offsets = [0, 4], sizes = [4, 28], strides = [1, 1]} : vector<4x32xf32> to vector<4x28xf32>
    %817 = vector.extract_strided_slice %773 {offsets = [0, 0], sizes = [4, 4], strides = [1, 1]} : vector<4x32xf32> to vector<4x4xf32>
    %818 = tpu.concatenate %816, %817 in 1 : vector<4x28xf32>, vector<4x4xf32> -> vector<4x32xf32>
    %819 = vector.extract_strided_slice %2 {offsets = [7, 0], sizes = [1, 32], strides = [1, 1]} : vector<9x32xf32> to vector<1x32xf32>
    %820 = vector.broadcast %819 : vector<1x32xf32> to vector<4x32xf32>
    %821 = arith.mulf %818, %820 : vector<4x32xf32>
    %822 = vector.extract_strided_slice %773 {offsets = [0, 5], sizes = [4, 27], strides = [1, 1]} : vector<4x32xf32> to vector<4x27xf32>
    %823 = vector.extract_strided_slice %773 {offsets = [0, 0], sizes = [4, 5], strides = [1, 1]} : vector<4x32xf32> to vector<4x5xf32>
    %824 = tpu.concatenate %822, %823 in 1 : vector<4x27xf32>, vector<4x5xf32> -> vector<4x32xf32>
    %825 = vector.extract_strided_slice %2 {offsets = [8, 0], sizes = [1, 32], strides = [1, 1]} : vector<9x32xf32> to vector<1x32xf32>
    %826 = vector.broadcast %825 : vector<1x32xf32> to vector<4x32xf32>
    %827 = arith.mulf %824, %826 : vector<4x32xf32>
    %828 = tpu.concatenate %782, %788, %794, %800, %803, %809, %815, %821, %827 in 0 : vector<4x32xf32>, vector<4x32xf32>, vector<4x32xf32>, vector<4x32xf32>, vector<4x32xf32>, vector<4x32xf32>, vector<4x32xf32>, vector<4x32xf32>, vector<4x32xf32> -> vector<36x32xf32>
    %cst_155 = arith.constant dense<0.000000e+00> : vector<4x32xf32>
    %829 = tpu.matmul %775, %828, %cst_155 {dimension_numbers = #tpu.dot_dimension_numbers<[1], [0], [0], [1], [0, 0, 1, 1], [], []>} : vector<4x36xf32>, vector<36x32xf32>, vector<4x32xf32> -> vector<4x32xf32>
    %830 = vector.broadcast %776 : vector<4x1xf32> to vector<4x32xf32>
    %831 = arith.addf %829, %830 : vector<4x32xf32>
    %cst_156 = arith.constant 0.000000e+00 : f32
    %832 = vector.broadcast %cst_156 : f32 to vector<4x32xf32>
    %833 = arith.cmpf oge, %831, %832 : vector<4x32xf32>
    %cst_157 = arith.constant 2.000000e-01 : f32
    %834 = vector.broadcast %cst_157 : f32 to vector<4x32xf32>
    %835 = arith.mulf %834, %831 : vector<4x32xf32>
    %836 = arith.select %833, %831, %835 : vector<4x32xi1>, vector<4x32xf32>
    %c11 = arith.constant 11 : index
    %c0_158 = arith.constant 0 : index
    %c0_159 = arith.constant 0 : index
    %837 = vector.load %arg1[%c11, %c0_158, %c0_159] : memref<16x4x36xf32, #tpu.memory_space<vmem>>, vector<1x4x36xf32>
    %838 = vector.shape_cast %837 : vector<1x4x36xf32> to vector<4x36xf32>
    %c0_160 = arith.constant 0 : index
    %c11_161 = arith.constant 11 : index
    %839 = vector.load %arg2[%c0_160, %c11_161] : memref<4x16xf32, #tpu.memory_space<vmem>>, vector<4x1xf32>
    %840 = vector.extract_strided_slice %836 {offsets = [0, 27], sizes = [4, 5], strides = [1, 1]} : vector<4x32xf32> to vector<4x5xf32>
    %841 = vector.extract_strided_slice %836 {offsets = [0, 0], sizes = [4, 27], strides = [1, 1]} : vector<4x32xf32> to vector<4x27xf32>
    %842 = tpu.concatenate %840, %841 in 1 : vector<4x5xf32>, vector<4x27xf32> -> vector<4x32xf32>
    %843 = vector.extract_strided_slice %2 {offsets = [0, 0], sizes = [1, 32], strides = [1, 1]} : vector<9x32xf32> to vector<1x32xf32>
    %844 = vector.broadcast %843 : vector<1x32xf32> to vector<4x32xf32>
    %845 = arith.mulf %842, %844 : vector<4x32xf32>
    %846 = vector.extract_strided_slice %836 {offsets = [0, 28], sizes = [4, 4], strides = [1, 1]} : vector<4x32xf32> to vector<4x4xf32>
    %847 = vector.extract_strided_slice %836 {offsets = [0, 0], sizes = [4, 28], strides = [1, 1]} : vector<4x32xf32> to vector<4x28xf32>
    %848 = tpu.concatenate %846, %847 in 1 : vector<4x4xf32>, vector<4x28xf32> -> vector<4x32xf32>
    %849 = vector.extract_strided_slice %2 {offsets = [1, 0], sizes = [1, 32], strides = [1, 1]} : vector<9x32xf32> to vector<1x32xf32>
    %850 = vector.broadcast %849 : vector<1x32xf32> to vector<4x32xf32>
    %851 = arith.mulf %848, %850 : vector<4x32xf32>
    %852 = vector.extract_strided_slice %836 {offsets = [0, 29], sizes = [4, 3], strides = [1, 1]} : vector<4x32xf32> to vector<4x3xf32>
    %853 = vector.extract_strided_slice %836 {offsets = [0, 0], sizes = [4, 29], strides = [1, 1]} : vector<4x32xf32> to vector<4x29xf32>
    %854 = tpu.concatenate %852, %853 in 1 : vector<4x3xf32>, vector<4x29xf32> -> vector<4x32xf32>
    %855 = vector.extract_strided_slice %2 {offsets = [2, 0], sizes = [1, 32], strides = [1, 1]} : vector<9x32xf32> to vector<1x32xf32>
    %856 = vector.broadcast %855 : vector<1x32xf32> to vector<4x32xf32>
    %857 = arith.mulf %854, %856 : vector<4x32xf32>
    %858 = vector.extract_strided_slice %836 {offsets = [0, 31], sizes = [4, 1], strides = [1, 1]} : vector<4x32xf32> to vector<4x1xf32>
    %859 = vector.extract_strided_slice %836 {offsets = [0, 0], sizes = [4, 31], strides = [1, 1]} : vector<4x32xf32> to vector<4x31xf32>
    %860 = tpu.concatenate %858, %859 in 1 : vector<4x1xf32>, vector<4x31xf32> -> vector<4x32xf32>
    %861 = vector.extract_strided_slice %2 {offsets = [3, 0], sizes = [1, 32], strides = [1, 1]} : vector<9x32xf32> to vector<1x32xf32>
    %862 = vector.broadcast %861 : vector<1x32xf32> to vector<4x32xf32>
    %863 = arith.mulf %860, %862 : vector<4x32xf32>
    %864 = vector.extract_strided_slice %2 {offsets = [4, 0], sizes = [1, 32], strides = [1, 1]} : vector<9x32xf32> to vector<1x32xf32>
    %865 = vector.broadcast %864 : vector<1x32xf32> to vector<4x32xf32>
    %866 = arith.mulf %836, %865 : vector<4x32xf32>
    %867 = vector.extract_strided_slice %836 {offsets = [0, 1], sizes = [4, 31], strides = [1, 1]} : vector<4x32xf32> to vector<4x31xf32>
    %868 = vector.extract_strided_slice %836 {offsets = [0, 0], sizes = [4, 1], strides = [1, 1]} : vector<4x32xf32> to vector<4x1xf32>
    %869 = tpu.concatenate %867, %868 in 1 : vector<4x31xf32>, vector<4x1xf32> -> vector<4x32xf32>
    %870 = vector.extract_strided_slice %2 {offsets = [5, 0], sizes = [1, 32], strides = [1, 1]} : vector<9x32xf32> to vector<1x32xf32>
    %871 = vector.broadcast %870 : vector<1x32xf32> to vector<4x32xf32>
    %872 = arith.mulf %869, %871 : vector<4x32xf32>
    %873 = vector.extract_strided_slice %836 {offsets = [0, 3], sizes = [4, 29], strides = [1, 1]} : vector<4x32xf32> to vector<4x29xf32>
    %874 = vector.extract_strided_slice %836 {offsets = [0, 0], sizes = [4, 3], strides = [1, 1]} : vector<4x32xf32> to vector<4x3xf32>
    %875 = tpu.concatenate %873, %874 in 1 : vector<4x29xf32>, vector<4x3xf32> -> vector<4x32xf32>
    %876 = vector.extract_strided_slice %2 {offsets = [6, 0], sizes = [1, 32], strides = [1, 1]} : vector<9x32xf32> to vector<1x32xf32>
    %877 = vector.broadcast %876 : vector<1x32xf32> to vector<4x32xf32>
    %878 = arith.mulf %875, %877 : vector<4x32xf32>
    %879 = vector.extract_strided_slice %836 {offsets = [0, 4], sizes = [4, 28], strides = [1, 1]} : vector<4x32xf32> to vector<4x28xf32>
    %880 = vector.extract_strided_slice %836 {offsets = [0, 0], sizes = [4, 4], strides = [1, 1]} : vector<4x32xf32> to vector<4x4xf32>
    %881 = tpu.concatenate %879, %880 in 1 : vector<4x28xf32>, vector<4x4xf32> -> vector<4x32xf32>
    %882 = vector.extract_strided_slice %2 {offsets = [7, 0], sizes = [1, 32], strides = [1, 1]} : vector<9x32xf32> to vector<1x32xf32>
    %883 = vector.broadcast %882 : vector<1x32xf32> to vector<4x32xf32>
    %884 = arith.mulf %881, %883 : vector<4x32xf32>
    %885 = vector.extract_strided_slice %836 {offsets = [0, 5], sizes = [4, 27], strides = [1, 1]} : vector<4x32xf32> to vector<4x27xf32>
    %886 = vector.extract_strided_slice %836 {offsets = [0, 0], sizes = [4, 5], strides = [1, 1]} : vector<4x32xf32> to vector<4x5xf32>
    %887 = tpu.concatenate %885, %886 in 1 : vector<4x27xf32>, vector<4x5xf32> -> vector<4x32xf32>
    %888 = vector.extract_strided_slice %2 {offsets = [8, 0], sizes = [1, 32], strides = [1, 1]} : vector<9x32xf32> to vector<1x32xf32>
    %889 = vector.broadcast %888 : vector<1x32xf32> to vector<4x32xf32>
    %890 = arith.mulf %887, %889 : vector<4x32xf32>
    %891 = tpu.concatenate %845, %851, %857, %863, %866, %872, %878, %884, %890 in 0 : vector<4x32xf32>, vector<4x32xf32>, vector<4x32xf32>, vector<4x32xf32>, vector<4x32xf32>, vector<4x32xf32>, vector<4x32xf32>, vector<4x32xf32>, vector<4x32xf32> -> vector<36x32xf32>
    %cst_162 = arith.constant dense<0.000000e+00> : vector<4x32xf32>
    %892 = tpu.matmul %838, %891, %cst_162 {dimension_numbers = #tpu.dot_dimension_numbers<[1], [0], [0], [1], [0, 0, 1, 1], [], []>} : vector<4x36xf32>, vector<36x32xf32>, vector<4x32xf32> -> vector<4x32xf32>
    %893 = vector.broadcast %839 : vector<4x1xf32> to vector<4x32xf32>
    %894 = arith.addf %892, %893 : vector<4x32xf32>
    %cst_163 = arith.constant 0.000000e+00 : f32
    %895 = vector.broadcast %cst_163 : f32 to vector<4x32xf32>
    %896 = arith.cmpf oge, %894, %895 : vector<4x32xf32>
    %cst_164 = arith.constant 2.000000e-01 : f32
    %897 = vector.broadcast %cst_164 : f32 to vector<4x32xf32>
    %898 = arith.mulf %897, %894 : vector<4x32xf32>
    %899 = arith.select %896, %894, %898 : vector<4x32xi1>, vector<4x32xf32>
    %cst_165 = arith.constant dense<0.000000e+00> : vector<4x128xf32>
    %900 = tpu.matmul %899, %8, %cst_165 {dimension_numbers = #tpu.dot_dimension_numbers<[1], [0], [0], [1], [0, 0, 1, 1], [], []>} : vector<4x32xf32>, vector<32x128xf32>, vector<4x128xf32> -> vector<4x128xf32>
    %901 = tpu.concatenate %616, %900 in 0 : vector<4x128xf32>, vector<4x128xf32> -> vector<8x128xf32>
    %c4_166 = arith.constant 4 : index
    %c0_167 = arith.constant 0 : index
    %c0_168 = arith.constant 0 : index
    %902 = vector.load %arg3[%c4_166, %c0_167, %c0_168] : memref<6x4x8xf32, #tpu.memory_space<vmem>>, vector<1x4x8xf32>
    %903 = vector.shape_cast %902 : vector<1x4x8xf32> to vector<4x8xf32>
    %c0_169 = arith.constant 0 : index
    %c5_170 = arith.constant 5 : index
    %904 = vector.load %arg5[%c0_169, %c5_170] : memref<4x8xf32, #tpu.memory_space<vmem>>, vector<4x1xf32>
    %cst_171 = arith.constant dense<0.000000e+00> : vector<4x128xf32>
    %905 = tpu.matmul %903, %901, %cst_171 {dimension_numbers = #tpu.dot_dimension_numbers<[1], [0], [0], [1], [0, 0, 1, 1], [], []>} : vector<4x8xf32>, vector<8x128xf32>, vector<4x128xf32> -> vector<4x128xf32>
    %906 = vector.broadcast %904 : vector<4x1xf32> to vector<4x128xf32>
    %907 = arith.addf %905, %906 : vector<4x128xf32>
    %cst_172 = arith.constant 0.000000e+00 : f32
    %908 = vector.broadcast %cst_172 : f32 to vector<4x128xf32>
    %909 = arith.cmpf oge, %907, %908 : vector<4x128xf32>
    %cst_173 = arith.constant 2.000000e-01 : f32
    %910 = vector.broadcast %cst_173 : f32 to vector<4x128xf32>
    %911 = arith.mulf %910, %907 : vector<4x128xf32>
    %912 = arith.select %909, %907, %911 : vector<4x128xi1>, vector<4x128xf32>
    %c12 = arith.constant 12 : index
    %c0_174 = arith.constant 0 : index
    %c0_175 = arith.constant 0 : index
    %913 = vector.load %arg1[%c12, %c0_174, %c0_175] : memref<16x4x36xf32, #tpu.memory_space<vmem>>, vector<1x4x36xf32>
    %914 = vector.shape_cast %913 : vector<1x4x36xf32> to vector<4x36xf32>
    %c0_176 = arith.constant 0 : index
    %c12_177 = arith.constant 12 : index
    %915 = vector.load %arg2[%c0_176, %c12_177] : memref<4x16xf32, #tpu.memory_space<vmem>>, vector<4x1xf32>
    %916 = vector.extract_strided_slice %912 {offsets = [0, 119], sizes = [4, 9], strides = [1, 1]} : vector<4x128xf32> to vector<4x9xf32>
    %917 = vector.extract_strided_slice %912 {offsets = [0, 0], sizes = [4, 119], strides = [1, 1]} : vector<4x128xf32> to vector<4x119xf32>
    %918 = tpu.concatenate %916, %917 in 1 : vector<4x9xf32>, vector<4x119xf32> -> vector<4x128xf32>
    %919 = vector.extract_strided_slice %1 {offsets = [0, 0], sizes = [1, 128], strides = [1, 1]} : vector<9x128xf32> to vector<1x128xf32>
    %920 = vector.broadcast %919 : vector<1x128xf32> to vector<4x128xf32>
    %921 = arith.mulf %918, %920 : vector<4x128xf32>
    %922 = vector.extract_strided_slice %912 {offsets = [0, 120], sizes = [4, 8], strides = [1, 1]} : vector<4x128xf32> to vector<4x8xf32>
    %923 = vector.extract_strided_slice %912 {offsets = [0, 0], sizes = [4, 120], strides = [1, 1]} : vector<4x128xf32> to vector<4x120xf32>
    %924 = tpu.concatenate %922, %923 in 1 : vector<4x8xf32>, vector<4x120xf32> -> vector<4x128xf32>
    %925 = vector.extract_strided_slice %1 {offsets = [1, 0], sizes = [1, 128], strides = [1, 1]} : vector<9x128xf32> to vector<1x128xf32>
    %926 = vector.broadcast %925 : vector<1x128xf32> to vector<4x128xf32>
    %927 = arith.mulf %924, %926 : vector<4x128xf32>
    %928 = vector.extract_strided_slice %912 {offsets = [0, 121], sizes = [4, 7], strides = [1, 1]} : vector<4x128xf32> to vector<4x7xf32>
    %929 = vector.extract_strided_slice %912 {offsets = [0, 0], sizes = [4, 121], strides = [1, 1]} : vector<4x128xf32> to vector<4x121xf32>
    %930 = tpu.concatenate %928, %929 in 1 : vector<4x7xf32>, vector<4x121xf32> -> vector<4x128xf32>
    %931 = vector.extract_strided_slice %1 {offsets = [2, 0], sizes = [1, 128], strides = [1, 1]} : vector<9x128xf32> to vector<1x128xf32>
    %932 = vector.broadcast %931 : vector<1x128xf32> to vector<4x128xf32>
    %933 = arith.mulf %930, %932 : vector<4x128xf32>
    %934 = vector.extract_strided_slice %912 {offsets = [0, 127], sizes = [4, 1], strides = [1, 1]} : vector<4x128xf32> to vector<4x1xf32>
    %935 = vector.extract_strided_slice %912 {offsets = [0, 0], sizes = [4, 127], strides = [1, 1]} : vector<4x128xf32> to vector<4x127xf32>
    %936 = tpu.concatenate %934, %935 in 1 : vector<4x1xf32>, vector<4x127xf32> -> vector<4x128xf32>
    %937 = vector.extract_strided_slice %1 {offsets = [3, 0], sizes = [1, 128], strides = [1, 1]} : vector<9x128xf32> to vector<1x128xf32>
    %938 = vector.broadcast %937 : vector<1x128xf32> to vector<4x128xf32>
    %939 = arith.mulf %936, %938 : vector<4x128xf32>
    %940 = vector.extract_strided_slice %1 {offsets = [4, 0], sizes = [1, 128], strides = [1, 1]} : vector<9x128xf32> to vector<1x128xf32>
    %941 = vector.broadcast %940 : vector<1x128xf32> to vector<4x128xf32>
    %942 = arith.mulf %912, %941 : vector<4x128xf32>
    %943 = vector.extract_strided_slice %912 {offsets = [0, 1], sizes = [4, 127], strides = [1, 1]} : vector<4x128xf32> to vector<4x127xf32>
    %944 = vector.extract_strided_slice %912 {offsets = [0, 0], sizes = [4, 1], strides = [1, 1]} : vector<4x128xf32> to vector<4x1xf32>
    %945 = tpu.concatenate %943, %944 in 1 : vector<4x127xf32>, vector<4x1xf32> -> vector<4x128xf32>
    %946 = vector.extract_strided_slice %1 {offsets = [5, 0], sizes = [1, 128], strides = [1, 1]} : vector<9x128xf32> to vector<1x128xf32>
    %947 = vector.broadcast %946 : vector<1x128xf32> to vector<4x128xf32>
    %948 = arith.mulf %945, %947 : vector<4x128xf32>
    %949 = vector.extract_strided_slice %912 {offsets = [0, 7], sizes = [4, 121], strides = [1, 1]} : vector<4x128xf32> to vector<4x121xf32>
    %950 = vector.extract_strided_slice %912 {offsets = [0, 0], sizes = [4, 7], strides = [1, 1]} : vector<4x128xf32> to vector<4x7xf32>
    %951 = tpu.concatenate %949, %950 in 1 : vector<4x121xf32>, vector<4x7xf32> -> vector<4x128xf32>
    %952 = vector.extract_strided_slice %1 {offsets = [6, 0], sizes = [1, 128], strides = [1, 1]} : vector<9x128xf32> to vector<1x128xf32>
    %953 = vector.broadcast %952 : vector<1x128xf32> to vector<4x128xf32>
    %954 = arith.mulf %951, %953 : vector<4x128xf32>
    %955 = vector.extract_strided_slice %912 {offsets = [0, 8], sizes = [4, 120], strides = [1, 1]} : vector<4x128xf32> to vector<4x120xf32>
    %956 = vector.extract_strided_slice %912 {offsets = [0, 0], sizes = [4, 8], strides = [1, 1]} : vector<4x128xf32> to vector<4x8xf32>
    %957 = tpu.concatenate %955, %956 in 1 : vector<4x120xf32>, vector<4x8xf32> -> vector<4x128xf32>
    %958 = vector.extract_strided_slice %1 {offsets = [7, 0], sizes = [1, 128], strides = [1, 1]} : vector<9x128xf32> to vector<1x128xf32>
    %959 = vector.broadcast %958 : vector<1x128xf32> to vector<4x128xf32>
    %960 = arith.mulf %957, %959 : vector<4x128xf32>
    %961 = vector.extract_strided_slice %912 {offsets = [0, 9], sizes = [4, 119], strides = [1, 1]} : vector<4x128xf32> to vector<4x119xf32>
    %962 = vector.extract_strided_slice %912 {offsets = [0, 0], sizes = [4, 9], strides = [1, 1]} : vector<4x128xf32> to vector<4x9xf32>
    %963 = tpu.concatenate %961, %962 in 1 : vector<4x119xf32>, vector<4x9xf32> -> vector<4x128xf32>
    %964 = vector.extract_strided_slice %1 {offsets = [8, 0], sizes = [1, 128], strides = [1, 1]} : vector<9x128xf32> to vector<1x128xf32>
    %965 = vector.broadcast %964 : vector<1x128xf32> to vector<4x128xf32>
    %966 = arith.mulf %963, %965 : vector<4x128xf32>
    %967 = tpu.concatenate %921, %927, %933, %939, %942, %948, %954, %960, %966 in 0 : vector<4x128xf32>, vector<4x128xf32>, vector<4x128xf32>, vector<4x128xf32>, vector<4x128xf32>, vector<4x128xf32>, vector<4x128xf32>, vector<4x128xf32>, vector<4x128xf32> -> vector<36x128xf32>
    %cst_178 = arith.constant dense<0.000000e+00> : vector<4x128xf32>
    %968 = tpu.matmul %914, %967, %cst_178 {dimension_numbers = #tpu.dot_dimension_numbers<[1], [0], [0], [1], [0, 0, 1, 1], [], []>} : vector<4x36xf32>, vector<36x128xf32>, vector<4x128xf32> -> vector<4x128xf32>
    %969 = vector.broadcast %915 : vector<4x1xf32> to vector<4x128xf32>
    %970 = arith.addf %968, %969 : vector<4x128xf32>
    %cst_179 = arith.constant 0.000000e+00 : f32
    %971 = vector.broadcast %cst_179 : f32 to vector<4x128xf32>
    %972 = arith.cmpf oge, %970, %971 : vector<4x128xf32>
    %cst_180 = arith.constant 2.000000e-01 : f32
    %973 = vector.broadcast %cst_180 : f32 to vector<4x128xf32>
    %974 = arith.mulf %973, %970 : vector<4x128xf32>
    %975 = arith.select %972, %970, %974 : vector<4x128xi1>, vector<4x128xf32>
    %c13 = arith.constant 13 : index
    %c0_181 = arith.constant 0 : index
    %c0_182 = arith.constant 0 : index
    %976 = vector.load %arg1[%c13, %c0_181, %c0_182] : memref<16x4x36xf32, #tpu.memory_space<vmem>>, vector<1x4x36xf32>
    %977 = vector.shape_cast %976 : vector<1x4x36xf32> to vector<4x36xf32>
    %c0_183 = arith.constant 0 : index
    %c13_184 = arith.constant 13 : index
    %978 = vector.load %arg2[%c0_183, %c13_184] : memref<4x16xf32, #tpu.memory_space<vmem>>, vector<4x1xf32>
    %979 = vector.extract_strided_slice %975 {offsets = [0, 119], sizes = [4, 9], strides = [1, 1]} : vector<4x128xf32> to vector<4x9xf32>
    %980 = vector.extract_strided_slice %975 {offsets = [0, 0], sizes = [4, 119], strides = [1, 1]} : vector<4x128xf32> to vector<4x119xf32>
    %981 = tpu.concatenate %979, %980 in 1 : vector<4x9xf32>, vector<4x119xf32> -> vector<4x128xf32>
    %982 = vector.extract_strided_slice %1 {offsets = [0, 0], sizes = [1, 128], strides = [1, 1]} : vector<9x128xf32> to vector<1x128xf32>
    %983 = vector.broadcast %982 : vector<1x128xf32> to vector<4x128xf32>
    %984 = arith.mulf %981, %983 : vector<4x128xf32>
    %985 = vector.extract_strided_slice %975 {offsets = [0, 120], sizes = [4, 8], strides = [1, 1]} : vector<4x128xf32> to vector<4x8xf32>
    %986 = vector.extract_strided_slice %975 {offsets = [0, 0], sizes = [4, 120], strides = [1, 1]} : vector<4x128xf32> to vector<4x120xf32>
    %987 = tpu.concatenate %985, %986 in 1 : vector<4x8xf32>, vector<4x120xf32> -> vector<4x128xf32>
    %988 = vector.extract_strided_slice %1 {offsets = [1, 0], sizes = [1, 128], strides = [1, 1]} : vector<9x128xf32> to vector<1x128xf32>
    %989 = vector.broadcast %988 : vector<1x128xf32> to vector<4x128xf32>
    %990 = arith.mulf %987, %989 : vector<4x128xf32>
    %991 = vector.extract_strided_slice %975 {offsets = [0, 121], sizes = [4, 7], strides = [1, 1]} : vector<4x128xf32> to vector<4x7xf32>
    %992 = vector.extract_strided_slice %975 {offsets = [0, 0], sizes = [4, 121], strides = [1, 1]} : vector<4x128xf32> to vector<4x121xf32>
    %993 = tpu.concatenate %991, %992 in 1 : vector<4x7xf32>, vector<4x121xf32> -> vector<4x128xf32>
    %994 = vector.extract_strided_slice %1 {offsets = [2, 0], sizes = [1, 128], strides = [1, 1]} : vector<9x128xf32> to vector<1x128xf32>
    %995 = vector.broadcast %994 : vector<1x128xf32> to vector<4x128xf32>
    %996 = arith.mulf %993, %995 : vector<4x128xf32>
    %997 = vector.extract_strided_slice %975 {offsets = [0, 127], sizes = [4, 1], strides = [1, 1]} : vector<4x128xf32> to vector<4x1xf32>
    %998 = vector.extract_strided_slice %975 {offsets = [0, 0], sizes = [4, 127], strides = [1, 1]} : vector<4x128xf32> to vector<4x127xf32>
    %999 = tpu.concatenate %997, %998 in 1 : vector<4x1xf32>, vector<4x127xf32> -> vector<4x128xf32>
    %1000 = vector.extract_strided_slice %1 {offsets = [3, 0], sizes = [1, 128], strides = [1, 1]} : vector<9x128xf32> to vector<1x128xf32>
    %1001 = vector.broadcast %1000 : vector<1x128xf32> to vector<4x128xf32>
    %1002 = arith.mulf %999, %1001 : vector<4x128xf32>
    %1003 = vector.extract_strided_slice %1 {offsets = [4, 0], sizes = [1, 128], strides = [1, 1]} : vector<9x128xf32> to vector<1x128xf32>
    %1004 = vector.broadcast %1003 : vector<1x128xf32> to vector<4x128xf32>
    %1005 = arith.mulf %975, %1004 : vector<4x128xf32>
    %1006 = vector.extract_strided_slice %975 {offsets = [0, 1], sizes = [4, 127], strides = [1, 1]} : vector<4x128xf32> to vector<4x127xf32>
    %1007 = vector.extract_strided_slice %975 {offsets = [0, 0], sizes = [4, 1], strides = [1, 1]} : vector<4x128xf32> to vector<4x1xf32>
    %1008 = tpu.concatenate %1006, %1007 in 1 : vector<4x127xf32>, vector<4x1xf32> -> vector<4x128xf32>
    %1009 = vector.extract_strided_slice %1 {offsets = [5, 0], sizes = [1, 128], strides = [1, 1]} : vector<9x128xf32> to vector<1x128xf32>
    %1010 = vector.broadcast %1009 : vector<1x128xf32> to vector<4x128xf32>
    %1011 = arith.mulf %1008, %1010 : vector<4x128xf32>
    %1012 = vector.extract_strided_slice %975 {offsets = [0, 7], sizes = [4, 121], strides = [1, 1]} : vector<4x128xf32> to vector<4x121xf32>
    %1013 = vector.extract_strided_slice %975 {offsets = [0, 0], sizes = [4, 7], strides = [1, 1]} : vector<4x128xf32> to vector<4x7xf32>
    %1014 = tpu.concatenate %1012, %1013 in 1 : vector<4x121xf32>, vector<4x7xf32> -> vector<4x128xf32>
    %1015 = vector.extract_strided_slice %1 {offsets = [6, 0], sizes = [1, 128], strides = [1, 1]} : vector<9x128xf32> to vector<1x128xf32>
    %1016 = vector.broadcast %1015 : vector<1x128xf32> to vector<4x128xf32>
    %1017 = arith.mulf %1014, %1016 : vector<4x128xf32>
    %1018 = vector.extract_strided_slice %975 {offsets = [0, 8], sizes = [4, 120], strides = [1, 1]} : vector<4x128xf32> to vector<4x120xf32>
    %1019 = vector.extract_strided_slice %975 {offsets = [0, 0], sizes = [4, 8], strides = [1, 1]} : vector<4x128xf32> to vector<4x8xf32>
    %1020 = tpu.concatenate %1018, %1019 in 1 : vector<4x120xf32>, vector<4x8xf32> -> vector<4x128xf32>
    %1021 = vector.extract_strided_slice %1 {offsets = [7, 0], sizes = [1, 128], strides = [1, 1]} : vector<9x128xf32> to vector<1x128xf32>
    %1022 = vector.broadcast %1021 : vector<1x128xf32> to vector<4x128xf32>
    %1023 = arith.mulf %1020, %1022 : vector<4x128xf32>
    %1024 = vector.extract_strided_slice %975 {offsets = [0, 9], sizes = [4, 119], strides = [1, 1]} : vector<4x128xf32> to vector<4x119xf32>
    %1025 = vector.extract_strided_slice %975 {offsets = [0, 0], sizes = [4, 9], strides = [1, 1]} : vector<4x128xf32> to vector<4x9xf32>
    %1026 = tpu.concatenate %1024, %1025 in 1 : vector<4x119xf32>, vector<4x9xf32> -> vector<4x128xf32>
    %1027 = vector.extract_strided_slice %1 {offsets = [8, 0], sizes = [1, 128], strides = [1, 1]} : vector<9x128xf32> to vector<1x128xf32>
    %1028 = vector.broadcast %1027 : vector<1x128xf32> to vector<4x128xf32>
    %1029 = arith.mulf %1026, %1028 : vector<4x128xf32>
    %1030 = tpu.concatenate %984, %990, %996, %1002, %1005, %1011, %1017, %1023, %1029 in 0 : vector<4x128xf32>, vector<4x128xf32>, vector<4x128xf32>, vector<4x128xf32>, vector<4x128xf32>, vector<4x128xf32>, vector<4x128xf32>, vector<4x128xf32>, vector<4x128xf32> -> vector<36x128xf32>
    %cst_185 = arith.constant dense<0.000000e+00> : vector<4x128xf32>
    %1031 = tpu.matmul %977, %1030, %cst_185 {dimension_numbers = #tpu.dot_dimension_numbers<[1], [0], [0], [1], [0, 0, 1, 1], [], []>} : vector<4x36xf32>, vector<36x128xf32>, vector<4x128xf32> -> vector<4x128xf32>
    %1032 = vector.broadcast %978 : vector<4x1xf32> to vector<4x128xf32>
    %1033 = arith.addf %1031, %1032 : vector<4x128xf32>
    %cst_186 = arith.constant 0.000000e+00 : f32
    %1034 = vector.broadcast %cst_186 : f32 to vector<4x128xf32>
    %1035 = arith.cmpf oge, %1033, %1034 : vector<4x128xf32>
    %cst_187 = arith.constant 2.000000e-01 : f32
    %1036 = vector.broadcast %cst_187 : f32 to vector<4x128xf32>
    %1037 = arith.mulf %1036, %1033 : vector<4x128xf32>
    %1038 = arith.select %1035, %1033, %1037 : vector<4x128xi1>, vector<4x128xf32>
    %cst_188 = arith.constant dense<0.000000e+00> : vector<4x512xf32>
    %1039 = tpu.matmul %1038, %9, %cst_188 {dimension_numbers = #tpu.dot_dimension_numbers<[1], [0], [0], [1], [0, 0, 1, 1], [], []>} : vector<4x128xf32>, vector<128x512xf32>, vector<4x512xf32> -> vector<4x512xf32>
    %1040 = tpu.concatenate %607, %1039 in 0 : vector<4x512xf32>, vector<4x512xf32> -> vector<8x512xf32>
    %c5_189 = arith.constant 5 : index
    %c0_190 = arith.constant 0 : index
    %c0_191 = arith.constant 0 : index
    %1041 = vector.load %arg3[%c5_189, %c0_190, %c0_191] : memref<6x4x8xf32, #tpu.memory_space<vmem>>, vector<1x4x8xf32>
    %1042 = vector.shape_cast %1041 : vector<1x4x8xf32> to vector<4x8xf32>
    %c0_192 = arith.constant 0 : index
    %c6_193 = arith.constant 6 : index
    %1043 = vector.load %arg5[%c0_192, %c6_193] : memref<4x8xf32, #tpu.memory_space<vmem>>, vector<4x1xf32>
    %cst_194 = arith.constant dense<0.000000e+00> : vector<4x512xf32>
    %1044 = tpu.matmul %1042, %1040, %cst_194 {dimension_numbers = #tpu.dot_dimension_numbers<[1], [0], [0], [1], [0, 0, 1, 1], [], []>} : vector<4x8xf32>, vector<8x512xf32>, vector<4x512xf32> -> vector<4x512xf32>
    %1045 = vector.broadcast %1043 : vector<4x1xf32> to vector<4x512xf32>
    %1046 = arith.addf %1044, %1045 : vector<4x512xf32>
    %cst_195 = arith.constant 0.000000e+00 : f32
    %1047 = vector.broadcast %cst_195 : f32 to vector<4x512xf32>
    %1048 = arith.cmpf oge, %1046, %1047 : vector<4x512xf32>
    %cst_196 = arith.constant 2.000000e-01 : f32
    %1049 = vector.broadcast %cst_196 : f32 to vector<4x512xf32>
    %1050 = arith.mulf %1049, %1046 : vector<4x512xf32>
    %1051 = arith.select %1048, %1046, %1050 : vector<4x512xi1>, vector<4x512xf32>
    %c14 = arith.constant 14 : index
    %c0_197 = arith.constant 0 : index
    %c0_198 = arith.constant 0 : index
    %1052 = vector.load %arg1[%c14, %c0_197, %c0_198] : memref<16x4x36xf32, #tpu.memory_space<vmem>>, vector<1x4x36xf32>
    %1053 = vector.shape_cast %1052 : vector<1x4x36xf32> to vector<4x36xf32>
    %c0_199 = arith.constant 0 : index
    %c14_200 = arith.constant 14 : index
    %1054 = vector.load %arg2[%c0_199, %c14_200] : memref<4x16xf32, #tpu.memory_space<vmem>>, vector<4x1xf32>
    %1055 = vector.extract_strided_slice %1051 {offsets = [0, 495], sizes = [4, 17], strides = [1, 1]} : vector<4x512xf32> to vector<4x17xf32>
    %1056 = vector.extract_strided_slice %1051 {offsets = [0, 0], sizes = [4, 495], strides = [1, 1]} : vector<4x512xf32> to vector<4x495xf32>
    %1057 = tpu.concatenate %1055, %1056 in 1 : vector<4x17xf32>, vector<4x495xf32> -> vector<4x512xf32>
    %1058 = vector.extract_strided_slice %0 {offsets = [0, 0], sizes = [1, 512], strides = [1, 1]} : vector<9x512xf32> to vector<1x512xf32>
    %1059 = vector.broadcast %1058 : vector<1x512xf32> to vector<4x512xf32>
    %1060 = arith.mulf %1057, %1059 : vector<4x512xf32>
    %1061 = vector.extract_strided_slice %1051 {offsets = [0, 496], sizes = [4, 16], strides = [1, 1]} : vector<4x512xf32> to vector<4x16xf32>
    %1062 = vector.extract_strided_slice %1051 {offsets = [0, 0], sizes = [4, 496], strides = [1, 1]} : vector<4x512xf32> to vector<4x496xf32>
    %1063 = tpu.concatenate %1061, %1062 in 1 : vector<4x16xf32>, vector<4x496xf32> -> vector<4x512xf32>
    %1064 = vector.extract_strided_slice %0 {offsets = [1, 0], sizes = [1, 512], strides = [1, 1]} : vector<9x512xf32> to vector<1x512xf32>
    %1065 = vector.broadcast %1064 : vector<1x512xf32> to vector<4x512xf32>
    %1066 = arith.mulf %1063, %1065 : vector<4x512xf32>
    %1067 = vector.extract_strided_slice %1051 {offsets = [0, 497], sizes = [4, 15], strides = [1, 1]} : vector<4x512xf32> to vector<4x15xf32>
    %1068 = vector.extract_strided_slice %1051 {offsets = [0, 0], sizes = [4, 497], strides = [1, 1]} : vector<4x512xf32> to vector<4x497xf32>
    %1069 = tpu.concatenate %1067, %1068 in 1 : vector<4x15xf32>, vector<4x497xf32> -> vector<4x512xf32>
    %1070 = vector.extract_strided_slice %0 {offsets = [2, 0], sizes = [1, 512], strides = [1, 1]} : vector<9x512xf32> to vector<1x512xf32>
    %1071 = vector.broadcast %1070 : vector<1x512xf32> to vector<4x512xf32>
    %1072 = arith.mulf %1069, %1071 : vector<4x512xf32>
    %1073 = vector.extract_strided_slice %1051 {offsets = [0, 511], sizes = [4, 1], strides = [1, 1]} : vector<4x512xf32> to vector<4x1xf32>
    %1074 = vector.extract_strided_slice %1051 {offsets = [0, 0], sizes = [4, 511], strides = [1, 1]} : vector<4x512xf32> to vector<4x511xf32>
    %1075 = tpu.concatenate %1073, %1074 in 1 : vector<4x1xf32>, vector<4x511xf32> -> vector<4x512xf32>
    %1076 = vector.extract_strided_slice %0 {offsets = [3, 0], sizes = [1, 512], strides = [1, 1]} : vector<9x512xf32> to vector<1x512xf32>
    %1077 = vector.broadcast %1076 : vector<1x512xf32> to vector<4x512xf32>
    %1078 = arith.mulf %1075, %1077 : vector<4x512xf32>
    %1079 = vector.extract_strided_slice %0 {offsets = [4, 0], sizes = [1, 512], strides = [1, 1]} : vector<9x512xf32> to vector<1x512xf32>
    %1080 = vector.broadcast %1079 : vector<1x512xf32> to vector<4x512xf32>
    %1081 = arith.mulf %1051, %1080 : vector<4x512xf32>
    %1082 = vector.extract_strided_slice %1051 {offsets = [0, 1], sizes = [4, 511], strides = [1, 1]} : vector<4x512xf32> to vector<4x511xf32>
    %1083 = vector.extract_strided_slice %1051 {offsets = [0, 0], sizes = [4, 1], strides = [1, 1]} : vector<4x512xf32> to vector<4x1xf32>
    %1084 = tpu.concatenate %1082, %1083 in 1 : vector<4x511xf32>, vector<4x1xf32> -> vector<4x512xf32>
    %1085 = vector.extract_strided_slice %0 {offsets = [5, 0], sizes = [1, 512], strides = [1, 1]} : vector<9x512xf32> to vector<1x512xf32>
    %1086 = vector.broadcast %1085 : vector<1x512xf32> to vector<4x512xf32>
    %1087 = arith.mulf %1084, %1086 : vector<4x512xf32>
    %1088 = vector.extract_strided_slice %1051 {offsets = [0, 15], sizes = [4, 497], strides = [1, 1]} : vector<4x512xf32> to vector<4x497xf32>
    %1089 = vector.extract_strided_slice %1051 {offsets = [0, 0], sizes = [4, 15], strides = [1, 1]} : vector<4x512xf32> to vector<4x15xf32>
    %1090 = tpu.concatenate %1088, %1089 in 1 : vector<4x497xf32>, vector<4x15xf32> -> vector<4x512xf32>
    %1091 = vector.extract_strided_slice %0 {offsets = [6, 0], sizes = [1, 512], strides = [1, 1]} : vector<9x512xf32> to vector<1x512xf32>
    %1092 = vector.broadcast %1091 : vector<1x512xf32> to vector<4x512xf32>
    %1093 = arith.mulf %1090, %1092 : vector<4x512xf32>
    %1094 = vector.extract_strided_slice %1051 {offsets = [0, 16], sizes = [4, 496], strides = [1, 1]} : vector<4x512xf32> to vector<4x496xf32>
    %1095 = vector.extract_strided_slice %1051 {offsets = [0, 0], sizes = [4, 16], strides = [1, 1]} : vector<4x512xf32> to vector<4x16xf32>
    %1096 = tpu.concatenate %1094, %1095 in 1 : vector<4x496xf32>, vector<4x16xf32> -> vector<4x512xf32>
    %1097 = vector.extract_strided_slice %0 {offsets = [7, 0], sizes = [1, 512], strides = [1, 1]} : vector<9x512xf32> to vector<1x512xf32>
    %1098 = vector.broadcast %1097 : vector<1x512xf32> to vector<4x512xf32>
    %1099 = arith.mulf %1096, %1098 : vector<4x512xf32>
    %1100 = vector.extract_strided_slice %1051 {offsets = [0, 17], sizes = [4, 495], strides = [1, 1]} : vector<4x512xf32> to vector<4x495xf32>
    %1101 = vector.extract_strided_slice %1051 {offsets = [0, 0], sizes = [4, 17], strides = [1, 1]} : vector<4x512xf32> to vector<4x17xf32>
    %1102 = tpu.concatenate %1100, %1101 in 1 : vector<4x495xf32>, vector<4x17xf32> -> vector<4x512xf32>
    %1103 = vector.extract_strided_slice %0 {offsets = [8, 0], sizes = [1, 512], strides = [1, 1]} : vector<9x512xf32> to vector<1x512xf32>
    %1104 = vector.broadcast %1103 : vector<1x512xf32> to vector<4x512xf32>
    %1105 = arith.mulf %1102, %1104 : vector<4x512xf32>
    %1106 = tpu.concatenate %1060, %1066, %1072, %1078, %1081, %1087, %1093, %1099, %1105 in 0 : vector<4x512xf32>, vector<4x512xf32>, vector<4x512xf32>, vector<4x512xf32>, vector<4x512xf32>, vector<4x512xf32>, vector<4x512xf32>, vector<4x512xf32>, vector<4x512xf32> -> vector<36x512xf32>
    %cst_201 = arith.constant dense<0.000000e+00> : vector<4x512xf32>
    %1107 = tpu.matmul %1053, %1106, %cst_201 {dimension_numbers = #tpu.dot_dimension_numbers<[1], [0], [0], [1], [0, 0, 1, 1], [], []>} : vector<4x36xf32>, vector<36x512xf32>, vector<4x512xf32> -> vector<4x512xf32>
    %1108 = vector.broadcast %1054 : vector<4x1xf32> to vector<4x512xf32>
    %1109 = arith.addf %1107, %1108 : vector<4x512xf32>
    %cst_202 = arith.constant 0.000000e+00 : f32
    %1110 = vector.broadcast %cst_202 : f32 to vector<4x512xf32>
    %1111 = arith.cmpf oge, %1109, %1110 : vector<4x512xf32>
    %cst_203 = arith.constant 2.000000e-01 : f32
    %1112 = vector.broadcast %cst_203 : f32 to vector<4x512xf32>
    %1113 = arith.mulf %1112, %1109 : vector<4x512xf32>
    %1114 = arith.select %1111, %1109, %1113 : vector<4x512xi1>, vector<4x512xf32>
    %c15 = arith.constant 15 : index
    %c0_204 = arith.constant 0 : index
    %c0_205 = arith.constant 0 : index
    %1115 = vector.load %arg1[%c15, %c0_204, %c0_205] : memref<16x4x36xf32, #tpu.memory_space<vmem>>, vector<1x4x36xf32>
    %1116 = vector.shape_cast %1115 : vector<1x4x36xf32> to vector<4x36xf32>
    %c0_206 = arith.constant 0 : index
    %c15_207 = arith.constant 15 : index
    %1117 = vector.load %arg2[%c0_206, %c15_207] : memref<4x16xf32, #tpu.memory_space<vmem>>, vector<4x1xf32>
    %1118 = vector.extract_strided_slice %1114 {offsets = [0, 495], sizes = [4, 17], strides = [1, 1]} : vector<4x512xf32> to vector<4x17xf32>
    %1119 = vector.extract_strided_slice %1114 {offsets = [0, 0], sizes = [4, 495], strides = [1, 1]} : vector<4x512xf32> to vector<4x495xf32>
    %1120 = tpu.concatenate %1118, %1119 in 1 : vector<4x17xf32>, vector<4x495xf32> -> vector<4x512xf32>
    %1121 = vector.extract_strided_slice %0 {offsets = [0, 0], sizes = [1, 512], strides = [1, 1]} : vector<9x512xf32> to vector<1x512xf32>
    %1122 = vector.broadcast %1121 : vector<1x512xf32> to vector<4x512xf32>
    %1123 = arith.mulf %1120, %1122 : vector<4x512xf32>
    %1124 = vector.extract_strided_slice %1114 {offsets = [0, 496], sizes = [4, 16], strides = [1, 1]} : vector<4x512xf32> to vector<4x16xf32>
    %1125 = vector.extract_strided_slice %1114 {offsets = [0, 0], sizes = [4, 496], strides = [1, 1]} : vector<4x512xf32> to vector<4x496xf32>
    %1126 = tpu.concatenate %1124, %1125 in 1 : vector<4x16xf32>, vector<4x496xf32> -> vector<4x512xf32>
    %1127 = vector.extract_strided_slice %0 {offsets = [1, 0], sizes = [1, 512], strides = [1, 1]} : vector<9x512xf32> to vector<1x512xf32>
    %1128 = vector.broadcast %1127 : vector<1x512xf32> to vector<4x512xf32>
    %1129 = arith.mulf %1126, %1128 : vector<4x512xf32>
    %1130 = vector.extract_strided_slice %1114 {offsets = [0, 497], sizes = [4, 15], strides = [1, 1]} : vector<4x512xf32> to vector<4x15xf32>
    %1131 = vector.extract_strided_slice %1114 {offsets = [0, 0], sizes = [4, 497], strides = [1, 1]} : vector<4x512xf32> to vector<4x497xf32>
    %1132 = tpu.concatenate %1130, %1131 in 1 : vector<4x15xf32>, vector<4x497xf32> -> vector<4x512xf32>
    %1133 = vector.extract_strided_slice %0 {offsets = [2, 0], sizes = [1, 512], strides = [1, 1]} : vector<9x512xf32> to vector<1x512xf32>
    %1134 = vector.broadcast %1133 : vector<1x512xf32> to vector<4x512xf32>
    %1135 = arith.mulf %1132, %1134 : vector<4x512xf32>
    %1136 = vector.extract_strided_slice %1114 {offsets = [0, 511], sizes = [4, 1], strides = [1, 1]} : vector<4x512xf32> to vector<4x1xf32>
    %1137 = vector.extract_strided_slice %1114 {offsets = [0, 0], sizes = [4, 511], strides = [1, 1]} : vector<4x512xf32> to vector<4x511xf32>
    %1138 = tpu.concatenate %1136, %1137 in 1 : vector<4x1xf32>, vector<4x511xf32> -> vector<4x512xf32>
    %1139 = vector.extract_strided_slice %0 {offsets = [3, 0], sizes = [1, 512], strides = [1, 1]} : vector<9x512xf32> to vector<1x512xf32>
    %1140 = vector.broadcast %1139 : vector<1x512xf32> to vector<4x512xf32>
    %1141 = arith.mulf %1138, %1140 : vector<4x512xf32>
    %1142 = vector.extract_strided_slice %0 {offsets = [4, 0], sizes = [1, 512], strides = [1, 1]} : vector<9x512xf32> to vector<1x512xf32>
    %1143 = vector.broadcast %1142 : vector<1x512xf32> to vector<4x512xf32>
    %1144 = arith.mulf %1114, %1143 : vector<4x512xf32>
    %1145 = vector.extract_strided_slice %1114 {offsets = [0, 1], sizes = [4, 511], strides = [1, 1]} : vector<4x512xf32> to vector<4x511xf32>
    %1146 = vector.extract_strided_slice %1114 {offsets = [0, 0], sizes = [4, 1], strides = [1, 1]} : vector<4x512xf32> to vector<4x1xf32>
    %1147 = tpu.concatenate %1145, %1146 in 1 : vector<4x511xf32>, vector<4x1xf32> -> vector<4x512xf32>
    %1148 = vector.extract_strided_slice %0 {offsets = [5, 0], sizes = [1, 512], strides = [1, 1]} : vector<9x512xf32> to vector<1x512xf32>
    %1149 = vector.broadcast %1148 : vector<1x512xf32> to vector<4x512xf32>
    %1150 = arith.mulf %1147, %1149 : vector<4x512xf32>
    %1151 = vector.extract_strided_slice %1114 {offsets = [0, 15], sizes = [4, 497], strides = [1, 1]} : vector<4x512xf32> to vector<4x497xf32>
    %1152 = vector.extract_strided_slice %1114 {offsets = [0, 0], sizes = [4, 15], strides = [1, 1]} : vector<4x512xf32> to vector<4x15xf32>
    %1153 = tpu.concatenate %1151, %1152 in 1 : vector<4x497xf32>, vector<4x15xf32> -> vector<4x512xf32>
    %1154 = vector.extract_strided_slice %0 {offsets = [6, 0], sizes = [1, 512], strides = [1, 1]} : vector<9x512xf32> to vector<1x512xf32>
    %1155 = vector.broadcast %1154 : vector<1x512xf32> to vector<4x512xf32>
    %1156 = arith.mulf %1153, %1155 : vector<4x512xf32>
    %1157 = vector.extract_strided_slice %1114 {offsets = [0, 16], sizes = [4, 496], strides = [1, 1]} : vector<4x512xf32> to vector<4x496xf32>
    %1158 = vector.extract_strided_slice %1114 {offsets = [0, 0], sizes = [4, 16], strides = [1, 1]} : vector<4x512xf32> to vector<4x16xf32>
    %1159 = tpu.concatenate %1157, %1158 in 1 : vector<4x496xf32>, vector<4x16xf32> -> vector<4x512xf32>
    %1160 = vector.extract_strided_slice %0 {offsets = [7, 0], sizes = [1, 512], strides = [1, 1]} : vector<9x512xf32> to vector<1x512xf32>
    %1161 = vector.broadcast %1160 : vector<1x512xf32> to vector<4x512xf32>
    %1162 = arith.mulf %1159, %1161 : vector<4x512xf32>
    %1163 = vector.extract_strided_slice %1114 {offsets = [0, 17], sizes = [4, 495], strides = [1, 1]} : vector<4x512xf32> to vector<4x495xf32>
    %1164 = vector.extract_strided_slice %1114 {offsets = [0, 0], sizes = [4, 17], strides = [1, 1]} : vector<4x512xf32> to vector<4x17xf32>
    %1165 = tpu.concatenate %1163, %1164 in 1 : vector<4x495xf32>, vector<4x17xf32> -> vector<4x512xf32>
    %1166 = vector.extract_strided_slice %0 {offsets = [8, 0], sizes = [1, 512], strides = [1, 1]} : vector<9x512xf32> to vector<1x512xf32>
    %1167 = vector.broadcast %1166 : vector<1x512xf32> to vector<4x512xf32>
    %1168 = arith.mulf %1165, %1167 : vector<4x512xf32>
    %1169 = tpu.concatenate %1123, %1129, %1135, %1141, %1144, %1150, %1156, %1162, %1168 in 0 : vector<4x512xf32>, vector<4x512xf32>, vector<4x512xf32>, vector<4x512xf32>, vector<4x512xf32>, vector<4x512xf32>, vector<4x512xf32>, vector<4x512xf32>, vector<4x512xf32> -> vector<36x512xf32>
    %cst_208 = arith.constant dense<0.000000e+00> : vector<4x512xf32>
    %1170 = tpu.matmul %1116, %1169, %cst_208 {dimension_numbers = #tpu.dot_dimension_numbers<[1], [0], [0], [1], [0, 0, 1, 1], [], []>} : vector<4x36xf32>, vector<36x512xf32>, vector<4x512xf32> -> vector<4x512xf32>
    %1171 = vector.broadcast %1117 : vector<4x1xf32> to vector<4x512xf32>
    %1172 = arith.addf %1170, %1171 : vector<4x512xf32>
    %cst_209 = arith.constant 0.000000e+00 : f32
    %1173 = vector.broadcast %cst_209 : f32 to vector<4x512xf32>
    %1174 = arith.cmpf oge, %1172, %1173 : vector<4x512xf32>
    %cst_210 = arith.constant 2.000000e-01 : f32
    %1175 = vector.broadcast %cst_210 : f32 to vector<4x512xf32>
    %1176 = arith.mulf %1175, %1172 : vector<4x512xf32>
    %1177 = arith.select %1174, %1172, %1176 : vector<4x512xi1>, vector<4x512xf32>
    %cst_211 = arith.constant dense<0.000000e+00> : vector<4x512xf32>
    %1178 = tpu.matmul %900, %9, %cst_211 {dimension_numbers = #tpu.dot_dimension_numbers<[1], [0], [0], [1], [0, 0, 1, 1], [], []>} : vector<4x128xf32>, vector<128x512xf32>, vector<4x512xf32> -> vector<4x512xf32>
    %cst_212 = arith.constant dense<0.000000e+00> : vector<4x128xf32>
    %1179 = tpu.matmul %761, %8, %cst_212 {dimension_numbers = #tpu.dot_dimension_numbers<[1], [0], [0], [1], [0, 0, 1, 1], [], []>} : vector<4x32xf32>, vector<32x128xf32>, vector<4x128xf32> -> vector<4x128xf32>
    %cst_213 = arith.constant dense<0.000000e+00> : vector<4x512xf32>
    %1180 = tpu.matmul %1179, %9, %cst_213 {dimension_numbers = #tpu.dot_dimension_numbers<[1], [0], [0], [1], [0, 0, 1, 1], [], []>} : vector<4x128xf32>, vector<128x512xf32>, vector<4x512xf32> -> vector<4x512xf32>
    %1181 = tpu.concatenate %1177, %1039, %1178, %1180 in 0 : vector<4x512xf32>, vector<4x512xf32>, vector<4x512xf32>, vector<4x512xf32> -> vector<16x512xf32>
    %c1_214 = arith.constant 1 : index
    %c0_215 = arith.constant 0 : index
    %c0_216 = arith.constant 0 : index
    %1182 = vector.load %arg4[%c1_214, %c0_215, %c0_216] : memref<2x4x16xf32, #tpu.memory_space<vmem>>, vector<1x4x16xf32>
    %1183 = vector.shape_cast %1182 : vector<1x4x16xf32> to vector<4x16xf32>
    %c0_217 = arith.constant 0 : index
    %c7_218 = arith.constant 7 : index
    %1184 = vector.load %arg5[%c0_217, %c7_218] : memref<4x8xf32, #tpu.memory_space<vmem>>, vector<4x1xf32>
    %cst_219 = arith.constant dense<0.000000e+00> : vector<4x512xf32>
    %1185 = tpu.matmul %1183, %1181, %cst_219 {dimension_numbers = #tpu.dot_dimension_numbers<[1], [0], [0], [1], [0, 0, 1, 1], [], []>} : vector<4x16xf32>, vector<16x512xf32>, vector<4x512xf32> -> vector<4x512xf32>
    %1186 = vector.broadcast %1184 : vector<4x1xf32> to vector<4x512xf32>
    %1187 = arith.addf %1185, %1186 : vector<4x512xf32>
    %cst_220 = arith.constant 0.000000e+00 : f32
    %1188 = vector.broadcast %cst_220 : f32 to vector<4x512xf32>
    %1189 = arith.cmpf oge, %1187, %1188 : vector<4x512xf32>
    %cst_221 = arith.constant 2.000000e-01 : f32
    %1190 = vector.broadcast %cst_221 : f32 to vector<4x512xf32>
    %1191 = arith.mulf %1190, %1187 : vector<4x512xf32>
    %1192 = arith.select %1189, %1187, %1191 : vector<4x512xi1>, vector<4x512xf32>
    %1193 = arith.addf %1192, %607 : vector<4x512xf32>
    %1194 = tpu.concatenate %10, %596, %1193 in 0 : vector<4x512xf32>, vector<4x512xf32>, vector<4x512xf32> -> vector<12x512xf32>
    %c0_222 = arith.constant 0 : index
    %c0_223 = arith.constant 0 : index
    %1195 = vector.load %arg7[%c0_222, %c0_223] : memref<4x12xf32, #tpu.memory_space<vmem>>, vector<4x12xf32>
    %c0_224 = arith.constant 0 : index
    %c1_225 = arith.constant 1 : index
    %1196 = vector.load %arg8[%c0_224, %c1_225] : memref<4x2xf32, #tpu.memory_space<vmem>>, vector<4x1xf32>
    %cst_226 = arith.constant dense<0.000000e+00> : vector<4x512xf32>
    %1197 = tpu.matmul %1195, %1194, %cst_226 {dimension_numbers = #tpu.dot_dimension_numbers<[1], [0], [0], [1], [0, 0, 1, 1], [], []>} : vector<4x12xf32>, vector<12x512xf32>, vector<4x512xf32> -> vector<4x512xf32>
    %1198 = vector.broadcast %1196 : vector<4x1xf32> to vector<4x512xf32>
    %1199 = arith.addf %1197, %1198 : vector<4x512xf32>
    %cst_227 = arith.constant 0.000000e+00 : f32
    %1200 = vector.broadcast %cst_227 : f32 to vector<4x512xf32>
    %1201 = arith.cmpf oge, %1199, %1200 : vector<4x512xf32>
    %cst_228 = arith.constant 2.000000e-01 : f32
    %1202 = vector.broadcast %cst_228 : f32 to vector<4x512xf32>
    %1203 = arith.mulf %1202, %1199 : vector<4x512xf32>
    %1204 = arith.select %1201, %1199, %1203 : vector<4x512xi1>, vector<4x512xf32>
    %c0_229 = arith.constant 0 : index
    %c0_230 = arith.constant 0 : index
    %1205 = vector.load %arg19[%c0_229, %c0_230] : memref<4x512xf32, #tpu.memory_space<vmem>>, vector<4x512xf32>
    tpu.vector_store %arg19[%c0_229, %c0_230], %1204 {strides = array<i32>} : memref<4x512xf32, #tpu.memory_space<vmem>>, vector<4x512xf32>,
    %c0_231 = arith.constant 0 : index
    %c0_232 = arith.constant 0 : index
    %1206 = vector.load %arg20[%c0_231, %c0_232] : memref<4x512xf32, #tpu.memory_space<vmem>>, vector<4x512xf32>
    tpu.vector_store %arg20[%c0_231, %c0_232], %596 {strides = array<i32>} : memref<4x512xf32, #tpu.memory_space<vmem>>, vector<4x512xf32>,
    %c0_233 = arith.constant 0 : index
    %c0_234 = arith.constant 0 : index
    %1207 = vector.load %arg21[%c0_233, %c0_234] : memref<4x512xf32, #tpu.memory_space<vmem>>, vector<4x512xf32>
    tpu.vector_store %arg21[%c0_233, %c0_234], %1193 {strides = array<i32>} : memref<4x512xf32, #tpu.memory_space<vmem>>, vector<4x512xf32>,
    return
  }
}

</mosaic_0001>

<bundles_post_ra>
// kernel: encoder_forward.1
= control target key start
LH: loop header
LB: loop body
LE: loop exit
PB: predicated region body
PF: predicated region fallthrough
CT: control target
= control target key end

     0   :  { %s12632_s0 = inlined_call_operand.vmem [shape: f32[4,512], index: 0, kind: input, shape index: {}]   ;;  %s12633_s1 = inlined_call_operand.vmem [shape: f32[16,4,36], index: 1, kind: input, shape index: {}]   ;;  %s12634_s2 = inlined_call_operand.hbm [shape: f32[4,16], index: 2, kind: input, shape index: {}]   ;;  %s12635_s3 = inlined_call_operand.hbm [shape: f32[6,4,8], index: 3, kind: input, shape index: {}]   ;;  %s12636_s4 = inlined_call_operand.hbm [shape: f32[2,4,16], index: 4, kind: input, shape index: {}]   ;;  %s12637_s5 = inlined_call_operand.hbm [shape: f32[4,8], index: 5, kind: input, shape index: {}]   ;;  %s12638_s6 = inlined_call_operand.hbm [shape: f32[4,8], index: 6, kind: input, shape index: {}]   ;;  %s12639_s7 = inlined_call_operand.hbm [shape: f32[4,12], index: 7, kind: input, shape index: {}]   ;;  %s12640_s8 = inlined_call_operand.vmem [shape: f32[4,2], index: 8, kind: input, shape index: {}]   ;;  %s12641_s9 = inlined_call_operand.vmem [shape: f32[9,512], index: 9, kind: input, shape index: {}]   ;;  %s12642_s10 = inlined_call_operand.hbm [shape: f32[9,128], index: 10, kind: input, shape index: {}]   ;;  %s12643_s11 = inlined_call_operand.hbm [shape: f32[9,32], index: 11, kind: input, shape index: {}]   ;;  %s12644_s12 = inlined_call_operand.vmem [shape: f32[9,8], index: 12, kind: input, shape index: {}]   ;;  %s12645_s13 = inlined_call_operand.vmem [shape: f32[512,128], index: 13, kind: input, shape index: {}]   ;;  %s12646_s14 = inlined_call_operand.vmem [shape: f32[128,32], index: 14, kind: input, shape index: {}]   ;;  %s12647_s15 = inlined_call_operand.vmem [shape: f32[32,8], index: 15, kind: input, shape index: {}]   ;;  %s12648_s16 = inlined_call_operand.hbm [shape: f32[8,32], index: 16, kind: input, shape index: {}]   ;;  %s12649_s17 = inlined_call_operand.hbm [shape: f32[32,128], index: 17, kind: input, shape index: {}]   ;;  %s12650_s18 = inlined_call_operand.hbm [shape: f32[128,512], index: 18, kind: input, shape index: {}]   ;;  %s12651_s19 = inlined_call_operand.vmem [shape: f32[4,512], index: 19, kind: output, shape index: {0}]   ;;  %s12652_s20 = inlined_call_operand.vmem [shape: f32[4,512], index: 20, kind: output, shape index: {1}]   ;;  %s12653_s21 = inlined_call_operand.vmem [shape: f32[4,512], index: 21, kind: output, shape index: {2}]  }
   0x1   :  { %13010 = sst [smem:[#allocation166_spill]] %s12632_s0 }
   0x2   :  { %13011 = sst [smem:[#allocation167_spill]] %s12633_s1 }
   0x3   :  { %13012 = sst [smem:[#allocation168_spill]] %s12634_s2 }
   0x4   :  { %13013 = sst [smem:[#allocation169_spill]] %s12635_s3 }
   0x5   :  { %13014 = sst [smem:[#allocation170_spill]] %s12636_s4 }
   0x6   :  { %13015 = sst [smem:[#allocation171_spill]] %s12637_s5 }
   0x7   :  { %13016 = sst [smem:[#allocation172_spill]] %s12651_s19 }
   0x8   :  { %13017 = sst [smem:[#allocation173_spill]] %s12652_s20 }
   0x9   :  { %13018 = sst [smem:[#allocation174_spill]] %s12653_s21 }
   0xa   :  { %27 = vsyncpa [#allocation3], 0 }
   0xb   :  { %28 = vsyncpa [#allocation5], 0 }
   0xc   :  { %29 = vsyncpa [#allocation8], 0 }
   0xd   :  { %30 = vsyncpa [#allocation11], 0 }
   0xe   :  { %31 = vsyncpa [#allocation14], 0 }
   0xf   :  { %32 = vsyncpa [#allocation17], 0  ;;  %s9479_s2 = smov [#allocation4]   ;;  %s13019_s3 = sld [smem:[#allocation169_spill]] }
  0x10   :  { %s52_s25 = sshll.u32 %s9479_s2, 4  ;;  %s53_s25 = int_to_ptr.vmem [resolvable:$true] %s52_s25 }
  0x15   :  { %s9225_s28 = scalar_lea.hbm %s13019_s3, 384 }
  0x16   :  { %p9226_p0 = scmp.ne.s32.totalorder %s13019_s3, %s9225_s28  ;;  %p9229_p1 = scmp.lt.u32.totalorder %s9225_s28, %s13019_s3 }
  0x18   :  { %p9231_p2 = pnand %p9229_p1, %p9226_p0 }
  0x1a   :  { %9234 = shalt.err (!%p9231_p2)
}
  0x1b   :  { %s9235_s5 = scalar_lea.vmem %s53_s25, 384  ;;  %p9240_p4 = scmp.lt.s32.totalorder %s53_s25, %s53_s25 }
  0x1c   :  { %p9236_p3 = scmp.ne.s32.totalorder %s53_s25, %s9235_s5  ;;  %p9241_p5 = scmp.lt.s32.totalorder %s9235_s5, %s9235_s5 }
  0x1e   :  { %p9242_p6 = por %p9241_p5, %p9240_p4 }
  0x20   :  { %p9243_p7 = pnand %p9242_p6, %p9236_p3 }
  0x22   :  { %9246 = shalt.err (!%p9243_p7)
}
  0x23   :  { %s9480_s22 = smov 64   ;;  %s12799_s23 = smov 4  }
  0x24   :  { %58 = dma.hbm_to_vmem [thread:$0]  %s13019_s3, 384, %s53_s25, [#allocation5], %s9480_s22, %s9480_s22, %s12799_s23  }
  0x25   :  { %s9482_s2 = smov [#allocation7]   ;;  %s9483_s27 = smov [#allocation10]  }
  0x26   :  { %s77_s26 = sshll.u32 %s9482_s2, 4  ;;  %s97_s28 = sshll.u32 %s9483_s27, 4  ;;  %s78_s26 = int_to_ptr.vmem [resolvable:$true] %s77_s26  ;;  %s98_s28 = int_to_ptr.vmem [resolvable:$true] %s97_s28 }
  0x27   :  { %s13020_s4 = sld [smem:[#allocation171_spill]] }
  0x2d   :  { %s9247_s30 = scalar_lea.hbm %s13020_s4, 64 }
  0x2e   :  { %p9248_p8 = scmp.ne.s32.totalorder %s13020_s4, %s9247_s30  ;;  %p9251_p9 = scmp.lt.u32.totalorder %s9247_s30, %s13020_s4 }
  0x30   :  { %p9253_p10 = pnand %p9251_p9, %p9248_p8 }
  0x32   :  { %9256 = shalt.err (!%p9253_p10)
}
  0x33   :  { %s9257_s25 = scalar_lea.vmem %s78_s26, 64  ;;  %p9262_p12 = scmp.lt.s32.totalorder %s78_s26, %s78_s26 }
  0x34   :  { %p9258_p11 = scmp.ne.s32.totalorder %s78_s26, %s9257_s25  ;;  %p9263_p13 = scmp.lt.s32.totalorder %s9257_s25, %s9257_s25 }
  0x36   :  { %p9264_p0 = por %p9263_p13, %p9262_p12 }
  0x38   :  { %p9265_p1 = pnand %p9264_p0, %p9258_p11 }
  0x3a   :  { %9268 = shalt.err (!%p9265_p1)
}
  0x3b   :  { %80 = dma.hbm_to_vmem [thread:$0]  %s13020_s4, 64, %s78_s26, [#allocation8]  }
  0x3c   :  { %s9269_s2 = scalar_lea.hbm %s12639_s7, 64 }
  0x3d   :  { %p9270_p2 = scmp.ne.s32.totalorder %s12639_s7, %s9269_s2  ;;  %p9273_p3 = scmp.lt.u32.totalorder %s9269_s2, %s12639_s7 }
  0x3f   :  { %p9275_p4 = pnand %p9273_p3, %p9270_p2 }
  0x41   :  { %9278 = shalt.err (!%p9275_p4)
}
  0x42   :  { %s9279_s0 = scalar_lea.vmem %s98_s28, 64  ;;  %p9284_p6 = scmp.lt.s32.totalorder %s98_s28, %s98_s28 }
  0x43   :  { %p9280_p5 = scmp.ne.s32.totalorder %s98_s28, %s9279_s0  ;;  %p9285_p7 = scmp.lt.s32.totalorder %s9279_s0, %s9279_s0 }
  0x45   :  { %p9286_p8 = por %p9285_p7, %p9284_p6 }
  0x47   :  { %p9287_p9 = pnand %p9286_p8, %p9280_p5 }
  0x49   :  { %9290 = shalt.err (!%p9287_p9)
}
  0x4a   :  { %100 = dma.hbm_to_vmem [thread:$0]  %s12639_s7, 64, %s98_s28, [#allocation11]  }
  0x4b   :  { %s9484_s30 = smov [#allocation13]   ;;  %s9485_s25 = smov [#allocation16]  }
  0x4c   :  { %s122_s5 = sshll.u32 %s9484_s30, 4  ;;  %s152_s3 = sshll.u32 %s9485_s25, 4  ;;  %s123_s5 = int_to_ptr.vmem [resolvable:$true] %s122_s5  ;;  %s153_s3 = int_to_ptr.vmem [resolvable:$true] %s152_s3 }
  0x4d   :  { %s9291_s24 = scalar_lea.hbm %s12643_s11, 256 }
  0x4e   :  { %p9292_p10 = scmp.ne.s32.totalorder %s12643_s11, %s9291_s24  ;;  %p9295_p11 = scmp.lt.u32.totalorder %s9291_s24, %s12643_s11 }
  0x50   :  { %p9297_p12 = pnand %p9295_p11, %p9292_p10 }
  0x52   :  { %9300 = shalt.err (!%p9297_p12)
}
  0x53   :  { %s9301_s7 = scalar_lea.vmem %s123_s5, 256  ;;  %p9306_p0 = scmp.lt.s32.totalorder %s123_s5, %s123_s5 }
  0x54   :  { %p9302_p13 = scmp.ne.s32.totalorder %s123_s5, %s9301_s7  ;;  %p9307_p1 = scmp.lt.s32.totalorder %s9301_s7, %s9301_s7 }
  0x56   :  { %p9308_p2 = por %p9307_p1, %p9306_p0 }
  0x58   :  { %p9309_p3 = pnand %p9308_p2, %p9302_p13 }
  0x5a   :  { %9312 = shalt.err (!%p9309_p3)
}
  0x5b   :  { %s9486_s28 = smov 128   ;;  %s12784_s29 = smov 8  }
  0x5c   :  { %128 = dma.hbm_to_vmem [thread:$0]  %s12643_s11, 256, %s123_s5, [#allocation14], %s9486_s28, %s9486_s28, %s12784_s29  }
  0x5d   :  { %s9313_s25 = scalar_lea.hbm %s12649_s17, 512 }
  0x5e   :  { %p9314_p4 = scmp.ne.s32.totalorder %s12649_s17, %s9313_s25  ;;  %p9317_p5 = scmp.lt.u32.totalorder %s9313_s25, %s12649_s17 }
  0x60   :  { %p9319_p6 = pnand %p9317_p5, %p9314_p4 }
  0x62   :  { %9322 = shalt.err (!%p9319_p6)
}
  0x63   :  { %s9323_s20 = scalar_lea.vmem %s153_s3, 512  ;;  %p9328_p8 = scmp.lt.s32.totalorder %s153_s3, %s153_s3 }
  0x64   :  { %p9324_p7 = scmp.ne.s32.totalorder %s153_s3, %s9323_s20  ;;  %p9329_p9 = scmp.lt.s32.totalorder %s9323_s20, %s9323_s20 }
  0x66   :  { %p9330_p10 = por %p9329_p9, %p9328_p8 }
  0x68   :  { %p9331_p11 = pnand %p9330_p10, %p9324_p7 }
  0x6a   :  { %9334 = shalt.err (!%p9331_p11)
}
  0x6b   :  { %158 = dma.hbm_to_vmem [thread:$0]  %s12649_s17, 512, %s153_s3, [#allocation17], %s9486_s28, %s9486_s28, %s12784_s29  }
  0x6c   :  { %s9488_s21 = smov [#allocation2]   ;;  %s9489_s7 = smov [#allocation6]  }
  0x6d   :  { %s43_s27 = sshll.u32 %s9488_s21, 4  ;;  %s64_s0 = sshll.u32 %s9489_s7, 4  ;;  %s44_s27 = int_to_ptr.vmem [resolvable:$true] %s43_s27  ;;  %s65_s0 = int_to_ptr.vmem [resolvable:$true] %s64_s0 }
  0x6e   :  { %s13021_s30 = sld [smem:[#allocation168_spill]] }
  0x74   :  { %s9335_s25 = scalar_lea.hbm %s13021_s30, 64 }
  0x75   :  { %p9336_p12 = scmp.ne.s32.totalorder %s13021_s30, %s9335_s25  ;;  %p9339_p13 = scmp.lt.u32.totalorder %s9335_s25, %s13021_s30 }
  0x77   :  { %p9341_p0 = pnand %p9339_p13, %p9336_p12 }
  0x79   :  { %9344 = shalt.err (!%p9341_p0)
}
  0x7a   :  { %s9345_s17 = scalar_lea.vmem %s44_s27, 64  ;;  %p9350_p2 = scmp.lt.s32.totalorder %s44_s27, %s44_s27 }
  0x7b   :  { %p9346_p1 = scmp.ne.s32.totalorder %s44_s27, %s9345_s17  ;;  %p9351_p3 = scmp.lt.s32.totalorder %s9345_s17, %s9345_s17 }
  0x7d   :  { %p9352_p4 = por %p9351_p3, %p9350_p2 }
  0x7f   :  { %p9353_p5 = pnand %p9352_p4, %p9346_p1 }
  0x81   :  { %9356 = shalt.err (!%p9353_p5)
}
  0x82   :  { %46 = dma.hbm_to_vmem [thread:$0]  %s13021_s30, 64, %s44_s27, [#allocation3]  }
  0x83   :  { %s13022_s21 = sld [smem:[#allocation170_spill]] }
  0x89   :  { %s9357_s7 = scalar_lea.hbm %s13022_s21, 128 }
  0x8a   :  { %p9358_p6 = scmp.ne.s32.totalorder %s13022_s21, %s9357_s7  ;;  %p9361_p7 = scmp.lt.u32.totalorder %s9357_s7, %s13022_s21 }
  0x8c   :  { %p9363_p8 = pnand %p9361_p7, %p9358_p6 }
  0x8e   :  { %9366 = shalt.err (!%p9363_p8)
}
  0x8f   :  { %s9367_s19 = scalar_lea.vmem %s65_s0, 128  ;;  %p9372_p10 = scmp.lt.s32.totalorder %s65_s0, %s65_s0 }
  0x90   :  { %p9368_p9 = scmp.ne.s32.totalorder %s65_s0, %s9367_s19  ;;  %p9373_p11 = scmp.lt.s32.totalorder %s9367_s19, %s9367_s19 }
  0x92   :  { %p9374_p12 = por %p9373_p11, %p9372_p10 }
  0x94   :  { %p9375_p13 = pnand %p9374_p12, %p9368_p9 }
  0x96   :  { %9378 = shalt.err (!%p9375_p13)
}
  0x97   :  { %70 = dma.hbm_to_vmem [thread:$0]  %s13022_s21, 128, %s65_s0, [#allocation5], %s9480_s22, %s9480_s22, %s12799_s23  }
  0x98   :  { %s9490_s24 = smov [#allocation9]   ;;  %s9491_s17 = smov [#allocation12]  }
  0x99   :  { %s87_s2 = sshll.u32 %s9490_s24, 4  ;;  %s110_s3 = sshll.u32 %s9491_s17, 4  ;;  %s88_s2 = int_to_ptr.vmem [resolvable:$true] %s87_s2  ;;  %s111_s3 = int_to_ptr.vmem [resolvable:$true] %s110_s3 }
  0x9a   :  { %s9379_s5 = scalar_lea.hbm %s12638_s6, 64 }
  0x9b   :  { %p9380_p0 = scmp.ne.s32.totalorder %s12638_s6, %s9379_s5  ;;  %p9383_p1 = scmp.lt.u32.totalorder %s9379_s5, %s12638_s6 }
  0x9d   :  { %p9385_p2 = pnand %p9383_p1, %p9380_p0 }
  0x9f   :  { %9388 = shalt.err (!%p9385_p2)
}
  0xa0   :  { %s9389_s22 = scalar_lea.vmem %s88_s2, 64  ;;  %p9394_p4 = scmp.lt.s32.totalorder %s88_s2, %s88_s2 }
  0xa1   :  { %p9390_p3 = scmp.ne.s32.totalorder %s88_s2, %s9389_s22  ;;  %p9395_p5 = scmp.lt.s32.totalorder %s9389_s22, %s9389_s22 }
  0xa3   :  { %p9396_p6 = por %p9395_p5, %p9394_p4 }
  0xa5   :  { %p9397_p7 = pnand %p9396_p6, %p9390_p3 }
  0xa7   :  { %9400 = shalt.err (!%p9397_p7)
}
  0xa8   :  { %90 = dma.hbm_to_vmem [thread:$0]  %s12638_s6, 64, %s88_s2, [#allocation8]  }
  0xa9   :  { %s9401_s27 = scalar_lea.hbm %s12642_s10, 256 }
  0xaa   :  { %p9402_p8 = scmp.ne.s32.totalorder %s12642_s10, %s9401_s27  ;;  %p9405_p9 = scmp.lt.u32.totalorder %s9401_s27, %s12642_s10 }
  0xac   :  { %p9407_p10 = pnand %p9405_p9, %p9402_p8 }
  0xae   :  { %9410 = shalt.err (!%p9407_p10)
}
  0xaf   :  { %s9411_s11 = scalar_lea.vmem %s111_s3, 256  ;;  %p9416_p12 = scmp.lt.s32.totalorder %s111_s3, %s111_s3 }
  0xb0   :  { %p9412_p11 = scmp.ne.s32.totalorder %s111_s3, %s9411_s11  ;;  %p9417_p13 = scmp.lt.s32.totalorder %s9411_s11, %s9411_s11 }
  0xb2   :  { %p9418_p0 = por %p9417_p13, %p9416_p12 }
  0xb4   :  { %p9419_p1 = pnand %p9418_p0, %p9412_p11 }
  0xb6   :  { %9422 = shalt.err (!%p9419_p1)
}
  0xb7   :  { %116 = dma.hbm_to_vmem [thread:$0]  %s12642_s10, 256, %s111_s3, [#allocation11], %s9486_s28, %s9486_s28, %s12784_s29  }
  0xb8   :  { %s9492_s5 = smov [#allocation15]   ;;  %s9493_s26 = smov [#allocation18]  }
  0xb9   :  { %s143_s7 = sshll.u32 %s9492_s5, 4  ;;  %s164_s4 = sshll.u32 %s9493_s26, 4  ;;  %s144_s7 = int_to_ptr.vmem [resolvable:$true] %s143_s7  ;;  %s165_s4 = int_to_ptr.vmem [resolvable:$true] %s164_s4 }
  0xba   :  { %s9423_s0 = scalar_lea.hbm %s12648_s16, 128 }
  0xbb   :  { %p9424_p2 = scmp.ne.s32.totalorder %s12648_s16, %s9423_s0  ;;  %p9427_p3 = scmp.lt.u32.totalorder %s9423_s0, %s12648_s16 }
  0xbd   :  { %p9429_p4 = pnand %p9427_p3, %p9424_p2 }
  0xbf   :  { %9432 = shalt.err (!%p9429_p4)
}
  0xc0   :  { %s9433_s10 = scalar_lea.vmem %s144_s7, 128  ;;  %p9438_p6 = scmp.lt.s32.totalorder %s144_s7, %s144_s7 }
  0xc1   :  { %p9434_p5 = scmp.ne.s32.totalorder %s144_s7, %s9433_s10  ;;  %p9439_p7 = scmp.lt.s32.totalorder %s9433_s10, %s9433_s10 }
  0xc3   :  { %p9440_p8 = por %p9439_p7, %p9438_p6 }
  0xc5   :  { %p9441_p9 = pnand %p9440_p8, %p9434_p5 }
  0xc7   :  { %9444 = shalt.err (!%p9441_p9)
}
  0xc8   :  { %146 = dma.hbm_to_vmem [thread:$0]  %s12648_s16, 128, %s144_s7, [#allocation14]  }
  0xc9   :  { %s9445_s17 = scalar_lea.hbm %s12650_s18, 8192 }
  0xca   :  { %p9446_p10 = scmp.ne.s32.totalorder %s12650_s18, %s9445_s17  ;;  %p9449_p11 = scmp.lt.u32.totalorder %s9445_s17, %s12650_s18 }
  0xcc   :  { %p9451_p12 = pnand %p9449_p11, %p9446_p10 }
  0xce   :  { %9454 = shalt.err (!%p9451_p12)
}
  0xcf   :  { %s9455_s5 = scalar_lea.vmem %s165_s4, 8192  ;;  %p9460_p0 = scmp.lt.s32.totalorder %s165_s4, %s165_s4 }
  0xd0   :  { %p9456_p13 = scmp.ne.s32.totalorder %s165_s4, %s9455_s5  ;;  %p9461_p1 = scmp.lt.s32.totalorder %s9455_s5, %s9455_s5 }
  0xd2   :  { %p9462_p2 = por %p9461_p1, %p9460_p0 }
  0xd4   :  { %p9463_p3 = pnand %p9462_p2, %p9456_p13 }
  0xd6   :  { %9466 = shalt.err (!%p9463_p3)
}
  0xd7   :  { %s9494_s16 = smov 512   ;;  %s9495_s7 = smov 32  }
  0xd8   :  { %170 = dma.hbm_to_vmem [thread:$0]  %s12650_s18, 8192, %s165_s4, [#allocation17], %s9494_s16, %s9494_s16, %s9495_s7  }
  0xd9   :  { %9467 = dma.done.wait [#allocation3], 64  }
  0xda   :  { %9468 = vsyncadd [#allocation3], 4294967232 }
  0xdb   :  { %9469 = dma.done.wait [#allocation5], 512  }
  0xdc   :  { %9470 = vsyncadd [#allocation5], 4294966784 }
  0xdd   :  { %9471 = dma.done.wait [#allocation8], 128  }
  0xde   :  { %9472 = vsyncadd [#allocation8], 4294967168 }
  0xdf   :  { %9473 = dma.done.wait [#allocation11], 320  }
  0xe0   :  { %9474 = vsyncadd [#allocation11], 4294966976 }
  0xe1   :  { %9475 = dma.done.wait [#allocation14], 384  }
  0xe2   :  { %9476 = vsyncadd [#allocation14], 4294966912 }
  0xe3   :  { %9477 = dma.done.wait [#allocation17], 8704  }
  0xe4   :  { %9478 = vsyncadd [#allocation17], 4294958592  ;;  %s13023_s21 = sld [smem:[#allocation166_spill]]  ;;  %s9496_s18 = smov 127   ;;  %v234_v4 = vld [vmem:[%s12645_s13 + $0x80] sm:$0xff]  ;;  %v235_v5 = vld [vmem:[%s12645_s13 + $0x88] sm:$0xff] }
  0xe5   :  { %v218_v6 = vld [vmem:[%s12645_s13] sm:$0xff]  ;;  %v9834_v7 = vpack.c.bf16 %v235_v5, %v234_v4  ;;  %v219_v8 = vld [vmem:[%s12645_s13 + $0x8] sm:$0xff]  ;;  %v236_v16 = vld [vmem:[%s12645_s13 + $0x90] sm:$0xff]  ;;  %vm385_vm0 = vcmask 1039360   ;;  %s9497_s10 = smov 112   ;;  %vm411_vm1 = vcmask 916480  }
  0xe6   :  { %v266_v9 = vld [vmem:[%s12645_s13 + $0x180] sm:$0xff]  ;;  %v267_v10 = vld [vmem:[%s12645_s13 + $0x188] sm:$0xff]  ;;  %v9849_v11 = vpack.c.bf16 %v219_v8, %v218_v6  ;;  %v237_v17 = vld [vmem:[%s12645_s13 + $0x98] sm:$0xff]  ;;  %vm9499_vm2 = vmmov 0   ;;  %s9502_s22 = smov 31   ;;  %vm12907_vm3 = vcmask 252928  }
  0xe7   :  { %13026 = vst [vmem:[#allocation27_spill] sm:$0xff] %v9834_v7  ;;  %v9851_v12 = vpack.c.bf16 %v267_v10, %v266_v9  ;;  %v250_v13 = vld [vmem:[%s12645_s13 + $0x100] sm:$0xff]  ;;  %v251_v14 = vld [vmem:[%s12645_s13 + $0x108] sm:$0xff]  ;;  %8336 = vmatprep.subr.bf16.mxu0 %v9834_v7  ;;  %v220_v18 = vld [vmem:[%s12645_s13 + $0x10] sm:$0xff]  ;;  %v9873_v19 = vpack.c.bf16 %v237_v17, %v236_v16  ;;  %s9503_s27 = smov 28   ;;  %vm12906_vm4 = vcmask 228352  }
  0xe8   :  { %13027 = vst [vmem:[#allocation28_spill] sm:$0xff] %v9849_v11  ;;  %v9860_v15 = vpack.c.bf16 %v251_v14, %v250_v13  ;;  %8338 = vmatpush3.bf16.msra.mxu0 %v9849_v11  ;;  %v221_v20 = vld [vmem:[%s12645_s13 + $0x18] sm:$0xff]  ;;  %v268_v21 = vld [vmem:[%s12645_s13 + $0x190] sm:$0xff]  ;;  %v238_v27 = vld [vmem:[%s12645_s13 + $0xa0] sm:$0xff]  ;;  %vm671_vm5 = vcmask 261120   ;;  %s9506_s28 = smov 122  }
  0xe9   :  { %13028 = vst [vmem:[#allocation29_spill] sm:$0xff] %v9851_v12  ;;  %8368 = vmatprep.subr.bf16.mxu1 %v9851_v12  ;;  %13030 = vst [vmem:[#allocation31_spill] sm:$0xff] %v9873_v19  ;;  %v269_v22 = vld [vmem:[%s12645_s13 + $0x198] sm:$0xff]  ;;  %v9885_v23 = vpack.c.bf16 %v221_v20, %v220_v18  ;;  %v252_v25 = vld [vmem:[%s12645_s13 + $0x110] sm:$0xff]  ;;  %8340 = vmatprep.subr.bf16.mxu0 %v9873_v19  ;;  %s9507_s3 = smov 1   ;;  %s9508_s30 = smov 121  }
  0xea   :  { %v9806_v0 = vld [vmem:[%s13023_s21 + $0x8] sm:$0xff]  ;;  %v9811_v1 = vld [vmem:[%s13023_s21] sm:$0xff]  ;;  %13029 = vst [vmem:[#allocation30_spill] sm:$0xff] %v9860_v15  ;;  %8370 = vmatpush3.bf16.msra.mxu1 %v9860_v15  ;;  %v9887_v24 = vpack.c.bf16 %v269_v22, %v268_v21  ;;  %v253_v26 = vld [vmem:[%s12645_s13 + $0x118] sm:$0xff]  ;;  %s9509_s24 = smov 3   ;;  %s9510_s17 = smov 123  }
  0xeb   :  { %381 = vrot.lane.b32.xlu1 %v9806_v0, %s9496_s18  ;;  %377 = vrot.lane.b32.xlu0 %v9811_v1, %s9496_s18  ;;  %v9819_v2 = vcombine.high %v9806_v0, %v9806_v0  ;;  %v9823_v3 = vcombine.high %v9811_v1, %v9811_v1  ;;  %13031 = vst [vmem:[#allocation32_spill] sm:$0xff] %v9885_v23  ;;  %v239_v29 = vld [vmem:[%s12645_s13 + $0xa8] sm:$0xff]  ;;  %v222_v30 = vld [vmem:[%s12645_s13 + $0x20] sm:$0xff]  ;;  %s9511_s20 = smov 7   ;;  %s12807_s11 = smov 6   ;;  %vm12707_vm6 = vcmask 15360  }
  0xec   :  { %13032 = vst [vmem:[#allocation33_spill] sm:$0xff] %v9887_v24  ;;  %v9899_v28 = vpack.c.bf16 %v253_v26, %v252_v25  ;;  %v223_v31 = vld [vmem:[%s12645_s13 + $0x28] sm:$0xff]  ;;  %8372 = vmatprep.subr.bf16.mxu1 %v9887_v24  ;;  %v9911_v32 = vpack.c.bf16 %v239_v29, %v238_v27  ;;  %v270_v33 = vld [vmem:[%s12645_s13 + $0x1a0] sm:$0xff]  ;;  %8342 = vmatpush3.bf16.msra.mxu0 %v9885_v23  ;;  %v240_v39 = vld [vmem:[%s12645_s13 + $0xb0] sm:$0xff]  ;;  %s12705_s6 = smov 126   ;;  %s12805_s2 = smov 5  }
  0xed   :  { %13024 = vst [vmem:[#allocation25_spill] sm:$0xff] %v9819_v2  ;;  %13025 = vst [vmem:[#allocation26_spill] sm:$0xff] %v9823_v3  ;;  %v271_v34 = vld [vmem:[%s12645_s13 + $0x1a8] sm:$0xff]  ;;  %v254_v35 = vld [vmem:[%s12645_s13 + $0x120] sm:$0xff]  ;;  %v9923_v36 = vpack.c.bf16 %v223_v31, %v222_v30  ;;  %s12801_s5 = smov 125   ;;  %vm780_vm7 = vcmask 7168  }
  0xee   :  { %13033 = vst [vmem:[#allocation34_spill] sm:$0xff] %v9899_v28  ;;  %13034 = vst [vmem:[#allocation35_spill] sm:$0xff] %v9911_v32  ;;  %v9925_v37 = vpack.c.bf16 %v271_v34, %v270_v33  ;;  %v255_v38 = vld [vmem:[%s12645_s13 + $0x128] sm:$0xff]  ;;  %v241_v40 = vld [vmem:[%s12645_s13 + $0xb8] sm:$0xff]  ;;  %8374 = vmatpush3.bf16.msra.mxu1 %v9899_v28  ;;  %8344 = vmatprep.subr.bf16.mxu0 %v9911_v32  ;;  %vm12905_vm8 = vcmask 23552   ;;  %vm853_vm9 = vcmask 1043456  }
  0xef   :  { %383 = vrot.lane.b32.xlu1 %v9819_v2, %s9496_s18  ;;  %379 = vrot.lane.b32.xlu0 %v9823_v3, %s9496_s18  ;;  %13035 = vst [vmem:[#allocation36_spill] sm:$0xff] %v9923_v36  ;;  %v9938_v41 = vpack.c.bf16 %v255_v38, %v254_v35  ;;  %v9940_v42 = vpack.c.bf16 %v241_v40, %v240_v39  ;;  %v224_v43 = vld [vmem:[%s12645_s13 + $0x30] sm:$0xff]  ;;  %v225_v44 = vld [vmem:[%s12645_s13 + $0x38] sm:$0xff]  ;;  %vm12702_vm10 = vcmask 56320   ;;  %vm12701_vm11 = vcmask 48128   ;;  %s13078_s19 = sld [smem:[#allocation167_spill]] }
  0xf0   :  { %13036 = vst [vmem:[#allocation37_spill] sm:$0xff] %v9925_v37  ;;  %v272_v45 = vld [vmem:[%s12645_s13 + $0x1b0] sm:$0xff]  ;;  %8376 = vmatprep.subr.bf16.mxu1 %v9925_v37  ;;  %v273_v46 = vld [vmem:[%s12645_s13 + $0x1b8] sm:$0xff]  ;;  %v242_v50 = vld [vmem:[%s12645_s13 + $0xc0] sm:$0xff]  ;;  %8346 = vmatpush3.bf16.msra.mxu0 %v9923_v36  ;;  %v9970_v52 = vpack.c.bf16 %v225_v44, %v224_v43  ;;  %vm12904_vm12 = vcmask 39936   ;;  %vm863_vm13 = vcmask 293888  }
  0xf1   :  { %13037 = vst [vmem:[#allocation38_spill] sm:$0xff] %v9938_v41  ;;  %13038 = vst [vmem:[#allocation39_spill] sm:$0xff] %v9940_v42  ;;  %v256_v47 = vld [vmem:[%s12645_s13 + $0x130] sm:$0xff]  ;;  %v257_v48 = vld [vmem:[%s12645_s13 + $0x138] sm:$0xff]  ;;  %v9961_v49 = vpack.c.bf16 %v273_v46, %v272_v45  ;;  %8348 = vmatprep.subr.bf16.mxu0 %v9940_v42  ;;  %s12796_s7 = smov 100   ;;  %s12794_s26 = smov 97  }
  0xf2   :  { %v243_v51 = vld [vmem:[%s12645_s13 + $0xc8] sm:$0xff]  ;;  %13040 = vst [vmem:[#allocation41_spill] sm:$0xff] %v9970_v52  ;;  %v274_v53 = vld [vmem:[%s12645_s13 + $0x1c0] sm:$0xff]  ;;  %8378 = vmatpush3.bf16.msra.mxu1 %v9938_v41  ;;  %v9980_v55 = vpack.c.bf16 %v257_v48, %v256_v47  ;;  %v244_v4 = vld [vmem:[%s12645_s13 + $0xd0] sm:$0xff]  ;;  %s12792_s25 = smov 101   ;;  %s12790_s0 = smov 99  }
  0xf3   :  { %13039 = vst [vmem:[#allocation40_spill] sm:$0xff] %v9961_v49  ;;  %v275_v54 = vld [vmem:[%s12645_s13 + $0x1c8] sm:$0xff]  ;;  %v9982_v56 = vpack.c.bf16 %v243_v51, %v242_v50  ;;  %v226_v57 = vld [vmem:[%s12645_s13 + $0x40] sm:$0xff]  ;;  %8380 = vmatprep.subr.bf16.mxu1 %v9961_v49  ;;  %v245_v5 = vld [vmem:[%s12645_s13 + $0xd8] sm:$0xff]  ;;  %s12729_s1 = smov 29   ;;  %s12727_s4 = smov 27  }
  0xf4   :  { %13041 = vst [vmem:[#allocation42_spill] sm:$0xff] %v9980_v55  ;;  %v227_v58 = vld [vmem:[%s12645_s13 + $0x48] sm:$0xff]  ;;  %v9991_v59 = vpack.c.bf16 %v275_v54, %v274_v53  ;;  %8350 = vmatpush3.bf16.msra.mxu0 %v9970_v52  ;;  %v258_v61 = vld [vmem:[%s12645_s13 + $0x140] sm:$0xff]  ;;  %v10014_v6 = vpack.c.bf16 %v245_v5, %v244_v4  ;;  %v228_v8 = vld [vmem:[%s12645_s13 + $0x50] sm:$0xff]  ;;  %s12770_s16 = smov 119  }
  0xf5   :  { %13042 = vst [vmem:[#allocation43_spill] sm:$0xff] %v9982_v56  ;;  %v9994_v60 = vpack.c.bf16 %v227_v58, %v226_v57  ;;  %8352 = vmatprep.subr.bf16.mxu0 %v9982_v56  ;;  %v259_v62 = vld [vmem:[%s12645_s13 + $0x148] sm:$0xff]  ;;  %v229_v9 = vld [vmem:[%s12645_s13 + $0x58] sm:$0xff]  ;;  %v276_v13 = vld [vmem:[%s12645_s13 + $0x1d0] sm:$0xff] }
  0xf6   :  { %13043 = vst [vmem:[#allocation44_spill] sm:$0xff] %v9991_v59  ;;  %8382 = vmatpush3.bf16.msra.mxu1 %v9980_v55  ;;  %v10006_v63 = vpack.c.bf16 %v259_v62, %v258_v61  ;;  %13046 = vst [vmem:[#allocation47_spill] sm:$0xff] %v10014_v6  ;;  %v10023_v10 = vpack.c.bf16 %v229_v9, %v228_v8  ;;  %v277_v14 = vld [vmem:[%s12645_s13 + $0x1d8] sm:$0xff]  ;;  %v260_v17 = vld [vmem:[%s12645_s13 + $0x150] sm:$0xff] }
  0xf7   :  { %13044 = vst [vmem:[#allocation45_spill] sm:$0xff] %v9994_v60  ;;  %8384 = vmatprep.subr.bf16.mxu1 %v9991_v59  ;;  %v10032_v16 = vpack.c.bf16 %v277_v14, %v276_v13  ;;  %v261_v18 = vld [vmem:[%s12645_s13 + $0x158] sm:$0xff]  ;;  %v246_v21 = vld [vmem:[%s12645_s13 + $0xe0] sm:$0xff]  ;;  %v247_v22 = vld [vmem:[%s12645_s13 + $0xe8] sm:$0xff] }
  0xf8   :  { %8354 = vmatpush3.bf16.msra.mxu0 %v9994_v60  ;;  %13045 = vst [vmem:[#allocation46_spill] sm:$0xff] %v10006_v63  ;;  %13047 = vst [vmem:[#allocation48_spill] sm:$0xff] %v10023_v10  ;;  %v10041_v20 = vpack.c.bf16 %v261_v18, %v260_v17  ;;  %v10050_v25 = vpack.c.bf16 %v247_v22, %v246_v21  ;;  %v230_v26 = vld [vmem:[%s12645_s13 + $0x60] sm:$0xff]  ;;  %v231_v27 = vld [vmem:[%s12645_s13 + $0x68] sm:$0xff] }
  0xf9   :  { %8356 = vmatprep.subr.bf16.mxu0 %v10014_v6  ;;  %13048 = vst [vmem:[#allocation49_spill] sm:$0xff] %v10032_v16  ;;  %v10059_v31 = vpack.c.bf16 %v231_v27, %v230_v26  ;;  %v278_v33 = vld [vmem:[%s12645_s13 + $0x1e0] sm:$0xff]  ;;  %v279_v34 = vld [vmem:[%s12645_s13 + $0x1e8] sm:$0xff]  ;;  %v248_v43 = vld [vmem:[%s12645_s13 + $0xf0] sm:$0xff] }
  0xfa   :  { %8386 = vmatpush3.bf16.msra.mxu1 %v10006_v63  ;;  %13049 = vst [vmem:[#allocation50_spill] sm:$0xff] %v10041_v20  ;;  %13050 = vst [vmem:[#allocation51_spill] sm:$0xff] %v10050_v25  ;;  %v10068_v35 = vpack.c.bf16 %v279_v34, %v278_v33  ;;  %v262_v38 = vld [vmem:[%s12645_s13 + $0x160] sm:$0xff]  ;;  %v263_v39 = vld [vmem:[%s12645_s13 + $0x168] sm:$0xff] }
  0xfb   :  { %8388 = vmatprep.subr.bf16.mxu1 %v10032_v16  ;;  %13051 = vst [vmem:[#allocation52_spill] sm:$0xff] %v10059_v31  ;;  %v10077_v40 = vpack.c.bf16 %v263_v39, %v262_v38  ;;  %v249_v44 = vld [vmem:[%s12645_s13 + $0xf8] sm:$0xff]  ;;  %v232_v46 = vld [vmem:[%s12645_s13 + $0x70] sm:$0xff]  ;;  %v369_v32 = vld [vmem:[#allocation18 + $0x1f0] sm:$0xff] }
  0xfc   :  { %8358 = vmatpush3.bf16.msra.mxu0 %v10023_v10  ;;  %13052 = vst [vmem:[#allocation53_spill] sm:$0xff] %v10068_v35  ;;  %v10086_v45 = vpack.c.bf16 %v249_v44, %v248_v43  ;;  %v233_v47 = vld [vmem:[%s12645_s13 + $0x78] sm:$0xff]  ;;  %v280_v48 = vld [vmem:[%s12645_s13 + $0x1f0] sm:$0xff]  ;;  %v2256_v23 = vld [vmem:[#allocation4 + $0x8] sm:$0xf] }
  0xfd   :  { %8360 = vmatprep.subr.bf16.mxu0 %v10050_v25  ;;  %13053 = vst [vmem:[#allocation54_spill] sm:$0xff] %v10077_v40  ;;  %v10098_v53 = vpack.c.bf16 %v233_v47, %v232_v46  ;;  %v281_v54 = vld [vmem:[%s12645_s13 + $0x1f8] sm:$0xff]  ;;  %v264_v4 = vld [vmem:[%s12645_s13 + $0x170] sm:$0xff] }
  0xfe   :  { %8390 = vmatpush3.bf16.msra.mxu1 %v10041_v20  ;;  %13054 = vst [vmem:[#allocation55_spill] sm:$0xff] %v10086_v45  ;;  %v265_v5 = vld [vmem:[%s12645_s13 + $0x178] sm:$0xff]  ;;  %v10115_v13 = vpack.c.bf16 %v281_v54, %v280_v48  ;;  %v282_v48 = vld [vmem:[%s12646_s14] sm:$0xff]  ;;  %v12666_v54 = vmov 0.0|0.0   ;;  %s9504_s13 = smov 124  }
  0xff   :  { %8392 = vmatprep.subr.bf16.mxu1 %v10068_v35  ;;  %13055 = vst [vmem:[#allocation56_spill] sm:$0xff] %v10098_v53  ;;  %v10117_v14 = vpack.c.bf16 %v265_v5, %v264_v4  ;;  %v286_v5 = vld [vmem:[%s12646_s14 + $0x20] sm:$0xff] }
 0x100   :  { %8362 = vmatpush3.bf16.msra.mxu0 %v10059_v31  ;;  %13056 = vst [vmem:[#allocation57_spill] sm:$0xff] %v10115_v13 }
 0x101   :  { %8364 = vmatprep.subr.bf16.mxu0 %v10086_v45  ;;  %13057 = vst [vmem:[#allocation58_spill] sm:$0xff] %v10117_v14 }
 0x102   :  { %8394 = vmatpush3.bf16.msra.mxu1 %v10077_v40 }
 0x103   :  { %8396 = vmatprep.subr.bf16.mxu1 %v10115_v13 }
 0x104   :  { %8366 = vmatpush3.bf16.msra.mxu0 %v10098_v53 }
 0x105   :  { %8399 = vmatprep.subr.bf16.mxu0 %v12666_v54 }
 0x106   :  { %8398 = vmatpush3.bf16.msra.mxu1 %v10117_v14 }
 0x107   :  { %8423 = vmatprep.subr.bf16.mxu1 %v12666_v54 }
 0x15d   :  { %v382_v29 = vpop.permute.xlu1 %381  ;;  %v378_v30 = vpop.permute.xlu0 %377 }
 0x161   :  { %v384_v50 = vpop.permute.xlu1 %383  ;;  %v380_v51 = vpop.permute.xlu0 %379 }
 0x162   :  { %v388_v57 = vsel %vm385_vm0, %v382_v29, %v384_v50  ;;  %v391_v58 = vsel %vm385_vm0, %v384_v50, %v378_v30  ;;  %v386_v61 = vsel %vm385_vm0, %v378_v30, %v380_v51  ;;  %v387_v62 = vsel %vm385_vm0, %v380_v51, %v382_v29  ;;  %v283_v50 = vld [vmem:[%s12646_s14 + $0x8] sm:$0xff]  ;;  %v284_v51 = vld [vmem:[%s12646_s14 + $0x10] sm:$0xff] }
 0x163   :  { %v394_v8 = vcombine.low %v388_v57, %v391_v58  ;;  %v393_v9 = vcombine.low %v386_v61, %v387_v62  ;;  %v10141_v57 = vpack.c.bf16 %v283_v50, %v282_v48  ;;  %v285_v58 = vld [vmem:[%s12646_s14 + $0x18] sm:$0xff] }
 0x164   :  { %v10148_v62 = vpack.c.bf16 %v285_v58, %v284_v51  ;;  %v297_v48 = vld [vmem:[%s12646_s14 + $0x78] sm:$0xff]  ;;  %v12664_v51 = vmov 0.0  }
 0x165   :  { %v397_v17 = vmax.f32 %v9811_v1, %v393_v9  ;;  %v398_v21 = vmax.f32 %v9806_v0, %v394_v8  ;;  %13058 = vst [vmem:[#allocation59_spill] sm:$0xff] %v10141_v57  ;;  %v287_v8 = vld [vmem:[%s12646_s14 + $0x28] sm:$0xff] }
 0x166   :  { %13059 = vst [vmem:[#allocation60_spill] sm:$0xff] %v10148_v62 }
 0x167   :  { %403 = vrot.lane.b32.xlu0 %v397_v17, %s9497_s10  ;;  %v401_v18 = vcombine.high %v397_v17, %v397_v17  ;;  %v402_v22 = vcombine.high %v398_v21, %v398_v21 }
 0x169   :  { %405 = vrot.lane.b32.xlu1 %v401_v18, %s9497_s10 }
 0x16b   :  { %407 = vrot.lane.b32.xlu0 %v398_v21, %s9497_s10 }
 0x16d   :  { %409 = vrot.lane.b32.xlu1 %v402_v22, %s9497_s10  ;;  %v10158_v22 = vpack.c.bf16 %v287_v8, %v286_v5  ;;  %v298_v8 = vld [vmem:[%s12647_s15] sm:$0xff] }
 0x16f   :  { %13060 = vst [vmem:[#allocation61_spill] sm:$0xff] %v10158_v22 }
 0x1d9   :  { %v404_v26 = vpop.permute.xlu0 %403 }
 0x1db   :  { %v406_v1 = vpop.permute.xlu1 %405 }
 0x1dc   :  { %v412_v29 = vsel %vm411_vm1, %v404_v26, %v406_v1 }
 0x1dd   :  { %v408_v27 = vpop.permute.xlu0 %407 }
 0x1de   :  { %v413_v30 = vsel %vm411_vm1, %v406_v1, %v408_v27  ;;  %v289_v1 = vld [vmem:[%s12646_s14 + $0x38] sm:$0xff] }
 0x1df   :  { %v410_v33 = vpop.permute.xlu1 %409  ;;  %v419_v34 = vcombine.low %v412_v29, %v413_v30  ;;  %v290_v30 = vld [vmem:[%s12646_s14 + $0x40] sm:$0xff] }
 0x1e0   :  { %v414_v38 = vsel %vm411_vm1, %v408_v27, %v410_v33  ;;  %v417_v0 = vsel %vm411_vm1, %v410_v33, %v404_v26  ;;  %v288_v26 = vld [vmem:[%s12646_s14 + $0x30] sm:$0xff]  ;;  %v291_v33 = vld [vmem:[%s12646_s14 + $0x48] sm:$0xff] }
 0x1e1   :  { %v423_v39 = vmax.f32 %v397_v17, %v419_v34  ;;  %v420_v43 = vcombine.low %v414_v38, %v417_v0  ;;  %v10172_v29 = vpack.c.bf16 %v289_v1, %v288_v26  ;;  %v10182_v34 = vpack.c.bf16 %v291_v33, %v290_v30  ;;  %v292_v38 = vld [vmem:[%s12646_s14 + $0x50] sm:$0xff]  ;;  %v293_v0 = vld [vmem:[%s12646_s14 + $0x58] sm:$0xff] }
 0x1e2   :  { %v300_v26 = vld [vmem:[%s12647_s15 + $0x10] sm:$0xff]  ;;  %v301_v1 = vld [vmem:[%s12647_s15 + $0x18] sm:$0xff] }
 0x1e3   :  { %v427_v44 = vcombine.high %v423_v39, %v423_v39  ;;  %v424_v46 = vmax.f32 %v398_v21, %v420_v43  ;;  %13061 = vst [vmem:[#allocation62_spill] sm:$0xff] %v10172_v29  ;;  %13062 = vst [vmem:[#allocation63_spill] sm:$0xff] %v10182_v34  ;;  %v294_v43 = vld [vmem:[%s12646_s14 + $0x60] sm:$0xff]  ;;  %v10247_v30 = vpack.c.bf16 %v301_v1, %v300_v26 }
 0x1e5   :  { %495 = vmatprep.mubr.f32.mxu0 %v427_v44  ;;  %v428_v47 = vcombine.high %v424_v46, %v424_v46  ;;  %v295_v44 = vld [vmem:[%s12646_s14 + $0x68] sm:$0xff]  ;;  %13067 = vst [vmem:[#allocation68_spill] sm:$0xff] %v10247_v30 }
 0x1e6   :  { %496 = vmatmul.mubr.f32.vlgmr.msra.gmra.mrb[0].mxu0 %v423_v39  ;;  %v10192_v39 = vpack.c.bf16 %v293_v0, %v292_v38 }
 0x1e7   :  { %565 = vmatprep.mubr.f32.mxu1 %v428_v47  ;;  %8401 = vmatpush3.bf16.msra.mxu0 %v10141_v57  ;;  %v296_v47 = vld [vmem:[%s12646_s14 + $0x70] sm:$0xff]  ;;  %s9501_s14 = smov 120  }
 0x1e8   :  { %566 = vmatmul.mubr.f32.vlgmr.msra.gmra.mrb[0].mxu1 %v424_v46  ;;  %8402 = vmatprep.subr.bf16.mxu0 %v12666_v54  ;;  %13063 = vst [vmem:[#allocation64_spill] sm:$0xff] %v10192_v39  ;;  %v10202_v46 = vpack.c.bf16 %v295_v44, %v294_v43  ;;  %v10212_v50 = vpack.c.bf16 %v297_v48, %v296_v47 }
 0x1e9   :  { %8045 = vmatprep.mubr.msk.f32.mxu0 %vm9499_vm2, %v12664_v51  ;;  %8056 = vmatprep.mubr.msk.f32.mxu1 %vm9499_vm2, %v12664_v51 }
 0x1ea   :  { %13064 = vst [vmem:[#allocation65_spill] sm:$0xff] %v10202_v46  ;;  %13065 = vst [vmem:[#allocation66_spill] sm:$0xff] %v10212_v50 }
 0x1eb   :  { %8404 = vmatpush3.bf16.msra.mxu0 %v10148_v62 }
 0x1ec   :  { %8405 = vmatprep.subr.bf16.mxu0 %v12666_v54 }
 0x1ef   :  { %8407 = vmatpush3.bf16.msra.mxu0 %v10158_v22 }
 0x1f0   :  { %8408 = vmatprep.subr.bf16.mxu0 %v12666_v54 }
 0x1f3   :  { %8410 = vmatpush3.bf16.msra.mxu0 %v10172_v29 }
 0x1f4   :  { %8411 = vmatprep.subr.bf16.mxu0 %v12666_v54 }
 0x1f7   :  { %8413 = vmatpush3.bf16.msra.mxu0 %v10182_v34 }
 0x1f8   :  { %8414 = vmatprep.subr.bf16.mxu0 %v12666_v54 }
 0x1fb   :  { %8416 = vmatpush3.bf16.msra.mxu0 %v10192_v39 }
 0x1fc   :  { %8417 = vmatprep.subr.bf16.mxu0 %v12666_v54 }
 0x1ff   :  { %8419 = vmatpush3.bf16.msra.mxu0 %v10202_v46 }
 0x200   :  { %8420 = vmatprep.subr.bf16.mxu0 %v12666_v54 }
 0x203   :  { %8422 = vmatpush3.bf16.msra.mxu0 %v10212_v50 }
 0x204   :  { %8090 = vmatprep.subr.mxu0 %v12664_v51 }
 0x2b9   :  { %v7757_v61 = vpop.f32.mrb[0].mxu0 }
 0x2ba   :  { %v7758_v4 = vpop.f32.mrb[1].mxu0 }
 0x2bb   :  { %v7759_v9 = vadd.f32 %v7758_v4, %v7757_v61  ;;  %v7792_v17 = vpop.f32.mrb[0].mxu1 }
 0x2bc   :  { %v7793_v18 = vpop.f32.mrb[1].mxu1 }
 0x2bd   :  { %v7794_v21 = vadd.f32 %v7793_v18, %v7792_v17 }
 0x2bf   :  { %v10167_v27 = vadd.f32 %v7794_v21, %v7759_v9  ;;  %v299_v9 = vld [vmem:[%s12647_s15 + $0x8] sm:$0xff]  ;;  %s9505_s15 = smov 2  }
 0x2c0   :  { %v10231_v17 = vpack.c.bf16 %v299_v9, %v298_v8  ;;  %v10287_v8 = vld [vmem:[#allocation2] sm:$0xf]  ;;  %v756_v9 = vlaneseq }
 0x2c1   :  { %572 = vrot.lane.b32.xlu0 %v10167_v27, %s9496_s18 }
 0x2c2   :  { %13066 = vst [vmem:[#allocation67_spill] sm:$0xff] %v10231_v17  ;;  %8425 = vmatpush3.bf16.msra.mxu1 %v10231_v17 }
 0x2c3   :  { %8426 = vmatprep.subr.bf16.mxu1 %v12666_v54 }
 0x2c6   :  { %8428 = vmatpush3.bf16.msra.mxu1 %v10247_v30 }
 0x2c7   :  { %8429 = vmatprep.subr.bf16.mxu1 %v12666_v54 }
 0x333   :  { %v573_v58 = vpop.permute.xlu0 %572 }
 0x334   :  { %v575_v61 = vmax.f32 %v10167_v27, %v573_v58 }
 0x336   :  { %577 = vrot.lane.b32.xlu1 %v575_v61, %s9501_s14 }
 0x3a8   :  { %v578_v4 = vpop.permute.xlu1 %577 }
 0x3a9   :  { %v580_v5 = vmax.f32 %v575_v61, %v578_v4 }
 0x3ab   :  { %8046 = vmatmul.mubr.f32.vlgmr.msra.gmra.mrb[2].mxu0 %v580_v5  ;;  %v12663_v5 = vmov 0  }
 0x3ac   :  { %8092 = vmatprep.mubr.msk.f32.mxu0 %vm9499_vm2, %v12664_v51  ;;  %9162 = vset.pattern.permute.xlu0 %v12663_v5 }
 0x3ad   :  { %9164 = vset.pattern.permute.xlu1 %v12663_v5 }
 0x47e   :  { %v10235_v18 = vpop.f32.mrb[2].mxu0 }
 0x47f   :  { %655 = vrot.lane.b32.xlu1 %v10235_v18, %s9502_s22  ;;  %652 = vrot.lane.b32.xlu0 %v10235_v18, %s9496_s18  ;;  %v8047_v21 = vpop.f32.mrb[3].mxu0 }
 0x480   :  { %v757_v21 = vshrl.u32 %v756_v9, 7 }
 0x482   :  { %v10290_v26 = vsub.s32 1, %v757_v21  ;;  %v10292_v1 = vsub.s32 3, %v757_v21  ;;  %v10312_v54 = vsub.s32 5, %v757_v21  ;;  %v10325_v30 = vsub.s32 7, %v757_v21 }
 0x483   :  { %v10329_v57 = vsub.s32 4, %v757_v21  ;;  %v10331_v14 = vsub.s32 6, %v757_v21 }
 0x4f1   :  { %v656_v33 = vpop.permute.xlu1 %655  ;;  %v653_v38 = vpop.permute.xlu0 %652 }
 0x4f2   :  { %v659_v0 = vsel %vm12907_vm3, %v653_v38, %v656_v33 }
 0x4f3   :  { %v660_v43 = vmax.f32 %v10235_v18, %v659_v0  ;;  %v216_v0 = vld [vmem:[%s12644_s12] sm:$0xff] }
 0x4f5   :  { %665 = vrot.lane.b32.xlu1 %v660_v43, %s9503_s27  ;;  %662 = vrot.lane.b32.xlu0 %v660_v43, %s9504_s13 }
 0x567   :  { %v666_v44 = vpop.permute.xlu1 %665  ;;  %v663_v47 = vpop.permute.xlu0 %662 }
 0x568   :  { %v669_v48 = vsel %vm12906_vm4, %v663_v47, %v666_v44  ;;  %v10300_v44 = vrot.slane %v216_v0, %v10290_v26  ;;  %v10303_v47 = vrot.slane %v216_v0, %v10292_v1 }
 0x569   :  { %v670_v58 = vmax.f32 %v660_v43, %v669_v48  ;;  %v10297_v43 = vsub.s32 2, %v757_v21  ;;  %v10305_v48 = vsub.s32 0, %v757_v21 }
 0x56a   :  { %13068 = vst [vmem:[#allocation69_spill] sm:$0xff] %v10300_v44  ;;  %13069 = vst [vmem:[#allocation70_spill] sm:$0xff] %v10303_v47 }
 0x56b   :  { %8057 = vmatmul.mubr.msk.f32.vlgmr.msra.gmra.mrb[2].mxu1 %vm671_vm5, %v670_v58  ;;  %v10317_v39 = vrot.slane %v216_v0, %v10305_v48 }
 0x56c   :  { %8069 = vmatprep.mubr.msk.f32.mxu1 %vm9499_vm2, %v12664_v51  ;;  %v10310_v51 = vrot.slane %v216_v0, %v10297_v43 }
 0x56d   :  { %13071 = vst [vmem:[#allocation72_spill] sm:$0xff] %v10317_v39 }
 0x56e   :  { %13070 = vst [vmem:[#allocation71_spill] sm:$0xff] %v10310_v51 }
 0x63e   :  { %v10259_v61 = vpop.f32.mrb[2].mxu1 }
 0x63f   :  { %764 = vrot.lane.b32.xlu1 %v10259_v61, %s9505_s15  ;;  %761 = vrot.lane.b32.xlu0 %v10259_v61, %s9506_s28  ;;  %v8058_v4 = vpop.f32.mrb[3].mxu1 }
 0x643   :  { %777 = vrot.lane.b32.xlu1 %v10259_v61, %s9507_s3  ;;  %774 = vrot.lane.b32.xlu0 %v10259_v61, %s9508_s30 }
 0x647   :  { %751 = vrot.lane.b32.xlu1 %v10259_v61, %s9509_s24  ;;  %748 = vrot.lane.b32.xlu0 %v10259_v61, %s9510_s17 }
 0x64b   :  { %800 = vrot.lane.b32.xlu1 %v10259_v61, %s9511_s20  ;;  %797 = vrot.lane.b32.xlu0 %v10259_v61, %s9496_s18 }
 0x64f   :  { %818 = vrot.lane.b32.xlu1 %v10259_v61, %s12807_s11  ;;  %815 = vrot.lane.b32.xlu0 %v10259_v61, %s12705_s6 }
 0x653   :  { %831 = vrot.lane.b32.xlu1 %v10259_v61, %s12805_s2  ;;  %828 = vrot.lane.b32.xlu0 %v10259_v61, %s12801_s5 }
 0x657   :  { %860 = vperm.xlu0 %9162, %v10287_v8  }
 0x6b1   :  { %v765_v33 = vpop.permute.xlu1 %764  ;;  %v762_v38 = vpop.permute.xlu0 %761 }
 0x6b2   :  { %v768_v58 = vsel %vm12707_vm6, %v762_v38, %v765_v33 }
 0x6b3   :  { %v773_v50 = vmul.f32 %v10300_v44, %v768_v58 }
 0x6b5   :  { %v778_v4 = vpop.permute.xlu1 %777  ;;  %v775_v9 = vpop.permute.xlu0 %774 }
 0x6b6   :  { %v781_v5 = vsel %vm780_vm7, %v775_v9, %v778_v4  ;;  %v10321_v4 = vrot.slane %v216_v0, %v10312_v54  ;;  %v842_v9 = vrot.slane %v773_v50, 4 }
 0x6b7   :  { %v791_v46 = vmul.f32 %v10303_v47, %v781_v5  ;;  %v786_v22 = vmul.f32 %v10310_v51, %v781_v5  ;;  %v10336_v5 = vrot.slane %v216_v0, %v10325_v30 }
 0x6b8   :  { %13072 = vst [vmem:[#allocation73_spill] sm:$0xff] %v10321_v4 }
 0x6b9   :  { %v845_v34 = vrot.slane %v791_v46, 4  ;;  %v752_v29 = vpop.permute.xlu1 %751  ;;  %v749_v33 = vpop.permute.xlu0 %748  ;;  %13073 = vst [vmem:[#allocation74_spill] sm:$0xff] %v10336_v5 }
 0x6ba   :  { %v755_v38 = vsel %vm12905_vm8, %v749_v33, %v752_v29 }
 0x6bb   :  { %v760_v58 = vmul.f32 %v10317_v39, %v755_v38  ;;  %v855_v62 = vsel %vm853_vm9, %v786_v22, %v845_v34  ;;  %v10339_v22 = vrot.slane %v216_v0, %v10329_v57  ;;  %v10342_v34 = vrot.slane %v216_v0, %v10331_v14 }
 0x6bd   :  { %v854_v46 = vsel %vm853_vm9, %v760_v58, %v842_v9  ;;  %v801_v17 = vpop.permute.xlu1 %800  ;;  %v798_v29 = vpop.permute.xlu0 %797  ;;  %13074 = vst [vmem:[#allocation75_spill] sm:$0xff] %v10339_v22  ;;  %13075 = vst [vmem:[#allocation76_spill] sm:$0xff] %v10342_v34  ;;  %v13076_v9 = vmov 0.0|0.0  }
 0x6be   :  { %v804_v33 = vsel %vm12702_vm10, %v798_v29, %v801_v17  ;;  %v8430_v13 = vpack.c.bf16 %v855_v62, %v854_v46  ;;  %v796_v46 = vmul.f32 %v10339_v22, %v10259_v61  ;;  %v13077_v61 = vmov 0.0  }
 0x6bf   :  { %v809_v50 = vmul.f32 %v10321_v4, %v804_v33 }
 0x6c0   :  { %8431 = vmatpush3.bf16.msra.mxu1 %v8430_v13  ;;  %v814_v13 = vmul.f32 %v10342_v34, %v804_v33 }
 0x6c1   :  { %v819_v38 = vpop.permute.xlu1 %818  ;;  %v816_v21 = vpop.permute.xlu0 %815  ;;  %8432 = vmatprep.subr.bf16.mxu1 %v13076_v9  ;;  %v848_v62 = vrot.slane %v809_v50, 4  ;;  %v10355_v50 = vld [vmem:[%s12644_s12 + $0x8] ss:$0 sm:$0xff] }
 0x6c2   :  { %v822_v17 = vsel %vm12701_vm11, %v816_v21, %v819_v38  ;;  %v745_v21 = vld [vmem:[%s13078_s19] sm:$0xf] }
 0x6c3   :  { %v827_v58 = vmul.f32 %v10336_v5, %v822_v17  ;;  %v856_v0 = vsel %vm853_vm9, %v796_v46, %v848_v62 }
 0x6c5   :  { %v851_v29 = vrot.slane %v827_v58, 4  ;;  %v832_v53 = vpop.permute.xlu1 %831  ;;  %v829_v40 = vpop.permute.xlu0 %828  ;;  %v12684_v58 = vmov 1  }
 0x6c6   :  { %v835_v38 = vsel %vm12904_vm12, %v829_v40, %v832_v53  ;;  %9163 = vset.pattern.permute.xlu0 %v12684_v58 }
 0x6c7   :  { %v857_v45 = vsel %vm853_vm9, %v814_v13, %v851_v29  ;;  %v840_v33 = vmul.f32 %v10355_v50, %v835_v38 }
 0x6c8   :  { %v8433_v35 = vpack.c.bf16 %v857_v45, %v856_v0 }
 0x6ca   :  { %8434 = vmatpush3.bf16.msra.mxu1 %v8433_v35 }
 0x6cb   :  { %8067 = vmatprep.subr.mxu1 %v13077_v61 }
 0x6ce   :  { %8068 = vmatpush3.msk.msra.mxu1 %vm853_vm9, %v840_v33 }
 0x6cf   :  { %8070 = vmatmul.mubr.msk.f32.vlgmr.msra.gmra.mrb[4].mxu1 %vm863_vm13, %v745_v21  ;;  %8435 = vmatprep.subr.bf16.mxu1 %v13076_v9 }
 0x6d0   :  { %8082 = vmatprep.mubr.msk.f32.mxu1 %vm9499_vm2, %v13077_v61 }
 0x6d6   :  { %v861_v40 = vpop.permute.xlu0 %860 }
 0x7a2   :  { %v936_v35 = vpop.f32.mrb[4].mxu1 }
 0x7a3   :  { %v937_v45 = vadd.f32 %v936_v35, %v861_v40  ;;  %v8071_v53 = vpop.f32.mrb[5].mxu1 }
 0x7a5   :  { %vm940_vm14 = vcmp.ge.f32.partialorder %v937_v45, 0.0  ;;  %v941_v17 = vmul.f32 0.2, %v937_v45 }
 0x7a7   :  { %v942_v62 = vsel %vm940_vm14, %v937_v45, %v941_v17  ;;  %vm1096_vm14 = vcmask 64512  }
 0x7a8   :  { %962 = vrot.lane.b32.xlu0 %v942_v62, %s9508_s30  ;;  %954 = vrot.lane.b32.xlu1 %v942_v62, %s9506_s28 }
 0x7ac   :  { %946 = vrot.lane.b32.xlu0 %v942_v62, %s9510_s17  ;;  %957 = vrot.lane.b32.xlu1 %v942_v62, %s9505_s15 }
 0x7b0   :  { %972 = vrot.lane.b32.xlu0 %v942_v62, %s9496_s18  ;;  %965 = vrot.lane.b32.xlu1 %v942_v62, %s9507_s3 }
 0x7b4   :  { %981 = vrot.lane.b32.xlu0 %v942_v62, %s12705_s6  ;;  %949 = vrot.lane.b32.xlu1 %v942_v62, %s9509_s24  ;;  %s12772_s6 = smov 9  }
 0x7b8   :  { %989 = vrot.lane.b32.xlu0 %v942_v62, %s12801_s5  ;;  %975 = vrot.lane.b32.xlu1 %v942_v62, %s9511_s20 }
 0x7bc   :  { %984 = vrot.lane.b32.xlu1 %v942_v62, %s12807_s11  ;;  %1014 = vperm.xlu0 %9163, %v10287_v8   ;;  %s13290_s11 = smov 125  }
 0x7c0   :  { %992 = vrot.lane.b32.xlu1 %v942_v62, %s12805_s2 }
 0x81a   :  { %v955_v46 = vpop.permute.xlu1 %954  ;;  %v963_v13 = vpop.permute.xlu0 %962 }
 0x81e   :  { %v958_v29 = vpop.permute.xlu1 %957  ;;  %v947_v38 = vpop.permute.xlu0 %946 }
 0x81f   :  { %v960_v0 = vsel %vm12707_vm6, %v955_v46, %v958_v29 }
 0x820   :  { %v961_v40 = vmul.f32 %v960_v0, %v10300_v44 }
 0x822   :  { %v966_v33 = vpop.permute.xlu1 %965  ;;  %v998_v58 = vrot.slane %v961_v40, 4  ;;  %v973_v31 = vpop.permute.xlu0 %972 }
 0x823   :  { %v968_v21 = vsel %vm780_vm7, %v963_v13, %v966_v33 }
 0x824   :  { %v970_v35 = vmul.f32 %v968_v21, %v10303_v47  ;;  %v969_v20 = vmul.f32 %v968_v21, %v10310_v51 }
 0x826   :  { %v1001_v45 = vrot.slane %v970_v35, 4  ;;  %v950_v53 = vpop.permute.xlu1 %949  ;;  %v982_v35 = vpop.permute.xlu0 %981 }
 0x827   :  { %v952_v17 = vsel %vm12905_vm8, %v947_v38, %v950_v53 }
 0x828   :  { %v953_v25 = vmul.f32 %v952_v17, %v10317_v39  ;;  %v1010_v46 = vsel %vm853_vm9, %v969_v20, %v1001_v45  ;;  %v971_v20 = vmul.f32 %v942_v62, %v10339_v22  ;;  %v7631_v62 = vld [vmem:[%s13078_s19 + $0x4] sm:$0xf]  ;;  %v10509_v39 = vld [vmem:[#allocation13 + $0x8] ss:$0 sm:$0xff] }
 0x82a   :  { %v1009_v29 = vsel %vm853_vm9, %v953_v25, %v998_v58  ;;  %v976_v16 = vpop.permute.xlu1 %975  ;;  %v990_v53 = vpop.permute.xlu0 %989 }
 0x82b   :  { %v978_v13 = vsel %vm12702_vm10, %v973_v31, %v976_v16  ;;  %v8436_v0 = vpack.c.bf16 %v1010_v46, %v1009_v29  ;;  %v302_v29 = vld [vmem:[#allocation15] sm:$0xff]  ;;  %vm12783_vm10 = vcmask 220160  }
 0x82c   :  { %v979_v33 = vmul.f32 %v978_v13, %v10321_v4  ;;  %v980_v25 = vmul.f32 %v978_v13, %v10342_v34 }
 0x82d   :  { %8437 = vmatpush3.bf16.msra.mxu1 %v8436_v0 }
 0x82e   :  { %v985_v47 = vpop.permute.xlu1 %984  ;;  %8438 = vmatprep.subr.bf16.mxu1 %v13076_v9  ;;  %v1004_v21 = vrot.slane %v979_v33, 4 }
 0x82f   :  { %v987_v38 = vsel %vm12701_vm11, %v982_v35, %v985_v47  ;;  %vm12849_vm11 = vcmask 236544  }
 0x830   :  { %v988_v40 = vmul.f32 %v987_v38, %v10336_v5  ;;  %v1011_v16 = vsel %vm853_vm9, %v971_v20, %v1004_v21  ;;  %v10415_v21 = vld [vmem:[#allocation7] sm:$0xf] }
 0x831   :  { %1178 = vperm.xlu1 %9164, %v10415_v21  }
 0x832   :  { %v1007_v58 = vrot.slane %v988_v40, 4  ;;  %v993_v45 = vpop.permute.xlu1 %992 }
 0x833   :  { %v995_v46 = vsel %vm12904_vm12, %v990_v53, %v993_v45 }
 0x834   :  { %v1012_v31 = vsel %vm853_vm9, %v980_v25, %v1007_v58  ;;  %v996_v47 = vmul.f32 %v10355_v50, %v995_v46  ;;  %v1174_v58 = vld [vmem:[#allocation4] sm:$0xf] }
 0x835   :  { %v8439_v17 = vpack.c.bf16 %v1012_v31, %v1011_v16 }
 0x837   :  { %8440 = vmatpush3.bf16.msra.mxu1 %v8439_v17 }
 0x838   :  { %8080 = vmatprep.subr.mxu1 %v13077_v61 }
 0x83b   :  { %8081 = vmatpush3.msk.msra.mxu1 %vm853_vm9, %v996_v47  ;;  %v1015_v13 = vpop.permute.xlu0 %1014 }
 0x83c   :  { %8083 = vmatmul.mubr.msk.f32.vlgmr.msra.gmra.mrb[6].mxu1 %vm863_vm13, %v7631_v62  ;;  %8085 = vmatprep.subr.mxu1 %v13077_v61  ;;  %v13080_v62 = vmov 1  }
 0x83d   :  { %8087 = vmatprep.mubr.msk.f32.mxu1 %vm9499_vm2, %v13077_v61  ;;  %8086 = vmatpush3.msra.mxu1 %v302_v29 }
 0x83e   :  { %8441 = vmatprep.subr.bf16.mxu1 %v13076_v9 }
 0x8b0   :  { %v1179_v16 = vpop.permute.xlu1 %1178 }
 0x90f   :  { %v1089_v0 = vpop.f32.mrb[6].mxu1 }
 0x910   :  { %v1090_v50 = vadd.f32 %v1089_v0, %v1015_v13  ;;  %v8084_v33 = vpop.f32.mrb[7].mxu1 }
 0x911   :  { %v214_v33 = vld [vmem:[#allocation13] sm:$0xff] }
 0x912   :  { %vm1093_vm15 = vcmp.ge.f32.partialorder %v1090_v50, 0.0  ;;  %v1094_v35 = vmul.f32 0.2, %v1090_v50  ;;  %v10491_v4 = vrot.slane %v214_v33, %v10325_v30 }
 0x914   :  { %v1095_v38 = vsel %vm1093_vm15, %v1090_v50, %v1094_v35  ;;  %v10465_v35 = vrot.slane %v214_v33, %v10290_v26  ;;  %13086 = vst [vmem:[#allocation83_spill] sm:$0xff] %v10491_v4 }
 0x915   :  { %8088 = vmatmul.mubr.msk.f32.vlgmr.msra.gmra.mrb[8].mxu1 %vm1096_vm14, %v1095_v38  ;;  %v10468_v38 = vrot.slane %v214_v33, %v10292_v1 }
 0x916   :  { %8105 = vmatprep.mubr.msk.f32.mxu1 %vm9499_vm2, %v13077_v61  ;;  %13081 = vst [vmem:[#allocation78_spill] sm:$0xff] %v10465_v35 }
 0x917   :  { %13082 = vst [vmem:[#allocation79_spill] sm:$0xff] %v10468_v38 }
 0x9e8   :  { %v10418_v40 = vpop.f32.mrb[8].mxu1 }
 0x9e9   :  { %13079 = vst [vmem:[#allocation77_spill] sm:$0xff] %v10418_v40  ;;  %v1171_v20 = vrot.slane %v10418_v40, 4  ;;  %v8089_v25 = vpop.f32.mrb[9].mxu1 }
 0x9eb   :  { %v1173_v45 = vsel %vm853_vm9, %v10235_v18, %v1171_v20  ;;  %v12692_v18 = vmov 2  }
 0x9ec   :  { %8091 = vmatpush3.msra.mxu0 %v1173_v45  ;;  %9165 = vset.pattern.permute.xlu1 %v12692_v18 }
 0x9ed   :  { %8093 = vmatmul.mubr.msk.f32.vlgmr.msra.gmra.mrb[4].mxu0 %vm1096_vm14, %v1174_v58  ;;  %8447 = vmatprep.subr.bf16.mxu0 %v13076_v9 }
 0x9ee   :  { %8118 = vmatprep.mubr.msk.f32.mxu0 %vm9499_vm2, %v13077_v61 }
 0xac0   :  { %v1250_v31 = vpop.f32.mrb[4].mxu0 }
 0xac1   :  { %v1251_v53 = vadd.f32 %v1250_v31, %v1179_v16  ;;  %v8094_v17 = vpop.f32.mrb[5].mxu0  ;;  %v10473_v16 = vrot.slane %v214_v33, %v10305_v48 }
 0xac3   :  { %vm1254_vm15 = vcmp.ge.f32.partialorder %v1251_v53, 0.0  ;;  %v1255_v46 = vmul.f32 0.2, %v1251_v53  ;;  %13083 = vst [vmem:[#allocation80_spill] sm:$0xff] %v10473_v16 }
 0xac5   :  { %v10427_v47 = vsel %vm1254_vm15, %v1251_v53, %v1255_v46  ;;  %vm12903_vm15 = vcmask 31744   ;;  %v10479_v46 = vrot.slane %v214_v33, %v10297_v43 }
 0xac6   :  { %1275 = vrot.lane.b32.xlu0 %v10427_v47, %s12799_s23  ;;  %1272 = vrot.lane.b32.xlu1 %v10427_v47, %s12796_s7 }
 0xac7   :  { %13084 = vst [vmem:[#allocation81_spill] sm:$0xff] %v10479_v46 }
 0xaca   :  { %1300 = vrot.lane.b32.xlu0 %v10427_v47, %s9507_s3  ;;  %1297 = vrot.lane.b32.xlu1 %v10427_v47, %s12794_s26 }
 0xace   :  { %1263 = vrot.lane.b32.xlu0 %v10427_v47, %s12805_s2  ;;  %1260 = vrot.lane.b32.xlu1 %v10427_v47, %s12792_s25 }
 0xad2   :  { %1288 = vrot.lane.b32.xlu0 %v10427_v47, %s9509_s24  ;;  %1285 = vrot.lane.b32.xlu1 %v10427_v47, %s12790_s0 }
 0xad6   :  { %1317 = vrot.lane.b32.xlu0 %v10427_v47, %s9502_s22  ;;  %1314 = vrot.lane.b32.xlu1 %v10427_v47, %s9496_s18 }
 0xada   :  { %1342 = vrot.lane.b32.xlu0 %v10427_v47, %s9503_s27  ;;  %1339 = vrot.lane.b32.xlu1 %v10427_v47, %s9504_s13 }
 0xade   :  { %1329 = vrot.lane.b32.xlu0 %v10427_v47, %s12729_s1  ;;  %1326 = vrot.lane.b32.xlu1 %v10427_v47, %s12801_s5 }
 0xae2   :  { %1354 = vrot.lane.b32.xlu0 %v10427_v47, %s12727_s4  ;;  %1351 = vrot.lane.b32.xlu1 %v10427_v47, %s9510_s17 }
 0xae6   :  { %1381 = vperm.xlu1 %9165, %v10287_v8  }
 0xaea   :  { %9167 = vset.pattern.permute.xlu1 %v13080_v62 }
 0xb38   :  { %v1276_v29 = vpop.permute.xlu0 %1275  ;;  %v1273_v13 = vpop.permute.xlu1 %1272 }
 0xb39   :  { %v1279_v20 = vsel %vm12903_vm15, %v1273_v13, %v1276_v29 }
 0xb3a   :  { %v1284_v53 = vmul.f32 %v10465_v35, %v1279_v20 }
 0xb3c   :  { %v1301_v0 = vpop.permute.xlu0 %1300  ;;  %v1298_v50 = vpop.permute.xlu1 %1297 }
 0xb3d   :  { %v1303_v25 = vsel %vm780_vm7, %v1298_v50, %v1301_v0  ;;  %v1365_v0 = vrot.slane %v1284_v53, 4 }
 0xb3e   :  { %v1308_v17 = vmul.f32 %v10468_v38, %v1303_v25  ;;  %v10487_v25 = vrot.slane %v214_v33, %v10312_v54 }
 0xb40   :  { %v1264_v58 = vpop.permute.xlu0 %1263  ;;  %v1261_v45 = vpop.permute.xlu1 %1260  ;;  %v1368_v50 = vrot.slane %v1308_v17, 4  ;;  %13085 = vst [vmem:[#allocation82_spill] sm:$0xff] %v10487_v25 }
 0xb41   :  { %v1266_v31 = vsel %vm12904_vm12, %v1261_v45, %v1264_v58 }
 0xb42   :  { %v1271_v18 = vmul.f32 %v10473_v16, %v1266_v31 }
 0xb44   :  { %v1289_v62 = vpop.permute.xlu0 %1288  ;;  %v1286_v29 = vpop.permute.xlu1 %1285  ;;  %v1376_v22 = vsel %vm853_vm9, %v1271_v18, %v1365_v0  ;;  %v10497_v18 = vrot.slane %v214_v33, %v10329_v57 }
 0xb45   :  { %v1291_v13 = vsel %vm12905_vm8, %v1286_v29, %v1289_v62 }
 0xb46   :  { %v1296_v34 = vmul.f32 %v10479_v46, %v1291_v13  ;;  %13087 = vst [vmem:[#allocation84_spill] sm:$0xff] %v10497_v18 }
 0xb48   :  { %v1377_v58 = vsel %vm853_vm9, %v1296_v34, %v1368_v50  ;;  %v1318_v20 = vpop.permute.xlu0 %1317  ;;  %v1315_v45 = vpop.permute.xlu1 %1314 }
 0xb49   :  { %v1320_v5 = vsel %vm12907_vm3, %v1315_v45, %v1318_v20  ;;  %v8442_v31 = vpack.c.bf16 %v1377_v58, %v1376_v22  ;;  %v10501_v22 = vrot.slane %v214_v33, %v10331_v14  ;;  %v1313_v58 = vmul.f32 %v10497_v18, %v10427_v47 }
 0xb4a   :  { %v1325_v62 = vmul.f32 %v10487_v25, %v1320_v5 }
 0xb4b   :  { %8443 = vmatpush3.bf16.msra.mxu1 %v8442_v31  ;;  %13088 = vst [vmem:[#allocation85_spill] sm:$0xff] %v10501_v22 }
 0xb4c   :  { %v1343_v53 = vpop.permute.xlu0 %1342  ;;  %v1340_v17 = vpop.permute.xlu1 %1339  ;;  %8444 = vmatprep.subr.bf16.mxu1 %v13076_v9  ;;  %v1371_v13 = vrot.slane %v1325_v62, 4 }
 0xb4d   :  { %v1345_v34 = vsel %vm12906_vm4, %v1340_v17, %v1343_v53 }
 0xb4e   :  { %v1350_v29 = vmul.f32 %v10491_v4, %v1345_v34  ;;  %v1378_v31 = vsel %vm853_vm9, %v1313_v58, %v1371_v13 }
 0xb50   :  { %v1330_v0 = vpop.permute.xlu0 %1329  ;;  %v1327_v50 = vpop.permute.xlu1 %1326  ;;  %v1374_v20 = vrot.slane %v1350_v29, 4  ;;  %v7636_v29 = vld [vmem:[%s13078_s19 + $0x8] sm:$0xf] }
 0xb51   :  { %v1333_v5 = vsel %vm12849_vm11, %v1327_v50, %v1330_v0 }
 0xb52   :  { %v1338_v45 = vmul.f32 %v10501_v22, %v1333_v5 }
 0xb54   :  { %v1379_v53 = vsel %vm853_vm9, %v1338_v45, %v1374_v20  ;;  %v1355_v17 = vpop.permute.xlu0 %1354  ;;  %v1352_v34 = vpop.permute.xlu1 %1351  ;;  %v303_v45 = vld [vmem:[#allocation16] sm:$0xff] }
 0xb55   :  { %v8445_v33 = vpack.c.bf16 %v1379_v53, %v1378_v31  ;;  %v1358_v62 = vsel %vm12783_vm10, %v1352_v34, %v1355_v17  ;;  %v304_v31 = vld [vmem:[#allocation16 + $0x8] sm:$0xff]  ;;  %v12708_v53 = vmov 3  }
 0xb56   :  { %v1363_v47 = vmul.f32 %v10509_v39, %v1358_v62  ;;  %9166 = vset.pattern.permute.xlu0 %v12708_v53  ;;  %v10535_v17 = vpack.c.bf16 %v304_v31, %v303_v45 }
 0xb57   :  { %8446 = vmatpush3.bf16.msra.mxu1 %v8445_v33 }
 0xb58   :  { %8103 = vmatprep.subr.mxu1 %v13077_v61  ;;  %13089 = vst [vmem:[#allocation86_spill] sm:$0xff] %v10535_v17 }
 0xb5b   :  { %8104 = vmatpush3.msk.msra.mxu1 %vm853_vm9, %v1363_v47 }
 0xb5c   :  { %8106 = vmatmul.mubr.msk.f32.vlgmr.msra.gmra.mrb[10].mxu1 %vm863_vm13, %v7636_v29  ;;  %8453 = vmatprep.subr.bf16.mxu1 %v13076_v9 }
 0xb5d   :  { %8129 = vmatprep.mubr.msk.f32.mxu1 %vm9499_vm2, %v13077_v61  ;;  %8455 = vmatpush3.bf16.msra.mxu1 %v10535_v17 }
 0xb5e   :  { %8456 = vmatprep.subr.bf16.mxu1 %v13076_v9 }
 0xb65   :  { %v1382_v13 = vpop.permute.xlu1 %1381 }
 0xc2f   :  { %v1456_v0 = vpop.f32.mrb[10].mxu1 }
 0xc30   :  { %v1457_v50 = vadd.f32 %v1456_v0, %v1382_v13  ;;  %v8107_v5 = vpop.f32.mrb[11].mxu1 }
 0xc32   :  { %vm1460_vm6 = vcmp.ge.f32.partialorder %v1457_v50, 0.0  ;;  %v1461_v58 = vmul.f32 0.2, %v1457_v50 }
 0xc34   :  { %v1462_v20 = vsel %vm1460_vm6, %v1457_v50, %v1461_v58 }
 0xc35   :  { %1477 = vrot.lane.b32.xlu1 %v1462_v20, %s12799_s23  ;;  %1474 = vrot.lane.b32.xlu0 %v1462_v20, %s12796_s7  ;;  %s13233_s7 = sld [smem:[#allocation173_spill]]  ;;  %s13289_s23 = smov 5  }
 0xc39   :  { %1493 = vrot.lane.b32.xlu1 %v1462_v20, %s9507_s3  ;;  %1490 = vrot.lane.b32.xlu0 %v1462_v20, %s12794_s26  ;;  %s13311_s26 = smov 100  }
 0xc3d   :  { %1469 = vrot.lane.b32.xlu1 %v1462_v20, %s12805_s2  ;;  %1466 = vrot.lane.b32.xlu0 %v1462_v20, %s12792_s25  ;;  %s13287_s25 = smov 6   ;;  %s13314_s2 = smov 99  }
 0xc41   :  { %1485 = vrot.lane.b32.xlu1 %v1462_v20, %s9509_s24  ;;  %1482 = vrot.lane.b32.xlu0 %v1462_v20, %s12790_s0  ;;  %s13288_s0 = smov 126  }
 0xc45   :  { %1502 = vrot.lane.b32.xlu1 %v1462_v20, %s9502_s22  ;;  %1499 = vrot.lane.b32.xlu0 %v1462_v20, %s9496_s18 }
 0xc49   :  { %1518 = vrot.lane.b32.xlu1 %v1462_v20, %s9503_s27  ;;  %1515 = vrot.lane.b32.xlu0 %v1462_v20, %s9504_s13 }
 0xc4d   :  { %1510 = vrot.lane.b32.xlu1 %v1462_v20, %s12729_s1  ;;  %1507 = vrot.lane.b32.xlu0 %v1462_v20, %s12801_s5  ;;  %s9532_s1 = smov 15   ;;  %s13315_s5 = smov 29  }
 0xc51   :  { %1526 = vrot.lane.b32.xlu1 %v1462_v20, %s12727_s4  ;;  %1523 = vrot.lane.b32.xlu0 %v1462_v20, %s9510_s17  ;;  %s9533_s4 = smov 113  }
 0xc55   :  { %1548 = vperm.xlu0 %9166, %v10287_v8   ;;  %1710 = vperm.xlu1 %9167, %v10415_v21  }
 0xca7   :  { %v1478_v34 = vpop.permute.xlu1 %1477  ;;  %v1475_v33 = vpop.permute.xlu0 %1474 }
 0xca8   :  { %v1480_v29 = vsel %vm12903_vm15, %v1475_v33, %v1478_v34  ;;  %vm2643_vm15 = vcmask 924672  }
 0xca9   :  { %v1481_v58 = vmul.f32 %v1480_v29, %v10465_v35  ;;  %v344_v35 = vld [vmem:[#allocation18 + $0x128] sm:$0xff] }
 0xcab   :  { %v1494_v62 = vpop.permute.xlu1 %1493  ;;  %v1491_v47 = vpop.permute.xlu0 %1490  ;;  %v1532_v44 = vrot.slane %v1481_v58, 4 }
 0xcac   :  { %v1496_v13 = vsel %vm780_vm7, %v1491_v47, %v1494_v62 }
 0xcad   :  { %v1497_v45 = vmul.f32 %v1496_v13, %v10468_v38  ;;  %v335_v38 = vld [vmem:[#allocation18 + $0xe0] sm:$0xff] }
 0xcaf   :  { %v1470_v0 = vpop.permute.xlu1 %1469  ;;  %v1467_v50 = vpop.permute.xlu0 %1466  ;;  %v1535_v10 = vrot.slane %v1497_v45, 4 }
 0xcb0   :  { %v1472_v5 = vsel %vm12904_vm12, %v1467_v50, %v1470_v0  ;;  %vm12947_vm12 = vcmask 908288  }
 0xcb1   :  { %v1473_v31 = vmul.f32 %v1472_v5, %v10473_v16 }
 0xcb3   :  { %v1486_v53 = vpop.permute.xlu1 %1485  ;;  %v1483_v21 = vpop.permute.xlu0 %1482  ;;  %v1543_v33 = vsel %vm853_vm9, %v1473_v31, %v1532_v44  ;;  %v1498_v31 = vmul.f32 %v1462_v20, %v10497_v18  ;;  %v7640_v20 = vld [vmem:[%s13078_s19 + $0xc] sm:$0xf] }
 0xcb4   :  { %v1488_v51 = vsel %vm12905_vm8, %v1483_v21, %v1486_v53 }
 0xcb5   :  { %v1489_v34 = vmul.f32 %v1488_v51, %v10479_v46 }
 0xcb7   :  { %v1544_v62 = vsel %vm853_vm9, %v1489_v34, %v1535_v10  ;;  %v1503_v47 = vpop.permute.xlu1 %1502  ;;  %v1500_v0 = vpop.permute.xlu0 %1499 }
 0xcb8   :  { %v1505_v29 = vsel %vm12907_vm3, %v1500_v0, %v1503_v47  ;;  %v8448_v50 = vpack.c.bf16 %v1544_v62, %v1543_v33 }
 0xcb9   :  { %v1506_v13 = vmul.f32 %v1505_v29, %v10487_v25 }
 0xcba   :  { %8449 = vmatpush3.bf16.msra.mxu0 %v8448_v50 }
 0xcbb   :  { %v1519_v5 = vpop.permute.xlu1 %1518  ;;  %v1516_v16 = vpop.permute.xlu0 %1515  ;;  %8450 = vmatprep.subr.bf16.mxu0 %v13076_v9  ;;  %v1538_v58 = vrot.slane %v1506_v13, 4  ;;  %v305_v13 = vld [vmem:[#allocation16 + $0x10] sm:$0xff] }
 0xcbc   :  { %v1521_v53 = vsel %vm12906_vm4, %v1516_v16, %v1519_v5  ;;  %v306_v5 = vld [vmem:[#allocation16 + $0x18] sm:$0xff] }
 0xcbd   :  { %v1522_v51 = vmul.f32 %v1521_v53, %v10491_v4  ;;  %v1545_v33 = vsel %vm853_vm9, %v1498_v31, %v1538_v58  ;;  %v10576_v53 = vpack.c.bf16 %v306_v5, %v305_v13  ;;  %v13092_v13 = vmov 2   ;;  %v212_v5 = vld [vmem:[#allocation12] sm:$0xff] }
 0xcbe   :  { %v10629_v25 = vrot.slane %v212_v5, %v10329_v57 }
 0xcbf   :  { %v1511_v44 = vpop.permute.xlu1 %1510  ;;  %v1508_v45 = vpop.permute.xlu0 %1507  ;;  %v1541_v21 = vrot.slane %v1522_v51, 4  ;;  %13090 = vst [vmem:[#allocation87_spill] sm:$0xff] %v10576_v53  ;;  %8458 = vmatpush3.bf16.msra.mxu1 %v10576_v53 }
 0xcc0   :  { %v1513_v10 = vsel %vm12849_vm11, %v1508_v45, %v1511_v44  ;;  %8465 = vmatprep.subr.bf16.mxu1 %v13076_v9  ;;  %13099 = vst [vmem:[#allocation95_spill] sm:$0xff] %v10629_v25  ;;  %vm2512_vm11 = vcmask 121856  }
 0xcc1   :  { %v1514_v34 = vmul.f32 %v1513_v10, %v10501_v22 }
 0xcc3   :  { %v1546_v62 = vsel %vm853_vm9, %v1514_v34, %v1541_v21  ;;  %v1527_v47 = vpop.permute.xlu1 %1526  ;;  %v1524_v0 = vpop.permute.xlu0 %1523 }
 0xcc4   :  { %v8451_v29 = vpack.c.bf16 %v1546_v62, %v1545_v33  ;;  %v1529_v16 = vsel %vm12783_vm10, %v1524_v0, %v1527_v47  ;;  %v1708_v33 = vld [vmem:[#allocation4 + $0x4] sm:$0xf] }
 0xcc5   :  { %v1530_v50 = vmul.f32 %v10509_v39, %v1529_v16 }
 0xcc6   :  { %8452 = vmatpush3.bf16.msra.mxu0 %v8451_v29 }
 0xcc7   :  { %8116 = vmatprep.subr.mxu0 %v13077_v61 }
 0xcca   :  { %8117 = vmatpush3.msk.msra.mxu0 %vm853_vm9, %v1530_v50 }
 0xccb   :  { %8119 = vmatmul.mubr.msk.f32.vlgmr.msra.gmra.mrb[6].mxu0 %vm863_vm13, %v7640_v20  ;;  %8132 = vmatprep.subr.mxu0 %v13077_v61 }
 0xccc   :  { %8134 = vmatprep.mubr.msk.f32.mxu0 %vm9499_vm2, %v13077_v61 }
 0xcd4   :  { %v1549_v39 = vpop.permute.xlu0 %1548  ;;  %v1711_v47 = vpop.permute.xlu1 %1710 }
 0xd9e   :  { %v1623_v51 = vpop.f32.mrb[6].mxu0 }
 0xd9f   :  { %v1624_v58 = vadd.f32 %v1623_v51, %v1549_v39  ;;  %v8120_v44 = vpop.f32.mrb[7].mxu0  ;;  %v10604_v39 = vrot.slane %v212_v5, %v10292_v1  ;;  %v10607_v51 = vrot.slane %v212_v5, %v10290_v26 }
 0xda1   :  { %vm1627_vm6 = vcmp.ge.f32.partialorder %v1624_v58, 0.0  ;;  %v1628_v45 = vmul.f32 0.2, %v1624_v58  ;;  %13093 = vst [vmem:[#allocation89_spill] sm:$0xff] %v10604_v39  ;;  %13094 = vst [vmem:[#allocation90_spill] sm:$0xff] %v10607_v51 }
 0xda3   :  { %v1629_v10 = vsel %vm1627_vm6, %v1624_v58, %v1628_v45 }
 0xda4   :  { %8130 = vmatmul.mubr.msk.f32.vlgmr.msra.gmra.mrb[12].mxu1 %vm671_vm5, %v1629_v10 }
 0xda5   :  { %8160 = vmatprep.mubr.msk.f32.mxu1 %vm9499_vm2, %v13077_v61 }
 0xe77   :  { %v10583_v31 = vpop.f32.mrb[12].mxu1 }
 0xe78   :  { %13091 = vst [vmem:[#allocation88_spill] sm:$0xff] %v10583_v31  ;;  %v1704_v21 = vrot.slane %v10583_v31, 4  ;;  %v8131_v34 = vpop.f32.mrb[13].mxu1 }
 0xe79   :  { %v10615_v34 = vrot.slane %v212_v5, %v10305_v48 }
 0xe7a   :  { %v1706_v62 = vsel %vm853_vm9, %v10167_v27, %v1704_v21  ;;  %v12716_v27 = vmov 4   ;;  %v10612_v21 = vrot.slane %v212_v5, %v10297_v43 }
 0xe7b   :  { %8133 = vmatpush3.msra.mxu0 %v1706_v62  ;;  %9168 = vset.pattern.permute.xlu1 %v12716_v27  ;;  %13096 = vst [vmem:[#allocation92_spill] sm:$0xff] %v10615_v34 }
 0xe7c   :  { %8135 = vmatmul.mubr.msk.f32.vlgmr.msra.gmra.mrb[8].mxu0 %vm1096_vm14, %v1708_v33  ;;  %8459 = vmatprep.subr.bf16.mxu0 %v13076_v9  ;;  %13095 = vst [vmem:[#allocation91_spill] sm:$0xff] %v10612_v21 }
 0xe7d   :  { %8147 = vmatprep.mubr.msk.f32.mxu0 %vm9499_vm2, %v13077_v61 }
 0xf4f   :  { %v1782_v0 = vpop.f32.mrb[8].mxu0 }
 0xf50   :  { %v1783_v29 = vadd.f32 %v1782_v0, %v1711_v47  ;;  %v8136_v16 = vpop.f32.mrb[9].mxu0  ;;  %v10618_v47 = vrot.slane %v212_v5, %v10325_v30  ;;  %v10621_v0 = vrot.slane %v212_v5, %v10312_v54 }
 0xf52   :  { %vm1786_vm6 = vcmp.ge.f32.partialorder %v1783_v29, 0.0  ;;  %v1787_v50 = vmul.f32 0.2, %v1783_v29  ;;  %13097 = vst [vmem:[#allocation93_spill] sm:$0xff] %v10618_v47  ;;  %13098 = vst [vmem:[#allocation94_spill] sm:$0xff] %v10621_v0 }
 0xf54   :  { %v1788_v20 = vsel %vm1786_vm6, %v1783_v29, %v1787_v50 }
 0xf55   :  { %1816 = vrot.lane.b32.xlu0 %v1788_v20, %s9507_s3  ;;  %1800 = vrot.lane.b32.xlu1 %v1788_v20, %s12784_s29 }
 0xf59   :  { %1808 = vrot.lane.b32.xlu0 %v1788_v20, %s9511_s20  ;;  %1792 = vrot.lane.b32.xlu1 %v1788_v20, %s12772_s6 }
 0xf5d   :  { %1845 = vrot.lane.b32.xlu0 %v1788_v20, %s9501_s14  ;;  %1829 = vrot.lane.b32.xlu1 %v1788_v20, %s9496_s18 }
 0xf61   :  { %1853 = vrot.lane.b32.xlu0 %v1788_v20, %s12770_s16  ;;  %1837 = vrot.lane.b32.xlu1 %v1788_v20, %s9508_s30 }
 0xf65   :  { %1878 = vperm.xlu1 %9168, %v10287_v8  }
 0xf69   :  { %9170 = vset.pattern.permute.xlu1 %v13092_v13 }
 0xfc7   :  { %v1817_v58 = vpop.permute.xlu0 %1816  ;;  %v1801_v44 = vpop.permute.xlu1 %1800 }
 0xfc8   :  { %v1823_v45 = vmul.f32 %v10604_v39, %v1817_v58  ;;  %v1807_v10 = vmul.f32 %v10607_v51, %v1801_v44 }
 0xfca   :  { %v1865_v29 = vrot.slane %v1823_v45, 4  ;;  %v1862_v16 = vrot.slane %v1807_v10, 4  ;;  %v10633_v45 = vrot.slane %v212_v5, %v10331_v14 }
 0xfcb   :  { %v1809_v33 = vpop.permute.xlu0 %1808  ;;  %v1793_v62 = vpop.permute.xlu1 %1792 }
 0xfcc   :  { %v1815_v50 = vmul.f32 %v10612_v21, %v1809_v33  ;;  %v1799_v13 = vmul.f32 %v10615_v34, %v1793_v62  ;;  %13100 = vst [vmem:[#allocation96_spill] sm:$0xff] %v10633_v45 }
 0xfce   :  { %v1874_v58 = vsel %vm853_vm9, %v1815_v50, %v1865_v29  ;;  %v1873_v44 = vsel %vm853_vm9, %v1799_v13, %v1862_v16  ;;  %v1828_v29 = vmul.f32 %v10629_v25, %v1788_v20 }
 0xfcf   :  { %v8460_v27 = vpack.c.bf16 %v1874_v58, %v1873_v44  ;;  %v1846_v22 = vpop.permute.xlu0 %1845  ;;  %v1830_v18 = vpop.permute.xlu1 %1829 }
 0xfd0   :  { %v1852_v4 = vmul.f32 %v10618_v47, %v1846_v22  ;;  %v1836_v46 = vmul.f32 %v10621_v0, %v1830_v18  ;;  %v10640_v18 = vld [vmem:[#allocation12 + $0x8] ss:$0 sm:$0xff] }
 0xfd1   :  { %8461 = vmatpush3.bf16.msra.mxu0 %v8460_v27 }
 0xfd2   :  { %v1868_v10 = vrot.slane %v1836_v46, 4  ;;  %8462 = vmatprep.subr.bf16.mxu0 %v13076_v9  ;;  %v1871_v62 = vrot.slane %v1852_v4, 4  ;;  %v7645_v4 = vld [vmem:[%s13078_s19 + $0x10] sm:$0xf] }
 0xfd3   :  { %v1838_v33 = vpop.permute.xlu1 %1837  ;;  %v1854_v58 = vpop.permute.xlu0 %1853 }
 0xfd4   :  { %v1844_v16 = vmul.f32 %v10633_v45, %v1838_v33  ;;  %v1875_v22 = vsel %vm853_vm9, %v1828_v29, %v1868_v10  ;;  %v1860_v46 = vmul.f32 %v10640_v18, %v1854_v58  ;;  %v312_v29 = vld [vmem:[#allocation18 + $0x28] sm:$0xff] }
 0xfd6   :  { %v1876_v50 = vsel %vm853_vm9, %v1844_v16, %v1871_v62  ;;  %v308_v62 = vld [vmem:[#allocation18 + $0x8] sm:$0xff]  ;;  %v12731_v16 = vmov 5  }
 0xfd7   :  { %v8463_v13 = vpack.c.bf16 %v1876_v50, %v1875_v22  ;;  %9169 = vset.pattern.permute.xlu0 %v12731_v16  ;;  %v10665_v22 = vpack.c.bf16 %v312_v29, %v308_v62  ;;  %v307_v50 = vld [vmem:[#allocation18] sm:$0xff]  ;;  %v328_v62 = vld [vmem:[#allocation18 + $0xa8] sm:$0xff] }
 0xfd8   :  { %v336_v16 = vld [vmem:[#allocation18 + $0xe8] sm:$0xff] }
 0xfd9   :  { %8464 = vmatpush3.bf16.msra.mxu0 %v8463_v13  ;;  %13101 = vst [vmem:[#allocation97_spill] sm:$0xff] %v10665_v22  ;;  %v311_v13 = vld [vmem:[#allocation18 + $0x20] sm:$0xff] }
 0xfda   :  { %8145 = vmatprep.subr.mxu0 %v13077_v61  ;;  %v10667_v58 = vpack.c.bf16 %v311_v13, %v307_v50  ;;  %v323_v50 = vld [vmem:[#allocation18 + $0x80] sm:$0xff] }
 0xfdb   :  { %v327_v13 = vld [vmem:[#allocation18 + $0xa0] sm:$0xff] }
 0xfdc   :  { %13102 = vst [vmem:[#allocation98_spill] sm:$0xff] %v10667_v58 }
 0xfdd   :  { %8146 = vmatpush3.msk.msra.mxu0 %vm853_vm9, %v1860_v46  ;;  %v316_v46 = vld [vmem:[#allocation18 + $0x48] sm:$0xff] }
 0xfde   :  { %8148 = vmatmul.mubr.msk.f32.vlgmr.msra.gmra.mrb[10].mxu0 %vm863_vm13, %v7645_v4  ;;  %v320_v4 = vld [vmem:[#allocation18 + $0x68] sm:$0xff]  ;;  %8472 = vmatprep.subr.bf16.mxu0 %v10665_v22 }
 0xfdf   :  { %2159 = vmatprep.mubr.f32.mxu0 %v13077_v61  ;;  %8474 = vmatpush1.bf16.msra.mxu0 %v10667_v58 }
 0xfe4   :  { %v1879_v20 = vpop.permute.xlu1 %1878 }
0x10b1   :  { %v1953_v27 = vpop.f32.mrb[10].mxu0 }
0x10b2   :  { %v1954_v5 = vadd.f32 %v1953_v27, %v1879_v20  ;;  %v8149_v44 = vpop.f32.mrb[11].mxu0  ;;  %v10674_v20 = vpack.c.bf16 %v320_v4, %v316_v46  ;;  %v315_v27 = vld [vmem:[#allocation18 + $0x40] sm:$0xff]  ;;  %v10684_v46 = vpack.c.bf16 %v327_v13, %v323_v50  ;;  %v332_v4 = vld [vmem:[#allocation18 + $0xc8] sm:$0xff] }
0x10b3   :  { %v339_v50 = vld [vmem:[#allocation18 + $0x100] sm:$0xff] }
0x10b4   :  { %vm1957_vm6 = vcmp.ge.f32.partialorder %v1954_v5, 0.0  ;;  %v1958_v10 = vmul.f32 0.2, %v1954_v5  ;;  %13103 = vst [vmem:[#allocation99_spill] sm:$0xff] %v10674_v20  ;;  %8476 = vmatprep.subr.bf16.mxu0 %v10674_v20  ;;  %13106 = vst [vmem:[#allocation102_spill] sm:$0xff] %v10684_v46  ;;  %v343_v13 = vld [vmem:[#allocation18 + $0x120] sm:$0xff] }
0x10b5   :  { %v10696_v63 = vpack.c.bf16 %v343_v13, %v339_v50  ;;  %v355_v50 = vld [vmem:[#allocation18 + $0x180] sm:$0xff] }
0x10b6   :  { %v10650_v33 = vsel %vm1957_vm6, %v1954_v5, %v1958_v10  ;;  %v319_v5 = vld [vmem:[#allocation18 + $0x60] sm:$0xff]  ;;  %v324_v10 = vld [vmem:[#allocation18 + $0x88] sm:$0xff] }
0x10b7   :  { %1975 = vrot.lane.b32.xlu1 %v10650_v33, %s9507_s3  ;;  %1967 = vrot.lane.b32.xlu0 %v10650_v33, %s12784_s29  ;;  %v10677_v44 = vpack.c.bf16 %v319_v5, %v315_v27  ;;  %v10680_v29 = vpack.c.bf16 %v328_v62, %v324_v10  ;;  %v10687_v27 = vpack.c.bf16 %v336_v16, %v332_v4  ;;  %v331_v5 = vld [vmem:[#allocation18 + $0xc0] sm:$0xff]  ;;  %v340_v62 = vld [vmem:[#allocation18 + $0x108] sm:$0xff]  ;;  %s9535_s29 = smov 111  }
0x10b8   :  { %v10690_v10 = vpack.c.bf16 %v335_v38, %v331_v5  ;;  %13110 = vst [vmem:[#allocation106_spill] sm:$0xff] %v10696_v63  ;;  %v348_v16 = vld [vmem:[#allocation18 + $0x148] sm:$0xff]  ;;  %v347_v38 = vld [vmem:[#allocation18 + $0x140] sm:$0xff] }
0x10b9   :  { %13104 = vst [vmem:[#allocation100_spill] sm:$0xff] %v10677_v44  ;;  %13105 = vst [vmem:[#allocation101_spill] sm:$0xff] %v10680_v29  ;;  %8478 = vmatpush1.bf16.msra.mxu0 %v10677_v44  ;;  %v352_v4 = vld [vmem:[#allocation18 + $0x168] sm:$0xff]  ;;  %v351_v5 = vld [vmem:[#allocation18 + $0x160] sm:$0xff] }
0x10ba   :  { %8480 = vmatprep.subr.bf16.mxu0 %v10680_v29  ;;  %13107 = vst [vmem:[#allocation103_spill] sm:$0xff] %v10687_v27  ;;  %13108 = vst [vmem:[#allocation104_spill] sm:$0xff] %v10690_v10  ;;  %v10699_v6 = vpack.c.bf16 %v352_v4, %v348_v16  ;;  %v10702_v59 = vpack.c.bf16 %v351_v5, %v347_v38  ;;  %v359_v13 = vld [vmem:[#allocation18 + $0x1a0] sm:$0xff] }
0x10bb   :  { %1971 = vrot.lane.b32.xlu1 %v10650_v33, %s9511_s20  ;;  %1963 = vrot.lane.b32.xlu0 %v10650_v33, %s12772_s6  ;;  %v10708_v55 = vpack.c.bf16 %v359_v13, %v355_v50  ;;  %s9530_s6 = smov 16  }
0x10bc   :  { %13111 = vst [vmem:[#allocation107_spill] sm:$0xff] %v10699_v6  ;;  %13112 = vst [vmem:[#allocation108_spill] sm:$0xff] %v10702_v59 }
0x10bd   :  { %8482 = vmatpush1.bf16.msra.mxu0 %v10684_v46  ;;  %13114 = vst [vmem:[#allocation110_spill] sm:$0xff] %v10708_v55 }
0x10be   :  { %8484 = vmatprep.subr.bf16.mxu0 %v10687_v27 }
0x10bf   :  { %1988 = vrot.lane.b32.xlu1 %v10650_v33, %s9501_s14  ;;  %1980 = vrot.lane.b32.xlu0 %v10650_v33, %s9496_s18 }
0x10c1   :  { %8486 = vmatpush1.bf16.msra.mxu0 %v10690_v10 }
0x10c3   :  { %1992 = vrot.lane.b32.xlu1 %v10650_v33, %s12770_s16  ;;  %1984 = vrot.lane.b32.xlu0 %v10650_v33, %s9508_s30  ;;  %s9531_s16 = smov 17  }
0x10c7   :  { %2013 = vperm.xlu0 %9169, %v10287_v8   ;;  %v10693_v8 = vpack.c.bf16 %v344_v35, %v340_v62  ;;  %v356_v35 = vld [vmem:[#allocation18 + $0x188] sm:$0xff] }
0x10c8   :  { %v360_v62 = vld [vmem:[#allocation18 + $0x1a8] sm:$0xff] }
0x10c9   :  { %13109 = vst [vmem:[#allocation105_spill] sm:$0xff] %v10693_v8  ;;  %8488 = vmatprep.subr.bf16.mxu0 %v10693_v8  ;;  %v10705_v60 = vpack.c.bf16 %v360_v62, %v356_v35 }
0x10ca   :  { %8490 = vmatpush1.bf16.msra.mxu0 %v10696_v63 }
0x10cb   :  { %8492 = vmatprep.subr.bf16.mxu0 %v10699_v6  ;;  %13113 = vst [vmem:[#allocation109_spill] sm:$0xff] %v10705_v60 }
0x10ce   :  { %8494 = vmatpush1.bf16.msra.mxu0 %v10702_v59 }
0x10cf   :  { %8496 = vmatprep.subr.bf16.mxu0 %v10705_v60 }
0x10d2   :  { %8498 = vmatpush1.bf16.msra.mxu0 %v10708_v55 }
0x1129   :  { %v1976_v16 = vpop.permute.xlu1 %1975  ;;  %v1968_v4 = vpop.permute.xlu0 %1967 }
0x112a   :  { %v1978_v38 = vmul.f32 %v1976_v16, %v10604_v39  ;;  %v1970_v5 = vmul.f32 %v1968_v4, %v10607_v51  ;;  %v367_v51 = vld [vmem:[#allocation18 + $0x1e0] sm:$0xff]  ;;  %v365_v39 = vld [vmem:[#allocation18 + $0x1d0] sm:$0xff] }
0x112c   :  { %v2000_v35 = vrot.slane %v1978_v38, 4  ;;  %v1997_v62 = vrot.slane %v1970_v5, 4 }
0x112d   :  { %v1972_v56 = vpop.permute.xlu1 %1971  ;;  %v1964_v49 = vpop.permute.xlu0 %1963 }
0x112e   :  { %v1974_v52 = vmul.f32 %v1972_v56, %v10612_v21  ;;  %v1966_v41 = vmul.f32 %v1964_v49, %v10615_v34  ;;  %v1979_v49 = vmul.f32 %v10650_v33, %v10629_v25  ;;  %v349_v25 = vld [vmem:[#allocation18 + $0x150] sm:$0xff] }
0x112f   :  { %v361_v34 = vld [vmem:[#allocation18 + $0x1b0] sm:$0xff] }
0x1130   :  { %v2009_v50 = vsel %vm853_vm9, %v1974_v52, %v2000_v35  ;;  %v2008_v13 = vsel %vm853_vm9, %v1966_v41, %v1997_v62  ;;  %v310_v62 = vld [vmem:[#allocation18 + $0x18] sm:$0xff] }
0x1131   :  { %v8466_v42 = vpack.c.bf16 %v2009_v50, %v2008_v13  ;;  %v1989_v37 = vpop.permute.xlu1 %1988  ;;  %v1981_v36 = vpop.permute.xlu0 %1980  ;;  %v318_v13 = vld [vmem:[#allocation18 + $0x58] sm:$0xff] }
0x1132   :  { %v1991_v28 = vmul.f32 %v1989_v37, %v10618_v47  ;;  %v1983_v16 = vmul.f32 %v1981_v36, %v10621_v0  ;;  %v314_v37 = vld [vmem:[#allocation18 + $0x38] sm:$0xff]  ;;  %v309_v36 = vld [vmem:[#allocation18 + $0x10] sm:$0xff] }
0x1133   :  { %8467 = vmatpush3.bf16.msra.mxu1 %v8466_v42  ;;  %v313_v42 = vld [vmem:[#allocation18 + $0x30] sm:$0xff] }
0x1134   :  { %v2003_v4 = vrot.slane %v1983_v16, 4  ;;  %8468 = vmatprep.subr.bf16.mxu1 %v13076_v9  ;;  %v2006_v5 = vrot.slane %v1991_v28, 4  ;;  %v322_v16 = vld [vmem:[#allocation18 + $0x78] sm:$0xff]  ;;  %v10727_v28 = vpack.c.bf16 %v314_v37, %v310_v62  ;;  %v325_v62 = vld [vmem:[#allocation18 + $0x90] sm:$0xff] }
0x1135   :  { %v1985_v38 = vpop.permute.xlu0 %1984  ;;  %v1993_v50 = vpop.permute.xlu1 %1992  ;;  %v329_v37 = vld [vmem:[#allocation18 + $0xb0] sm:$0xff] }
0x1136   :  { %v1987_v52 = vmul.f32 %v1985_v38, %v10633_v45  ;;  %v2010_v41 = vsel %vm853_vm9, %v1979_v49, %v2003_v4  ;;  %13115 = vst [vmem:[#allocation111_spill] sm:$0xff] %v10727_v28  ;;  %v1995_v33 = vmul.f32 %v10640_v18, %v1993_v50  ;;  %v7649_v4 = vld [vmem:[%s13078_s19 + $0x14] sm:$0xf]  ;;  %v10733_v38 = vpack.c.bf16 %v313_v42, %v309_v36  ;;  %v317_v49 = vld [vmem:[#allocation18 + $0x50] sm:$0xff] }
0x1137   :  { %v334_v50 = vld [vmem:[#allocation18 + $0xd8] sm:$0xff]  ;;  %v10748_v42 = vpack.c.bf16 %v329_v37, %v325_v62  ;;  %v345_v45 = vld [vmem:[#allocation18 + $0x130] sm:$0xff] }
0x1138   :  { %v2011_v56 = vsel %vm853_vm9, %v1987_v52, %v2006_v5  ;;  %13116 = vst [vmem:[#allocation112_spill] sm:$0xff] %v10733_v38  ;;  %v10735_v5 = vpack.c.bf16 %v322_v16, %v318_v13  ;;  %v321_v52 = vld [vmem:[#allocation18 + $0x70] sm:$0xff]  ;;  %v338_v36 = vld [vmem:[#allocation18 + $0xf8] sm:$0xff] }
0x1139   :  { %v8469_v35 = vpack.c.bf16 %v2011_v56, %v2010_v41  ;;  %v326_v41 = vld [vmem:[#allocation18 + $0x98] sm:$0xff]  ;;  %v10741_v18 = vpack.c.bf16 %v321_v52, %v317_v49  ;;  %13120 = vst [vmem:[#allocation116_spill] sm:$0xff] %v10748_v42  ;;  %v10751_v13 = vpack.c.bf16 %v338_v36, %v334_v50  ;;  %v333_v16 = vld [vmem:[#allocation18 + $0xd0] sm:$0xff] }
0x113a   :  { %13117 = vst [vmem:[#allocation113_spill] sm:$0xff] %v10735_v5  ;;  %v330_v56 = vld [vmem:[#allocation18 + $0xb8] sm:$0xff]  ;;  %v353_v0 = vld [vmem:[#allocation18 + $0x170] sm:$0xff] }
0x113b   :  { %8470 = vmatpush3.bf16.msra.mxu1 %v8469_v35  ;;  %13118 = vst [vmem:[#allocation114_spill] sm:$0xff] %v10741_v18  ;;  %v10745_v35 = vpack.c.bf16 %v330_v56, %v326_v41  ;;  %13121 = vst [vmem:[#allocation117_spill] sm:$0xff] %v10751_v13  ;;  %v346_v49 = vld [vmem:[#allocation18 + $0x138] sm:$0xff]  ;;  %v341_v56 = vld [vmem:[#allocation18 + $0x110] sm:$0xff] }
0x113c   :  { %8158 = vmatprep.subr.mxu1 %v13077_v61  ;;  %v350_v62 = vld [vmem:[#allocation18 + $0x158] sm:$0xff]  ;;  %v10760_v50 = vpack.c.bf16 %v345_v45, %v341_v56  ;;  %v357_v47 = vld [vmem:[#allocation18 + $0x190] sm:$0xff]  ;;  %v364_v56 = vld [vmem:[#allocation18 + $0x1c8] sm:$0xff] }
0x113d   :  { %13119 = vst [vmem:[#allocation115_spill] sm:$0xff] %v10745_v35  ;;  %v354_v37 = vld [vmem:[#allocation18 + $0x178] sm:$0xff]  ;;  %v10772_v45 = vpack.c.bf16 %v361_v34, %v357_v47  ;;  %v10783_v34 = vpack.c.bf16 %v369_v32, %v365_v39  ;;  %v10790_v32 = vld [vmem:[#allocation7] sm:$0xf] }
0x113e   :  { %13124 = vst [vmem:[#allocation120_spill] sm:$0xff] %v10760_v50  ;;  %v10763_v36 = vpack.c.bf16 %v354_v37, %v350_v62  ;;  %v368_v62 = vld [vmem:[#allocation18 + $0x1e8] sm:$0xff]  ;;  %v366_v37 = vld [vmem:[#allocation18 + $0x1d8] sm:$0xff]  ;;  %2260 = vperm.xlu1 %9170, %v10790_v32  }
0x113f   :  { %8159 = vmatpush3.msk.msra.mxu1 %vm853_vm9, %v1995_v33  ;;  %v337_v33 = vld [vmem:[#allocation18 + $0xf0] sm:$0xff]  ;;  %13128 = vst [vmem:[#allocation124_spill] sm:$0xff] %v10772_v45  ;;  %v10776_v21 = vpack.c.bf16 %v368_v62, %v364_v56  ;;  %13132 = vst [vmem:[#allocation128_spill] sm:$0xff] %v10783_v34 }
0x1140   :  { %8161 = vmatmul.mubr.msk.f32.vlgmr.msra.gmra.mrb[14].mxu1 %vm863_vm13, %v7649_v4  ;;  %8504 = vmatprep.subr.bf16.mxu1 %v10727_v28  ;;  %v342_v4 = vld [vmem:[#allocation18 + $0x118] sm:$0xff]  ;;  %v10754_v52 = vpack.c.bf16 %v337_v33, %v333_v16  ;;  %13125 = vst [vmem:[#allocation121_spill] sm:$0xff] %v10763_v36 }
0x1141   :  { %8506 = vmatpush1.bf16.msra.mxu1 %v10733_v38  ;;  %2230 = vmatprep.mubr.f32.mxu1 %v13077_v61  ;;  %v10757_v41 = vpack.c.bf16 %v346_v49, %v342_v4  ;;  %v358_v16 = vld [vmem:[#allocation18 + $0x198] sm:$0xff]  ;;  %v10766_v4 = vpack.c.bf16 %v353_v0, %v349_v25  ;;  %13129 = vst [vmem:[#allocation125_spill] sm:$0xff] %v10776_v21  ;;  %v363_v0 = vld [vmem:[#allocation18 + $0x1c0] sm:$0xff] }
0x1142   :  { %8508 = vmatprep.subr.bf16.mxu1 %v10735_v5  ;;  %13122 = vst [vmem:[#allocation118_spill] sm:$0xff] %v10754_v52  ;;  %v362_v33 = vld [vmem:[#allocation18 + $0x1b8] sm:$0xff]  ;;  %8500 = vmatprep.subr.bf16.mxu0 %v10776_v21 }
0x1143   :  { %13123 = vst [vmem:[#allocation119_spill] sm:$0xff] %v10757_v41  ;;  %13126 = vst [vmem:[#allocation122_spill] sm:$0xff] %v10766_v4  ;;  %v10769_v49 = vpack.c.bf16 %v362_v33, %v358_v16  ;;  %v370_v25 = vld [vmem:[#allocation18 + $0x1f8] sm:$0xff]  ;;  %v10780_v33 = vpack.c.bf16 %v367_v51, %v363_v0 }
0x1144   :  { %v10778_v16 = vpack.c.bf16 %v370_v25, %v366_v37 }
0x1145   :  { %8510 = vmatpush1.bf16.msra.mxu1 %v10741_v18  ;;  %13127 = vst [vmem:[#allocation123_spill] sm:$0xff] %v10769_v49  ;;  %13131 = vst [vmem:[#allocation127_spill] sm:$0xff] %v10780_v33  ;;  %8502 = vmatpush1.bf16.msra.mxu0 %v10780_v33 }
0x1146   :  { %8512 = vmatprep.subr.bf16.mxu1 %v10745_v35  ;;  %13130 = vst [vmem:[#allocation126_spill] sm:$0xff] %v10778_v16  ;;  %v2014_v47 = vpop.permute.xlu0 %2013 }
0x1149   :  { %8514 = vmatpush1.bf16.msra.mxu1 %v10748_v42 }
0x114a   :  { %8516 = vmatprep.subr.bf16.mxu1 %v10751_v13 }
0x114d   :  { %8518 = vmatpush1.bf16.msra.mxu1 %v10754_v52 }
0x114e   :  { %8520 = vmatprep.subr.bf16.mxu1 %v10757_v41 }
0x1151   :  { %8522 = vmatpush1.bf16.msra.mxu1 %v10760_v50 }
0x1152   :  { %8524 = vmatprep.subr.bf16.mxu1 %v10763_v36 }
0x1155   :  { %8526 = vmatpush1.bf16.msra.mxu1 %v10766_v4 }
0x1156   :  { %8528 = vmatprep.subr.bf16.mxu1 %v10769_v49 }
0x1159   :  { %8530 = vmatpush1.bf16.msra.mxu1 %v10772_v45 }
0x115a   :  { %8532 = vmatprep.subr.bf16.mxu1 %v10778_v16  ;;  %v206_v16 = vld [vmem:[%s12641_s9 + $0x10] sm:$0xff] }
0x115b   :  { %v10935_v53 = vrot.slane %v206_v16, %v10329_v57  ;;  %v10975_v33 = vrot.slane %v206_v16, %v10292_v1  ;;  %v10990_v55 = vrot.slane %v206_v16, %v10305_v48  ;;  %v11005_v5 = vrot.slane %v206_v16, %v10297_v43 }
0x115c   :  { %v11016_v28 = vrot.slane %v206_v16, %v10312_v54 }
0x115d   :  { %8534 = vmatpush1.bf16.msra.mxu1 %v10783_v34  ;;  %v10913_v34 = vld [vmem:[%s12641_s9 + $0x18] sm:$0xff]  ;;  %13144 = vst [vmem:[#allocation137_spill] sm:$0xff] %v10935_v53  ;;  %13150 = vst [vmem:[#allocation143_spill] sm:$0xff] %v10975_v33 }
0x115e   :  { %v10928_v40 = vrot.slane %v10913_v34, %v10329_v57  ;;  %v10983_v35 = vrot.slane %v10913_v34, %v10292_v1  ;;  %13154 = vst [vmem:[#allocation147_spill] sm:$0xff] %v10990_v55  ;;  %v10998_v60 = vrot.slane %v10913_v34, %v10305_v48  ;;  %13158 = vst [vmem:[#allocation151_spill] sm:$0xff] %v11005_v5 }
0x115f   :  { %v11013_v38 = vrot.slane %v10913_v34, %v10297_v43  ;;  %13161 = vst [vmem:[#allocation154_spill] sm:$0xff] %v11016_v28  ;;  %v11024_v8 = vrot.slane %v10913_v34, %v10312_v54 }
0x1160   :  { %13142 = vst [vmem:[#allocation135_spill] sm:$0xff] %v10928_v40  ;;  %13152 = vst [vmem:[#allocation145_spill] sm:$0xff] %v10983_v35 }
0x1161   :  { %13156 = vst [vmem:[#allocation149_spill] sm:$0xff] %v10998_v60  ;;  %13160 = vst [vmem:[#allocation153_spill] sm:$0xff] %v11013_v38 }
0x1162   :  { %13162 = vst [vmem:[#allocation155_spill] sm:$0xff] %v11024_v8 }
0x1213   :  { %v2088_v56 = vpop.f32.mrb[14].mxu1 }
0x1214   :  { %v2089_v62 = vadd.f32 %v2088_v56, %v2014_v47  ;;  %v8162_v24 = vpop.f32.mrb[15].mxu1 }
0x1215   :  { %v9211_v24 = vld [vmem:[%s13023_s21] sm:$0xff] }
0x1216   :  { %vm2092_vm6 = vcmp.ge.f32.partialorder %v2089_v62, 0.0  ;;  %v2093_v37 = vmul.f32 0.2, %v2089_v62 }
0x1218   :  { %v2094_v51 = vsel %vm2092_vm6, %v2089_v62, %v2093_v37 }
0x1219   :  { %2160 = vmatmul.mubr.f32.vlgmr.msra.gmra.mrb[12].mxu0 %v2094_v51  ;;  %2231 = vmatmul.mubr.f32.vlgmr.msra.gmra.mrb[16].mxu1 %v2094_v51 }
0x121a   :  { %2330 = vmatprep.mubr.f32.mxu0 %v13077_v61  ;;  %2401 = vmatprep.mubr.f32.mxu1 %v13077_v61 }
0x12ec   :  { %v10793_v39 = vpop.f32.mrb[12].mxu0  ;;  %v10795_v25 = vpop.f32.mrb[16].mxu1 }
0x12ed   :  { %13133 = vst [vmem:[#allocation129_spill] sm:$0xff] %v10793_v39  ;;  %13134 = vst [vmem:[#allocation130_spill] sm:$0xff] %v10795_v25  ;;  %v10799_v47 = vpop.f32.mrb[13].mxu0  ;;  %v10801_v56 = vpop.f32.mrb[17].mxu1  ;;  %v13137_v15 = vrot.slane %v10793_v39, 4  ;;  %v13138_v19 = vrot.slane %v10795_v25, 4 }
0x12ee   :  { %13135 = vst [vmem:[#allocation131_spill] sm:$0xff] %v10799_v47  ;;  %13136 = vst [vmem:[#allocation132_spill] sm:$0xff] %v10801_v56  ;;  %v12774_v62 = vrot.slane %v10799_v47, 4  ;;  %v12777_v37 = vrot.slane %v10801_v56, 4  ;;  %v10908_v39 = vld [vmem:[%s12641_s9] sm:$0xff] }
0x12ef   :  { %v2251_v12 = vsel %vm853_vm9, %v9211_v24, %v13137_v15  ;;  %v10932_v36 = vrot.slane %v10908_v39, %v10329_v57  ;;  %v10994_v18 = vrot.slane %v10908_v39, %v10305_v48  ;;  %v11009_v59 = vrot.slane %v10908_v39, %v10297_v43 }
0x12f0   :  { %v2252_v51 = vsel %vm853_vm9, %v9823_v3, %v12774_v62  ;;  %v2254_v0 = vsel %vm853_vm9, %v9819_v2, %v12777_v37  ;;  %v9212_v62 = vld [vmem:[%s13023_s21 + $0x8] sm:$0xff]  ;;  %v11050_v22 = vrot.slane %v10908_v39, %v10325_v30 }
0x12f1   :  { %2266 = vmatprep.subr.mxu0 %v2252_v51  ;;  %2337 = vmatprep.subr.mxu1 %v2254_v0  ;;  %v2253_v11 = vsel %vm853_vm9, %v9212_v62, %v13138_v19  ;;  %v2261_v0 = vpop.permute.xlu1 %2260  ;;  %13143 = vst [vmem:[#allocation136_spill] sm:$0xff] %v10932_v36  ;;  %13155 = vst [vmem:[#allocation148_spill] sm:$0xff] %v10994_v18 }
0x12f2   :  { %2267 = vmatpush1.msra.mxu0 %v2251_v12  ;;  %2338 = vmatpush1.msra.mxu1 %v2253_v11  ;;  %13159 = vst [vmem:[#allocation152_spill] sm:$0xff] %v11009_v59  ;;  %13167 = vst [vmem:[#allocation160_spill] sm:$0xff] %v11050_v22 }
0x12f3   :  { %7652 = vmatmul.mubr.msk.f32.vlgmr.msra.gmra.mrb[14].mxu0 %vm1096_vm14, %v2256_v23  ;;  %7653 = vmatmul.mubr.msk.f32.vlgmr.msra.gmra.mrb[18].mxu1 %vm1096_vm14, %v2256_v23 }
0x12f4   :  { %2896 = vmatprep.mubr.f32.mxu0 %v13077_v61  ;;  %2967 = vmatprep.mubr.f32.mxu1 %v13077_v61 }
0x13c6   :  { %v2332_v15 = vpop.f32.mrb[14].mxu0  ;;  %v2403_v24 = vpop.f32.mrb[18].mxu1 }
0x13c7   :  { %v2333_v51 = vadd.f32 %v2332_v15, %v2261_v0  ;;  %v2404_v37 = vadd.f32 %v2403_v24, %v2261_v0  ;;  %v2334_v7 = vpop.f32.mrb[15].mxu0  ;;  %v2405_v2 = vpop.f32.mrb[19].mxu1  ;;  %v13140_v24 = vmov 3  }
0x13c8   :  { %v2406_v23 = vadd.f32 %v2405_v2, %v2261_v0  ;;  %v12786_v2 = vmov 6  }
0x13c9   :  { %vm2408_vm6 = vcmp.ge.f32.partialorder %v2333_v51, 0.0  ;;  %v2412_v3 = vmul.f32 0.2, %v2333_v51  ;;  %vm2410_vm10 = vcmp.ge.f32.partialorder %v2404_v37, 0.0  ;;  %v2414_v12 = vmul.f32 0.2, %v2404_v37  ;;  %9171 = vset.pattern.permute.xlu1 %v12786_v2 }
0x13cb   :  { %v10829_v11 = vsel %vm2408_vm6, %v2333_v51, %v2412_v3  ;;  %v10831_v19 = vsel %vm2410_vm10, %v2404_v37, %v2414_v12  ;;  %v2335_v3 = vadd.f32 %v2334_v7, %v2261_v0  ;;  %v2415_v37 = vmul.f32 0.2, %v2406_v23  ;;  %v10882_v0 = vld [vmem:[#allocation2] sm:$0xf] }
0x13cc   :  { %2472 = vrot.lane.b32.xlu0 %v10831_v19, %s9530_s6  ;;  %2468 = vrot.lane.b32.xlu1 %v10829_v11, %s9530_s6  ;;  %vm2411_vm6 = vcmp.ge.f32.partialorder %v2406_v23, 0.0  ;;  %13139 = vst [vmem:[#allocation133_spill] sm:$0xff] %v10882_v0  ;;  %v10949_v31 = vmul.f32 %v10932_v36, %v10829_v11  ;;  %v10960_v13 = vmul.f32 %v10935_v53, %v10831_v19 }
0x13cd   :  { %v2413_v62 = vmul.f32 0.2, %v2335_v3  ;;  %vm2409_vm10 = vcmp.ge.f32.partialorder %v2335_v3, 0.0  ;;  %v2419_v7 = vsel %vm2411_vm6, %v2406_v23, %v2415_v37  ;;  %vm2436_vm6 = vcmask 138240  }
0x13ce   :  { %v10945_v52 = vmul.f32 %v10928_v40, %v2419_v7  ;;  %v11035_v53 = vrot.slane %v206_v16, %v10325_v30 }
0x13cf   :  { %v2417_v15 = vsel %vm2409_vm10, %v2335_v3, %v2413_v62  ;;  %vm2474_vm10 = vcmask 130048  }
0x13d0   :  { %2548 = vrot.lane.b32.xlu0 %v10831_v19, %s9507_s3  ;;  %2544 = vrot.lane.b32.xlu1 %v10829_v11, %s9507_s3  ;;  %13165 = vst [vmem:[#allocation158_spill] sm:$0xff] %v11035_v53 }
0x13d4   :  { %2434 = vrot.lane.b32.xlu0 %v10831_v19, %s9531_s16  ;;  %2430 = vrot.lane.b32.xlu1 %v10829_v11, %s9531_s16 }
0x13d8   :  { %2510 = vrot.lane.b32.xlu0 %v10831_v19, %s9532_s1  ;;  %2506 = vrot.lane.b32.xlu1 %v10829_v11, %s9532_s1 }
0x13dc   :  { %2602 = vrot.lane.b32.xlu0 %v10831_v19, %s9496_s18  ;;  %2598 = vrot.lane.b32.xlu1 %v10829_v11, %s9496_s18 }
0x13e0   :  { %2677 = vrot.lane.b32.xlu0 %v10831_v19, %s9497_s10  ;;  %2673 = vrot.lane.b32.xlu1 %v10829_v11, %s9497_s10 }
0x13e4   :  { %2639 = vrot.lane.b32.xlu0 %v10831_v19, %s9533_s4  ;;  %2635 = vrot.lane.b32.xlu1 %v10829_v11, %s9533_s4 }
0x13e8   :  { %2470 = vrot.lane.b32.xlu0 %v2417_v15, %s9530_s6  ;;  %2465 = vrot.lane.b32.xlu1 %v2419_v7, %s9530_s6 }
0x13ec   :  { %2546 = vrot.lane.b32.xlu0 %v2417_v15, %s9507_s3  ;;  %2541 = vrot.lane.b32.xlu1 %v2419_v7, %s9507_s3 }
0x13f0   :  { %2432 = vrot.lane.b32.xlu0 %v2417_v15, %s9531_s16  ;;  %2424 = vrot.lane.b32.xlu1 %v2419_v7, %s9531_s16 }
0x13f4   :  { %2508 = vrot.lane.b32.xlu0 %v2417_v15, %s9532_s1  ;;  %2503 = vrot.lane.b32.xlu1 %v2419_v7, %s9532_s1 }
0x13f8   :  { %2604 = vrot.lane.b32.xlu0 %v2419_v7, %s9496_s18  ;;  %2600 = vrot.lane.b32.xlu1 %v2417_v15, %s9496_s18 }
0x13fc   :  { %2679 = vrot.lane.b32.xlu0 %v2419_v7, %s9497_s10  ;;  %2675 = vrot.lane.b32.xlu1 %v2417_v15, %s9497_s10 }
0x1400   :  { %2641 = vrot.lane.b32.xlu0 %v2419_v7, %s9533_s4  ;;  %2637 = vrot.lane.b32.xlu1 %v2417_v15, %s9533_s4 }
0x1404   :  { %2714 = vrot.lane.b32.xlu0 %v10831_v19, %s9535_s29  ;;  %2712 = vrot.lane.b32.xlu1 %v2417_v15, %s9535_s29  ;;  %v10979_v19 = vrot.slane %v10908_v39, %v10292_v1 }
0x1406   :  { %13151 = vst [vmem:[#allocation144_spill] sm:$0xff] %v10979_v19 }
0x1408   :  { %2716 = vrot.lane.b32.xlu0 %v2419_v7, %s9535_s29  ;;  %2710 = vrot.lane.b32.xlu1 %v10829_v11, %s9535_s29  ;;  %v10968_v11 = vrot.slane %v10913_v34, %v10290_v26 }
0x140a   :  { %13148 = vst [vmem:[#allocation141_spill] sm:$0xff] %v10968_v11 }
0x140c   :  { %2814 = vperm.xlu1 %9171, %v10882_v0  }
0x1410   :  { %9173 = vset.pattern.permute.xlu1 %v13140_v24  ;;  %v10903_v24 = vld [vmem:[%s12641_s9 + $0x8] sm:$0xff] }
0x1411   :  { %v10924_v4 = vrot.slane %v10903_v24, %v10329_v57  ;;  %v10953_v9 = vrot.slane %v10903_v24, %v10290_v26  ;;  %v10956_v57 = vrot.slane %v206_v16, %v10290_v26  ;;  %v10972_v7 = vrot.slane %v10903_v24, %v10292_v1 }
0x1412   :  { %v11002_v1 = vrot.slane %v10903_v24, %v10297_v43  ;;  %v11028_v43 = vrot.slane %v10908_v39, %v10312_v54  ;;  %v11032_v46 = vrot.slane %v10903_v24, %v10312_v54 }
0x1413   :  { %13141 = vst [vmem:[#allocation134_spill] sm:$0xff] %v10924_v4  ;;  %v10942_v17 = vmul.f32 %v10924_v4, %v2417_v15  ;;  %13145 = vst [vmem:[#allocation138_spill] sm:$0xff] %v10953_v9  ;;  %v10964_v15 = vrot.slane %v10908_v39, %v10290_v26  ;;  %v10987_v26 = vrot.slane %v10903_v24, %v10305_v48 }
0x1414   :  { %13146 = vst [vmem:[#allocation139_spill] sm:$0xff] %v10956_v57  ;;  %13149 = vst [vmem:[#allocation142_spill] sm:$0xff] %v10972_v7 }
0x1415   :  { %13147 = vst [vmem:[#allocation140_spill] sm:$0xff] %v10964_v15  ;;  %13153 = vst [vmem:[#allocation146_spill] sm:$0xff] %v10987_v26 }
0x1416   :  { %13157 = vst [vmem:[#allocation150_spill] sm:$0xff] %v11002_v1  ;;  %13163 = vst [vmem:[#allocation156_spill] sm:$0xff] %v11028_v43 }
0x1417   :  { %13164 = vst [vmem:[#allocation157_spill] sm:$0xff] %v11032_v46 }
0x143e   :  { %v10886_v51 = vpop.permute.xlu0 %2472  ;;  %v2469_v12 = vpop.permute.xlu1 %2468 }
0x1442   :  { %v2549_v3 = vpop.permute.xlu0 %2548  ;;  %v2545_v23 = vpop.permute.xlu1 %2544 }
0x1446   :  { %v10888_v62 = vpop.permute.xlu0 %2434  ;;  %v10890_v37 = vpop.permute.xlu1 %2430 }
0x144a   :  { %v10892_v2 = vpop.permute.xlu0 %2510  ;;  %v10894_v56 = vpop.permute.xlu1 %2506 }
0x144e   :  { %v10896_v25 = vpop.permute.xlu0 %2602  ;;  %v10898_v47 = vpop.permute.xlu1 %2598 }
0x1452   :  { %v10918_v45 = vpop.permute.xlu0 %2677  ;;  %v10920_v49 = vpop.permute.xlu1 %2673 }
0x1456   :  { %v10937_v50 = vpop.permute.xlu0 %2639  ;;  %v10939_v41 = vpop.permute.xlu1 %2635 }
0x145a   :  { %v2471_v42 = vpop.permute.xlu0 %2470  ;;  %v2466_v21 = vpop.permute.xlu1 %2465 }
0x145b   :  { %v2475_v48 = vsel %vm2474_vm10, %v2469_v12, %v2471_v42  ;;  %v2477_v6 = vsel %vm2474_vm10, %v10886_v51, %v2466_v21  ;;  %v2482_v63 = vsel %vm2474_vm10, %v2466_v21, %v2469_v12  ;;  %v11039_v21 = vrot.slane %v10913_v34, %v10325_v30 }
0x145c   :  { %v2500_v20 = vmul.f32 %v10953_v9, %v2475_v48  ;;  %v2499_v54 = vmul.f32 %v10964_v15, %v2482_v63  ;;  %v2502_v58 = vmul.f32 %v10968_v11, %v2477_v6  ;;  %v2476_v36 = vsel %vm2474_vm10, %v2471_v42, %v10886_v51 }
0x145d   :  { %13166 = vst [vmem:[#allocation159_spill] sm:$0xff] %v11039_v21  ;;  %v11067_v42 = vrot.slane %v10913_v34, %v10331_v14 }
0x145e   :  { %v2547_v10 = vpop.permute.xlu0 %2546  ;;  %v2542_v27 = vpop.permute.xlu1 %2541 }
0x145f   :  { %v2550_v12 = vsel %vm780_vm7, %v2545_v23, %v2547_v10  ;;  %v2551_v40 = vsel %vm780_vm7, %v2547_v10, %v2549_v3  ;;  %v2552_v29 = vsel %vm780_vm7, %v2549_v3, %v2542_v27  ;;  %v2557_v44 = vsel %vm780_vm7, %v2542_v27, %v2545_v23  ;;  %13170 = vst [vmem:[#allocation163_spill] sm:$0xff] %v11067_v42 }
0x1460   :  { %v2575_v4 = vmul.f32 %v10972_v7, %v2550_v12  ;;  %v11057_v10 = vrot.slane %v10903_v24, %v10325_v30  ;;  %v11060_v27 = vrot.slane %v206_v16, %v10331_v14  ;;  %v2576_v63 = vmul.f32 %v10975_v33, %v2551_v40 }
0x1461   :  { %v2574_v6 = vmul.f32 %v10979_v19, %v2557_v44  ;;  %v2577_v3 = vmul.f32 %v10983_v35, %v2552_v29  ;;  %v2501_v44 = vmul.f32 %v10956_v57, %v2476_v36  ;;  %v2753_v29 = vrot.slane %v2500_v20, 4 }
0x1462   :  { %13168 = vst [vmem:[#allocation161_spill] sm:$0xff] %v11057_v10  ;;  %13169 = vst [vmem:[#allocation162_spill] sm:$0xff] %v11060_v27  ;;  %v2433_v23 = vpop.permute.xlu0 %2432  ;;  %v2425_v48 = vpop.permute.xlu1 %2424  ;;  %v2752_v12 = vrot.slane %v2499_v54, 4  ;;  %v2755_v35 = vrot.slane %v2502_v58, 4  ;;  %v2765_v33 = vrot.slane %v2575_v4, 4  ;;  %v2766_v15 = vrot.slane %v2576_v63, 4 }
0x1463   :  { %v2437_v51 = vsel %vm2436_vm6, %v10890_v37, %v2433_v23  ;;  %v2438_v30 = vsel %vm2436_vm6, %v2433_v23, %v10888_v62  ;;  %v2439_v16 = vsel %vm2436_vm6, %v10888_v62, %v2425_v48  ;;  %v2444_v40 = vsel %vm2436_vm6, %v2425_v48, %v10890_v37 }
0x1464   :  { %v2462_v34 = vmul.f32 %v10987_v26, %v2437_v51  ;;  %v2461_v11 = vmul.f32 %v10994_v18, %v2444_v40  ;;  %v2464_v19 = vmul.f32 %v10998_v60, %v2439_v16  ;;  %v2764_v23 = vrot.slane %v2574_v6, 4 }
0x1465   :  { %v2767_v7 = vrot.slane %v2577_v3, 4  ;;  %v2463_v62 = vmul.f32 %v10990_v55, %v2438_v30  ;;  %v2754_v3 = vrot.slane %v2501_v44, 4 }
0x1466   :  { %v2509_v9 = vpop.permute.xlu0 %2508  ;;  %v2504_v0 = vpop.permute.xlu1 %2503  ;;  %v2797_v48 = vsel %vm853_vm9, %v2462_v34, %v2753_v29  ;;  %v2799_v51 = vsel %vm853_vm9, %v2464_v19, %v2755_v35 }
0x1467   :  { %v2513_v36 = vsel %vm2512_vm11, %v10894_v56, %v2509_v9  ;;  %v2514_v58 = vsel %vm2512_vm11, %v2509_v9, %v10892_v2  ;;  %v2515_v20 = vsel %vm2512_vm11, %v10892_v2, %v2504_v0  ;;  %v2520_v4 = vsel %vm2512_vm11, %v2504_v0, %v10894_v56 }
0x1468   :  { %v2538_v37 = vmul.f32 %v11002_v1, %v2513_v36  ;;  %v2539_v54 = vmul.f32 %v11005_v5, %v2514_v58  ;;  %v2537_v63 = vmul.f32 %v11009_v59, %v2520_v4  ;;  %v2540_v6 = vmul.f32 %v11013_v38, %v2515_v20 }
0x1469   :  { %v2796_v9 = vsel %vm853_vm9, %v2461_v11, %v2752_v12 }
0x146a   :  { %v2605_v30 = vpop.permute.xlu0 %2604  ;;  %v2601_v2 = vpop.permute.xlu1 %2600  ;;  %v2801_v16 = vsel %vm853_vm9, %v2538_v37, %v2765_v33  ;;  %v2803_v56 = vsel %vm853_vm9, %v2540_v6, %v2767_v7  ;;  %v2800_v0 = vsel %vm853_vm9, %v2537_v63, %v2764_v23  ;;  %v2802_v40 = vsel %vm853_vm9, %v2539_v54, %v2766_v15 }
0x146b   :  { %v2608_v36 = vsel %vm385_vm0, %v10896_v25, %v2605_v30  ;;  %v2614_v44 = vsel %vm385_vm0, %v2605_v30, %v10898_v47  ;;  %v2606_v35 = vsel %vm385_vm0, %v10898_v47, %v2601_v2  ;;  %v2607_v11 = vsel %vm385_vm0, %v2601_v2, %v10896_v25 }
0x146c   :  { %v2634_v33 = vmul.f32 %v11024_v8, %v2614_v44  ;;  %v2631_v7 = vmul.f32 %v11028_v43, %v2606_v35  ;;  %v2632_v19 = vmul.f32 %v11032_v46, %v2607_v11  ;;  %v2798_v15 = vsel %vm853_vm9, %v2463_v62, %v2754_v3 }
0x146d   :  { %v8535_v29 = vpack.c.bf16 %v2801_v16, %v2797_v48  ;;  %v8543_v12 = vpack.c.bf16 %v2803_v56, %v2799_v51  ;;  %v8537_v34 = vpack.c.bf16 %v2800_v0, %v2796_v9  ;;  %v8545_v23 = vpack.c.bf16 %v2802_v40, %v2798_v15 }
0x146e   :  { %v2633_v58 = vmul.f32 %v11016_v28, %v2608_v36  ;;  %v2777_v20 = vrot.slane %v2632_v19, 4  ;;  %v2680_v4 = vpop.permute.xlu0 %2679  ;;  %v2676_v47 = vpop.permute.xlu1 %2675  ;;  %v11116_v25 = vrot.slane %v10908_v39, %v10331_v14  ;;  %v11120_v37 = vrot.slane %v10903_v24, %v10331_v14  ;;  %v11151_v19 = vld [vmem:[%s12641_s9 + $0x28] ss:$0 sm:$0xff] }
0x146f   :  { %8536 = vmatprep.subr.bf16.mxu0 %v8535_v29  ;;  %8544 = vmatprep.subr.bf16.mxu1 %v8543_v12  ;;  %v2683_v62 = vsel %vm411_vm1, %v10918_v45, %v2680_v4  ;;  %v2689_v54 = vsel %vm411_vm1, %v2680_v4, %v10920_v49  ;;  %v2681_v63 = vsel %vm411_vm1, %v10920_v49, %v2676_v47  ;;  %v2779_v3 = vrot.slane %v2634_v33, 4 }
0x1470   :  { %13171 = vst [vmem:[#allocation164_spill] sm:$0xff] %v11116_v25  ;;  %13172 = vst [vmem:[#allocation165_spill] sm:$0xff] %v11120_v37  ;;  %v2708_v6 = vmul.f32 %v11035_v53, %v2683_v62  ;;  %v2709_v39 = vmul.f32 %v11039_v21, %v2689_v54  ;;  %v2682_v14 = vsel %vm411_vm1, %v2676_v47, %v10918_v45  ;;  %8538 = vmatpush1.bf16.msra.mxu0 %v8537_v34 }
0x1471   :  { %v2706_v24 = vmul.f32 %v11050_v22, %v2681_v63  ;;  %v2776_v48 = vrot.slane %v2631_v7, 4  ;;  %v2707_v51 = vmul.f32 %v11057_v10, %v2682_v14  ;;  %8546 = vmatpush1.bf16.msra.mxu1 %v8545_v23  ;;  %v2778_v9 = vrot.slane %v2633_v58, 4  ;;  %v11168_v63 = vld [vmem:[%s12641_s9 + $0x30] ss:$0 sm:$0xff] }
0x1472   :  { %v2790_v30 = vrot.slane %v2708_v6, 4  ;;  %v2791_v49 = vrot.slane %v2709_v39, 4  ;;  %v2642_v2 = vpop.permute.xlu0 %2641  ;;  %v2638_v16 = vpop.permute.xlu1 %2637  ;;  %v2805_v56 = vsel %vm853_vm9, %v10942_v17, %v2777_v20  ;;  %v11178_v6 = vld [vmem:[%s12641_s9 + $0x38] ss:$0 sm:$0xff] }
0x1473   :  { %v2788_v0 = vrot.slane %v2706_v24, 4  ;;  %v2646_v45 = vsel %vm2643_vm15, %v10937_v50, %v2642_v2  ;;  %v2652_v40 = vsel %vm2643_vm15, %v2642_v2, %v10939_v41  ;;  %v2644_v36 = vsel %vm2643_vm15, %v10939_v41, %v2638_v16 }
0x1474   :  { %v2671_v44 = vmul.f32 %v11060_v27, %v2646_v45  ;;  %v2672_v35 = vmul.f32 %v11067_v42, %v2652_v40  ;;  %v2645_v11 = vsel %vm2643_vm15, %v2638_v16, %v10937_v50  ;;  %v2669_v33 = vmul.f32 %v11116_v25, %v2644_v36 }
0x1475   :  { %v2789_v17 = vrot.slane %v2707_v51, 4  ;;  %v2670_v7 = vmul.f32 %v11120_v37, %v2645_v11  ;;  %v2807_v41 = vsel %vm853_vm9, %v10945_v52, %v2779_v3  ;;  %v2804_v15 = vsel %vm853_vm9, %v10949_v31, %v2776_v48 }
0x1476   :  { %v2715_v29 = vpop.permute.xlu0 %2714  ;;  %v2713_v12 = vpop.permute.xlu1 %2712  ;;  %v2811_v50 = vsel %vm853_vm9, %v2672_v35, %v2791_v49  ;;  %v2808_v34 = vsel %vm853_vm9, %v2669_v33, %v2788_v0  ;;  %v2806_v23 = vsel %vm853_vm9, %v10960_v13, %v2778_v9  ;;  %v2810_v58 = vsel %vm853_vm9, %v2671_v44, %v2790_v30  ;;  %v11173_v13 = vld [vmem:[%s12641_s9 + $0x20] ss:$0 sm:$0xff]  ;;  %v7654_v49 = vld [vmem:[%s13078_s19 + $0x18] sm:$0xf] }
0x1477   :  { %v2720_v20 = vsel %vm12947_vm12, %v2713_v12, %v2715_v29  ;;  %v2809_v4 = vsel %vm853_vm9, %v2670_v7, %v2789_v17  ;;  %v8547_v47 = vpack.c.bf16 %v2811_v50, %v2807_v41  ;;  %v8541_v52 = vpack.c.bf16 %v2808_v34, %v2804_v15 }
0x1478   :  { %v2745_v62 = vmul.f32 %v11151_v19, %v2720_v20  ;;  %v8539_v31 = vpack.c.bf16 %v2809_v4, %v2805_v56  ;;  %v8549_v54 = vpack.c.bf16 %v2810_v58, %v2806_v23  ;;  %v13173_v50 = vmov 0   ;;  %v13174_v23 = vld [vmem:[#allocation133_spill] sm:$0xff] }
0x1479   :  { %8548 = vmatprep.subr.bf16.mxu1 %v8547_v47  ;;  %v12908_v34 = vmov 7  }
0x147a   :  { %8540 = vmatprep.subr.bf16.mxu0 %v8539_v31  ;;  %v2717_v39 = vpop.permute.xlu0 %2716  ;;  %v2711_v14 = vpop.permute.xlu1 %2710  ;;  %8550 = vmatpush1.bf16.msra.mxu1 %v8549_v54 }
0x147b   :  { %v2721_v24 = vsel %vm12947_vm12, %v2715_v29, %v2717_v39  ;;  %v2719_v3 = vsel %vm12947_vm12, %v2711_v14, %v2713_v12  ;;  %v2727_v48 = vsel %vm12947_vm12, %v2717_v39, %v2711_v14  ;;  %8542 = vmatpush1.bf16.msra.mxu0 %v8541_v52  ;;  %9172 = vset.pattern.permute.xlu0 %v12908_v34 }
0x147c   :  { %v2746_v51 = vmul.f32 %v11168_v63, %v2721_v24  ;;  %v2744_v9 = vmul.f32 %v11173_v13, %v2719_v3  ;;  %v2747_v30 = vmul.f32 %v11178_v6, %v2727_v48  ;;  %7659 = vmatprep.subr.msk.mxu0 %vm853_vm9, %v2745_v62 }
0x147e   :  { %7662 = vmatprep.subr.msk.mxu1 %vm853_vm9, %v2747_v30  ;;  %v13175_v30 = vld [vmem:[#allocation138_spill] sm:$0xff] }
0x147f   :  { %7660 = vmatpush1.msk.msra.mxu0 %vm853_vm9, %v2744_v9  ;;  %7663 = vmatpush1.msk.msra.mxu1 %vm853_vm9, %v2746_v51 }
0x1480   :  { %7661 = vmatmul.mubr.msk.f32.vlgmr.msra.gmra.mrb[16].mxu0 %vm863_vm13, %v7654_v49  ;;  %7664 = vmatmul.mubr.msk.f32.vlgmr.msra.gmra.mrb[20].mxu1 %vm863_vm13, %v7654_v49 }
0x1481   :  { %3311 = vmatprep.mubr.f32.mxu0 %v13077_v61  ;;  %3382 = vmatprep.mubr.f32.mxu1 %v13077_v61 }
0x148b   :  { %v2815_v2 = vpop.permute.xlu1 %2814 }
0x1553   :  { %v2898_v16 = vpop.f32.mrb[16].mxu0  ;;  %v2969_v56 = vpop.f32.mrb[20].mxu1 }
0x1554   :  { %v2899_v0 = vadd.f32 %v2898_v16, %v2815_v2  ;;  %v2900_v45 = vpop.f32.mrb[17].mxu0  ;;  %v2970_v40 = vadd.f32 %v2969_v56, %v2815_v2  ;;  %v2971_v36 = vpop.f32.mrb[21].mxu1  ;;  %v13176_v16 = vld [vmem:[#allocation142_spill] sm:$0xff] }
0x1555   :  { %v2901_v17 = vadd.f32 %v2900_v45, %v2815_v2  ;;  %v2972_v15 = vadd.f32 %v2971_v36, %v2815_v2 }
0x1556   :  { %vm2974_vm8 = vcmp.ge.f32.partialorder %v2899_v0, 0.0  ;;  %v2978_v44 = vmul.f32 0.2, %v2899_v0  ;;  %vm2976_vm4 = vcmp.ge.f32.partialorder %v2970_v40, 0.0  ;;  %v2980_v35 = vmul.f32 0.2, %v2970_v40 }
0x1557   :  { %v2979_v7 = vmul.f32 0.2, %v2901_v17  ;;  %vm2975_vm3 = vcmp.ge.f32.partialorder %v2901_v17, 0.0  ;;  %v2981_v29 = vmul.f32 0.2, %v2972_v15 }
0x1558   :  { %v11197_v11 = vsel %vm2974_vm8, %v2899_v0, %v2978_v44  ;;  %v11199_v33 = vsel %vm2976_vm4, %v2970_v40, %v2980_v35  ;;  %vm2977_vm4 = vcmp.ge.f32.partialorder %v2972_v15, 0.0 }
0x1559   :  { %3016 = vrot.lane.b32.xlu0 %v11197_v11, %s9530_s6  ;;  %3084 = vrot.lane.b32.xlu1 %v11199_v33, %s9496_s18  ;;  %v11213_v41 = vsel %vm2975_vm3, %v2901_v17, %v2979_v7  ;;  %v11223_v12 = vsel %vm2977_vm4, %v2972_v15, %v2981_v29 }
0x155d   :  { %3058 = vrot.lane.b32.xlu0 %v11197_v11, %s9507_s3  ;;  %3126 = vrot.lane.b32.xlu1 %v11199_v33, %s9497_s10 }
0x1561   :  { %2995 = vrot.lane.b32.xlu0 %v11197_v11, %s9531_s16  ;;  %3122 = vrot.lane.b32.xlu1 %v11197_v11, %s9497_s10 }
0x1565   :  { %3037 = vrot.lane.b32.xlu0 %v11197_v11, %s9532_s1  ;;  %3018 = vrot.lane.b32.xlu1 %v11213_v41, %s9530_s6 }
0x1569   :  { %3080 = vrot.lane.b32.xlu0 %v11197_v11, %s9496_s18  ;;  %3060 = vrot.lane.b32.xlu1 %v11213_v41, %s9507_s3 }
0x156d   :  { %3013 = vrot.lane.b32.xlu0 %v11223_v12, %s9530_s6  ;;  %3055 = vrot.lane.b32.xlu1 %v11223_v12, %s9507_s3 }
0x1571   :  { %2989 = vrot.lane.b32.xlu0 %v11223_v12, %s9531_s16  ;;  %2997 = vrot.lane.b32.xlu1 %v11213_v41, %s9531_s16 }
0x1575   :  { %3082 = vrot.lane.b32.xlu0 %v11213_v41, %s9496_s18  ;;  %3039 = vrot.lane.b32.xlu1 %v11213_v41, %s9532_s1 }
0x1579   :  { %3124 = vrot.lane.b32.xlu0 %v11213_v41, %s9497_s10  ;;  %3034 = vrot.lane.b32.xlu1 %v11223_v12, %s9532_s1 }
0x157d   :  { %3103 = vrot.lane.b32.xlu0 %v11213_v41, %s9533_s4  ;;  %3105 = vrot.lane.b32.xlu1 %v11199_v33, %s9533_s4 }
0x1581   :  { %3101 = vrot.lane.b32.xlu0 %v11197_v11, %s9533_s4  ;;  %3145 = vrot.lane.b32.xlu1 %v11213_v41, %s9535_s29 }
0x1585   :  { %3147 = vrot.lane.b32.xlu0 %v11199_v33, %s9535_s29  ;;  %3143 = vrot.lane.b32.xlu1 %v11197_v11, %s9535_s29 }
0x1589   :  { %3020 = vrot.lane.b32.xlu0 %v11199_v33, %s9530_s6  ;;  %3062 = vrot.lane.b32.xlu1 %v11199_v33, %s9507_s3 }
0x158d   :  { %2999 = vrot.lane.b32.xlu0 %v11199_v33, %s9531_s16  ;;  %3041 = vrot.lane.b32.xlu1 %v11199_v33, %s9532_s1 }
0x1591   :  { %3086 = vrot.lane.b32.xlu0 %v11223_v12, %s9496_s18  ;;  %3128 = vrot.lane.b32.xlu1 %v11223_v12, %s9497_s10 }
0x1595   :  { %3107 = vrot.lane.b32.xlu0 %v11223_v12, %s9533_s4  ;;  %3149 = vrot.lane.b32.xlu1 %v11223_v12, %s9535_s29 }
0x1599   :  { %3779 = vperm.xlu1 %9173, %v10790_v32   ;;  %3229 = vperm.xlu0 %9172, %v13174_v23  }
0x159d   :  { %9174 = vset.pattern.permute.xlu1 %v13173_v50  ;;  %v13177_v50 = vld [vmem:[#allocation140_spill] sm:$0xff] }
0x15cb   :  { %v3017_v58 = vpop.permute.xlu0 %3016  ;;  %v11273_v20 = vpop.permute.xlu1 %3084 }
0x15cf   :  { %v3059_v4 = vpop.permute.xlu0 %3058  ;;  %v11275_v47 = vpop.permute.xlu1 %3126 }
0x15d3   :  { %v2996_v52 = vpop.permute.xlu0 %2995  ;;  %v11277_v62 = vpop.permute.xlu1 %3122 }
0x15d7   :  { %v3038_v31 = vpop.permute.xlu0 %3037  ;;  %v11279_v54 = vpop.permute.xlu1 %3018 }
0x15d8   :  { %v3022_v3 = vsel %vm2474_vm10, %v3017_v58, %v11279_v54 }
0x15d9   :  { %v3031_v49 = vmul.f32 %v3022_v3, %v13175_v30  ;;  %v13225_v30 = vld [vmem:[#allocation131_spill] sm:$0xff] }
0x15db   :  { %v11281_v32 = vpop.permute.xlu0 %3080  ;;  %v11283_v39 = vpop.permute.xlu1 %3060  ;;  %v3169_v35 = vrot.slane %v3031_v49, 4 }
0x15dc   :  { %v3064_v48 = vsel %vm780_vm7, %v3059_v4, %v11283_v39 }
0x15dd   :  { %v3073_v56 = vmul.f32 %v3064_v48, %v13176_v16 }
0x15df   :  { %v11285_v14 = vpop.permute.xlu0 %3013  ;;  %v11287_v24 = vpop.permute.xlu1 %3055  ;;  %v3181_v29 = vrot.slane %v3073_v56, 4 }
0x15e0   :  { %v3029_v0 = vsel %vm2474_vm10, %v11285_v14, %v3017_v58  ;;  %v3071_v45 = vsel %vm780_vm7, %v11287_v24, %v3059_v4  ;;  %v13178_v58 = vld [vmem:[#allocation144_spill] sm:$0xff] }
0x15e1   :  { %v3030_v23 = vmul.f32 %v3029_v0, %v13177_v50  ;;  %v3072_v4 = vmul.f32 %v3071_v45, %v13178_v58 }
0x15e3   :  { %v11293_v51 = vpop.permute.xlu0 %2989  ;;  %v11295_v9 = vpop.permute.xlu1 %2997 }
0x15e4   :  { %v3001_v2 = vsel %vm2436_vm6, %v2996_v52, %v11295_v9  ;;  %v3008_v17 = vsel %vm2436_vm6, %v11293_v51, %v2996_v52 }
0x15e5   :  { %v3010_v40 = vmul.f32 %v3001_v2, %v10987_v26  ;;  %v3009_v48 = vmul.f32 %v3008_v17, %v10994_v18  ;;  %v3168_v17 = vrot.slane %v3030_v23, 4 }
0x15e7   :  { %v3083_v36 = vpop.permute.xlu0 %3082  ;;  %v11306_v44 = vpop.permute.xlu1 %3039  ;;  %v3213_v52 = vsel %vm853_vm9, %v3010_v40, %v3169_v35  ;;  %v3212_v18 = vsel %vm853_vm9, %v3009_v48, %v3168_v17 }
0x15e8   :  { %v3089_v7 = vsel %vm385_vm0, %v3083_v36, %v11273_v20  ;;  %v3043_v15 = vsel %vm2512_vm11, %v3038_v31, %v11306_v44  ;;  %v3088_v56 = vsel %vm385_vm0, %v11281_v32, %v3083_v36 }
0x15e9   :  { %v3052_v3 = vmul.f32 %v3043_v15, %v11002_v1  ;;  %v3098_v49 = vmul.f32 %v3089_v7, %v11032_v46  ;;  %v3180_v1 = vrot.slane %v3072_v4, 4  ;;  %v3097_v35 = vmul.f32 %v3088_v56, %v11028_v43 }
0x15eb   :  { %v3125_v2 = vpop.permute.xlu0 %3124  ;;  %v11319_v34 = vpop.permute.xlu1 %3034  ;;  %v3217_v26 = vsel %vm853_vm9, %v3052_v3, %v3181_v29  ;;  %v3193_v36 = vrot.slane %v3098_v49, 4  ;;  %v3192_v49 = vrot.slane %v3097_v35, 4 }
0x15ec   :  { %v3131_v0 = vsel %vm411_vm1, %v3125_v2, %v11275_v47  ;;  %v3050_v45 = vsel %vm2512_vm11, %v11319_v34, %v3038_v31  ;;  %v8551_v15 = vpack.c.bf16 %v3217_v26, %v3213_v52  ;;  %v3130_v40 = vsel %vm411_vm1, %v11277_v62, %v3125_v2 }
0x15ed   :  { %v3140_v7 = vmul.f32 %v3131_v0, %v11057_v10  ;;  %v3051_v46 = vmul.f32 %v3050_v45, %v11009_v59  ;;  %v3139_v4 = vmul.f32 %v3130_v40, %v11050_v22  ;;  %v13179_v0 = vld [vmem:[#allocation134_spill] sm:$0xff]  ;;  %v13180_v40 = vld [vmem:[#allocation136_spill] sm:$0xff] }
0x15ee   :  { %8552 = vmatprep.subr.bf16.mxu0 %v8551_v15  ;;  %v3077_v56 = vmul.f32 %v11213_v41, %v13179_v0 }
0x15ef   :  { %v3104_v29 = vpop.permute.xlu0 %3103  ;;  %v11334_v3 = vpop.permute.xlu1 %3105  ;;  %v3216_v26 = vsel %vm853_vm9, %v3051_v46, %v3180_v1  ;;  %v3205_v52 = vrot.slane %v3140_v7, 4  ;;  %v3204_v17 = vrot.slane %v3139_v4, 4 }
0x15f0   :  { %v3110_v31 = vsel %vm2643_vm15, %v3104_v29, %v11334_v3  ;;  %v8553_v23 = vpack.c.bf16 %v3216_v26, %v3212_v18  ;;  %v3221_v48 = vsel %vm853_vm9, %v3077_v56, %v3193_v36  ;;  %v3076_v26 = vmul.f32 %v11197_v11, %v13180_v40 }
0x15f1   :  { %v3119_v2 = vmul.f32 %v3110_v31, %v11120_v37  ;;  %v13221_v37 = vld [vmem:[#allocation126_spill] sm:$0xff] }
0x15f2   :  { %8554 = vmatpush1.bf16.msra.mxu0 %v8553_v23  ;;  %v3220_v31 = vsel %vm853_vm9, %v3076_v26, %v3192_v49 }
0x15f3   :  { %v11344_v45 = vpop.permute.xlu0 %3101  ;;  %v3146_v15 = vpop.permute.xlu1 %3145  ;;  %v3225_v46 = vsel %vm853_vm9, %v3119_v2, %v3205_v52 }
0x15f4   :  { %v3109_v18 = vsel %vm2643_vm15, %v11344_v45, %v3104_v29  ;;  %v8555_v1 = vpack.c.bf16 %v3225_v46, %v3221_v48 }
0x15f5   :  { %v3118_v7 = vmul.f32 %v3109_v18, %v11116_v25  ;;  %v13181_v18 = vld [vmem:[#allocation141_spill] sm:$0xff]  ;;  %v13222_v25 = vld [vmem:[#allocation128_spill] sm:$0xff] }
0x15f6   :  { %8556 = vmatprep.subr.bf16.mxu0 %v8555_v1 }
0x15f7   :  { %v11353_v41 = vpop.permute.xlu0 %3147  ;;  %v11355_v35 = vpop.permute.xlu1 %3143  ;;  %v3224_v36 = vsel %vm853_vm9, %v3118_v7, %v3204_v17  ;;  %v13182_v17 = vld [vmem:[#allocation143_spill] sm:$0xff]  ;;  %v13183_v7 = vld [vmem:[#allocation145_spill] sm:$0xff] }
0x15f8   :  { %v3152_v23 = vsel %vm12947_vm12, %v3146_v15, %v11353_v41  ;;  %v3151_v29 = vsel %vm12947_vm12, %v11355_v35, %v3146_v15  ;;  %v8557_v4 = vpack.c.bf16 %v3224_v36, %v3220_v31 }
0x15f9   :  { %v3161_v52 = vmul.f32 %v11151_v19, %v3152_v23  ;;  %v3160_v11 = vmul.f32 %v11173_v13, %v3151_v29  ;;  %v11377_v19 = vld [vmem:[%s13078_s19 + $0x1c] sm:$0xf] }
0x15fa   :  { %8558 = vmatpush1.bf16.msra.mxu0 %v8557_v4  ;;  %v13184_v23 = vld [vmem:[#allocation97_spill] sm:$0xff] }
0x15fb   :  { %v3021_v2 = vpop.permute.xlu0 %3020  ;;  %7666 = vmatprep.subr.msk.mxu0 %vm853_vm9, %v3161_v52  ;;  %v3063_v56 = vpop.permute.xlu1 %3062 }
0x15fc   :  { %v3023_v49 = vsel %vm2474_vm10, %v11279_v54, %v3021_v2  ;;  %v3024_v48 = vsel %vm2474_vm10, %v3021_v2, %v11285_v14  ;;  %v3065_v46 = vsel %vm780_vm7, %v11283_v39, %v3063_v56  ;;  %v3066_v15 = vsel %vm780_vm7, %v3063_v56, %v11287_v24  ;;  %v13185_v56 = vld [vmem:[#allocation98_spill] sm:$0xff] }
0x15fd   :  { %v3032_v13 = vmul.f32 %v3023_v49, %v10956_v57  ;;  %v3033_v1 = vmul.f32 %v3024_v48, %v13181_v18  ;;  %v3074_v54 = vmul.f32 %v3065_v46, %v13182_v17  ;;  %v3075_v26 = vmul.f32 %v3066_v15, %v13183_v7 }
0x15fe   :  { %7667 = vmatpush1.msk.msra.mxu0 %vm853_vm9, %v3160_v11 }
0x15ff   :  { %v3170_v14 = vrot.slane %v3032_v13, 4  ;;  %v3171_v39 = vrot.slane %v3033_v1, 4  ;;  %v3182_v31 = vrot.slane %v3074_v54, 4  ;;  %v3183_v36 = vrot.slane %v3075_v26, 4  ;;  %v3000_v24 = vpop.permute.xlu0 %2999  ;;  %7668 = vmatmul.mubr.msk.f32.vlgmr.msra.gmra.mrb[18].mxu0 %vm863_vm13, %v11377_v19  ;;  %8568 = vmatprep.subr.bf16.mxu0 %v13184_v23  ;;  %v3042_v29 = vpop.permute.xlu1 %3041 }
0x1600   :  { %v3002_v4 = vsel %vm2436_vm6, %v11295_v9, %v3000_v24  ;;  %v3003_v52 = vsel %vm2436_vm6, %v3000_v24, %v11293_v51  ;;  %v3044_v11 = vsel %vm2512_vm11, %v11306_v44, %v3042_v29  ;;  %v3045_v2 = vsel %vm2512_vm11, %v3042_v29, %v11319_v34  ;;  %8570 = vmatpush1.bf16.msra.mxu0 %v13185_v56  ;;  %v13186_v9 = vld [vmem:[#allocation99_spill] sm:$0xff] }
0x1601   :  { %v3011_v49 = vmul.f32 %v3002_v4, %v10990_v55  ;;  %v3012_v48 = vmul.f32 %v3003_v52, %v10998_v60  ;;  %v3053_v46 = vmul.f32 %v3044_v11, %v11005_v5  ;;  %v3054_v15 = vmul.f32 %v3045_v2, %v11013_v38  ;;  %8572 = vmatprep.subr.bf16.mxu0 %v13186_v9  ;;  %v13187_v52 = vld [vmem:[#allocation100_spill] sm:$0xff] }
0x1602   :  { %3465 = vmatprep.mubr.f32.mxu0 %v13077_v61 }
0x1603   :  { %v3087_v51 = vpop.permute.xlu0 %3086  ;;  %v3129_v13 = vpop.permute.xlu1 %3128  ;;  %v3215_v44 = vsel %vm853_vm9, %v3012_v48, %v3171_v39  ;;  %v3219_v34 = vsel %vm853_vm9, %v3054_v15, %v3183_v36  ;;  %v3214_v1 = vsel %vm853_vm9, %v3011_v49, %v3170_v14  ;;  %v3218_v54 = vsel %vm853_vm9, %v3053_v46, %v3182_v31 }
0x1604   :  { %v3090_v26 = vsel %vm385_vm0, %v11273_v20, %v3087_v51  ;;  %v3096_v24 = vsel %vm385_vm0, %v3087_v51, %v11281_v32  ;;  %v3132_v29 = vsel %vm411_vm1, %v11275_v47, %v3129_v13  ;;  %v3138_v4 = vsel %vm411_vm1, %v3129_v13, %v11277_v62  ;;  %8574 = vmatpush1.bf16.msra.mxu0 %v13187_v52  ;;  %v13188_v20 = vld [vmem:[#allocation101_spill] sm:$0xff] }
0x1605   :  { %v3099_v39 = vmul.f32 %v3090_v26, %v11016_v28  ;;  %v3100_v14 = vmul.f32 %v3096_v24, %v11024_v8  ;;  %v3141_v31 = vmul.f32 %v3132_v29, %v11035_v53  ;;  %v3142_v36 = vmul.f32 %v3138_v4, %v11039_v21  ;;  %8576 = vmatprep.subr.bf16.mxu0 %v13188_v20  ;;  %v13191_v29 = vld [vmem:[#allocation102_spill] sm:$0xff] }
0x1606   :  { %v8559_v11 = vpack.c.bf16 %v3219_v34, %v3215_v44  ;;  %v8561_v32 = vpack.c.bf16 %v3218_v54, %v3214_v1  ;;  %v13189_v44 = vld [vmem:[#allocation135_spill] sm:$0xff]  ;;  %v13190_v1 = vld [vmem:[#allocation137_spill] sm:$0xff] }
0x1607   :  { %v3194_v2 = vrot.slane %v3099_v39, 4  ;;  %v3195_v49 = vrot.slane %v3100_v14, 4  ;;  %v3206_v47 = vrot.slane %v3141_v31, 4  ;;  %v3207_v48 = vrot.slane %v3142_v36, 4  ;;  %v3108_v46 = vpop.permute.xlu0 %3107  ;;  %v3150_v62 = vpop.permute.xlu1 %3149 }
0x1608   :  { %8560 = vmatprep.subr.bf16.mxu1 %v8559_v11  ;;  %v3111_v15 = vsel %vm2643_vm15, %v11334_v3, %v3108_v46  ;;  %v3117_v51 = vsel %vm2643_vm15, %v3108_v46, %v11344_v45  ;;  %v3079_v34 = vmul.f32 %v11223_v12, %v13189_v44  ;;  %v3078_v54 = vmul.f32 %v11199_v33, %v13190_v1  ;;  %v13192_v3 = vld [vmem:[#allocation103_spill] sm:$0xff]  ;;  %v13194_v11 = vld [vmem:[#allocation105_spill] sm:$0xff]  ;;  %v13202_v46 = vld [vmem:[#allocation114_spill] sm:$0xff] }
0x1609   :  { %v3120_v13 = vmul.f32 %v3111_v15, %v11060_v27  ;;  %v3121_v26 = vmul.f32 %v3117_v51, %v11067_v42  ;;  %8562 = vmatpush1.bf16.msra.mxu1 %v8561_v32  ;;  %v3159_v24 = vsel %vm12947_vm12, %v3150_v62, %v11355_v35  ;;  %8578 = vmatpush1.bf16.msra.mxu0 %v13191_v29  ;;  %v13193_v35 = vld [vmem:[#allocation104_spill] sm:$0xff]  ;;  %v13204_v15 = vld [vmem:[#allocation115_spill] sm:$0xff]  ;;  %v13205_v51 = vld [vmem:[#allocation125_spill] sm:$0xff] }
0x160a   :  { %8580 = vmatprep.subr.bf16.mxu0 %v13192_v3  ;;  %v3223_v45 = vsel %vm853_vm9, %v3079_v34, %v3195_v49  ;;  %v3222_v39 = vsel %vm853_vm9, %v3078_v54, %v3194_v2  ;;  %v3153_v33 = vsel %vm12947_vm12, %v11353_v41, %v3150_v62  ;;  %v3163_v36 = vmul.f32 %v11178_v6, %v3159_v24  ;;  %v13195_v2 = vld [vmem:[#allocation106_spill] sm:$0xff]  ;;  %v13196_v49 = vld [vmem:[#allocation107_spill] sm:$0xff]  ;;  %v13198_v41 = vld [vmem:[#allocation112_spill] sm:$0xff] }
0x160b   :  { %v3227_v4 = vsel %vm853_vm9, %v3121_v26, %v3207_v48  ;;  %v3226_v14 = vsel %vm853_vm9, %v3120_v13, %v3206_v47  ;;  %v3162_v32 = vmul.f32 %v11168_v63, %v3153_v33  ;;  %v13197_v6 = vld [vmem:[#allocation111_spill] sm:$0xff]  ;;  %v13199_v47 = vld [vmem:[#allocation108_spill] sm:$0xff]  ;;  %v13200_v48 = vld [vmem:[#allocation113_spill] sm:$0xff]  ;;  %v13209_v34 = vmov 0.0|0.0  }
0x160c   :  { %v8563_v31 = vpack.c.bf16 %v3227_v4, %v3223_v45  ;;  %v8565_v12 = vpack.c.bf16 %v3226_v14, %v3222_v39  ;;  %v13201_v63 = vld [vmem:[#allocation109_spill] sm:$0xff]  ;;  %v13203_v62 = vld [vmem:[#allocation110_spill] sm:$0xff]  ;;  %v13207_v13 = vld [vmem:[#allocation127_spill] sm:$0xff] }
0x160d   :  { %8582 = vmatpush1.bf16.msra.mxu0 %v13193_v35  ;;  %v13208_v26 = vld [vmem:[#allocation117_spill] sm:$0xff]  ;;  %v13210_v54 = vld [vmem:[#allocation88_spill] sm:$0xff]  ;;  %v13211_v24 = vld [vmem:[#allocation118_spill] sm:$0xff] }
0x160e   :  { %8564 = vmatprep.subr.bf16.mxu1 %v8563_v31  ;;  %8584 = vmatprep.subr.bf16.mxu0 %v13194_v11  ;;  %v13212_v45 = vld [vmem:[#allocation86_spill] sm:$0xff]  ;;  %v13213_v4 = vld [vmem:[#allocation119_spill] sm:$0xff]  ;;  %v13214_v39 = vld [vmem:[#allocation120_spill] sm:$0xff] }
0x160f   :  { %8566 = vmatpush1.bf16.msra.mxu1 %v8565_v12  ;;  %v13215_v14 = vld [vmem:[#allocation87_spill] sm:$0xff]  ;;  %v13216_v31 = vld [vmem:[#allocation121_spill] sm:$0xff]  ;;  %v13218_v33 = vld [vmem:[#allocation122_spill] sm:$0xff] }
0x1610   :  { %7669 = vmatprep.subr.msk.mxu1 %vm853_vm9, %v3163_v36  ;;  %v13217_v12 = vld [vmem:[#allocation77_spill] sm:$0xff]  ;;  %v13219_v36 = vld [vmem:[#allocation123_spill] sm:$0xff] }
0x1611   :  { %8586 = vmatpush1.bf16.msra.mxu0 %v13195_v2 }
0x1612   :  { %8588 = vmatprep.subr.bf16.mxu0 %v13196_v49 }
0x1613   :  { %7670 = vmatpush1.msk.msra.mxu1 %vm853_vm9, %v3162_v32  ;;  %v13220_v32 = vld [vmem:[#allocation124_spill] sm:$0xff] }
0x1614   :  { %7671 = vmatmul.mubr.msk.f32.vlgmr.msra.gmra.mrb[22].mxu1 %vm863_vm13, %v11377_v19  ;;  %8600 = vmatprep.subr.bf16.mxu1 %v13197_v6  ;;  %v13206_v19 = vld [vmem:[#allocation116_spill] sm:$0xff] }
0x1615   :  { %8602 = vmatpush1.bf16.msra.mxu1 %v13198_v41  ;;  %3536 = vmatprep.mubr.f32.mxu1 %v13077_v61 }
0x1616   :  { %8590 = vmatpush1.bf16.msra.mxu0 %v13199_v47  ;;  %8604 = vmatprep.subr.bf16.mxu1 %v13200_v48 }
0x1617   :  { %8592 = vmatprep.subr.bf16.mxu0 %v13201_v63 }
0x1618   :  { %v3230_v40 = vpop.permute.xlu0 %3229 }
0x1619   :  { %8606 = vmatpush1.bf16.msra.mxu1 %v13202_v46 }
0x161a   :  { %8594 = vmatpush1.bf16.msra.mxu0 %v13203_v62  ;;  %8608 = vmatprep.subr.bf16.mxu1 %v13204_v15 }
0x161b   :  { %8596 = vmatprep.subr.bf16.mxu0 %v13205_v51 }
0x161d   :  { %8610 = vmatpush1.bf16.msra.mxu1 %v13206_v19 }
0x161e   :  { %8598 = vmatpush1.bf16.msra.mxu0 %v13207_v13  ;;  %8612 = vmatprep.subr.bf16.mxu1 %v13208_v26 }
0x161f   :  { %8631 = vmatprep.subr.bf16.mxu0 %v13209_v34 }
0x1621   :  { %3466 = vmatmul.mubr.f32.vlgmr.msra.gmra.mrb[20].mxu0 %v13210_v54  ;;  %8614 = vmatpush1.bf16.msra.mxu1 %v13211_v24 }
0x1622   :  { %8633 = vmatpush3.bf16.msra.mxu0 %v13212_v45  ;;  %8616 = vmatprep.subr.bf16.mxu1 %v13213_v4 }
0x1623   :  { %8634 = vmatprep.subr.bf16.mxu0 %v13209_v34  ;;  %8171 = vmatprep.mubr.msk.f32.mxu0 %vm9499_vm2, %v13077_v61 }
0x1625   :  { %8618 = vmatpush1.bf16.msra.mxu1 %v13214_v39 }
0x1626   :  { %8636 = vmatpush3.bf16.msra.mxu0 %v13215_v14  ;;  %8620 = vmatprep.subr.bf16.mxu1 %v13216_v31 }
0x1627   :  { %8670 = vmatprep.subr.bf16.mxu0 %v13197_v6 }
0x1629   :  { %8172 = vmatmul.mubr.msk.f32.vlgmr.msra.gmra.mrb[22].mxu0 %vm671_vm5, %v13217_v12  ;;  %8622 = vmatpush1.bf16.msra.mxu1 %v13218_v33 }
0x162a   :  { %8624 = vmatprep.subr.bf16.mxu1 %v13219_v36  ;;  %8672 = vmatpush1.bf16.msra.mxu0 %v13198_v41 }
0x162b   :  { %8674 = vmatprep.subr.bf16.mxu0 %v13200_v48  ;;  %3750 = vmatprep.mubr.f32.mxu0 %v13077_v61 }
0x162d   :  { %8626 = vmatpush1.bf16.msra.mxu1 %v13220_v32 }
0x162e   :  { %8628 = vmatprep.subr.bf16.mxu1 %v13221_v37  ;;  %8676 = vmatpush1.bf16.msra.mxu0 %v13202_v46 }
0x162f   :  { %8678 = vmatprep.subr.bf16.mxu0 %v13204_v15 }
0x1631   :  { %8630 = vmatpush1.bf16.msra.mxu1 %v13222_v25 }
0x1632   :  { %8638 = vmatprep.subr.bf16.mxu1 %v13184_v23  ;;  %8680 = vmatpush1.bf16.msra.mxu0 %v13206_v19 }
0x1633   :  { %8682 = vmatprep.subr.bf16.mxu0 %v13208_v26 }
0x1634   :  { %3537 = vmatmul.mubr.f32.vlgmr.msra.gmra.mrb[24].mxu1 %v13210_v54 }
0x1635   :  { %8640 = vmatpush1.bf16.msra.mxu1 %v13185_v56  ;;  %3679 = vmatprep.mubr.f32.mxu1 %v13077_v61 }
0x1636   :  { %8642 = vmatprep.subr.bf16.mxu1 %v13186_v9  ;;  %8684 = vmatpush1.bf16.msra.mxu0 %v13211_v24 }
0x1637   :  { %8686 = vmatprep.subr.bf16.mxu0 %v13213_v4 }
0x1639   :  { %8644 = vmatpush1.bf16.msra.mxu1 %v13187_v52 }
0x163a   :  { %8646 = vmatprep.subr.bf16.mxu1 %v13188_v20  ;;  %8688 = vmatpush1.bf16.msra.mxu0 %v13214_v39 }
0x163b   :  { %8690 = vmatprep.subr.bf16.mxu0 %v13216_v31 }
0x163d   :  { %8648 = vmatpush1.bf16.msra.mxu1 %v13191_v29 }
0x163e   :  { %8650 = vmatprep.subr.bf16.mxu1 %v13192_v3  ;;  %8692 = vmatpush1.bf16.msra.mxu0 %v13218_v33 }
0x163f   :  { %8694 = vmatprep.subr.bf16.mxu0 %v13219_v36 }
0x1641   :  { %8652 = vmatpush1.bf16.msra.mxu1 %v13193_v35 }
0x1642   :  { %8654 = vmatprep.subr.bf16.mxu1 %v13194_v11  ;;  %8696 = vmatpush1.bf16.msra.mxu0 %v13220_v32 }
0x1643   :  { %8698 = vmatprep.subr.bf16.mxu0 %v13221_v37 }
0x1645   :  { %8656 = vmatpush1.bf16.msra.mxu1 %v13195_v2 }
0x1646   :  { %8658 = vmatprep.subr.bf16.mxu1 %v13196_v49  ;;  %8700 = vmatpush1.bf16.msra.mxu0 %v13222_v25  ;;  %v13226_v25 = vrot.slane %v13225_v30, 4 }
0x1649   :  { %8660 = vmatpush1.bf16.msra.mxu1 %v13199_v47 }
0x164a   :  { %8662 = vmatprep.subr.bf16.mxu1 %v13201_v63 }
0x164d   :  { %8664 = vmatpush1.bf16.msra.mxu1 %v13203_v62 }
0x164e   :  { %8666 = vmatprep.subr.bf16.mxu1 %v13205_v51 }
0x1651   :  { %8668 = vmatpush1.bf16.msra.mxu1 %v13207_v13 }
0x16d2   :  { %v3313_v54 = vpop.f32.mrb[18].mxu0 }
0x16d3   :  { %v3315_v12 = vpop.f32.mrb[19].mxu0  ;;  %v3314_v1 = vadd.f32 %v3313_v54, %v3230_v40 }
0x16d4   :  { %v3316_v43 = vadd.f32 %v3315_v12, %v3230_v40 }
0x16d5   :  { %v3393_v38 = vmul.f32 0.2, %v3314_v1  ;;  %vm3389_vm3 = vcmp.ge.f32.partialorder %v3314_v1, 0.0 }
0x16d6   :  { %v3394_v59 = vmul.f32 0.2, %v3316_v43  ;;  %vm3390_vm8 = vcmp.ge.f32.partialorder %v3316_v43, 0.0 }
0x16e7   :  { %v3384_v42 = vpop.f32.mrb[22].mxu1 }
0x16e8   :  { %v3386_v27 = vpop.f32.mrb[23].mxu1  ;;  %v3385_v8 = vadd.f32 %v3384_v42, %v3230_v40  ;;  %v13223_v42 = vld [vmem:[#allocation129_spill] sm:$0xff] }
0x16e9   :  { %v3387_v28 = vadd.f32 %v3386_v27, %v3230_v40  ;;  %v13224_v27 = vrot.slane %v13223_v42, 4 }
0x16ea   :  { %v3395_v5 = vmul.f32 0.2, %v3385_v8  ;;  %vm3391_vm4 = vcmp.ge.f32.partialorder %v3385_v8, 0.0 }
0x16eb   :  { %v3396_v60 = vmul.f32 0.2, %v3387_v28  ;;  %vm3392_vm12 = vcmp.ge.f32.partialorder %v3387_v28, 0.0 }
0x16ec   :  { %v3399_v55 = vsel %vm3391_vm4, %v3385_v8, %v3395_v5  ;;  %v13227_v8 = vld [vmem:[#allocation130_spill] sm:$0xff]  ;;  %v13229_v5 = vld [vmem:[#allocation132_spill] sm:$0xff] }
0x16ed   :  { %v3400_v18 = vsel %vm3392_vm12, %v3387_v28, %v3396_v60  ;;  %v13228_v60 = vrot.slane %v13227_v8, 4 }
0x16ef   :  { %v3771_v28 = vsel %vm853_vm9, %v3399_v55, %v13228_v60  ;;  %v3960_v55 = vld [vmem:[%s12640_s8] sm:$0xf] }
0x16f0   :  { %3963 = vperm.xlu1 %9174, %v3960_v55   ;;  %v13232_v60 = vld [vmem:[#allocation26_spill] sm:$0xff] }
0x16f4   :  { %v3467_v10 = vpop.f32.mrb[20].mxu0 }
0x16f5   :  { %v3469_v44 = vpop.f32.mrb[21].mxu0 }
0x16fc   :  { %v3611_v22 = vpop.f32.mrb[22].mxu0 }
0x16fd   :  { %v8173_v0 = vpop.f32.mrb[23].mxu0  ;;  %3680 = vmatmul.mubr.f32.vlgmr.msra.gmra.mrb[26].mxu1 %v3611_v22  ;;  %3751 = vmatmul.mubr.f32.vlgmr.msra.gmra.mrb[24].mxu0 %v3611_v22  ;;  %v3397_v22 = vsel %vm3389_vm3, %v3314_v1, %v3393_v38 }
0x16fe   :  { %3849 = vmatprep.mubr.f32.mxu1 %v13077_v61  ;;  %4033 = vmatprep.mubr.f32.mxu0 %v13077_v61  ;;  %v3398_v0 = vsel %vm3390_vm8, %v3316_v43, %v3394_v59  ;;  %v3769_v40 = vsel %vm853_vm9, %v3397_v22, %v13224_v27  ;;  %v13230_v43 = vrot.slane %v13229_v5, 4  ;;  %v9213_v27 = vld [vmem:[%s13023_s21] sm:$0xff] }
0x16ff   :  { %v3770_v37 = vsel %vm853_vm9, %v3398_v0, %v13226_v25 }
0x1707   :  { %v3538_v21 = vpop.f32.mrb[24].mxu1 }
0x1708   :  { %v3540_v53 = vpop.f32.mrb[25].mxu1 }
0x17d0   :  { %v3681_v7 = vpop.f32.mrb[26].mxu1  ;;  %v3752_v58 = vpop.f32.mrb[24].mxu0 }
0x17d1   :  { %v3761_v17 = vrot.slane %v3681_v7, 4  ;;  %v3763_v16 = vrot.slane %v3752_v58, 4  ;;  %v3683_v54 = vpop.f32.mrb[27].mxu1  ;;  %v3754_v12 = vpop.f32.mrb[25].mxu0  ;;  %v3772_v58 = vsel %vm853_vm9, %v3400_v18, %v13230_v43 }
0x17d2   :  { %v3762_v50 = vrot.slane %v3683_v54, 4  ;;  %v3764_v57 = vrot.slane %v3754_v12, 4 }
0x17d3   :  { %v3773_v59 = vsel %vm853_vm9, %v3467_v10, %v3761_v17  ;;  %v3775_v38 = vsel %vm853_vm9, %v3538_v21, %v3763_v16  ;;  %v3777_v10 = vld [vmem:[#allocation6] sm:$0xf] }
0x17d4   :  { %v8703_v7 = vpack.c.bf16 %v3773_v59, %v3769_v40  ;;  %v8707_v1 = vpack.c.bf16 %v3775_v38, %v3771_v28  ;;  %v3774_v22 = vsel %vm853_vm9, %v3469_v44, %v3762_v50  ;;  %v3776_v30 = vsel %vm853_vm9, %v3540_v53, %v3764_v57  ;;  %v3780_v57 = vpop.permute.xlu1 %3779 }
0x17d5   :  { %v8701_v54 = vpack.c.bf16 %v3774_v22, %v3770_v37  ;;  %v8705_v25 = vpack.c.bf16 %v3776_v30, %v3772_v58  ;;  %v13231_v53 = vmov 4   ;;  %v9214_v22 = vld [vmem:[%s13023_s21 + $0x8] sm:$0xff] }
0x17d6   :  { %9197 = vset.pattern.permute.xlu1 %v13231_v53  ;;  %v3959_v53 = vld [vmem:[#allocation9] sm:$0xf] }
0x17d7   :  { %8702 = vmatprep.subr.bf16.mxu1 %v8701_v54 }
0x17d8   :  { %8704 = vmatpush1.bf16.msra.mxu1 %v8703_v7 }
0x17d9   :  { %8706 = vmatprep.subr.bf16.mxu1 %v8705_v25  ;;  %v13234_v25 = vld [vmem:[#allocation25_spill] sm:$0xff] }
0x17db   :  { %7673 = vmatmul.mubr.msk.f32.vlgmr.msra.gmra.mrb[28].mxu1 %vm2474_vm10, %v3777_v10 }
0x17dc   :  { %8708 = vmatpush1.bf16.msra.mxu1 %v8707_v1  ;;  %3920 = vmatprep.mubr.f32.mxu1 %v13077_v61 }
0x17df   :  { %7674 = vmatmul.mubr.msk.f32.vlgmr.msra.gmra.mrb[30].mxu1 %vm2474_vm10, %v3777_v10 }
0x17e0   :  { %4104 = vmatprep.mubr.f32.mxu1 %v13077_v61 }
0x18ae   :  { %v3851_v21 = vpop.f32.mrb[28].mxu1 }
0x18af   :  { %v3852_v37 = vadd.f32 %v3851_v21, %v3780_v57  ;;  %v3853_v16 = vpop.f32.mrb[29].mxu1 }
0x18b0   :  { %v3854_v50 = vadd.f32 %v3853_v16, %v3780_v57 }
0x18b1   :  { %vm3927_vm12 = vcmp.ge.f32.partialorder %v3852_v37, 0.0  ;;  %v3931_v18 = vmul.f32 0.2, %v3852_v37 }
0x18b2   :  { %vm3928_vm3 = vcmp.ge.f32.partialorder %v3854_v50, 0.0  ;;  %v3932_v17 = vmul.f32 0.2, %v3854_v50  ;;  %v3922_v44 = vpop.f32.mrb[30].mxu1 }
0x18b3   :  { %v3935_v0 = vsel %vm3927_vm12, %v3852_v37, %v3931_v18  ;;  %v3923_v12 = vadd.f32 %v3922_v44, %v3780_v57  ;;  %v3924_v42 = vpop.f32.mrb[31].mxu1 }
0x18b4   :  { %v3939_v40 = vadd.f32 %v9213_v27, %v3935_v0  ;;  %v3936_v59 = vsel %vm3928_vm3, %v3854_v50, %v3932_v17  ;;  %v3925_v8 = vadd.f32 %v3924_v42, %v3780_v57  ;;  %v13237_v50 = vld [vmem:[#allocation27_spill] sm:$0xff]  ;;  %v13239_v17 = vld [vmem:[#allocation28_spill] sm:$0xff]  ;;  %v13243_v42 = vld [vmem:[#allocation30_spill] sm:$0xff] }
0x18b5   :  { %v3940_v28 = vadd.f32 %v3936_v59, %v13232_v60  ;;  %vm3929_vm8 = vcmp.ge.f32.partialorder %v3923_v12, 0.0  ;;  %v3933_v38 = vmul.f32 0.2, %v3923_v12  ;;  %v13241_v0 = vld [vmem:[#allocation31_spill] sm:$0xff] }
0x18b6   :  { %vm3930_vm4 = vcmp.ge.f32.partialorder %v3925_v8, 0.0  ;;  %v3934_v5 = vmul.f32 0.2, %v3925_v8  ;;  %v3947_v43 = vrot.slane %v3939_v40, 4  ;;  %v13246_v59 = vld [vmem:[#allocation35_spill] sm:$0xff] }
0x18b7   :  { %v7597_v58 = vcombine.low %v3939_v40, %v3940_v28  ;;  %v3937_v7 = vsel %vm3929_vm8, %v3923_v12, %v3933_v38  ;;  %v3948_v1 = vrot.slane %v3940_v28, 4  ;;  %v13242_v12 = vld [vmem:[#allocation29_spill] sm:$0xff]  ;;  %v13250_v38 = vld [vmem:[#allocation39_spill] sm:$0xff] }
0x18b8   :  { %v3941_v30 = vadd.f32 %v9214_v22, %v3937_v7  ;;  %v3938_v54 = vsel %vm3930_vm4, %v3925_v8, %v3934_v5  ;;  %v11559_v57 = vsel %vm853_vm9, %v9213_v27, %v3947_v43  ;;  %v13244_v27 = vld [vmem:[#allocation32_spill] sm:$0xff]  ;;  %v13245_v40 = vld [vmem:[#allocation33_spill] sm:$0xff]  ;;  %v13247_v8 = vld [vmem:[#allocation34_spill] sm:$0xff] }
0x18b9   :  { %7601 = vst [vmem:[%s13233_s7] sm:$0xff] %v7597_v58  ;;  %v3942_v10 = vadd.f32 %v3938_v54, %v13234_v25  ;;  %v11555_v55 = vsel %vm853_vm9, %v13232_v60, %v3948_v1  ;;  %13236 = vst [vmem:[#allocation97_spill] sm:$0xff] %v11559_v57  ;;  %v13248_v60 = vld [vmem:[#allocation36_spill] sm:$0xff]  ;;  %v13249_v28 = vld [vmem:[#allocation37_spill] sm:$0xff] }
0x18ba   :  { %13235 = vst [vmem:[#allocation133_spill] sm:$0xff] %v11555_v55  ;;  %3969 = vmatprep.subr.mxu0 %v11555_v55  ;;  %v3949_v21 = vrot.slane %v3941_v30, 4  ;;  %v13251_v5 = vld [vmem:[#allocation38_spill] sm:$0xff]  ;;  %v13252_v43 = vld [vmem:[#allocation41_spill] sm:$0xff]  ;;  %v13253_v58 = vld [vmem:[#allocation40_spill] sm:$0xff] }
0x18bb   :  { %v7598_v37 = vcombine.low %v3941_v30, %v3942_v10  ;;  %3970 = vmatpush1.msra.mxu0 %v11559_v57  ;;  %v3950_v16 = vrot.slane %v3942_v10, 4  ;;  %v13254_v7 = vld [vmem:[#allocation43_spill] sm:$0xff]  ;;  %v13255_v1 = vld [vmem:[#allocation42_spill] sm:$0xff]  ;;  %v13257_v30 = vld [vmem:[#allocation44_spill] sm:$0xff] }
0x18bc   :  { %7675 = vmatmul.mubr.msk.f32.vlgmr.msra.gmra.mrb[26].mxu0 %vm1096_vm14, %v3959_v53  ;;  %8710 = vmatprep.subr.bf16.mxu0 %v13237_v50  ;;  %v11574_v44 = vsel %vm853_vm9, %v9214_v22, %v3949_v21  ;;  %v13256_v22 = vld [vmem:[#allocation45_spill] sm:$0xff]  ;;  %v13258_v54 = vld [vmem:[#allocation47_spill] sm:$0xff]  ;;  %v13260_v10 = vld [vmem:[#allocation48_spill] sm:$0xff] }
0x18bd   :  { %7602 = vst [vmem:[%s13233_s7 + $0x8] sm:$0xff] %v7598_v37  ;;  %v11569_v18 = vsel %vm853_vm9, %v13234_v25, %v3950_v16  ;;  %8712 = vmatpush3.bf16.msra.mxu0 %v13239_v17  ;;  %13240 = vst [vmem:[#allocation99_spill] sm:$0xff] %v11574_v44  ;;  %v13259_v25 = vld [vmem:[#allocation46_spill] sm:$0xff]  ;;  %v13262_v21 = vld [vmem:[#allocation51_spill] sm:$0xff]  ;;  %s13316_s7 = smov 27  }
0x18be   :  { %13238 = vst [vmem:[#allocation98_spill] sm:$0xff] %v11569_v18  ;;  %4040 = vmatprep.subr.mxu1 %v11569_v18  ;;  %8714 = vmatprep.subr.bf16.mxu0 %v13241_v0  ;;  %v13263_v37 = vld [vmem:[#allocation50_spill] sm:$0xff]  ;;  %v13264_v16 = vld [vmem:[#allocation52_spill] sm:$0xff]  ;;  %v13265_v50 = vld [vmem:[#allocation53_spill] sm:$0xff] }
0x18bf   :  { %4041 = vmatpush1.msra.mxu1 %v11574_v44  ;;  %v13266_v17 = vld [vmem:[#allocation55_spill] sm:$0xff]  ;;  %v13267_v0 = vld [vmem:[#allocation54_spill] sm:$0xff]  ;;  %v13298_v57 = vld [vmem:[#allocation73_spill] sm:$0xff] }
0x18c0   :  { %7676 = vmatmul.mubr.msk.f32.vlgmr.msra.gmra.mrb[32].mxu1 %vm1096_vm14, %v3959_v53  ;;  %8742 = vmatprep.subr.bf16.mxu1 %v13242_v12  ;;  %v13261_v53 = vld [vmem:[#allocation49_spill] sm:$0xff]  ;;  %v13268_v12 = vld [vmem:[#allocation56_spill] sm:$0xff] }
0x18c1   :  { %8744 = vmatpush3.bf16.msra.mxu1 %v13243_v42  ;;  %8716 = vmatpush3.bf16.msra.mxu0 %v13244_v27  ;;  %v13269_v42 = vld [vmem:[#allocation57_spill] sm:$0xff]  ;;  %v13270_v27 = vld [vmem:[#allocation58_spill] sm:$0xff] }
0x18c2   :  { %8746 = vmatprep.subr.bf16.mxu1 %v13245_v40  ;;  %8718 = vmatprep.subr.bf16.mxu0 %v13246_v59  ;;  %v3964_v40 = vpop.permute.xlu1 %3963 }
0x18c5   :  { %8748 = vmatpush3.bf16.msra.mxu1 %v13247_v8  ;;  %8720 = vmatpush3.bf16.msra.mxu0 %v13248_v60 }
0x18c6   :  { %8750 = vmatprep.subr.bf16.mxu1 %v13249_v28  ;;  %8722 = vmatprep.subr.bf16.mxu0 %v13250_v38 }
0x18c9   :  { %8752 = vmatpush3.bf16.msra.mxu1 %v13251_v5  ;;  %8724 = vmatpush3.bf16.msra.mxu0 %v13252_v43 }
0x18ca   :  { %8754 = vmatprep.subr.bf16.mxu1 %v13253_v58  ;;  %8726 = vmatprep.subr.bf16.mxu0 %v13254_v7 }
0x18cd   :  { %8756 = vmatpush3.bf16.msra.mxu1 %v13255_v1  ;;  %8728 = vmatpush3.bf16.msra.mxu0 %v13256_v22 }
0x18ce   :  { %8758 = vmatprep.subr.bf16.mxu1 %v13257_v30  ;;  %8730 = vmatprep.subr.bf16.mxu0 %v13258_v54 }
0x18d1   :  { %8760 = vmatpush3.bf16.msra.mxu1 %v13259_v25  ;;  %8732 = vmatpush3.bf16.msra.mxu0 %v13260_v10 }
0x18d2   :  { %8762 = vmatprep.subr.bf16.mxu1 %v13261_v53  ;;  %8734 = vmatprep.subr.bf16.mxu0 %v13262_v21 }
0x18d5   :  { %8764 = vmatpush3.bf16.msra.mxu1 %v13263_v37  ;;  %8736 = vmatpush3.bf16.msra.mxu0 %v13264_v16 }
0x18d6   :  { %8766 = vmatprep.subr.bf16.mxu1 %v13265_v50  ;;  %8738 = vmatprep.subr.bf16.mxu0 %v13266_v17 }
0x18d9   :  { %8768 = vmatpush3.bf16.msra.mxu1 %v13267_v0  ;;  %8740 = vmatpush3.bf16.msra.mxu0 %v13268_v12 }
0x18da   :  { %8770 = vmatprep.subr.bf16.mxu1 %v13269_v42  ;;  %8773 = vmatprep.subr.bf16.mxu0 %v13209_v34 }
0x18dd   :  { %8772 = vmatpush3.bf16.msra.mxu1 %v13270_v27 }
0x18de   :  { %8797 = vmatprep.subr.bf16.mxu1 %v13209_v34 }
0x198f   :  { %v4035_v59 = vpop.f32.mrb[26].mxu0 }
0x1990   :  { %v4036_v8 = vadd.f32 %v4035_v59, %v3964_v40  ;;  %v4037_v60 = vpop.f32.mrb[27].mxu0 }
0x1991   :  { %v4038_v28 = vadd.f32 %v4037_v60, %v3964_v40 }
0x1992   :  { %vm4111_vm12 = vcmp.ge.f32.partialorder %v4036_v8, 0.0  ;;  %v4115_v38 = vmul.f32 0.2, %v4036_v8 }
0x1993   :  { %vm4112_vm3 = vcmp.ge.f32.partialorder %v4038_v28, 0.0  ;;  %v4116_v5 = vmul.f32 0.2, %v4038_v28  ;;  %v4106_v43 = vpop.f32.mrb[32].mxu1 }
0x1994   :  { %v4107_v58 = vadd.f32 %v4106_v43, %v3964_v40  ;;  %v4108_v7 = vpop.f32.mrb[33].mxu1  ;;  %v11610_v1 = vsel %vm4111_vm12, %v4036_v8, %v4115_v38  ;;  %vm13285_vm12 = vcmask 252928  }
0x1995   :  { %13271 = vst [vmem:[#allocation100_spill] sm:$0xff] %v11610_v1  ;;  %v11612_v22 = vsel %vm4112_vm3, %v4038_v28, %v4116_v5  ;;  %v4109_v30 = vadd.f32 %v4108_v7, %v3964_v40  ;;  %vm13286_vm3 = vcmask 228352  }
0x1996   :  { %13272 = vst [vmem:[#allocation88_spill] sm:$0xff] %v11612_v22  ;;  %vm4113_vm8 = vcmp.ge.f32.partialorder %v4107_v58, 0.0  ;;  %v4117_v54 = vmul.f32 0.2, %v4107_v58  ;;  %v9175_v25 = vpack.i.bf16 %v11612_v22, %v11610_v1 }
0x1997   :  { %vm4114_vm4 = vcmp.ge.f32.partialorder %v4109_v30, 0.0  ;;  %v4118_v10 = vmul.f32 0.2, %v4109_v30 }
0x1998   :  { %v11616_v53 = vsel %vm4113_vm8, %v4107_v58, %v4117_v54  ;;  %9176 = vrot.lane.b32.xlu0 %v9175_v25, %s9496_s18  ;;  %vm13291_vm8 = vcmask 15360  }
0x1999   :  { %13273 = vst [vmem:[#allocation77_spill] sm:$0xff] %v11616_v53  ;;  %v11619_v21 = vsel %vm4114_vm4, %v4109_v30, %v4118_v10  ;;  %vm13294_vm4 = vcmask 23552  }
0x199a   :  { %13274 = vst [vmem:[#allocation129_spill] sm:$0xff] %v11619_v21  ;;  %v9180_v37 = vpack.i.bf16 %v11619_v21, %v11616_v53 }
0x199c   :  { %9181 = vrot.lane.b32.xlu1 %v9180_v37, %s9496_s18 }
0x1a0a   :  { %v9177_v16 = vpop.permute.xlu0 %9176 }
0x1a0b   :  { %v9179_v50 = vunpack.i.h.bf16 %v9177_v16  ;;  %v9178_v17 = vunpack.i.l.bf16 %v9177_v16 }
0x1a0d   :  { %v4135_v12 = vsel %vm385_vm0, %v9178_v17, %v9179_v50 }
0x1a0e   :  { %v9182_v0 = vpop.permute.xlu1 %9181  ;;  %v4144_v60 = vmax.f32 %v11610_v1, %v4135_v12 }
0x1a0f   :  { %v9184_v42 = vunpack.i.h.bf16 %v9182_v0  ;;  %v9183_v27 = vunpack.i.l.bf16 %v9182_v0 }
0x1a11   :  { %v4136_v40 = vsel %vm385_vm0, %v9179_v50, %v9183_v27  ;;  %v4137_v59 = vsel %vm385_vm0, %v9183_v27, %v9184_v42  ;;  %v4143_v8 = vsel %vm385_vm0, %v9184_v42, %v9178_v17 }
0x1a12   :  { %v4145_v28 = vmax.f32 %v11612_v22, %v4136_v40  ;;  %v4146_v38 = vmax.f32 %v11616_v53, %v4137_v59  ;;  %v4147_v5 = vmax.f32 %v11619_v21, %v4143_v8  ;;  %v13275_v59 = vld [vmem:[#allocation59_spill] sm:$0xff] }
0x1a13   :  { %v13276_v8 = vld [vmem:[#allocation67_spill] sm:$0xff] }
0x1a14   :  { %v9190_v43 = vpack.i.bf16 %v4147_v5, %v4146_v38  ;;  %v9185_v58 = vpack.i.bf16 %v4145_v28, %v4144_v60 }
0x1a16   :  { %9191 = vrot.lane.b32.xlu1 %v9190_v43, %s9497_s10  ;;  %9186 = vrot.lane.b32.xlu0 %v9185_v58, %s9497_s10  ;;  %v13281_v43 = vld [vmem:[#allocation63_spill] sm:$0xff]  ;;  %v13282_v58 = vld [vmem:[#allocation64_spill] sm:$0xff] }
0x1a88   :  { %v9192_v7 = vpop.permute.xlu1 %9191  ;;  %v9187_v30 = vpop.permute.xlu0 %9186 }
0x1a89   :  { %v9194_v54 = vunpack.i.h.bf16 %v9192_v7  ;;  %v9193_v25 = vunpack.i.l.bf16 %v9192_v7  ;;  %v9189_v10 = vunpack.i.h.bf16 %v9187_v30  ;;  %v9188_v37 = vunpack.i.l.bf16 %v9187_v30  ;;  %v13283_v7 = vld [vmem:[#allocation65_spill] sm:$0xff]  ;;  %v13284_v30 = vld [vmem:[#allocation66_spill] sm:$0xff] }
0x1a8b   :  { %v4162_v16 = vsel %vm411_vm1, %v9193_v25, %v9194_v54  ;;  %v4160_v50 = vsel %vm411_vm1, %v9188_v37, %v9189_v10  ;;  %v4161_v17 = vsel %vm411_vm1, %v9189_v10, %v9193_v25  ;;  %v4168_v0 = vsel %vm411_vm1, %v9194_v54, %v9188_v37 }
0x1a8c   :  { %v4170_v12 = vmax.f32 %v4145_v28, %v4161_v17  ;;  %v4172_v42 = vmax.f32 %v4147_v5, %v4168_v0  ;;  %v4169_v27 = vmax.f32 %v4144_v60, %v4160_v50  ;;  %v4171_v40 = vmax.f32 %v4146_v38, %v4162_v16  ;;  %v13277_v60 = vld [vmem:[#allocation60_spill] sm:$0xff]  ;;  %v13279_v38 = vld [vmem:[#allocation61_spill] sm:$0xff]  ;;  %v13280_v5 = vld [vmem:[#allocation62_spill] sm:$0xff] }
0x1a8d   :  { %v13278_v28 = vld [vmem:[#allocation68_spill] sm:$0xff] }
0x1a8e   :  { %4237 = vmatprep.mubr.f32.mxu0 %v4170_v12  ;;  %4307 = vmatprep.mubr.f32.mxu1 %v4172_v42 }
0x1a8f   :  { %4238 = vmatmul.mubr.f32.vlgmr.msra.gmra.mrb[28].mxu0 %v4169_v27  ;;  %4308 = vmatmul.mubr.f32.vlgmr.msra.gmra.mrb[34].mxu1 %v4171_v40 }
0x1a90   :  { %8775 = vmatpush3.bf16.msra.mxu0 %v13275_v59  ;;  %8206 = vmatprep.mubr.msk.f32.mxu0 %vm9499_vm2, %v13077_v61 }
0x1a91   :  { %8776 = vmatprep.subr.bf16.mxu0 %v13209_v34  ;;  %8799 = vmatpush3.bf16.msra.mxu1 %v13276_v8 }
0x1a92   :  { %8800 = vmatprep.subr.bf16.mxu1 %v13209_v34  ;;  %8217 = vmatprep.mubr.msk.f32.mxu1 %vm9499_vm2, %v13077_v61 }
0x1a94   :  { %8778 = vmatpush3.bf16.msra.mxu0 %v13277_v60 }
0x1a95   :  { %8779 = vmatprep.subr.bf16.mxu0 %v13209_v34  ;;  %8802 = vmatpush3.bf16.msra.mxu1 %v13278_v28 }
0x1a96   :  { %8803 = vmatprep.subr.bf16.mxu1 %v13209_v34 }
0x1a98   :  { %8781 = vmatpush3.bf16.msra.mxu0 %v13279_v38 }
0x1a99   :  { %8782 = vmatprep.subr.bf16.mxu0 %v13209_v34 }
0x1a9c   :  { %8784 = vmatpush3.bf16.msra.mxu0 %v13280_v5 }
0x1a9d   :  { %8785 = vmatprep.subr.bf16.mxu0 %v13209_v34 }
0x1aa0   :  { %8787 = vmatpush3.bf16.msra.mxu0 %v13281_v43 }
0x1aa1   :  { %8788 = vmatprep.subr.bf16.mxu0 %v13209_v34 }
0x1aa4   :  { %8790 = vmatpush3.bf16.msra.mxu0 %v13282_v58 }
0x1aa5   :  { %8791 = vmatprep.subr.bf16.mxu0 %v13209_v34 }
0x1aa8   :  { %8793 = vmatpush3.bf16.msra.mxu0 %v13283_v7 }
0x1aa9   :  { %8794 = vmatprep.subr.bf16.mxu0 %v13209_v34 }
0x1aac   :  { %8796 = vmatpush3.bf16.msra.mxu0 %v13284_v30 }
0x1aad   :  { %8251 = vmatprep.subr.mxu0 %v13077_v61 }
0x1b62   :  { %v7901_v54 = vpop.f32.mrb[28].mxu0  ;;  %v7936_v25 = vpop.f32.mrb[34].mxu1 }
0x1b63   :  { %v7902_v10 = vpop.f32.mrb[29].mxu0  ;;  %v7937_v37 = vpop.f32.mrb[35].mxu1 }
0x1b64   :  { %v7903_v16 = vadd.f32 %v7902_v10, %v7901_v54  ;;  %v7938_v50 = vadd.f32 %v7937_v37, %v7936_v25  ;;  %v9537_v25 = vmov 8   ;;  %v11696_v10 = vld [vmem:[#allocation2] sm:$0xf] }
0x1b65   :  { %9195 = vset.pattern.permute.xlu0 %v9537_v25  ;;  %v13296_v25 = vld [vmem:[#allocation72_spill] sm:$0xff] }
0x1b66   :  { %v11662_v17 = vadd.f32 %v7938_v50, %v7903_v16 }
0x1b68   :  { %4314 = vrot.lane.b32.xlu0 %v11662_v17, %s9496_s18 }
0x1bda   :  { %v4315_v0 = vpop.permute.xlu0 %4314 }
0x1bdb   :  { %v4317_v12 = vmax.f32 %v11662_v17, %v4315_v0 }
0x1bdd   :  { %4319 = vrot.lane.b32.xlu1 %v4317_v12, %s9501_s14 }
0x1c4f   :  { %v4320_v42 = vpop.permute.xlu1 %4319 }
0x1c50   :  { %v4322_v27 = vmax.f32 %v4317_v12, %v4320_v42 }
0x1c52   :  { %8207 = vmatmul.mubr.f32.vlgmr.msra.gmra.mrb[30].mxu0 %v4322_v27  ;;  %v13292_v27 = vld [vmem:[#allocation69_spill] sm:$0xff] }
0x1c53   :  { %8253 = vmatprep.mubr.msk.f32.mxu0 %vm9499_vm2, %v13077_v61 }
0x1d25   :  { %v11670_v40 = vpop.f32.mrb[30].mxu0 }
0x1d26   :  { %4397 = vrot.lane.b32.xlu1 %v11670_v40, %s9502_s22  ;;  %4394 = vrot.lane.b32.xlu0 %v11670_v40, %s9496_s18  ;;  %v8208_v59 = vpop.f32.mrb[31].mxu0 }
0x1d98   :  { %v4398_v8 = vpop.permute.xlu1 %4397  ;;  %v4395_v60 = vpop.permute.xlu0 %4394 }
0x1d99   :  { %v4400_v28 = vsel %vm13285_vm12, %v4395_v60, %v4398_v8  ;;  %v13293_v8 = vld [vmem:[#allocation70_spill] sm:$0xff]  ;;  %vm13297_vm12 = vcmask 56320  }
0x1d9a   :  { %v4401_v38 = vmax.f32 %v11670_v40, %v4400_v28 }
0x1d9c   :  { %4406 = vrot.lane.b32.xlu1 %v4401_v38, %s9503_s27  ;;  %4403 = vrot.lane.b32.xlu0 %v4401_v38, %s9504_s13 }
0x1e0e   :  { %v4407_v5 = vpop.permute.xlu1 %4406  ;;  %v4404_v43 = vpop.permute.xlu0 %4403 }
0x1e0f   :  { %v4409_v58 = vsel %vm13286_vm3, %v4404_v43, %v4407_v5  ;;  %vm13299_vm3 = vcmask 48128  }
0x1e10   :  { %v4410_v7 = vmax.f32 %v4401_v38, %v4409_v58 }
0x1e12   :  { %8218 = vmatmul.mubr.msk.f32.vlgmr.msra.gmra.mrb[36].mxu1 %vm671_vm5, %v4410_v7  ;;  %v13295_v7 = vld [vmem:[#allocation71_spill] sm:$0xff] }
0x1e13   :  { %8230 = vmatprep.mubr.msk.f32.mxu1 %vm9499_vm2, %v13077_v61 }
0x1ee5   :  { %v4480_v30 = vpop.f32.mrb[36].mxu1 }
0x1ee6   :  { %4499 = vrot.lane.b32.xlu1 %v4480_v30, %s9505_s15  ;;  %4496 = vrot.lane.b32.xlu0 %v4480_v30, %s9506_s28  ;;  %v8219_v54 = vpop.f32.mrb[37].mxu1 }
0x1eea   :  { %4507 = vrot.lane.b32.xlu1 %v4480_v30, %s9507_s3  ;;  %4504 = vrot.lane.b32.xlu0 %v4480_v30, %s9508_s30 }
0x1eee   :  { %4491 = vrot.lane.b32.xlu1 %v4480_v30, %s9509_s24  ;;  %4488 = vrot.lane.b32.xlu0 %v4480_v30, %s9510_s17 }
0x1ef2   :  { %4517 = vrot.lane.b32.xlu1 %v4480_v30, %s9511_s20  ;;  %4514 = vrot.lane.b32.xlu0 %v4480_v30, %s9496_s18 }
0x1ef6   :  { %4526 = vrot.lane.b32.xlu1 %v4480_v30, %s13287_s25  ;;  %4523 = vrot.lane.b32.xlu0 %v4480_v30, %s13288_s0 }
0x1efa   :  { %4534 = vrot.lane.b32.xlu1 %v4480_v30, %s13289_s23  ;;  %4531 = vrot.lane.b32.xlu0 %v4480_v30, %s13290_s11 }
0x1efe   :  { %4557 = vperm.xlu0 %9195, %v11696_v10  }
0x1f58   :  { %v4500_v37 = vpop.permute.xlu1 %4499  ;;  %v4497_v16 = vpop.permute.xlu0 %4496 }
0x1f59   :  { %v4502_v50 = vsel %vm13291_vm8, %v4497_v16, %v4500_v37  ;;  %vm13303_vm8 = vcmask 39936  }
0x1f5a   :  { %v4503_v59 = vmul.f32 %v4502_v50, %v13292_v27 }
0x1f5c   :  { %v4508_v0 = vpop.permute.xlu1 %4507  ;;  %v4505_v12 = vpop.permute.xlu0 %4504  ;;  %v4540_v58 = vrot.slane %v4503_v59, 4 }
0x1f5d   :  { %v4510_v42 = vsel %vm780_vm7, %v4505_v12, %v4508_v0 }
0x1f5e   :  { %v4512_v60 = vmul.f32 %v4510_v42, %v13293_v8  ;;  %v4511_v54 = vmul.f32 %v4510_v42, %v13295_v7 }
0x1f60   :  { %v4543_v28 = vrot.slane %v4512_v60, 4  ;;  %v4492_v38 = vpop.permute.xlu1 %4491  ;;  %v4489_v5 = vpop.permute.xlu0 %4488 }
0x1f61   :  { %v4494_v43 = vsel %vm13294_vm4, %v4489_v5, %v4492_v38  ;;  %v13300_v38 = vld [vmem:[#allocation74_spill] sm:$0xff] }
0x1f62   :  { %v4495_v44 = vmul.f32 %v4494_v43, %v13296_v25  ;;  %v4552_v37 = vsel %vm853_vm9, %v4511_v54, %v4543_v28  ;;  %v13301_v28 = vld [vmem:[#allocation75_spill] sm:$0xff] }
0x1f63   :  { %v4513_v43 = vmul.f32 %v4480_v30, %v13301_v28  ;;  %v7678_v30 = vld [vmem:[%s13078_s19 + $0x20] sm:$0xf] }
0x1f64   :  { %v4551_v16 = vsel %vm853_vm9, %v4495_v44, %v4540_v58  ;;  %v4518_v18 = vpop.permute.xlu1 %4517  ;;  %v4515_v0 = vpop.permute.xlu0 %4514  ;;  %v13302_v44 = vld [vmem:[#allocation76_spill] sm:$0xff] }
0x1f65   :  { %v4520_v50 = vsel %vm13297_vm12, %v4515_v0, %v4518_v18  ;;  %v8804_v12 = vpack.c.bf16 %v4552_v37, %v4551_v16  ;;  %vm13304_vm12 = vcmask 15360  }
0x1f66   :  { %v4521_v60 = vmul.f32 %v4520_v50, %v13298_v57  ;;  %v4522_v58 = vmul.f32 %v4520_v50, %v13302_v44 }
0x1f67   :  { %8805 = vmatpush3.bf16.msra.mxu1 %v8804_v12 }
0x1f68   :  { %v4527_v55 = vpop.permute.xlu1 %4526  ;;  %v4524_v53 = vpop.permute.xlu0 %4523  ;;  %8806 = vmatprep.subr.bf16.mxu1 %v13209_v34  ;;  %v4546_v59 = vrot.slane %v4521_v60, 4 }
0x1f69   :  { %v4529_v42 = vsel %vm13299_vm3, %v4524_v53, %v4527_v55  ;;  %v11722_v55 = vld [vmem:[%s12644_s12 + $0x8] ss:$0 sm:$0xff]  ;;  %vm13305_vm3 = vcmask 23552   ;;  %s13468_s12 = sld [smem:[#allocation172_spill]] }
0x1f6a   :  { %v4530_v5 = vmul.f32 %v4529_v42, %v13300_v38  ;;  %v4553_v37 = vsel %vm853_vm9, %v4513_v43, %v4546_v59  ;;  %v9538_v43 = vmov 9  }
0x1f6b   :  { %9196 = vset.pattern.permute.xlu0 %v9538_v43 }
0x1f6c   :  { %v4549_v54 = vrot.slane %v4530_v5, 4  ;;  %v4535_v1 = vpop.permute.xlu1 %4534  ;;  %v4532_v18 = vpop.permute.xlu0 %4531 }
0x1f6d   :  { %v4537_v12 = vsel %vm13303_vm8, %v4532_v18, %v4535_v1  ;;  %vm13306_vm8 = vcmask 56320  }
0x1f6e   :  { %v4554_v16 = vsel %vm853_vm9, %v4522_v58, %v4549_v54  ;;  %v4538_v53 = vmul.f32 %v11722_v55, %v4537_v12 }
0x1f6f   :  { %v8807_v0 = vpack.c.bf16 %v4554_v16, %v4553_v37 }
0x1f71   :  { %8808 = vmatpush3.bf16.msra.mxu1 %v8807_v0 }
0x1f72   :  { %8228 = vmatprep.subr.mxu1 %v13077_v61 }
0x1f75   :  { %8229 = vmatpush3.msk.msra.mxu1 %vm853_vm9, %v4538_v53 }
0x1f76   :  { %8231 = vmatmul.mubr.msk.f32.vlgmr.msra.gmra.mrb[38].mxu1 %vm863_vm13, %v7678_v30  ;;  %8809 = vmatprep.subr.bf16.mxu1 %v13209_v34 }
0x1f77   :  { %8243 = vmatprep.mubr.msk.f32.mxu1 %vm9499_vm2, %v13077_v61 }
0x1f7d   :  { %v4558_v1 = vpop.permute.xlu0 %4557 }
0x2049   :  { %v4632_v50 = vpop.f32.mrb[38].mxu1 }
0x204a   :  { %v4633_v60 = vadd.f32 %v4632_v50, %v4558_v1  ;;  %v8232_v42 = vpop.f32.mrb[39].mxu1 }
0x204c   :  { %vm4636_vm4 = vcmp.ge.f32.partialorder %v4633_v60, 0.0  ;;  %v4637_v59 = vmul.f32 0.2, %v4633_v60 }
0x204e   :  { %v4638_v5 = vsel %vm4636_vm4, %v4633_v60, %v4637_v59  ;;  %vm13307_vm4 = vcmask 48128  }
0x204f   :  { %4658 = vrot.lane.b32.xlu0 %v4638_v5, %s9508_s30  ;;  %4650 = vrot.lane.b32.xlu1 %v4638_v5, %s9506_s28  ;;  %s13310_s28 = smov 4  }
0x2053   :  { %4642 = vrot.lane.b32.xlu0 %v4638_v5, %s9510_s17  ;;  %4653 = vrot.lane.b32.xlu1 %v4638_v5, %s9505_s15 }
0x2057   :  { %4668 = vrot.lane.b32.xlu0 %v4638_v5, %s9496_s18  ;;  %4661 = vrot.lane.b32.xlu1 %v4638_v5, %s9507_s3 }
0x205b   :  { %4677 = vrot.lane.b32.xlu0 %v4638_v5, %s13288_s0  ;;  %4645 = vrot.lane.b32.xlu1 %v4638_v5, %s9509_s24  ;;  %s13313_s0 = smov 101  }
0x205f   :  { %4685 = vrot.lane.b32.xlu0 %v4638_v5, %s13290_s11  ;;  %4671 = vrot.lane.b32.xlu1 %v4638_v5, %s9511_s20 }
0x2063   :  { %4680 = vrot.lane.b32.xlu1 %v4638_v5, %s13287_s25  ;;  %4710 = vperm.xlu0 %9196, %v11696_v10   ;;  %s13312_s25 = smov 97  }
0x2067   :  { %4688 = vrot.lane.b32.xlu1 %v4638_v5, %s13289_s23 }
0x20c1   :  { %v4651_v58 = vpop.permute.xlu1 %4650  ;;  %v4659_v54 = vpop.permute.xlu0 %4658 }
0x20c5   :  { %v4654_v18 = vpop.permute.xlu1 %4653  ;;  %v4643_v16 = vpop.permute.xlu0 %4642 }
0x20c6   :  { %v4656_v37 = vsel %vm13304_vm12, %v4651_v58, %v4654_v18  ;;  %vm13308_vm12 = vcmask 39936  }
0x20c7   :  { %v4657_v53 = vmul.f32 %v4656_v37, %v13292_v27 }
0x20c9   :  { %v4662_v0 = vpop.permute.xlu1 %4661  ;;  %v4694_v42 = vrot.slane %v4657_v53, 4  ;;  %v4669_v59 = vpop.permute.xlu0 %4668 }
0x20ca   :  { %v4664_v12 = vsel %vm780_vm7, %v4659_v54, %v4662_v0 }
0x20cb   :  { %v4666_v30 = vmul.f32 %v4664_v12, %v13293_v8  ;;  %v4665_v43 = vmul.f32 %v4664_v12, %v13295_v7  ;;  %v4667_v12 = vmul.f32 %v4638_v5, %v13301_v28  ;;  %v9216_v28 = vld [vmem:[#allocation15] sm:$0xff] }
0x20cd   :  { %v4697_v1 = vrot.slane %v4666_v30, 4  ;;  %v4646_v50 = vpop.permute.xlu1 %4645  ;;  %v4678_v37 = vpop.permute.xlu0 %4677 }
0x20ce   :  { %v4648_v60 = vsel %vm13305_vm3, %v4643_v16, %v4646_v50 }
0x20cf   :  { %v4649_v21 = vmul.f32 %v4648_v60, %v13296_v25  ;;  %v4706_v58 = vsel %vm853_vm9, %v4665_v43, %v4697_v1 }
0x20d1   :  { %v4705_v18 = vsel %vm853_vm9, %v4649_v21, %v4694_v42  ;;  %v4672_v22 = vpop.permute.xlu1 %4671  ;;  %v4686_v1 = vpop.permute.xlu0 %4685 }
0x20d2   :  { %v4674_v54 = vsel %vm13306_vm8, %v4669_v59, %v4672_v22  ;;  %v8810_v27 = vpack.c.bf16 %v4706_v58, %v4705_v18  ;;  %v11779_v18 = vld [vmem:[#allocation7] sm:$0xf] }
0x20d3   :  { %v4675_v8 = vmul.f32 %v4674_v54, %v13298_v57  ;;  %v4676_v21 = vmul.f32 %v4674_v54, %v13302_v44  ;;  %4874 = vperm.xlu1 %9197, %v11779_v18  }
0x20d4   :  { %8811 = vmatpush3.bf16.msra.mxu1 %v8810_v27 }
0x20d5   :  { %v4681_v0 = vpop.permute.xlu1 %4680  ;;  %8812 = vmatprep.subr.bf16.mxu1 %v13209_v34  ;;  %v4700_v7 = vrot.slane %v4675_v8, 4 }
0x20d6   :  { %v4683_v16 = vsel %vm13307_vm4, %v4678_v37, %v4681_v0  ;;  %v4870_v37 = vld [vmem:[#allocation4 + $0xc] sm:$0xf]  ;;  %vm13318_vm4 = vcmask 31744  }
0x20d7   :  { %v4684_v25 = vmul.f32 %v4683_v16, %v13300_v38  ;;  %v4707_v22 = vsel %vm853_vm9, %v4667_v12, %v4700_v7  ;;  %v7681_v38 = vld [vmem:[%s13078_s19 + $0x24] sm:$0xf] }
0x20d9   :  { %v4703_v53 = vrot.slane %v4684_v25, 4  ;;  %v4689_v30 = vpop.permute.xlu1 %4688 }
0x20da   :  { %v4691_v60 = vsel %vm13308_vm12, %v4686_v1, %v4689_v30  ;;  %v13317_v30 = vmov 5  }
0x20db   :  { %v4708_v57 = vsel %vm853_vm9, %v4676_v21, %v4703_v53  ;;  %v4692_v42 = vmul.f32 %v11722_v55, %v4691_v60 }
0x20dc   :  { %v8813_v50 = vpack.c.bf16 %v4708_v57, %v4707_v22 }
0x20de   :  { %8814 = vmatpush3.bf16.msra.mxu1 %v8813_v50 }
0x20df   :  { %8241 = vmatprep.subr.mxu1 %v13077_v61 }
0x20e2   :  { %8242 = vmatpush3.msk.msra.mxu1 %vm853_vm9, %v4692_v42  ;;  %v4711_v44 = vpop.permute.xlu0 %4710 }
0x20e3   :  { %8244 = vmatmul.mubr.msk.f32.vlgmr.msra.gmra.mrb[40].mxu1 %vm863_vm13, %v7681_v38  ;;  %8246 = vmatprep.subr.mxu1 %v13077_v61 }
0x20e4   :  { %8247 = vmatpush3.msra.mxu1 %v9216_v28  ;;  %8248 = vmatprep.mubr.msk.f32.mxu1 %vm9499_vm2, %v13077_v61 }
0x20e5   :  { %8815 = vmatprep.subr.bf16.mxu1 %v13209_v34 }
0x2152   :  { %v4875_v16 = vpop.permute.xlu1 %4874 }
0x21b6   :  { %v4785_v5 = vpop.f32.mrb[40].mxu1 }
0x21b7   :  { %v4786_v55 = vadd.f32 %v4785_v5, %v4711_v44  ;;  %v8245_v59 = vpop.f32.mrb[41].mxu1  ;;  %v13319_v5 = vld [vmem:[#allocation78_spill] sm:$0xff] }
0x21b8   :  { %v13320_v59 = vld [vmem:[#allocation79_spill] sm:$0xff] }
0x21b9   :  { %vm4789_vm3 = vcmp.ge.f32.partialorder %v4786_v55, 0.0  ;;  %v4790_v43 = vmul.f32 0.2, %v4786_v55 }
0x21bb   :  { %v4791_v58 = vsel %vm4789_vm3, %v4786_v55, %v4790_v43  ;;  %vm13322_vm3 = vcmask 23552  }
0x21bc   :  { %8249 = vmatmul.mubr.msk.f32.vlgmr.msra.gmra.mrb[42].mxu1 %vm1096_vm14, %v4791_v58  ;;  %v13321_v58 = vld [vmem:[#allocation80_spill] sm:$0xff] }
0x21bd   :  { %8266 = vmatprep.mubr.msk.f32.mxu1 %vm9499_vm2, %v13077_v61 }
0x228f   :  { %v11782_v54 = vpop.f32.mrb[42].mxu1 }
0x2290   :  { %13309 = vst [vmem:[#allocation131_spill] sm:$0xff] %v11782_v54  ;;  %v4866_v27 = vrot.slane %v11782_v54, 4  ;;  %v8250_v8 = vpop.f32.mrb[43].mxu1 }
0x2292   :  { %v4868_v0 = vsel %vm853_vm9, %v11670_v40, %v4866_v27  ;;  %v9539_v40 = vmov 10  }
0x2293   :  { %8252 = vmatpush3.msra.mxu0 %v4868_v0  ;;  %9198 = vset.pattern.permute.xlu1 %v9539_v40 }
0x2294   :  { %8254 = vmatmul.mubr.msk.f32.vlgmr.msra.gmra.mrb[32].mxu0 %vm1096_vm14, %v4870_v37  ;;  %8821 = vmatprep.subr.bf16.mxu0 %v13209_v34 }
0x2295   :  { %8279 = vmatprep.mubr.msk.f32.mxu0 %vm9499_vm2, %v13077_v61 }
0x2367   :  { %v4946_v7 = vpop.f32.mrb[32].mxu0 }
0x2368   :  { %v4947_v25 = vadd.f32 %v4946_v7, %v4875_v16  ;;  %v8255_v12 = vpop.f32.mrb[33].mxu0 }
0x236a   :  { %vm4950_vm8 = vcmp.ge.f32.partialorder %v4947_v25, 0.0  ;;  %v4951_v21 = vmul.f32 0.2, %v4947_v25 }
0x236c   :  { %v4952_v53 = vsel %vm4950_vm8, %v4947_v25, %v4951_v21  ;;  %v13323_v25 = vld [vmem:[#allocation81_spill] sm:$0xff]  ;;  %vm13324_vm8 = vcmask 252928  }
0x236d   :  { %4967 = vrot.lane.b32.xlu0 %v4952_v53, %s13310_s28  ;;  %4964 = vrot.lane.b32.xlu1 %v4952_v53, %s13311_s26 }
0x2371   :  { %4983 = vrot.lane.b32.xlu0 %v4952_v53, %s9507_s3  ;;  %4980 = vrot.lane.b32.xlu1 %v4952_v53, %s13312_s25 }
0x2375   :  { %4959 = vrot.lane.b32.xlu0 %v4952_v53, %s13289_s23  ;;  %4956 = vrot.lane.b32.xlu1 %v4952_v53, %s13313_s0 }
0x2379   :  { %4975 = vrot.lane.b32.xlu0 %v4952_v53, %s9509_s24  ;;  %4972 = vrot.lane.b32.xlu1 %v4952_v53, %s13314_s2 }
0x237d   :  { %4992 = vrot.lane.b32.xlu0 %v4952_v53, %s9502_s22  ;;  %4989 = vrot.lane.b32.xlu1 %v4952_v53, %s9496_s18 }
0x2381   :  { %5008 = vrot.lane.b32.xlu0 %v4952_v53, %s9503_s27  ;;  %5005 = vrot.lane.b32.xlu1 %v4952_v53, %s9504_s13 }
0x2385   :  { %5000 = vrot.lane.b32.xlu0 %v4952_v53, %s13315_s5  ;;  %4997 = vrot.lane.b32.xlu1 %v4952_v53, %s13290_s11 }
0x2389   :  { %5016 = vrot.lane.b32.xlu0 %v4952_v53, %s13316_s7  ;;  %5013 = vrot.lane.b32.xlu1 %v4952_v53, %s9510_s17 }
0x238d   :  { %5038 = vperm.xlu1 %9198, %v11696_v10  }
0x2391   :  { %9200 = vset.pattern.permute.xlu1 %v13317_v30 }
0x23df   :  { %v4968_v22 = vpop.permute.xlu0 %4967  ;;  %v4965_v57 = vpop.permute.xlu1 %4964 }
0x23e0   :  { %v4970_v60 = vsel %vm13318_vm4, %v4965_v57, %v4968_v22  ;;  %vm13326_vm4 = vcmask 228352  }
0x23e1   :  { %v4971_v55 = vmul.f32 %v4970_v60, %v13319_v5 }
0x23e3   :  { %v4984_v1 = vpop.permute.xlu0 %4983  ;;  %v4981_v50 = vpop.permute.xlu1 %4980  ;;  %v5022_v16 = vrot.slane %v4971_v55, 4 }
0x23e4   :  { %v4986_v42 = vsel %vm780_vm7, %v4981_v50, %v4984_v1  ;;  %v13325_v50 = vld [vmem:[#allocation82_spill] sm:$0xff] }
0x23e5   :  { %v4987_v43 = vmul.f32 %v4986_v42, %v13320_v59 }
0x23e7   :  { %v4960_v38 = vpop.permute.xlu0 %4959  ;;  %v4957_v28 = vpop.permute.xlu1 %4956  ;;  %v5025_v7 = vrot.slane %v4987_v43, 4 }
0x23e8   :  { %v4962_v44 = vsel %vm13308_vm12, %v4957_v28, %v4960_v38  ;;  %vm13328_vm12 = vcmask 236544  }
0x23e9   :  { %v4963_v27 = vmul.f32 %v4962_v44, %v13321_v58  ;;  %v13327_v44 = vld [vmem:[#allocation83_spill] sm:$0xff] }
0x23eb   :  { %v4976_v8 = vpop.permute.xlu0 %4975  ;;  %v4973_v37 = vpop.permute.xlu1 %4972  ;;  %v5033_v21 = vsel %vm853_vm9, %v4963_v27, %v5022_v16 }
0x23ec   :  { %v4978_v0 = vsel %vm13322_vm3, %v4973_v37, %v4976_v8  ;;  %vm13331_vm3 = vcmask 220160  }
0x23ed   :  { %v4979_v12 = vmul.f32 %v4978_v0, %v13323_v25  ;;  %v13329_v0 = vld [vmem:[#allocation84_spill] sm:$0xff] }
0x23ee   :  { %v4988_v16 = vmul.f32 %v4952_v53, %v13329_v0  ;;  %v7686_v53 = vld [vmem:[%s13078_s19 + $0x28] sm:$0xf] }
0x23ef   :  { %v5034_v40 = vsel %vm853_vm9, %v4979_v12, %v5025_v7  ;;  %v4993_v30 = vpop.permute.xlu0 %4992  ;;  %v4990_v22 = vpop.permute.xlu1 %4989  ;;  %v13330_v12 = vld [vmem:[#allocation85_spill] sm:$0xff] }
0x23f0   :  { %v4995_v57 = vsel %vm13324_vm8, %v4990_v22, %v4993_v30  ;;  %v8816_v1 = vpack.c.bf16 %v5034_v40, %v5033_v21 }
0x23f1   :  { %v4996_v60 = vmul.f32 %v4995_v57, %v13325_v50 }
0x23f2   :  { %8817 = vmatpush3.bf16.msra.mxu1 %v8816_v1 }
0x23f3   :  { %v5009_v42 = vpop.permute.xlu0 %5008  ;;  %v5006_v38 = vpop.permute.xlu1 %5005  ;;  %8818 = vmatprep.subr.bf16.mxu1 %v13209_v34  ;;  %v5028_v43 = vrot.slane %v4996_v60, 4  ;;  %v11831_v60 = vld [vmem:[#allocation13 + $0x8] ss:$0 sm:$0xff] }
0x23f4   :  { %v5011_v28 = vsel %vm13326_vm4, %v5006_v38, %v5009_v42  ;;  %vm13332_vm4 = vcmask 31744  }
0x23f5   :  { %v5012_v55 = vmul.f32 %v5011_v28, %v13327_v44  ;;  %v5035_v40 = vsel %vm853_vm9, %v4988_v16, %v5028_v43  ;;  %v9540_v16 = vmov 11  }
0x23f6   :  { %9199 = vset.pattern.permute.xlu0 %v9540_v16 }
0x23f7   :  { %v5001_v27 = vpop.permute.xlu0 %5000  ;;  %v4998_v8 = vpop.permute.xlu1 %4997  ;;  %v5031_v7 = vrot.slane %v5012_v55, 4 }
0x23f8   :  { %v5003_v37 = vsel %vm13328_vm12, %v4998_v8, %v5001_v27  ;;  %vm13333_vm12 = vcmask 39936  }
0x23f9   :  { %v5004_v21 = vmul.f32 %v5003_v37, %v13330_v12 }
0x23fb   :  { %v5036_v30 = vsel %vm853_vm9, %v5004_v21, %v5031_v7  ;;  %v5017_v22 = vpop.permute.xlu0 %5016  ;;  %v5014_v57 = vpop.permute.xlu1 %5013 }
0x23fc   :  { %v8819_v1 = vpack.c.bf16 %v5036_v30, %v5035_v40  ;;  %v5019_v42 = vsel %vm13331_vm3, %v5014_v57, %v5017_v22  ;;  %vm13334_vm3 = vcmask 23552  }
0x23fd   :  { %v5020_v38 = vmul.f32 %v11831_v60, %v5019_v42 }
0x23fe   :  { %8820 = vmatpush3.bf16.msra.mxu1 %v8819_v1 }
0x23ff   :  { %8264 = vmatprep.subr.mxu1 %v13077_v61 }
0x2402   :  { %8265 = vmatpush3.msk.msra.mxu1 %vm853_vm9, %v5020_v38 }
0x2403   :  { %8267 = vmatmul.mubr.msk.f32.vlgmr.msra.gmra.mrb[44].mxu1 %vm863_vm13, %v7686_v53  ;;  %8827 = vmatprep.subr.bf16.mxu1 %v13209_v34 }
0x2404   :  { %8829 = vmatpush3.bf16.msra.mxu1 %v13212_v45  ;;  %8290 = vmatprep.mubr.msk.f32.mxu1 %vm9499_vm2, %v13077_v61  ;;  %v13366_v45 = vld [vmem:[#allocation142_spill] sm:$0xff] }
0x2405   :  { %8830 = vmatprep.subr.bf16.mxu1 %v13209_v34 }
0x2408   :  { %8832 = vmatpush3.bf16.msra.mxu1 %v13215_v14 }
0x2409   :  { %8839 = vmatprep.subr.bf16.mxu1 %v13209_v34 }
0x240c   :  { %v5039_v28 = vpop.permute.xlu1 %5038 }
0x24d6   :  { %v5113_v55 = vpop.f32.mrb[44].mxu1 }
0x24d7   :  { %v5114_v43 = vadd.f32 %v5113_v55, %v5039_v28  ;;  %v8268_v27 = vpop.f32.mrb[45].mxu1 }
0x24d9   :  { %vm5117_vm8 = vcmp.ge.f32.partialorder %v5114_v43, 0.0  ;;  %v5118_v8 = vmul.f32 0.2, %v5114_v43 }
0x24db   :  { %v5119_v37 = vsel %vm5117_vm8, %v5114_v43, %v5118_v8  ;;  %vm13335_vm8 = vcmask 252928  }
0x24dc   :  { %5134 = vrot.lane.b32.xlu1 %v5119_v37, %s13310_s28  ;;  %5131 = vrot.lane.b32.xlu0 %v5119_v37, %s13311_s26 }
0x24e0   :  { %5150 = vrot.lane.b32.xlu1 %v5119_v37, %s9507_s3  ;;  %5147 = vrot.lane.b32.xlu0 %v5119_v37, %s13312_s25 }
0x24e4   :  { %5126 = vrot.lane.b32.xlu1 %v5119_v37, %s13289_s23  ;;  %5123 = vrot.lane.b32.xlu0 %v5119_v37, %s13313_s0 }
0x24e8   :  { %5142 = vrot.lane.b32.xlu1 %v5119_v37, %s9509_s24  ;;  %5139 = vrot.lane.b32.xlu0 %v5119_v37, %s13314_s2  ;;  %s13341_s24 = smov 9  }
0x24ec   :  { %5159 = vrot.lane.b32.xlu1 %v5119_v37, %s9502_s22  ;;  %5156 = vrot.lane.b32.xlu0 %v5119_v37, %s9496_s18 }
0x24f0   :  { %5175 = vrot.lane.b32.xlu1 %v5119_v37, %s9503_s27  ;;  %5172 = vrot.lane.b32.xlu0 %v5119_v37, %s9504_s13  ;;  %s13340_s13 = smov 8  }
0x24f4   :  { %5167 = vrot.lane.b32.xlu1 %v5119_v37, %s13315_s5  ;;  %5164 = vrot.lane.b32.xlu0 %v5119_v37, %s13290_s11 }
0x24f8   :  { %5183 = vrot.lane.b32.xlu1 %v5119_v37, %s13316_s7  ;;  %5180 = vrot.lane.b32.xlu0 %v5119_v37, %s9510_s17  ;;  %s13342_s17 = smov 119  }
0x24fc   :  { %5205 = vperm.xlu0 %9199, %v11696_v10   ;;  %5367 = vperm.xlu1 %9200, %v11779_v18  }
0x254e   :  { %v5135_v7 = vpop.permute.xlu1 %5134  ;;  %v5132_v21 = vpop.permute.xlu0 %5131 }
0x254f   :  { %v5137_v22 = vsel %vm13332_vm4, %v5132_v21, %v5135_v7  ;;  %vm13336_vm4 = vcmask 228352  }
0x2550   :  { %v5138_v53 = vmul.f32 %v5137_v22, %v13319_v5 }
0x2552   :  { %v5151_v40 = vpop.permute.xlu1 %5150  ;;  %v5148_v30 = vpop.permute.xlu0 %5147  ;;  %v5189_v16 = vrot.slane %v5138_v53, 4 }
0x2553   :  { %v5153_v57 = vsel %vm780_vm7, %v5148_v30, %v5151_v40 }
0x2554   :  { %v5154_v28 = vmul.f32 %v5153_v57, %v13320_v59 }
0x2556   :  { %v5127_v1 = vpop.permute.xlu1 %5126  ;;  %v5124_v42 = vpop.permute.xlu0 %5123  ;;  %v5192_v54 = vrot.slane %v5154_v28, 4 }
0x2557   :  { %v5129_v38 = vsel %vm13333_vm12, %v5124_v42, %v5127_v1  ;;  %vm13337_vm12 = vcmask 236544  }
0x2558   :  { %v5130_v55 = vmul.f32 %v5129_v38, %v13321_v58 }
0x255a   :  { %v5143_v43 = vpop.permute.xlu1 %5142  ;;  %v5140_v27 = vpop.permute.xlu0 %5139  ;;  %v5200_v21 = vsel %vm853_vm9, %v5130_v55, %v5189_v16  ;;  %v5155_v55 = vmul.f32 %v5119_v37, %v13329_v0  ;;  %v7689_v0 = vld [vmem:[%s13078_s19 + $0x2c] sm:$0xf] }
0x255b   :  { %v5145_v8 = vsel %vm13334_vm3, %v5140_v27, %v5143_v43  ;;  %vm13338_vm3 = vcmask 220160  }
0x255c   :  { %v5146_v7 = vmul.f32 %v5145_v8, %v13323_v25 }
0x255e   :  { %v5201_v40 = vsel %vm853_vm9, %v5146_v7, %v5192_v54  ;;  %v5160_v30 = vpop.permute.xlu1 %5159  ;;  %v5157_v1 = vpop.permute.xlu0 %5156 }
0x255f   :  { %v5162_v5 = vsel %vm13335_vm8, %v5157_v1, %v5160_v30  ;;  %v8822_v22 = vpack.c.bf16 %v5201_v40, %v5200_v21 }
0x2560   :  { %v5163_v59 = vmul.f32 %v5162_v5, %v13325_v50 }
0x2561   :  { %8823 = vmatpush3.bf16.msra.mxu0 %v8822_v22 }
0x2562   :  { %v5176_v58 = vpop.permute.xlu1 %5175  ;;  %v5173_v57 = vpop.permute.xlu0 %5172  ;;  %8824 = vmatprep.subr.bf16.mxu0 %v13209_v34  ;;  %v5195_v38 = vrot.slane %v5163_v59, 4 }
0x2563   :  { %v5178_v42 = vsel %vm13336_vm4, %v5173_v57, %v5176_v58  ;;  %v5365_v57 = vld [vmem:[#allocation4 + $0x10] sm:$0xf] }
0x2564   :  { %v5179_v25 = vmul.f32 %v5178_v42, %v13327_v44  ;;  %v5202_v50 = vsel %vm853_vm9, %v5155_v55, %v5195_v38 }
0x2566   :  { %v5168_v53 = vpop.permute.xlu1 %5167  ;;  %v5165_v28 = vpop.permute.xlu0 %5164  ;;  %v5198_v43 = vrot.slane %v5179_v25, 4 }
0x2567   :  { %v5170_v54 = vsel %vm13337_vm12, %v5165_v28, %v5168_v53 }
0x2568   :  { %v5171_v27 = vmul.f32 %v5170_v54, %v13330_v12 }
0x256a   :  { %v5203_v8 = vsel %vm853_vm9, %v5171_v27, %v5198_v43  ;;  %v5184_v16 = vpop.permute.xlu1 %5183  ;;  %v5181_v7 = vpop.permute.xlu0 %5180  ;;  %v13343_v43 = vmov 6  }
0x256b   :  { %v8825_v21 = vpack.c.bf16 %v5203_v8, %v5202_v50  ;;  %v5186_v40 = vsel %vm13338_vm3, %v5181_v7, %v5184_v16  ;;  %v13344_v8 = vld [vmem:[#allocation89_spill] sm:$0xff]  ;;  %v13345_v7 = vld [vmem:[#allocation90_spill] sm:$0xff] }
0x256c   :  { %v5187_v44 = vmul.f32 %v11831_v60, %v5186_v40 }
0x256d   :  { %8826 = vmatpush3.bf16.msra.mxu0 %v8825_v21 }
0x256e   :  { %8277 = vmatprep.subr.mxu0 %v13077_v61 }
0x2571   :  { %8278 = vmatpush3.msk.msra.mxu0 %vm853_vm9, %v5187_v44 }
0x2572   :  { %8280 = vmatmul.mubr.msk.f32.vlgmr.msra.gmra.mrb[34].mxu0 %vm863_vm13, %v7689_v0  ;;  %8293 = vmatprep.subr.mxu0 %v13077_v61 }
0x2573   :  { %8295 = vmatprep.mubr.msk.f32.mxu0 %vm9499_vm2, %v13077_v61 }
0x257b   :  { %v5206_v12 = vpop.permute.xlu0 %5205  ;;  %v5368_v25 = vpop.permute.xlu1 %5367 }
0x2645   :  { %v5280_v37 = vpop.f32.mrb[34].mxu0 }
0x2646   :  { %v5281_v30 = vadd.f32 %v5280_v37, %v5206_v12  ;;  %v8281_v1 = vpop.f32.mrb[35].mxu0  ;;  %v13346_v37 = vld [vmem:[#allocation91_spill] sm:$0xff] }
0x2647   :  { %v13347_v1 = vld [vmem:[#allocation92_spill] sm:$0xff] }
0x2648   :  { %vm5284_vm8 = vcmp.ge.f32.partialorder %v5281_v30, 0.0  ;;  %v5285_v5 = vmul.f32 0.2, %v5281_v30 }
0x264a   :  { %v5286_v60 = vsel %vm5284_vm8, %v5281_v30, %v5285_v5 }
0x264b   :  { %8291 = vmatmul.mubr.msk.f32.vlgmr.msra.gmra.mrb[46].mxu1 %vm671_vm5, %v5286_v60 }
0x264c   :  { %8321 = vmatprep.mubr.msk.f32.mxu1 %vm9499_vm2, %v13077_v61 }
0x271e   :  { %v11898_v22 = vpop.f32.mrb[46].mxu1 }
0x271f   :  { %13339 = vst [vmem:[#allocation130_spill] sm:$0xff] %v11898_v22  ;;  %v5361_v59 = vrot.slane %v11898_v22, 4  ;;  %v8292_v58 = vpop.f32.mrb[47].mxu1 }
0x2721   :  { %v5363_v42 = vsel %vm853_vm9, %v11662_v17, %v5361_v59  ;;  %v9541_v17 = vmov 12  }
0x2722   :  { %8294 = vmatpush3.msra.mxu0 %v5363_v42  ;;  %9201 = vset.pattern.permute.xlu1 %v9541_v17 }
0x2723   :  { %8296 = vmatmul.mubr.msk.f32.vlgmr.msra.gmra.mrb[36].mxu0 %vm1096_vm14, %v5365_v57  ;;  %8833 = vmatprep.subr.bf16.mxu0 %v13209_v34 }
0x2724   :  { %8308 = vmatprep.mubr.msk.f32.mxu0 %vm9499_vm2, %v13077_v61 }
0x27f6   :  { %v5439_v38 = vpop.f32.mrb[36].mxu0 }
0x27f7   :  { %v5440_v53 = vadd.f32 %v5439_v38, %v5368_v25  ;;  %v8297_v28 = vpop.f32.mrb[37].mxu0  ;;  %v13348_v25 = vld [vmem:[#allocation93_spill] sm:$0xff] }
0x27f9   :  { %vm5443_vm4 = vcmp.ge.f32.partialorder %v5440_v53, 0.0  ;;  %v5444_v54 = vmul.f32 0.2, %v5440_v53 }
0x27fb   :  { %v5445_v55 = vsel %vm5443_vm4, %v5440_v53, %v5444_v54  ;;  %v13349_v53 = vld [vmem:[#allocation94_spill] sm:$0xff] }
0x27fc   :  { %5461 = vrot.lane.b32.xlu0 %v5445_v55, %s9507_s3  ;;  %5453 = vrot.lane.b32.xlu1 %v5445_v55, %s13340_s13 }
0x2800   :  { %5457 = vrot.lane.b32.xlu0 %v5445_v55, %s9511_s20  ;;  %5449 = vrot.lane.b32.xlu1 %v5445_v55, %s13341_s24 }
0x2804   :  { %5474 = vrot.lane.b32.xlu0 %v5445_v55, %s9501_s14  ;;  %5466 = vrot.lane.b32.xlu1 %v5445_v55, %s9496_s18 }
0x2808   :  { %5478 = vrot.lane.b32.xlu0 %v5445_v55, %s13342_s17  ;;  %5470 = vrot.lane.b32.xlu1 %v5445_v55, %s9508_s30 }
0x280c   :  { %5499 = vperm.xlu1 %9201, %v11696_v10  }
0x2810   :  { %9203 = vset.pattern.permute.xlu1 %v13343_v43 }
0x286e   :  { %v5462_v27 = vpop.permute.xlu0 %5461  ;;  %v5454_v50 = vpop.permute.xlu1 %5453 }
0x286f   :  { %v5464_v16 = vmul.f32 %v5462_v27, %v13344_v8  ;;  %v5456_v21 = vmul.f32 %v5454_v50, %v13345_v7  ;;  %v13350_v27 = vld [vmem:[#allocation95_spill] sm:$0xff] }
0x2870   :  { %v5465_v50 = vmul.f32 %v5445_v55, %v13350_v27 }
0x2871   :  { %v5486_v0 = vrot.slane %v5464_v16, 4  ;;  %v5483_v12 = vrot.slane %v5456_v21, 4  ;;  %v13351_v16 = vld [vmem:[#allocation96_spill] sm:$0xff] }
0x2872   :  { %v5458_v40 = vpop.permute.xlu0 %5457  ;;  %v5450_v44 = vpop.permute.xlu1 %5449 }
0x2873   :  { %v5460_v30 = vmul.f32 %v5458_v40, %v13346_v37  ;;  %v5452_v5 = vmul.f32 %v5450_v44, %v13347_v1 }
0x2875   :  { %v5495_v60 = vsel %vm853_vm9, %v5460_v30, %v5486_v0  ;;  %v5494_v59 = vsel %vm853_vm9, %v5452_v5, %v5483_v12  ;;  %v11931_v30 = vld [vmem:[#allocation12 + $0x8] ss:$0 sm:$0xff] }
0x2876   :  { %v8834_v58 = vpack.c.bf16 %v5495_v60, %v5494_v59  ;;  %v5475_v57 = vpop.permute.xlu0 %5474  ;;  %v5467_v42 = vpop.permute.xlu1 %5466  ;;  %v7694_v60 = vld [vmem:[%s13078_s19 + $0x30] sm:$0xf] }
0x2877   :  { %v5477_v38 = vmul.f32 %v5475_v57, %v13348_v25  ;;  %v5469_v28 = vmul.f32 %v5467_v42, %v13349_v53 }
0x2878   :  { %8835 = vmatpush3.bf16.msra.mxu0 %v8834_v58 }
0x2879   :  { %v5489_v54 = vrot.slane %v5469_v28, 4  ;;  %8836 = vmatprep.subr.bf16.mxu0 %v13209_v34  ;;  %v5492_v43 = vrot.slane %v5477_v38, 4  ;;  %v9542_v28 = vmov 13  }
0x287a   :  { %v5471_v17 = vpop.permute.xlu1 %5470  ;;  %v5479_v12 = vpop.permute.xlu0 %5478  ;;  %9202 = vset.pattern.permute.xlu0 %v9542_v28 }
0x287b   :  { %v5473_v21 = vmul.f32 %v5471_v17, %v13351_v16  ;;  %v5496_v40 = vsel %vm853_vm9, %v5465_v50, %v5489_v54  ;;  %v5481_v5 = vmul.f32 %v11931_v30, %v5479_v12 }
0x287d   :  { %v5497_v44 = vsel %vm853_vm9, %v5473_v21, %v5492_v43 }
0x287e   :  { %v8837_v0 = vpack.c.bf16 %v5497_v44, %v5496_v40 }
0x2880   :  { %8838 = vmatpush3.bf16.msra.mxu0 %v8837_v0 }
0x2881   :  { %8306 = vmatprep.subr.mxu0 %v13077_v61 }
0x2884   :  { %8307 = vmatpush3.msk.msra.mxu0 %vm853_vm9, %v5481_v5 }
0x2885   :  { %8309 = vmatmul.mubr.msk.f32.vlgmr.msra.gmra.mrb[38].mxu0 %vm863_vm13, %v7694_v60  ;;  %8846 = vmatprep.subr.bf16.mxu0 %v13184_v23 }
0x2886   :  { %8848 = vmatpush1.bf16.msra.mxu0 %v13185_v56  ;;  %5780 = vmatprep.mubr.f32.mxu0 %v13077_v61 }
0x2887   :  { %8850 = vmatprep.subr.bf16.mxu0 %v13186_v9 }
0x288a   :  { %8852 = vmatpush1.bf16.msra.mxu0 %v13187_v52 }
0x288b   :  { %8854 = vmatprep.subr.bf16.mxu0 %v13188_v20  ;;  %v5500_v55 = vpop.permute.xlu1 %5499 }
0x288e   :  { %8856 = vmatpush1.bf16.msra.mxu0 %v13191_v29 }
0x288f   :  { %8858 = vmatprep.subr.bf16.mxu0 %v13192_v3 }
0x2892   :  { %8860 = vmatpush1.bf16.msra.mxu0 %v13193_v35 }
0x2893   :  { %8862 = vmatprep.subr.bf16.mxu0 %v13194_v11 }
0x2896   :  { %8864 = vmatpush1.bf16.msra.mxu0 %v13195_v2 }
0x2897   :  { %8866 = vmatprep.subr.bf16.mxu0 %v13196_v49 }
0x289a   :  { %8868 = vmatpush1.bf16.msra.mxu0 %v13199_v47 }
0x289b   :  { %8870 = vmatprep.subr.bf16.mxu0 %v13201_v63 }
0x289e   :  { %8872 = vmatpush1.bf16.msra.mxu0 %v13203_v62  ;;  %v13372_v62 = vld [vmem:[#allocation147_spill] sm:$0xff] }
0x289f   :  { %8874 = vmatprep.subr.bf16.mxu0 %v13205_v51 }
0x28a2   :  { %8876 = vmatpush1.bf16.msra.mxu0 %v13207_v13  ;;  %v13369_v13 = vld [vmem:[#allocation145_spill] sm:$0xff] }
0x2958   :  { %v5574_v59 = vpop.f32.mrb[38].mxu0 }
0x2959   :  { %v5575_v58 = vadd.f32 %v5574_v59, %v5500_v55  ;;  %v8310_v57 = vpop.f32.mrb[39].mxu0 }
0x295b   :  { %vm5578_vm12 = vcmp.ge.f32.partialorder %v5575_v58, 0.0  ;;  %v5579_v42 = vmul.f32 0.2, %v5575_v58 }
0x295d   :  { %v5580_v38 = vsel %vm5578_vm12, %v5575_v58, %v5579_v42 }
0x295e   :  { %5596 = vrot.lane.b32.xlu1 %v5580_v38, %s9507_s3  ;;  %5588 = vrot.lane.b32.xlu0 %v5580_v38, %s13340_s13 }
0x2962   :  { %5592 = vrot.lane.b32.xlu1 %v5580_v38, %s9511_s20  ;;  %5584 = vrot.lane.b32.xlu0 %v5580_v38, %s13341_s24 }
0x2966   :  { %5609 = vrot.lane.b32.xlu1 %v5580_v38, %s9501_s14  ;;  %5601 = vrot.lane.b32.xlu0 %v5580_v38, %s9496_s18 }
0x296a   :  { %5613 = vrot.lane.b32.xlu1 %v5580_v38, %s13342_s17  ;;  %5605 = vrot.lane.b32.xlu0 %v5580_v38, %s9508_s30 }
0x296e   :  { %5634 = vperm.xlu0 %9202, %v11696_v10   ;;  %5877 = vperm.xlu1 %9203, %v11779_v18  }
0x29d0   :  { %v5597_v54 = vpop.permute.xlu1 %5596  ;;  %v5589_v17 = vpop.permute.xlu0 %5588 }
0x29d1   :  { %v5599_v43 = vmul.f32 %v5597_v54, %v13344_v8  ;;  %v5591_v50 = vmul.f32 %v5589_v17, %v13345_v7 }
0x29d3   :  { %v5621_v44 = vrot.slane %v5599_v43, 4  ;;  %v5618_v0 = vrot.slane %v5591_v50, 4 }
0x29d4   :  { %v5593_v21 = vpop.permute.xlu1 %5592  ;;  %v5585_v40 = vpop.permute.xlu0 %5584 }
0x29d5   :  { %v5595_v12 = vmul.f32 %v5593_v21, %v13346_v37  ;;  %v5587_v5 = vmul.f32 %v5585_v40, %v13347_v1  ;;  %v5600_v37 = vmul.f32 %v5580_v38, %v13350_v27  ;;  %v13352_v27 = vld [vmem:[#allocation126_spill] sm:$0xff] }
0x29d7   :  { %v5630_v60 = vsel %vm853_vm9, %v5595_v12, %v5621_v44  ;;  %v5629_v10 = vsel %vm853_vm9, %v5587_v5, %v5618_v0 }
0x29d8   :  { %v8840_v55 = vpack.c.bf16 %v5630_v60, %v5629_v10  ;;  %v5610_v18 = vpop.permute.xlu1 %5609  ;;  %v5602_v59 = vpop.permute.xlu0 %5601 }
0x29d9   :  { %v5612_v58 = vmul.f32 %v5610_v18, %v13348_v25  ;;  %v5604_v8 = vmul.f32 %v5602_v59, %v13349_v53  ;;  %v7697_v53 = vld [vmem:[%s13078_s19 + $0x34] sm:$0xf] }
0x29da   :  { %8841 = vmatpush3.bf16.msra.mxu1 %v8840_v55 }
0x29db   :  { %v5624_v7 = vrot.slane %v5604_v8, 4  ;;  %8842 = vmatprep.subr.bf16.mxu1 %v13209_v34  ;;  %v5627_v42 = vrot.slane %v5612_v58, 4  ;;  %v13358_v58 = vld [vmem:[#allocation88_spill] sm:$0xff] }
0x29dc   :  { %v5606_v57 = vpop.permute.xlu0 %5605  ;;  %v5614_v43 = vpop.permute.xlu1 %5613  ;;  %v13368_v34 = vld [vmem:[#allocation144_spill] sm:$0xff] }
0x29dd   :  { %v5608_v1 = vmul.f32 %v5606_v57, %v13351_v16  ;;  %v5631_v28 = vsel %vm853_vm9, %v5600_v37, %v5624_v7  ;;  %v5616_v25 = vmul.f32 %v11931_v30, %v5614_v43  ;;  %v13353_v16 = vld [vmem:[#allocation128_spill] sm:$0xff]  ;;  %v13359_v7 = vld [vmem:[#allocation129_spill] sm:$0xff] }
0x29de   :  { %v13360_v37 = vld [vmem:[#allocation100_spill] sm:$0xff] }
0x29df   :  { %v5632_v54 = vsel %vm853_vm9, %v5608_v1, %v5627_v42  ;;  %v5875_v42 = vld [vmem:[#allocation4 + $0x14] sm:$0xf] }
0x29e0   :  { %v8843_v17 = vpack.c.bf16 %v5632_v54, %v5631_v28  ;;  %v13361_v28 = vld [vmem:[#allocation77_spill] sm:$0xff] }
0x29e2   :  { %8844 = vmatpush3.bf16.msra.mxu1 %v8843_v17 }
0x29e3   :  { %8319 = vmatprep.subr.mxu1 %v13077_v61 }
0x29e6   :  { %8320 = vmatpush3.msk.msra.mxu1 %vm853_vm9, %v5616_v25 }
0x29e7   :  { %8322 = vmatmul.mubr.msk.f32.vlgmr.msra.gmra.mrb[48].mxu1 %vm863_vm13, %v7697_v53  ;;  %8878 = vmatprep.subr.bf16.mxu1 %v13197_v6 }
0x29e8   :  { %8880 = vmatpush1.bf16.msra.mxu1 %v13198_v41  ;;  %5851 = vmatprep.mubr.f32.mxu1 %v13077_v61 }
0x29e9   :  { %8882 = vmatprep.subr.bf16.mxu1 %v13200_v48 }
0x29ec   :  { %8884 = vmatpush1.bf16.msra.mxu1 %v13202_v46  ;;  %v13373_v46 = vld [vmem:[#allocation148_spill] sm:$0xff] }
0x29ed   :  { %8886 = vmatprep.subr.bf16.mxu1 %v13204_v15  ;;  %v5635_v30 = vpop.permute.xlu0 %5634  ;;  %v5878_v17 = vpop.permute.xlu1 %5877  ;;  %v13371_v15 = vld [vmem:[#allocation146_spill] sm:$0xff] }
0x29f0   :  { %8888 = vmatpush1.bf16.msra.mxu1 %v13206_v19 }
0x29f1   :  { %8890 = vmatprep.subr.bf16.mxu1 %v13208_v26 }
0x29f4   :  { %8892 = vmatpush1.bf16.msra.mxu1 %v13211_v24  ;;  %v13367_v24 = vld [vmem:[#allocation143_spill] sm:$0xff] }
0x29f5   :  { %8894 = vmatprep.subr.bf16.mxu1 %v13213_v4 }
0x29f8   :  { %8896 = vmatpush1.bf16.msra.mxu1 %v13214_v39  ;;  %v13365_v39 = vld [vmem:[#allocation140_spill] sm:$0xff] }
0x29f9   :  { %8898 = vmatprep.subr.bf16.mxu1 %v13216_v31  ;;  %v13364_v31 = vld [vmem:[#allocation139_spill] sm:$0xff] }
0x29fc   :  { %8900 = vmatpush1.bf16.msra.mxu1 %v13218_v33 }
0x29fd   :  { %8902 = vmatprep.subr.bf16.mxu1 %v13219_v36  ;;  %v13363_v36 = vld [vmem:[#allocation138_spill] sm:$0xff] }
0x2a00   :  { %8904 = vmatpush1.bf16.msra.mxu1 %v13220_v32 }
0x2a01   :  { %8906 = vmatprep.subr.bf16.mxu1 %v13352_v27 }
0x2a04   :  { %8908 = vmatpush1.bf16.msra.mxu1 %v13353_v16 }
0x2aba   :  { %v5709_v38 = vpop.f32.mrb[48].mxu1 }
0x2abb   :  { %v5710_v50 = vadd.f32 %v5709_v38, %v5635_v30  ;;  %v8323_v21 = vpop.f32.mrb[49].mxu1 }
0x2abd   :  { %vm5713_vm3 = vcmp.ge.f32.partialorder %v5710_v50, 0.0  ;;  %v5714_v40 = vmul.f32 0.2, %v5710_v50 }
0x2abf   :  { %v5715_v44 = vsel %vm5713_vm3, %v5710_v50, %v5714_v40  ;;  %vm13395_vm3 = vcmask 908288  }
0x2ac0   :  { %5781 = vmatmul.mubr.f32.vlgmr.msra.gmra.mrb[40].mxu0 %v5715_v44  ;;  %5852 = vmatmul.mubr.f32.vlgmr.msra.gmra.mrb[50].mxu1 %v5715_v44 }
0x2ac1   :  { %5947 = vmatprep.mubr.f32.mxu0 %v13077_v61  ;;  %6018 = vmatprep.mubr.f32.mxu1 %v13077_v61 }
0x2b93   :  { %v12005_v0 = vpop.f32.mrb[40].mxu0  ;;  %v12007_v12 = vpop.f32.mrb[50].mxu1 }
0x2b94   :  { %13354 = vst [vmem:[#allocation132_spill] sm:$0xff] %v12005_v0  ;;  %13355 = vst [vmem:[#allocation26_spill] sm:$0xff] %v12007_v12  ;;  %v12970_v5 = vrot.slane %v12005_v0, 4  ;;  %v12968_v60 = vrot.slane %v12007_v12, 4  ;;  %v12011_v10 = vpop.f32.mrb[41].mxu0  ;;  %v12013_v55 = vpop.f32.mrb[51].mxu1 }
0x2b95   :  { %13356 = vst [vmem:[#allocation25_spill] sm:$0xff] %v12011_v10  ;;  %13357 = vst [vmem:[#allocation27_spill] sm:$0xff] %v12013_v55  ;;  %v12969_v18 = vrot.slane %v12011_v10, 4  ;;  %v12967_v59 = vrot.slane %v12013_v55, 4 }
0x2b96   :  { %v5870_v1 = vsel %vm853_vm9, %v13360_v37, %v12970_v5  ;;  %v5872_v54 = vsel %vm853_vm9, %v13361_v28, %v12968_v60 }
0x2b97   :  { %v5871_v8 = vsel %vm853_vm9, %v13358_v58, %v12969_v18  ;;  %v5873_v57 = vsel %vm853_vm9, %v13359_v7, %v12967_v59 }
0x2b98   :  { %5883 = vmatprep.subr.mxu0 %v5871_v8  ;;  %5954 = vmatprep.subr.mxu1 %v5873_v57 }
0x2b99   :  { %5884 = vmatpush1.msra.mxu0 %v5870_v1  ;;  %5955 = vmatpush1.msra.mxu1 %v5872_v54 }
0x2b9a   :  { %7700 = vmatmul.mubr.msk.f32.vlgmr.msra.gmra.mrb[42].mxu0 %vm1096_vm14, %v5875_v42  ;;  %7701 = vmatmul.mubr.msk.f32.vlgmr.msra.gmra.mrb[52].mxu1 %vm1096_vm14, %v5875_v42 }
0x2b9b   :  { %6362 = vmatprep.mubr.f32.mxu0 %v13077_v61  ;;  %6433 = vmatprep.mubr.f32.mxu1 %v13077_v61 }
0x2c6d   :  { %v5949_v43 = vpop.f32.mrb[42].mxu0  ;;  %v6020_v25 = vpop.f32.mrb[52].mxu1 }
0x2c6e   :  { %v5950_v53 = vadd.f32 %v5949_v43, %v5878_v17  ;;  %v6021_v30 = vadd.f32 %v6020_v25, %v5878_v17  ;;  %v5951_v38 = vpop.f32.mrb[43].mxu0  ;;  %v6022_v50 = vpop.f32.mrb[53].mxu1 }
0x2c6f   :  { %v5952_v57 = vadd.f32 %v5951_v38, %v5878_v17  ;;  %v6023_v42 = vadd.f32 %v6022_v50, %v5878_v17  ;;  %v9543_v17 = vmov 14  }
0x2c70   :  { %vm6025_vm8 = vcmp.ge.f32.partialorder %v5950_v53, 0.0  ;;  %v6029_v21 = vmul.f32 0.2, %v5950_v53  ;;  %vm6027_vm4 = vcmp.ge.f32.partialorder %v6021_v30, 0.0  ;;  %v6031_v40 = vmul.f32 0.2, %v6021_v30  ;;  %9204 = vset.pattern.permute.xlu1 %v9543_v17 }
0x2c71   :  { %v6030_v1 = vmul.f32 0.2, %v5952_v57  ;;  %v6032_v54 = vmul.f32 0.2, %v6023_v42  ;;  %vm6026_vm14 = vcmp.ge.f32.partialorder %v5952_v57, 0.0  ;;  %vm6028_vm12 = vcmp.ge.f32.partialorder %v6023_v42, 0.0 }
0x2c72   :  { %v12037_v44 = vsel %vm6025_vm8, %v5950_v53, %v6029_v21  ;;  %v12039_v8 = vsel %vm6027_vm4, %v6021_v30, %v6031_v40  ;;  %v12109_v53 = vld [vmem:[#allocation2] sm:$0xf]  ;;  %v13362_v30 = vmov 7   ;;  %vm13396_vm8 = vmmov %vm13395_vm3 }
0x2c73   :  { %6071 = vrot.lane.b32.xlu0 %v12039_v8, %s9530_s6  ;;  %6067 = vrot.lane.b32.xlu1 %v12037_v44, %s9530_s6  ;;  %v12069_v43 = vsel %vm6026_vm14, %v5952_v57, %v6030_v1  ;;  %v12071_v25 = vsel %vm6028_vm12, %v6023_v42, %v6032_v54  ;;  %vm13397_vm4 = vmmov %vm13395_vm3 }
0x2c74   :  { %vm13398_vm14 = vmmov %vm13395_vm3 }
0x2c77   :  { %6113 = vrot.lane.b32.xlu0 %v12039_v8, %s9507_s3  ;;  %6109 = vrot.lane.b32.xlu1 %v12037_v44, %s9507_s3 }
0x2c7b   :  { %6050 = vrot.lane.b32.xlu0 %v12039_v8, %s9531_s16  ;;  %6046 = vrot.lane.b32.xlu1 %v12037_v44, %s9531_s16 }
0x2c7f   :  { %6092 = vrot.lane.b32.xlu0 %v12039_v8, %s9532_s1  ;;  %6088 = vrot.lane.b32.xlu1 %v12037_v44, %s9532_s1 }
0x2c83   :  { %6135 = vrot.lane.b32.xlu0 %v12039_v8, %s9496_s18  ;;  %6131 = vrot.lane.b32.xlu1 %v12037_v44, %s9496_s18 }
0x2c87   :  { %6177 = vrot.lane.b32.xlu0 %v12039_v8, %s9497_s10  ;;  %6173 = vrot.lane.b32.xlu1 %v12037_v44, %s9497_s10 }
0x2c8b   :  { %6156 = vrot.lane.b32.xlu0 %v12039_v8, %s9533_s4  ;;  %6152 = vrot.lane.b32.xlu1 %v12037_v44, %s9533_s4 }
0x2c8f   :  { %6069 = vrot.lane.b32.xlu0 %v12069_v43, %s9530_s6  ;;  %6064 = vrot.lane.b32.xlu1 %v12071_v25, %s9530_s6 }
0x2c93   :  { %6111 = vrot.lane.b32.xlu0 %v12069_v43, %s9507_s3  ;;  %6106 = vrot.lane.b32.xlu1 %v12071_v25, %s9507_s3 }
0x2c97   :  { %6048 = vrot.lane.b32.xlu0 %v12069_v43, %s9531_s16  ;;  %6040 = vrot.lane.b32.xlu1 %v12071_v25, %s9531_s16 }
0x2c9b   :  { %6090 = vrot.lane.b32.xlu0 %v12069_v43, %s9532_s1  ;;  %6085 = vrot.lane.b32.xlu1 %v12071_v25, %s9532_s1 }
0x2c9f   :  { %6137 = vrot.lane.b32.xlu0 %v12071_v25, %s9496_s18  ;;  %6133 = vrot.lane.b32.xlu1 %v12069_v43, %s9496_s18 }
0x2ca3   :  { %6179 = vrot.lane.b32.xlu0 %v12071_v25, %s9497_s10  ;;  %6175 = vrot.lane.b32.xlu1 %v12069_v43, %s9497_s10 }
0x2ca7   :  { %6158 = vrot.lane.b32.xlu0 %v12071_v25, %s9533_s4  ;;  %6154 = vrot.lane.b32.xlu1 %v12069_v43, %s9533_s4 }
0x2cab   :  { %6198 = vrot.lane.b32.xlu0 %v12039_v8, %s9535_s29  ;;  %6196 = vrot.lane.b32.xlu1 %v12069_v43, %s9535_s29 }
0x2caf   :  { %6200 = vrot.lane.b32.xlu0 %v12071_v25, %s9535_s29  ;;  %6194 = vrot.lane.b32.xlu1 %v12037_v44, %s9535_s29 }
0x2cb3   :  { %6280 = vperm.xlu1 %9204, %v12109_v53  }
0x2cb7   :  { %9206 = vset.pattern.permute.xlu1 %v13362_v30 }
0x2ce5   :  { %v6072_v38 = vpop.permute.xlu0 %6071  ;;  %v6068_v50 = vpop.permute.xlu1 %6067 }
0x2ce9   :  { %v6114_v21 = vpop.permute.xlu0 %6113  ;;  %v6110_v40 = vpop.permute.xlu1 %6109 }
0x2ced   :  { %v6051_v57 = vpop.permute.xlu0 %6050  ;;  %v6047_v42 = vpop.permute.xlu1 %6046 }
0x2cf1   :  { %v6093_v1 = vpop.permute.xlu0 %6092  ;;  %v6089_v54 = vpop.permute.xlu1 %6088 }
0x2cf5   :  { %v12113_v17 = vpop.permute.xlu0 %6135  ;;  %v12115_v59 = vpop.permute.xlu1 %6131 }
0x2cf9   :  { %v12117_v60 = vpop.permute.xlu0 %6177  ;;  %v12119_v18 = vpop.permute.xlu1 %6173 }
0x2cfd   :  { %v12121_v5 = vpop.permute.xlu0 %6156  ;;  %v12123_v7 = vpop.permute.xlu1 %6152 }
0x2d01   :  { %v6070_v30 = vpop.permute.xlu0 %6069  ;;  %v6065_v28 = vpop.permute.xlu1 %6064 }
0x2d02   :  { %v6073_v58 = vsel %vm2474_vm10, %v6068_v50, %v6070_v30  ;;  %v6074_v37 = vsel %vm2474_vm10, %v6070_v30, %v6072_v38  ;;  %v6080_v55 = vsel %vm2474_vm10, %v6065_v28, %v6068_v50  ;;  %v6075_v30 = vsel %vm2474_vm10, %v6072_v38, %v6065_v28  ;;  %v13370_v38 = vld [vmem:[#allocation141_spill] sm:$0xff] }
0x2d03   :  { %v6082_v33 = vmul.f32 %v6073_v58, %v13363_v36  ;;  %v6083_v14 = vmul.f32 %v6074_v37, %v13364_v31  ;;  %v6081_v4 = vmul.f32 %v6080_v55, %v13365_v39 }
0x2d05   :  { %v6112_v12 = vpop.permute.xlu0 %6111  ;;  %v6107_v10 = vpop.permute.xlu1 %6106  ;;  %v6221_v28 = vrot.slane %v6083_v14, 4  ;;  %v6219_v51 = vrot.slane %v6081_v4, 4 }
0x2d06   :  { %v6115_v0 = vsel %vm780_vm7, %v6110_v40, %v6112_v12  ;;  %v6116_v16 = vsel %vm780_vm7, %v6112_v12, %v6114_v21  ;;  %v6117_v27 = vsel %vm780_vm7, %v6114_v21, %v6107_v10  ;;  %v6122_v32 = vsel %vm780_vm7, %v6107_v10, %v6110_v40 }
0x2d07   :  { %v6124_v50 = vmul.f32 %v6115_v0, %v13366_v45  ;;  %v6125_v22 = vmul.f32 %v6116_v16, %v13367_v24  ;;  %v6123_v26 = vmul.f32 %v6122_v32, %v13368_v34  ;;  %v6126_v12 = vmul.f32 %v6117_v27, %v13369_v13 }
0x2d08   :  { %v6220_v40 = vrot.slane %v6082_v33, 4  ;;  %v6084_v0 = vmul.f32 %v6075_v30, %v13370_v38  ;;  %v13375_v30 = vld [vmem:[#allocation150_spill] sm:$0xff] }
0x2d09   :  { %v6049_v19 = vpop.permute.xlu0 %6048  ;;  %v6041_v21 = vpop.permute.xlu1 %6040  ;;  %v6232_v16 = vrot.slane %v6124_v50, 4  ;;  %v6233_v48 = vrot.slane %v6125_v22, 4  ;;  %v6231_v47 = vrot.slane %v6123_v26, 4  ;;  %v6234_v41 = vrot.slane %v6126_v12, 4  ;;  %v13378_v26 = vld [vmem:[#allocation153_spill] sm:$0xff] }
0x2d0a   :  { %v6052_v10 = vsel %vm2436_vm6, %v6047_v42, %v6049_v19  ;;  %v6053_v58 = vsel %vm2436_vm6, %v6049_v19, %v6051_v57  ;;  %v6054_v37 = vsel %vm2436_vm6, %v6051_v57, %v6041_v21  ;;  %v6059_v55 = vsel %vm2436_vm6, %v6041_v21, %v6047_v42  ;;  %v13374_v19 = vld [vmem:[#allocation149_spill] sm:$0xff]  ;;  %v13376_v21 = vld [vmem:[#allocation151_spill] sm:$0xff] }
0x2d0b   :  { %v6061_v32 = vmul.f32 %v6052_v10, %v13371_v15  ;;  %v6062_v27 = vmul.f32 %v6053_v58, %v13372_v62  ;;  %v6060_v63 = vmul.f32 %v6059_v55, %v13373_v46  ;;  %v6063_v6 = vmul.f32 %v6054_v37, %v13374_v19  ;;  %v13377_v58 = vld [vmem:[#allocation152_spill] sm:$0xff] }
0x2d0c   :  { %v6222_v55 = vrot.slane %v6084_v0, 4 }
0x2d0d   :  { %v6091_v57 = vpop.permute.xlu0 %6090  ;;  %v6086_v49 = vpop.permute.xlu1 %6085  ;;  %v6265_v37 = vsel %vm853_vm9, %v6062_v27, %v6221_v28  ;;  %v6263_v2 = vsel %vm853_vm9, %v6060_v63, %v6219_v51  ;;  %v6264_v11 = vsel %vm853_vm9, %v6061_v32, %v6220_v40  ;;  %v13379_v51 = vld [vmem:[#allocation154_spill] sm:$0xff]  ;;  %v13380_v40 = vld [vmem:[#allocation155_spill] sm:$0xff]  ;;  %v13381_v32 = vld [vmem:[#allocation156_spill] sm:$0xff] }
0x2d0e   :  { %v6094_v33 = vsel %vm2512_vm11, %v6089_v54, %v6091_v57  ;;  %v6095_v14 = vsel %vm2512_vm11, %v6091_v57, %v6093_v1  ;;  %v6096_v4 = vsel %vm2512_vm11, %v6093_v1, %v6086_v49  ;;  %v6101_v42 = vsel %vm2512_vm11, %v6086_v49, %v6089_v54 }
0x2d0f   :  { %v6103_v50 = vmul.f32 %v6094_v33, %v13375_v30  ;;  %v6104_v10 = vmul.f32 %v6095_v14, %v13376_v21  ;;  %v6102_v22 = vmul.f32 %v6101_v42, %v13377_v58  ;;  %v6105_v12 = vmul.f32 %v6096_v4, %v13378_v26 }
0x2d11   :  { %v6269_v57 = vsel %vm853_vm9, %v6104_v10, %v6233_v48  ;;  %v6267_v1 = vsel %vm853_vm9, %v6102_v22, %v6231_v47  ;;  %v6138_v49 = vpop.permute.xlu0 %6137  ;;  %v6134_v54 = vpop.permute.xlu1 %6133  ;;  %v6268_v33 = vsel %vm853_vm9, %v6103_v50, %v6232_v16  ;;  %v6270_v14 = vsel %vm853_vm9, %v6105_v12, %v6234_v41  ;;  %v13382_v22 = vld [vmem:[#allocation137_spill] sm:$0xff] }
0x2d12   :  { %v6141_v4 = vsel %vm385_vm0, %v12113_v17, %v6138_v49  ;;  %v6147_v28 = vsel %vm385_vm0, %v6138_v49, %v12115_v59  ;;  %v6139_v63 = vsel %vm385_vm0, %v12115_v59, %v6134_v54  ;;  %v6140_v48 = vsel %vm385_vm0, %v6134_v54, %v12113_v17  ;;  %v13383_v59 = vld [vmem:[#allocation157_spill] sm:$0xff] }
0x2d13   :  { %v6150_v47 = vmul.f32 %v6141_v4, %v13379_v51  ;;  %v6151_v0 = vmul.f32 %v6147_v28, %v13380_v40  ;;  %v6148_v16 = vmul.f32 %v6139_v63, %v13381_v32  ;;  %v6266_v41 = vsel %vm853_vm9, %v6063_v6, %v6222_v55  ;;  %v13384_v6 = vld [vmem:[#allocation136_spill] sm:$0xff]  ;;  %v13385_v55 = vld [vmem:[#allocation158_spill] sm:$0xff] }
0x2d14   :  { %v8909_v27 = vpack.c.bf16 %v6268_v33, %v6264_v11  ;;  %v8917_v42 = vpack.c.bf16 %v6270_v14, %v6266_v41  ;;  %v8911_v50 = vpack.c.bf16 %v6267_v1, %v6263_v2  ;;  %v8919_v10 = vpack.c.bf16 %v6269_v57, %v6265_v37  ;;  %v13386_v57 = vld [vmem:[#allocation159_spill] sm:$0xff]  ;;  %v13387_v33 = vld [vmem:[#allocation134_spill] sm:$0xff] }
0x2d15   :  { %v6129_v12 = vmul.f32 %v12039_v8, %v13382_v22  ;;  %v6245_v49 = vrot.slane %v6150_v47, 4  ;;  %v6149_v35 = vmul.f32 %v6140_v48, %v13383_v59  ;;  %v6243_v3 = vrot.slane %v6148_v16, 4  ;;  %v6180_v17 = vpop.permute.xlu0 %6179  ;;  %v6176_v54 = vpop.permute.xlu1 %6175  ;;  %v13388_v48 = vld [vmem:[#allocation160_spill] sm:$0xff]  ;;  %v13389_v16 = vld [vmem:[#allocation135_spill] sm:$0xff] }
0x2d16   :  { %8910 = vmatprep.subr.bf16.mxu0 %v8909_v27  ;;  %8918 = vmatprep.subr.bf16.mxu1 %v8917_v42  ;;  %v6183_v4 = vsel %vm411_vm1, %v12117_v60, %v6180_v17  ;;  %v6189_v11 = vsel %vm411_vm1, %v6180_v17, %v12119_v18  ;;  %v6181_v2 = vsel %vm411_vm1, %v12119_v18, %v6176_v54  ;;  %v6246_v28 = vrot.slane %v6151_v0, 4  ;;  %v13390_v42 = vld [vmem:[#allocation161_spill] sm:$0xff] }
0x2d17   :  { %v6127_v8 = vmul.f32 %v12037_v44, %v13384_v6  ;;  %v6192_v37 = vmul.f32 %v6183_v4, %v13385_v55  ;;  %v6193_v1 = vmul.f32 %v6189_v11, %v13386_v57  ;;  %8912 = vmatpush1.bf16.msra.mxu0 %v8911_v50  ;;  %v6128_v14 = vmul.f32 %v12069_v43, %v13387_v33 }
0x2d18   :  { %8920 = vmatpush1.bf16.msra.mxu1 %v8919_v10  ;;  %v6182_v63 = vsel %vm411_vm1, %v6176_v54, %v12117_v60  ;;  %v6190_v47 = vmul.f32 %v6181_v2, %v13388_v48  ;;  %v6130_v18 = vmul.f32 %v12071_v25, %v13389_v16  ;;  %v6273_v44 = vsel %vm853_vm9, %v6129_v12, %v6245_v49  ;;  %v13391_v54 = vld [vmem:[#allocation162_spill] sm:$0xff] }
0x2d19   :  { %v6244_v41 = vrot.slane %v6149_v35, 4  ;;  %v6271_v27 = vsel %vm853_vm9, %v6127_v8, %v6243_v3  ;;  %v6191_v50 = vmul.f32 %v6182_v63, %v13390_v42  ;;  %v6159_v17 = vpop.permute.xlu0 %6158  ;;  %v6155_v4 = vpop.permute.xlu1 %6154  ;;  %v6257_v43 = vrot.slane %v6192_v37, 4  ;;  %v13392_v35 = vld [vmem:[#allocation163_spill] sm:$0xff]  ;;  %v13393_v8 = vld [vmem:[#allocation164_spill] sm:$0xff]  ;;  %v13394_v63 = vld [vmem:[#allocation165_spill] sm:$0xff] }
0x2d1a   :  { %v6162_v0 = vsel %vm2643_vm15, %v12121_v5, %v6159_v17  ;;  %v6168_v60 = vsel %vm2643_vm15, %v6159_v17, %v12123_v7  ;;  %v6160_v10 = vsel %vm2643_vm15, %v12123_v7, %v6155_v4  ;;  %v6258_v25 = vrot.slane %v6193_v1, 4 }
0x2d1b   :  { %v6171_v12 = vmul.f32 %v6162_v0, %v13391_v54  ;;  %v6172_v49 = vmul.f32 %v6168_v60, %v13392_v35  ;;  %v6161_v3 = vsel %vm2643_vm15, %v6155_v4, %v12121_v5  ;;  %v6255_v11 = vrot.slane %v6190_v47, 4  ;;  %v12221_v4 = vld [vmem:[%s12641_s9 + $0x28] ss:$0 sm:$0xff] }
0x2d1c   :  { %v6256_v2 = vrot.slane %v6191_v50, 4  ;;  %v6169_v37 = vmul.f32 %v6160_v10, %v13393_v8  ;;  %v6170_v29 = vmul.f32 %v6161_v3, %v13394_v63  ;;  %v6272_v7 = vsel %vm853_vm9, %v6128_v14, %v6244_v41 }
0x2d1d   :  { %v6277_v16 = vsel %vm853_vm9, %v6171_v12, %v6257_v43  ;;  %v6199_v17 = vpop.permute.xlu0 %6198  ;;  %v6197_v22 = vpop.permute.xlu1 %6196  ;;  %v6274_v1 = vsel %vm853_vm9, %v6130_v18, %v6246_v28  ;;  %v6278_v0 = vsel %vm853_vm9, %v6172_v49, %v6258_v25  ;;  %v12230_v49 = vld [vmem:[%s12641_s9 + $0x30] ss:$0 sm:$0xff] }
0x2d1e   :  { %v6275_v60 = vsel %vm853_vm9, %v6169_v37, %v6255_v11  ;;  %v6203_v5 = vsel %vm13395_vm3, %v6197_v22, %v6199_v17  ;;  %v6276_v47 = vsel %vm853_vm9, %v6170_v29, %v6256_v2  ;;  %v8921_v50 = vpack.c.bf16 %v6278_v0, %v6274_v1  ;;  %13399 = vst [vmem:[#allocation28_spill] sm:$0xff] %v12230_v49  ;;  %v7702_v11 = vld [vmem:[%s13078_s19 + $0x38] sm:$0xf] }
0x2d1f   :  { %v6212_v43 = vmul.f32 %v12221_v4, %v6203_v5  ;;  %v8913_v10 = vpack.c.bf16 %v6276_v47, %v6272_v7  ;;  %v8923_v14 = vpack.c.bf16 %v6277_v16, %v6273_v44  ;;  %v8915_v41 = vpack.c.bf16 %v6275_v60, %v6271_v27  ;;  %v12236_v44 = vld [vmem:[%s12641_s9 + $0x20] ss:$0 sm:$0xff] }
0x2d20   :  { %8922 = vmatprep.subr.bf16.mxu1 %v8921_v50 }
0x2d21   :  { %8914 = vmatprep.subr.bf16.mxu0 %v8913_v10  ;;  %v6201_v28 = vpop.permute.xlu0 %6200  ;;  %8924 = vmatpush1.bf16.msra.mxu1 %v8923_v14  ;;  %v6195_v18 = vpop.permute.xlu1 %6194 }
0x2d22   :  { %v6204_v25 = vsel %vm13396_vm8, %v6199_v17, %v6201_v28  ;;  %v6202_v29 = vsel %vm13397_vm4, %v6195_v18, %v6197_v22  ;;  %v6210_v12 = vsel %vm13398_vm14, %v6201_v28, %v6195_v18  ;;  %8916 = vmatpush1.bf16.msra.mxu0 %v8915_v41  ;;  %v12242_v22 = vld [vmem:[%s12641_s9 + $0x38] ss:$0 sm:$0xff] }
0x2d23   :  { %v6213_v16 = vmul.f32 %v12230_v49, %v6204_v25  ;;  %v6211_v27 = vmul.f32 %v12236_v44, %v6202_v29  ;;  %13400 = vst [vmem:[#allocation31_spill] sm:$0xff] %v12242_v22  ;;  %v6214_v3 = vmul.f32 %v12242_v22, %v6210_v12  ;;  %7703 = vmatprep.subr.msk.mxu0 %vm853_vm9, %v6212_v43  ;;  %v9224_v29 = vld [vmem:[#allocation7] sm:$0xf]  ;;  %v13403_v12 = vmov 1  }
0x2d25   :  { %7706 = vmatprep.subr.msk.mxu1 %vm853_vm9, %v6214_v3 }
0x2d26   :  { %7704 = vmatpush1.msk.msra.mxu0 %vm853_vm9, %v6211_v27  ;;  %7707 = vmatpush1.msk.msra.mxu1 %vm853_vm9, %v6213_v16  ;;  %v9544_v16 = vmov 15  }
0x2d27   :  { %7705 = vmatmul.mubr.msk.f32.vlgmr.msra.gmra.mrb[44].mxu0 %vm863_vm13, %v7702_v11  ;;  %7708 = vmatmul.mubr.msk.f32.vlgmr.msra.gmra.mrb[54].mxu1 %vm863_vm13, %v7702_v11 }
0x2d28   :  { %6777 = vmatprep.mubr.f32.mxu0 %v13077_v61  ;;  %6848 = vmatprep.mubr.f32.mxu1 %v13077_v61 }
0x2d29   :  { %9205 = vset.pattern.permute.xlu0 %v9544_v16 }
0x2d32   :  { %v6281_v2 = vpop.permute.xlu1 %6280 }
0x2dfa   :  { %v6364_v37 = vpop.f32.mrb[44].mxu0  ;;  %v6435_v17 = vpop.f32.mrb[54].mxu1 }
0x2dfb   :  { %v6365_v7 = vadd.f32 %v6364_v37, %v6281_v2  ;;  %v6366_v1 = vpop.f32.mrb[45].mxu0  ;;  %v6436_v0 = vadd.f32 %v6435_v17, %v6281_v2  ;;  %v6437_v60 = vpop.f32.mrb[55].mxu1 }
0x2dfc   :  { %v6367_v10 = vadd.f32 %v6366_v1, %v6281_v2  ;;  %v6438_v28 = vadd.f32 %v6437_v60, %v6281_v2 }
0x2dfd   :  { %vm6440_vm12 = vcmp.ge.f32.partialorder %v6365_v7, 0.0  ;;  %v6444_v5 = vmul.f32 0.2, %v6365_v7  ;;  %vm6442_vm3 = vcmp.ge.f32.partialorder %v6436_v0, 0.0  ;;  %v6446_v47 = vmul.f32 0.2, %v6436_v0 }
0x2dfe   :  { %v6445_v14 = vmul.f32 0.2, %v6367_v10  ;;  %vm6441_vm8 = vcmp.ge.f32.partialorder %v6367_v10, 0.0  ;;  %v6447_v18 = vmul.f32 0.2, %v6438_v28  ;;  %vm6443_vm4 = vcmp.ge.f32.partialorder %v6438_v28, 0.0 }
0x2dff   :  { %v12256_v50 = vsel %vm6440_vm12, %v6365_v7, %v6444_v5  ;;  %v12258_v43 = vsel %vm6442_vm3, %v6436_v0, %v6446_v47  ;;  %vm13404_vm12 = vmmov %vm13398_vm14  ;;  %vm9545_vm3 = vmmov 1  }
0x2e00   :  { %13401 = vst [vmem:[#allocation29_spill] sm:$0xff] %v12258_v43  ;;  %6482 = vrot.lane.b32.xlu0 %v12256_v50, %s9530_s6  ;;  %6550 = vrot.lane.b32.xlu1 %v12258_v43, %s9496_s18  ;;  %v12272_v41 = vsel %vm6441_vm8, %v6367_v10, %v6445_v14  ;;  %v12282_v25 = vsel %vm6443_vm4, %v6438_v28, %v6447_v18  ;;  %vm12602_vm8 = vmpackc.low %vm853_vm9, %vm9545_vm3 }
0x2e01   :  { %13402 = vst [vmem:[#allocation30_spill] sm:$0xff] %v12282_v25 }
0x2e04   :  { %6524 = vrot.lane.b32.xlu0 %v12256_v50, %s9507_s3  ;;  %6592 = vrot.lane.b32.xlu1 %v12258_v43, %s9497_s10 }
0x2e08   :  { %6461 = vrot.lane.b32.xlu0 %v12256_v50, %s9531_s16  ;;  %6588 = vrot.lane.b32.xlu1 %v12256_v50, %s9497_s10 }
0x2e0c   :  { %6503 = vrot.lane.b32.xlu0 %v12256_v50, %s9532_s1  ;;  %6484 = vrot.lane.b32.xlu1 %v12272_v41, %s9530_s6 }
0x2e10   :  { %6546 = vrot.lane.b32.xlu0 %v12256_v50, %s9496_s18  ;;  %6526 = vrot.lane.b32.xlu1 %v12272_v41, %s9507_s3 }
0x2e14   :  { %6479 = vrot.lane.b32.xlu0 %v12282_v25, %s9530_s6  ;;  %6521 = vrot.lane.b32.xlu1 %v12282_v25, %s9507_s3 }
0x2e18   :  { %6455 = vrot.lane.b32.xlu0 %v12282_v25, %s9531_s16  ;;  %6463 = vrot.lane.b32.xlu1 %v12272_v41, %s9531_s16 }
0x2e1c   :  { %6548 = vrot.lane.b32.xlu0 %v12272_v41, %s9496_s18  ;;  %6505 = vrot.lane.b32.xlu1 %v12272_v41, %s9532_s1 }
0x2e20   :  { %6590 = vrot.lane.b32.xlu0 %v12272_v41, %s9497_s10  ;;  %6500 = vrot.lane.b32.xlu1 %v12282_v25, %s9532_s1 }
0x2e24   :  { %6569 = vrot.lane.b32.xlu0 %v12272_v41, %s9533_s4  ;;  %6571 = vrot.lane.b32.xlu1 %v12258_v43, %s9533_s4 }
0x2e28   :  { %6567 = vrot.lane.b32.xlu0 %v12256_v50, %s9533_s4  ;;  %6611 = vrot.lane.b32.xlu1 %v12272_v41, %s9535_s29 }
0x2e2c   :  { %6613 = vrot.lane.b32.xlu0 %v12258_v43, %s9535_s29  ;;  %6609 = vrot.lane.b32.xlu1 %v12256_v50, %s9535_s29 }
0x2e30   :  { %6486 = vrot.lane.b32.xlu0 %v12258_v43, %s9530_s6  ;;  %6528 = vrot.lane.b32.xlu1 %v12258_v43, %s9507_s3 }
0x2e34   :  { %6465 = vrot.lane.b32.xlu0 %v12258_v43, %s9531_s16  ;;  %6507 = vrot.lane.b32.xlu1 %v12258_v43, %s9532_s1 }
0x2e38   :  { %6552 = vrot.lane.b32.xlu0 %v12282_v25, %s9496_s18  ;;  %6594 = vrot.lane.b32.xlu1 %v12282_v25, %s9497_s10 }
0x2e3c   :  { %6573 = vrot.lane.b32.xlu0 %v12282_v25, %s9533_s4  ;;  %6615 = vrot.lane.b32.xlu1 %v12282_v25, %s9535_s29 }
0x2e40   :  { %7246 = vperm.xlu1 %9206, %v9224_v29   ;;  %6695 = vperm.xlu0 %9205, %v12109_v53  }
0x2e44   :  { %9207 = vset.pattern.permute.xlu1 %v13403_v12  ;;  %9208 = vset.pattern.permute.xlu0 %v13403_v12 }
0x2e72   :  { %v6483_v27 = vpop.permute.xlu0 %6482  ;;  %v12331_v3 = vpop.permute.xlu1 %6550 }
0x2e76   :  { %v6525_v11 = vpop.permute.xlu0 %6524  ;;  %v12333_v2 = vpop.permute.xlu1 %6592 }
0x2e7a   :  { %v6462_v37 = vpop.permute.xlu0 %6461  ;;  %v12335_v17 = vpop.permute.xlu1 %6588 }
0x2e7e   :  { %v6504_v7 = vpop.permute.xlu0 %6503  ;;  %v12337_v1 = vpop.permute.xlu1 %6484 }
0x2e7f   :  { %v6488_v47 = vsel %vm2474_vm10, %v6483_v27, %v12337_v1 }
0x2e80   :  { %v6497_v18 = vmul.f32 %v6488_v47, %v13363_v36 }
0x2e82   :  { %v12339_v0 = vpop.permute.xlu0 %6546  ;;  %v12341_v60 = vpop.permute.xlu1 %6526  ;;  %v6635_v54 = vrot.slane %v6497_v18, 4 }
0x2e83   :  { %v6530_v10 = vsel %vm780_vm7, %v6525_v11, %v12341_v60 }
0x2e84   :  { %v6539_v12 = vmul.f32 %v6530_v10, %v13366_v45 }
0x2e86   :  { %v12343_v5 = vpop.permute.xlu0 %6479  ;;  %v12345_v53 = vpop.permute.xlu1 %6521  ;;  %v6647_v10 = vrot.slane %v6539_v12, 4 }
0x2e87   :  { %v6495_v16 = vsel %vm2474_vm10, %v12343_v5, %v6483_v27  ;;  %v6537_v49 = vsel %vm780_vm7, %v12345_v53, %v6525_v11 }
0x2e88   :  { %v6496_v27 = vmul.f32 %v6495_v16, %v13365_v39  ;;  %v6538_v11 = vmul.f32 %v6537_v49, %v13368_v34 }
0x2e8a   :  { %v12351_v14 = vpop.permute.xlu0 %6455  ;;  %v12353_v28 = vpop.permute.xlu1 %6463  ;;  %v6646_v49 = vrot.slane %v6538_v11, 4 }
0x2e8b   :  { %v6467_v29 = vsel %vm2436_vm6, %v6462_v37, %v12353_v28  ;;  %v6474_v36 = vsel %vm2436_vm6, %v12351_v14, %v6462_v37 }
0x2e8c   :  { %v6476_v22 = vmul.f32 %v6467_v29, %v13371_v15  ;;  %v6475_v29 = vmul.f32 %v6474_v36, %v13373_v46  ;;  %v6634_v46 = vrot.slane %v6496_v27, 4  ;;  %v6543_v27 = vmul.f32 %v12272_v41, %v13387_v33 }
0x2e8e   :  { %v6549_v25 = vpop.permute.xlu0 %6548  ;;  %v12364_v35 = vpop.permute.xlu1 %6505  ;;  %v6679_v37 = vsel %vm853_vm9, %v6476_v22, %v6635_v54  ;;  %v6678_v22 = vsel %vm853_vm9, %v6475_v29, %v6634_v46 }
0x2e8f   :  { %v6555_v47 = vsel %vm385_vm0, %v6549_v25, %v12331_v3  ;;  %v6509_v45 = vsel %vm2512_vm11, %v6504_v7, %v12364_v35  ;;  %v6554_v12 = vsel %vm385_vm0, %v12339_v0, %v6549_v25 }
0x2e90   :  { %v6518_v15 = vmul.f32 %v6509_v45, %v13375_v30  ;;  %v6564_v18 = vmul.f32 %v6555_v47, %v13383_v59  ;;  %v6563_v25 = vmul.f32 %v6554_v12, %v13381_v32 }
0x2e92   :  { %v6591_v43 = vpop.permute.xlu0 %6590  ;;  %v12377_v20 = vpop.permute.xlu1 %6500  ;;  %v6683_v57 = vsel %vm853_vm9, %v6518_v15, %v6647_v10  ;;  %v6659_v36 = vrot.slane %v6564_v18, 4  ;;  %v6658_v32 = vrot.slane %v6563_v25, 4 }
0x2e93   :  { %v6597_v39 = vsel %vm411_vm1, %v6591_v43, %v12333_v2  ;;  %v6516_v34 = vsel %vm2512_vm11, %v12377_v20, %v6504_v7  ;;  %v8925_v30 = vpack.c.bf16 %v6683_v57, %v6679_v37  ;;  %v6596_v54 = vsel %vm411_vm1, %v12335_v17, %v6591_v43 }
0x2e94   :  { %v6606_v59 = vmul.f32 %v6597_v39, %v13390_v42  ;;  %v6517_v16 = vmul.f32 %v6516_v34, %v13377_v58  ;;  %v6605_v58 = vmul.f32 %v6596_v54, %v13388_v48  ;;  %v6687_v29 = vsel %vm853_vm9, %v6543_v27, %v6659_v36 }
0x2e95   :  { %8926 = vmatprep.subr.bf16.mxu0 %v8925_v30  ;;  %v6542_v48 = vmul.f32 %v12256_v50, %v13384_v6 }
0x2e96   :  { %v6682_v47 = vsel %vm853_vm9, %v6517_v16, %v6646_v49  ;;  %v6570_v45 = vpop.permute.xlu0 %6569  ;;  %v12394_v7 = vpop.permute.xlu1 %6571  ;;  %v6671_v10 = vrot.slane %v6606_v59, 4 }
0x2e97   :  { %v6576_v57 = vsel %vm2643_vm15, %v6570_v45, %v12394_v7  ;;  %v8927_v42 = vpack.c.bf16 %v6682_v47, %v6678_v22  ;;  %v6686_v33 = vsel %vm853_vm9, %v6542_v48, %v6658_v32  ;;  %v13405_v48 = vld [vmem:[#allocation159_spill] sm:$0xff] }
0x2e98   :  { %v6585_v43 = vmul.f32 %v6576_v57, %v13394_v63  ;;  %v6670_v63 = vrot.slane %v6605_v58, 4 }
0x2e99   :  { %8928 = vmatpush1.bf16.msra.mxu0 %v8927_v42 }
0x2e9a   :  { %v12402_v11 = vpop.permute.xlu0 %6567  ;;  %v6612_v15 = vpop.permute.xlu1 %6611  ;;  %v6691_v18 = vsel %vm853_vm9, %v6585_v43, %v6671_v10 }
0x2e9b   :  { %v6575_v37 = vsel %vm2643_vm15, %v12402_v11, %v6570_v45  ;;  %v8929_v12 = vpack.c.bf16 %v6691_v18, %v6687_v29 }
0x2e9c   :  { %v6584_v39 = vmul.f32 %v6575_v37, %v13393_v8 }
0x2e9d   :  { %8930 = vmatprep.subr.bf16.mxu0 %v8929_v12 }
0x2e9e   :  { %v6690_v41 = vsel %vm853_vm9, %v6584_v39, %v6670_v63  ;;  %v12413_v34 = vpop.permute.xlu0 %6613  ;;  %v12415_v30 = vpop.permute.xlu1 %6609 }
0x2e9f   :  { %v6618_v46 = vsel %vm13398_vm14, %v6612_v15, %v12413_v34  ;;  %v6617_v49 = vsel %vm13404_vm12, %v12415_v30, %v6612_v15  ;;  %v8931_v59 = vpack.c.bf16 %v6690_v41, %v6686_v33 }
0x2ea0   :  { %v6627_v6 = vmul.f32 %v12221_v4, %v6618_v46  ;;  %v6626_v8 = vmul.f32 %v12236_v44, %v6617_v49  ;;  %v12435_v4 = vld [vmem:[%s13078_s19 + $0x3c] sm:$0xf]  ;;  %s13464_s19 = sld [smem:[#allocation174_spill]] }
0x2ea1   :  { %8932 = vmatpush1.bf16.msra.mxu0 %v8931_v59  ;;  %v13408_v59 = vld [vmem:[#allocation29_spill] sm:$0xff] }
0x2ea2   :  { %v6487_v50 = vpop.permute.xlu0 %6486  ;;  %7710 = vmatprep.subr.msk.mxu0 %vm853_vm9, %v6627_v6  ;;  %v6529_v16 = vpop.permute.xlu1 %6528 }
0x2ea3   :  { %v6489_v54 = vsel %vm2474_vm10, %v12337_v1, %v6487_v50  ;;  %v6490_v22 = vsel %vm2474_vm10, %v6487_v50, %v12343_v5  ;;  %v6531_v25 = vsel %vm780_vm7, %v12341_v60, %v6529_v16  ;;  %v6532_v36 = vsel %vm780_vm7, %v6529_v16, %v12345_v53  ;;  %v13410_v16 = vld [vmem:[#allocation163_spill] sm:$0xff] }
0x2ea4   :  { %v6498_v44 = vmul.f32 %v6489_v54, %v13364_v31  ;;  %v6499_v47 = vmul.f32 %v6490_v22, %v13370_v38  ;;  %v6540_v1 = vmul.f32 %v6531_v25, %v13367_v24  ;;  %v6541_v45 = vmul.f32 %v6532_v36, %v13369_v13  ;;  %v13411_v22 = vld [vmem:[#allocation135_spill] sm:$0xff]  ;;  %v13412_v25 = vld [vmem:[#allocation30_spill] sm:$0xff] }
0x2ea5   :  { %7711 = vmatpush1.msk.msra.mxu0 %vm853_vm9, %v6626_v8  ;;  %v13409_v8 = vld [vmem:[#allocation162_spill] sm:$0xff]  ;;  %v6545_v36 = vmul.f32 %v13412_v25, %v13411_v22 }
0x2ea6   :  { %v6636_v5 = vrot.slane %v6498_v44, 4  ;;  %v6637_v60 = vrot.slane %v6499_v47, 4  ;;  %v6648_v57 = vrot.slane %v6540_v1, 4  ;;  %v6649_v42 = vrot.slane %v6541_v45, 4  ;;  %v6466_v53 = vpop.permute.xlu0 %6465  ;;  %7712 = vmatmul.mubr.msk.f32.vlgmr.msra.gmra.mrb[46].mxu0 %vm863_vm13, %v12435_v4  ;;  %8942 = vmatprep.subr.bf16.mxu0 %v13184_v23  ;;  %v6508_v58 = vpop.permute.xlu1 %6507  ;;  %v13414_v47 = vld [vmem:[#allocation102_spill] sm:$0xff]  ;;  %v13415_v1 = vld [vmem:[#allocation103_spill] sm:$0xff] }
0x2ea7   :  { %v6468_v31 = vsel %vm2436_vm6, %v12353_v28, %v6466_v53  ;;  %v6469_v24 = vsel %vm2436_vm6, %v6466_v53, %v12351_v14  ;;  %v6510_v13 = vsel %vm2512_vm11, %v12364_v35, %v6508_v58  ;;  %v6511_v38 = vsel %vm2512_vm11, %v6508_v58, %v12377_v20  ;;  %8944 = vmatpush1.bf16.msra.mxu0 %v13185_v56  ;;  %v13417_v53 = vld [vmem:[#allocation31_spill] sm:$0xff] }
0x2ea8   :  { %v6477_v10 = vmul.f32 %v6468_v31, %v13372_v62  ;;  %v6478_v43 = vmul.f32 %v6469_v24, %v13374_v19  ;;  %v6519_v27 = vmul.f32 %v6510_v13, %v13376_v21  ;;  %v6520_v32 = vmul.f32 %v6511_v38, %v13378_v26  ;;  %8946 = vmatprep.subr.bf16.mxu0 %v13186_v9  ;;  %v13419_v31 = vld [vmem:[#allocation105_spill] sm:$0xff]  ;;  %v13420_v24 = vld [vmem:[#allocation28_spill] sm:$0xff]  ;;  %v13421_v38 = vld [vmem:[#allocation106_spill] sm:$0xff] }
0x2ea9   :  { %6931 = vmatprep.mubr.f32.mxu0 %v13077_v61 }
0x2eaa   :  { %v6680_v14 = vsel %vm853_vm9, %v6477_v10, %v6636_v5  ;;  %v6684_v35 = vsel %vm853_vm9, %v6519_v27, %v6648_v57  ;;  %v6553_v28 = vpop.permute.xlu0 %6552  ;;  %v6595_v20 = vpop.permute.xlu1 %6594  ;;  %v6681_v15 = vsel %vm853_vm9, %v6478_v43, %v6637_v60  ;;  %v6685_v62 = vsel %vm853_vm9, %v6520_v32, %v6649_v42  ;;  %v13422_v10 = vld [vmem:[#allocation107_spill] sm:$0xff]  ;;  %v13424_v43 = vld [vmem:[#allocation112_spill] sm:$0xff]  ;;  %v13426_v32 = vld [vmem:[#allocation113_spill] sm:$0xff] }
0x2eab   :  { %v6556_v19 = vsel %vm385_vm0, %v12331_v3, %v6553_v28  ;;  %v6562_v21 = vsel %vm385_vm0, %v6553_v28, %v12339_v0  ;;  %v6598_v26 = vsel %vm411_vm1, %v12333_v2, %v6595_v20  ;;  %v6604_v29 = vsel %vm411_vm1, %v6595_v20, %v12335_v17  ;;  %8948 = vmatpush1.bf16.msra.mxu0 %v13187_v52  ;;  %v13406_v3 = vld [vmem:[#allocation101_spill] sm:$0xff]  ;;  %vm13413_vm0 = vmmov %vm13404_vm12  ;;  %v13425_v27 = vld [vmem:[#allocation108_spill] sm:$0xff] }
0x2eac   :  { %v6565_v18 = vmul.f32 %v6556_v19, %v13379_v51  ;;  %v6566_v37 = vmul.f32 %v6562_v21, %v13380_v40  ;;  %v6607_v12 = vmul.f32 %v6598_v26, %v13385_v55  ;;  %v6608_v63 = vmul.f32 %v6604_v29, %v13405_v48  ;;  %8950 = vmatprep.subr.bf16.mxu0 %v13406_v3  ;;  %v13407_v55 = vld [vmem:[#allocation137_spill] sm:$0xff]  ;;  %vm13416_vm1 = vmmov %vm13413_vm0  ;;  %v13429_v28 = vld [vmem:[#allocation110_spill] sm:$0xff] }
0x2ead   :  { %v8933_v39 = vpack.c.bf16 %v6685_v62, %v6681_v15  ;;  %v8935_v0 = vpack.c.bf16 %v6684_v35, %v6680_v14  ;;  %v6544_v6 = vmul.f32 %v13408_v59, %v13407_v55  ;;  %v13427_v14 = vld [vmem:[#allocation109_spill] sm:$0xff]  ;;  %v13428_v35 = vld [vmem:[#allocation114_spill] sm:$0xff]  ;;  %v13430_v20 = vld [vmem:[#allocation115_spill] sm:$0xff]  ;;  %v13435_v21 = vmov 0.0|0.0  }
0x2eae   :  { %v6660_v33 = vrot.slane %v6565_v18, 4  ;;  %v6661_v41 = vrot.slane %v6566_v37, 4  ;;  %v6672_v2 = vrot.slane %v6607_v12, 4  ;;  %v6673_v46 = vrot.slane %v6608_v63, 4  ;;  %v6574_v49 = vpop.permute.xlu0 %6573  ;;  %v6616_v17 = vpop.permute.xlu1 %6615  ;;  %v13431_v15 = vld [vmem:[#allocation125_spill] sm:$0xff]  ;;  %v13433_v62 = vld [vmem:[#allocation127_spill] sm:$0xff] }
0x2eaf   :  { %8934 = vmatprep.subr.bf16.mxu1 %v8933_v39  ;;  %v6577_v51 = vsel %vm2643_vm15, %v12394_v7, %v6574_v49  ;;  %v6583_v40 = vsel %vm2643_vm15, %v6574_v49, %v12402_v11  ;;  %v6625_v44 = vsel %vm13413_vm0, %v6616_v17, %v12415_v30  ;;  %8952 = vmatpush1.bf16.msra.mxu0 %v13414_v47  ;;  %v13418_v30 = vld [vmem:[#allocation104_spill] sm:$0xff]  ;;  %v13434_v19 = vld [vmem:[#allocation117_spill] sm:$0xff]  ;;  %v13436_v26 = vld [vmem:[#allocation130_spill] sm:$0xff] }
0x2eb0   :  { %v6586_v50 = vmul.f32 %v6577_v51, %v13409_v8  ;;  %v6587_v54 = vmul.f32 %v6583_v40, %v13410_v16  ;;  %8936 = vmatpush1.bf16.msra.mxu1 %v8935_v0  ;;  %v6688_v7 = vsel %vm853_vm9, %v6544_v6, %v6660_v33  ;;  %8954 = vmatprep.subr.bf16.mxu0 %v13415_v1  ;;  %v13437_v29 = vld [vmem:[#allocation118_spill] sm:$0xff]  ;;  %v13439_v37 = vld [vmem:[#allocation119_spill] sm:$0xff]  ;;  %v13440_v12 = vld [vmem:[#allocation120_spill] sm:$0xff] }
0x2eb1   :  { %v6689_v45 = vsel %vm853_vm9, %v6545_v36, %v6661_v41  ;;  %v6619_v42 = vsel %vm13416_vm1, %v12413_v34, %v6616_v17  ;;  %v6629_v58 = vmul.f32 %v13417_v53, %v6625_v44  ;;  %v13423_v34 = vld [vmem:[#allocation111_spill] sm:$0xff]  ;;  %v13438_v18 = vld [vmem:[#allocation86_spill] sm:$0xff]  ;;  %v13442_v63 = vld [vmem:[#allocation121_spill] sm:$0xff] }
0x2eb2   :  { %v6692_v11 = vsel %vm853_vm9, %v6586_v50, %v6672_v2  ;;  %v6693_v5 = vsel %vm853_vm9, %v6587_v54, %v6673_v46  ;;  %v6628_v13 = vmul.f32 %v13420_v24, %v6619_v42  ;;  %v13441_v48 = vld [vmem:[#allocation87_spill] sm:$0xff]  ;;  %v13444_v0 = vld [vmem:[#allocation122_spill] sm:$0xff]  ;;  %v13446_v41 = vld [vmem:[#allocation124_spill] sm:$0xff] }
0x2eb3   :  { %v8937_v60 = vpack.c.bf16 %v6693_v5, %v6689_v45  ;;  %v8939_v57 = vpack.c.bf16 %v6692_v11, %v6688_v7  ;;  %8956 = vmatpush1.bf16.msra.mxu0 %v13418_v30  ;;  %v13443_v39 = vld [vmem:[#allocation131_spill] sm:$0xff]  ;;  %v13447_v2 = vld [vmem:[#allocation126_spill] sm:$0xff]  ;;  %v13448_v46 = vld [vmem:[#allocation128_spill] sm:$0xff] }
0x2eb4   :  { %8958 = vmatprep.subr.bf16.mxu0 %v13419_v31  ;;  %v13445_v33 = vld [vmem:[#allocation123_spill] sm:$0xff]  ;;  %v13449_v53 = vld [vmem:[#allocation132_spill] sm:$0xff] }
0x2eb5   :  { %8938 = vmatprep.subr.bf16.mxu1 %v8937_v60 }
0x2eb6   :  { %8940 = vmatpush1.bf16.msra.mxu1 %v8939_v57 }
0x2eb7   :  { %7713 = vmatprep.subr.msk.mxu1 %vm853_vm9, %v6629_v58  ;;  %8960 = vmatpush1.bf16.msra.mxu0 %v13421_v38  ;;  %v13450_v58 = vrot.slane %v13449_v53, 4 }
0x2eb8   :  { %8962 = vmatprep.subr.bf16.mxu0 %v13422_v10 }
0x2eba   :  { %7714 = vmatpush1.msk.msra.mxu1 %vm853_vm9, %v6628_v13  ;;  %v13451_v13 = vld [vmem:[#allocation25_spill] sm:$0xff] }
0x2ebb   :  { %7715 = vmatmul.mubr.msk.f32.vlgmr.msra.gmra.mrb[56].mxu1 %vm863_vm13, %v12435_v4  ;;  %8974 = vmatprep.subr.bf16.mxu1 %v13423_v34  ;;  %v13432_v4 = vld [vmem:[#allocation116_spill] sm:$0xff] }
0x2ebc   :  { %8976 = vmatpush1.bf16.msra.mxu1 %v13424_v43  ;;  %7002 = vmatprep.mubr.f32.mxu1 %v13077_v61 }
0x2ebd   :  { %8964 = vmatpush1.bf16.msra.mxu0 %v13425_v27  ;;  %8978 = vmatprep.subr.bf16.mxu1 %v13426_v32 }
0x2ebe   :  { %8966 = vmatprep.subr.bf16.mxu0 %v13427_v14 }
0x2ebf   :  { %v6696_v59 = vpop.permute.xlu0 %6695 }
0x2ec0   :  { %8980 = vmatpush1.bf16.msra.mxu1 %v13428_v35 }
0x2ec1   :  { %8968 = vmatpush1.bf16.msra.mxu0 %v13429_v28  ;;  %8982 = vmatprep.subr.bf16.mxu1 %v13430_v20 }
0x2ec2   :  { %8970 = vmatprep.subr.bf16.mxu0 %v13431_v15 }
0x2ec4   :  { %8984 = vmatpush1.bf16.msra.mxu1 %v13432_v4 }
0x2ec5   :  { %8972 = vmatpush1.bf16.msra.mxu0 %v13433_v62  ;;  %8986 = vmatprep.subr.bf16.mxu1 %v13434_v19 }
0x2ec6   :  { %9005 = vmatprep.subr.bf16.mxu0 %v13435_v21 }
0x2ec8   :  { %6932 = vmatmul.mubr.f32.vlgmr.msra.gmra.mrb[48].mxu0 %v13436_v26  ;;  %8988 = vmatpush1.bf16.msra.mxu1 %v13437_v29 }
0x2ec9   :  { %9007 = vmatpush3.bf16.msra.mxu0 %v13438_v18  ;;  %8990 = vmatprep.subr.bf16.mxu1 %v13439_v37  ;;  %v7411_v18 = vld [vmem:[%s12640_s8] sm:$0xf] }
0x2eca   :  { %9008 = vmatprep.subr.bf16.mxu0 %v13435_v21  ;;  %8332 = vmatprep.mubr.msk.f32.mxu0 %vm9499_vm2, %v13077_v61 }
0x2ecb   :  { %7414 = vperm.xlu1 %9207, %v7411_v18  }
0x2ecc   :  { %8992 = vmatpush1.bf16.msra.mxu1 %v13440_v12 }
0x2ecd   :  { %9010 = vmatpush3.bf16.msra.mxu0 %v13441_v48  ;;  %8994 = vmatprep.subr.bf16.mxu1 %v13442_v63 }
0x2ece   :  { %9044 = vmatprep.subr.bf16.mxu0 %v13423_v34 }
0x2ed0   :  { %8333 = vmatmul.mubr.msk.f32.vlgmr.msra.gmra.mrb[50].mxu0 %vm671_vm5, %v13443_v39  ;;  %8996 = vmatpush1.bf16.msra.mxu1 %v13444_v0 }
0x2ed1   :  { %8998 = vmatprep.subr.bf16.mxu1 %v13445_v33  ;;  %9046 = vmatpush1.bf16.msra.mxu0 %v13424_v43  ;;  %v13453_v43 = vld [vmem:[#allocation26_spill] sm:$0xff] }
0x2ed2   :  { %9048 = vmatprep.subr.bf16.mxu0 %v13426_v32  ;;  %7216 = vmatprep.mubr.f32.mxu0 %v13077_v61 }
0x2ed4   :  { %9000 = vmatpush1.bf16.msra.mxu1 %v13446_v41 }
0x2ed5   :  { %9002 = vmatprep.subr.bf16.mxu1 %v13447_v2  ;;  %9050 = vmatpush1.bf16.msra.mxu0 %v13428_v35  ;;  %v13455_v35 = vld [vmem:[#allocation27_spill] sm:$0xff] }
0x2ed6   :  { %9052 = vmatprep.subr.bf16.mxu0 %v13430_v20 }
0x2ed8   :  { %9004 = vmatpush1.bf16.msra.mxu1 %v13448_v46 }
0x2ed9   :  { %9012 = vmatprep.subr.bf16.mxu1 %v13184_v23  ;;  %9054 = vmatpush1.bf16.msra.mxu0 %v13432_v4 }
0x2eda   :  { %9056 = vmatprep.subr.bf16.mxu0 %v13434_v19 }
0x2edb   :  { %7003 = vmatmul.mubr.f32.vlgmr.msra.gmra.mrb[58].mxu1 %v13436_v26 }
0x2edc   :  { %9014 = vmatpush1.bf16.msra.mxu1 %v13185_v56  ;;  %7145 = vmatprep.mubr.f32.mxu1 %v13077_v61 }
0x2edd   :  { %9016 = vmatprep.subr.bf16.mxu1 %v13186_v9  ;;  %9058 = vmatpush1.bf16.msra.mxu0 %v13437_v29  ;;  %v7244_v29 = vld [vmem:[#allocation6 + $0x4] sm:$0xf] }
0x2ede   :  { %9060 = vmatprep.subr.bf16.mxu0 %v13439_v37  ;;  %v7247_v37 = vpop.permute.xlu1 %7246 }
0x2ee0   :  { %9018 = vmatpush1.bf16.msra.mxu1 %v13187_v52 }
0x2ee1   :  { %9020 = vmatprep.subr.bf16.mxu1 %v13406_v3  ;;  %9062 = vmatpush1.bf16.msra.mxu0 %v13440_v12 }
0x2ee2   :  { %9064 = vmatprep.subr.bf16.mxu0 %v13442_v63 }
0x2ee4   :  { %9022 = vmatpush1.bf16.msra.mxu1 %v13414_v47 }
0x2ee5   :  { %9024 = vmatprep.subr.bf16.mxu1 %v13415_v1  ;;  %9066 = vmatpush1.bf16.msra.mxu0 %v13444_v0 }
0x2ee6   :  { %9068 = vmatprep.subr.bf16.mxu0 %v13445_v33 }
0x2ee8   :  { %9026 = vmatpush1.bf16.msra.mxu1 %v13418_v30 }
0x2ee9   :  { %9028 = vmatprep.subr.bf16.mxu1 %v13419_v31  ;;  %9070 = vmatpush1.bf16.msra.mxu0 %v13446_v41 }
0x2eea   :  { %9072 = vmatprep.subr.bf16.mxu0 %v13447_v2 }
0x2eec   :  { %9030 = vmatpush1.bf16.msra.mxu1 %v13421_v38  ;;  %v13452_v38 = vrot.slane %v13451_v13, 4 }
0x2eed   :  { %9032 = vmatprep.subr.bf16.mxu1 %v13422_v10  ;;  %9074 = vmatpush1.bf16.msra.mxu0 %v13448_v46 }
0x2ef0   :  { %9034 = vmatpush1.bf16.msra.mxu1 %v13425_v27  ;;  %v13454_v27 = vrot.slane %v13453_v43, 4 }
0x2ef1   :  { %9036 = vmatprep.subr.bf16.mxu1 %v13427_v14 }
0x2ef4   :  { %9038 = vmatpush1.bf16.msra.mxu1 %v13429_v28  ;;  %v13456_v28 = vrot.slane %v13455_v35, 4 }
0x2ef5   :  { %9040 = vmatprep.subr.bf16.mxu1 %v13431_v15 }
0x2ef8   :  { %9042 = vmatpush1.bf16.msra.mxu1 %v13433_v62 }
0x2f79   :  { %v6779_v23 = vpop.f32.mrb[46].mxu0 }
0x2f7a   :  { %v6781_v56 = vpop.f32.mrb[47].mxu0  ;;  %v6780_v6 = vadd.f32 %v6779_v23, %v6696_v59 }
0x2f7b   :  { %v6782_v8 = vadd.f32 %v6781_v56, %v6696_v59  ;;  %v13457_v56 = vld [vmem:[#allocation100_spill] sm:$0xff] }
0x2f7c   :  { %v6859_v54 = vmul.f32 0.2, %v6780_v6  ;;  %vm6855_vm2 = vcmp.ge.f32.partialorder %v6780_v6, 0.0 }
0x2f7d   :  { %v6860_v22 = vmul.f32 0.2, %v6782_v8  ;;  %vm6856_vm5 = vcmp.ge.f32.partialorder %v6782_v8, 0.0 }
0x2f7e   :  { %v6863_v44 = vsel %vm6855_vm2, %v6780_v6, %v6859_v54  ;;  %v13461_v6 = vld [vmem:[#allocation133_spill] sm:$0xff] }
0x2f7f   :  { %v6864_v47 = vsel %vm6856_vm5, %v6782_v8, %v6860_v22  ;;  %v7235_v30 = vsel %vm853_vm9, %v6863_v44, %v13450_v58  ;;  %v13463_v54 = vld [vmem:[#allocation77_spill] sm:$0xff] }
0x2f80   :  { %v7236_v10 = vsel %vm853_vm9, %v6864_v47, %v13452_v38  ;;  %v7410_v47 = vld [vmem:[#allocation10] sm:$0xf] }
0x2f8e   :  { %v6850_v9 = vpop.f32.mrb[56].mxu1 }
0x2f8f   :  { %v6852_v52 = vpop.f32.mrb[57].mxu1  ;;  %v6851_v50 = vadd.f32 %v6850_v9, %v6696_v59 }
0x2f90   :  { %v6853_v16 = vadd.f32 %v6852_v52, %v6696_v59 }
0x2f91   :  { %v6861_v25 = vmul.f32 0.2, %v6851_v50  ;;  %vm6857_vm7 = vcmp.ge.f32.partialorder %v6851_v50, 0.0 }
0x2f92   :  { %v6862_v36 = vmul.f32 0.2, %v6853_v16  ;;  %vm6858_vm11 = vcmp.ge.f32.partialorder %v6853_v16, 0.0 }
0x2f93   :  { %v6865_v7 = vsel %vm6857_vm7, %v6851_v50, %v6861_v25  ;;  %v13462_v50 = vld [vmem:[#allocation97_spill] sm:$0xff] }
0x2f94   :  { %v6866_v11 = vsel %vm6858_vm11, %v6853_v16, %v6862_v36  ;;  %v7237_v32 = vsel %vm853_vm9, %v6865_v7, %v13454_v27  ;;  %v13465_v36 = vld [vmem:[#allocation129_spill] sm:$0xff] }
0x2f95   :  { %v7238_v20 = vsel %vm853_vm9, %v6866_v11, %v13456_v28  ;;  %v13466_v11 = vld [vmem:[#allocation98_spill] sm:$0xff] }
0x2f9b   :  { %v6933_v3 = vpop.f32.mrb[48].mxu0 }
0x2f9c   :  { %v6935_v49 = vpop.f32.mrb[49].mxu0 }
0x2fa3   :  { %v7077_v17 = vpop.f32.mrb[50].mxu0 }
0x2fa4   :  { %v8334_v51 = vpop.f32.mrb[51].mxu0  ;;  %7146 = vmatmul.mubr.f32.vlgmr.msra.gmra.mrb[60].mxu1 %v7077_v17  ;;  %7217 = vmatmul.mubr.f32.vlgmr.msra.gmra.mrb[52].mxu0 %v7077_v17 }
0x2fa5   :  { %7316 = vmatprep.mubr.f32.mxu1 %v13077_v61  ;;  %7497 = vmatprep.mubr.f32.mxu0 %v13077_v61 }
0x2fae   :  { %v7004_v40 = vpop.f32.mrb[58].mxu1 }
0x2faf   :  { %v7006_v55 = vpop.f32.mrb[59].mxu1 }
0x3077   :  { %v7147_v1 = vpop.f32.mrb[60].mxu1  ;;  %v7218_v45 = vpop.f32.mrb[52].mxu0 }
0x3078   :  { %v7227_v5 = vrot.slane %v7147_v1, 4  ;;  %v7229_v60 = vrot.slane %v7218_v45, 4  ;;  %v7149_v57 = vpop.f32.mrb[61].mxu1  ;;  %v7220_v42 = vpop.f32.mrb[53].mxu0  ;;  %v13467_v45 = vld [vmem:[#allocation99_spill] sm:$0xff] }
0x3079   :  { %v7228_v31 = vrot.slane %v7149_v57, 4  ;;  %v7230_v24 = vrot.slane %v7220_v42, 4 }
0x307a   :  { %v7239_v34 = vsel %vm853_vm9, %v6933_v3, %v7227_v5  ;;  %v7241_v14 = vsel %vm853_vm9, %v7004_v40, %v7229_v60  ;;  %v13458_v3 = vld [vmem:[#allocation88_spill] sm:$0xff]  ;;  %v7415_v60 = vpop.permute.xlu1 %7414 }
0x307b   :  { %v9077_v15 = vpack.c.bf16 %v7239_v34, %v7235_v30  ;;  %v9081_v4 = vpack.c.bf16 %v7241_v14, %v7237_v32  ;;  %v7240_v62 = vsel %vm853_vm9, %v6935_v49, %v7228_v31  ;;  %v7242_v19 = vsel %vm853_vm9, %v7006_v55, %v7230_v24 }
0x307c   :  { %v9075_v21 = vpack.c.bf16 %v7240_v62, %v7236_v10  ;;  %v9079_v26 = vpack.c.bf16 %v7242_v19, %v7238_v20  ;;  %vm7417_vm9 = vcmask 97280  }
0x307e   :  { %9076 = vmatprep.subr.bf16.mxu1 %v9075_v21 }
0x307f   :  { %9078 = vmatpush1.bf16.msra.mxu1 %v9077_v15 }
0x3080   :  { %9080 = vmatprep.subr.bf16.mxu1 %v9079_v26 }
0x3082   :  { %7717 = vmatmul.mubr.msk.f32.vlgmr.msra.gmra.mrb[62].mxu1 %vm2474_vm10, %v7244_v29 }
0x3083   :  { %9082 = vmatpush1.bf16.msra.mxu1 %v9081_v4  ;;  %7387 = vmatprep.mubr.f32.mxu1 %v13077_v61 }
0x3086   :  { %7718 = vmatmul.mubr.msk.f32.vlgmr.msra.gmra.mrb[64].mxu1 %vm2474_vm10, %v7244_v29 }
0x3087   :  { %7568 = vmatprep.mubr.f32.mxu1 %v13077_v61 }
0x3155   :  { %v7318_v12 = vpop.f32.mrb[62].mxu1 }
0x3156   :  { %v7319_v48 = vadd.f32 %v7318_v12, %v7247_v37  ;;  %v7320_v63 = vpop.f32.mrb[63].mxu1 }
0x3157   :  { %v7321_v39 = vadd.f32 %v7320_v63, %v7247_v37 }
0x3158   :  { %vm7394_vm13 = vcmp.ge.f32.partialorder %v7319_v48, 0.0  ;;  %v7398_v0 = vmul.f32 0.2, %v7319_v48 }
0x3159   :  { %vm7395_vm15 = vcmp.ge.f32.partialorder %v7321_v39, 0.0  ;;  %v7399_v33 = vmul.f32 0.2, %v7321_v39  ;;  %v7389_v41 = vpop.f32.mrb[64].mxu1 }
0x315a   :  { %v7402_v2 = vsel %vm7394_vm13, %v7319_v48, %v7398_v0  ;;  %v7390_v46 = vadd.f32 %v7389_v41, %v7247_v37  ;;  %v7391_v23 = vpop.f32.mrb[65].mxu1 }
0x315b   :  { %v7406_v61 = vadd.f32 %v7402_v2, %v13457_v56  ;;  %v7403_v9 = vsel %vm7395_vm15, %v7321_v39, %v7399_v33  ;;  %v7392_v52 = vadd.f32 %v7391_v23, %v7247_v37 }
0x315c   :  { %v7407_v49 = vadd.f32 %v7403_v9, %v13458_v3  ;;  %vm7396_vm10 = vcmp.ge.f32.partialorder %v7390_v46, 0.0  ;;  %v7400_v17 = vmul.f32 0.2, %v7390_v46 }
0x315d   :  { %vm7397_vm6 = vcmp.ge.f32.partialorder %v7392_v52, 0.0  ;;  %v7401_v51 = vmul.f32 0.2, %v7392_v52  ;;  %v9086_v16 = vpack.c.bf16 %v7406_v61, %v13462_v50 }
0x315e   :  { %v7603_v55 = vcombine.low %v7406_v61, %v7407_v49  ;;  %v7404_v59 = vsel %vm7396_vm10, %v7390_v46, %v7400_v17  ;;  %v9083_v8 = vpack.c.bf16 %v7407_v49, %v13461_v6 }
0x315f   :  { %v7408_v22 = vadd.f32 %v7404_v59, %v13463_v54  ;;  %v7405_v25 = vsel %vm7397_vm6, %v7392_v52, %v7401_v51 }
0x3160   :  { %7607 = vst [vmem:[%s13464_s19] sm:$0xff] %v7603_v55  ;;  %v7409_v44 = vadd.f32 %v7405_v25, %v13465_v36  ;;  %9085 = vmatprep.subr.msk.bf16.mxu0 %vm12602_vm8, %v9083_v8 }
0x3161   :  { %9088 = vmatpush1.bf16.msk.msra.mxu0 %vm12602_vm8, %v9086_v16  ;;  %v9092_v5 = vpack.c.bf16 %v7408_v22, %v13467_v45 }
0x3162   :  { %v7604_v7 = vcombine.low %v7408_v22, %v7409_v44  ;;  %v9089_v1 = vpack.c.bf16 %v7409_v44, %v13466_v11 }
0x3164   :  { %7608 = vst [vmem:[%s13464_s19 + $0x8] sm:$0xff] %v7604_v7  ;;  %9091 = vmatprep.subr.msk.bf16.mxu1 %vm12602_vm8, %v9089_v1  ;;  %7721 = vmatmul.mubr.msk.f32.vlgmr.msra.gmra.mrb[54].mxu0 %vm7417_vm9, %v7410_v47 }
0x3165   :  { %9094 = vmatpush1.bf16.msk.msra.mxu1 %vm12602_vm8, %v9092_v5 }
0x3168   :  { %7724 = vmatmul.mubr.msk.f32.vlgmr.msra.gmra.mrb[66].mxu1 %vm7417_vm9, %v7410_v47 }
0x3237   :  { %v7499_v57 = vpop.f32.mrb[54].mxu0 }
0x3238   :  { %v7500_v42 = vadd.f32 %v7499_v57, %v7415_v60  ;;  %v7501_v53 = vpop.f32.mrb[55].mxu0 }
0x3239   :  { %v7502_v58 = vadd.f32 %v7501_v53, %v7415_v60 }
0x323a   :  { %vm7575_vm4 = vcmp.ge.f32.partialorder %v7500_v42, 0.0  ;;  %v7579_v30 = vmul.f32 0.2, %v7500_v42 }
0x323b   :  { %v7570_v31 = vpop.f32.mrb[66].mxu1  ;;  %vm7576_vm14 = vcmp.ge.f32.partialorder %v7502_v58, 0.0  ;;  %v7580_v24 = vmul.f32 0.2, %v7502_v58 }
0x323c   :  { %v7571_v13 = vadd.f32 %v7570_v31, %v7415_v60  ;;  %v7583_v38 = vsel %vm7575_vm4, %v7500_v42, %v7579_v30  ;;  %v7572_v10 = vpop.f32.mrb[67].mxu1 }
0x323d   :  { %v7584_v34 = vsel %vm7576_vm14, %v7502_v58, %v7580_v24  ;;  %v7573_v43 = vadd.f32 %v7572_v10, %v7415_v60 }
0x323e   :  { %vm7577_vm12 = vcmp.ge.f32.partialorder %v7571_v13, 0.0  ;;  %v7581_v27 = vmul.f32 0.2, %v7571_v13  ;;  %v7591_v32 = vcombine.low %v7583_v38, %v7584_v34 }
0x323f   :  { %vm7578_vm0 = vcmp.ge.f32.partialorder %v7573_v43, 0.0  ;;  %v7582_v14 = vmul.f32 0.2, %v7573_v43 }
0x3240   :  { %7595 = vst [vmem:[%s13468_s12] sm:$0xff] %v7591_v32  ;;  %v7585_v35 = vsel %vm7577_vm12, %v7571_v13, %v7581_v27 }
0x3241   :  { %v7586_v28 = vsel %vm7578_vm0, %v7573_v43, %v7582_v14 }
0x3242   :  { %v7592_v20 = vcombine.low %v7585_v35, %v7586_v28 }
0x3244   :  { %7596 = vst [vmem:[%s13468_s12 + $0x8] sm:$0xff] %v7592_v20 }
0x3245   :  { %7621 = vsyncpa [#allocation3], 1 }
0x3246   :  { %7622 = vsyncpa [#allocation5], 1 }
0x3247   :  { %7623 = vsyncpa [#allocation8], 1 }
0x3248   :  { %7624 = vsyncpa [#allocation11], 1 }
0x3249   :  { %7625 = vsyncpa [#allocation14], 1 }
0x324a   :  { %7626 = vsyncpa [#allocation17], 1 }

</bundles_post_ra>
